<compile_context>
chip_gen: v7x
topology: tpu7x:2x2x1
jax: 0.10.0
libtpu: 0.0.40
codegen_flags: <defaults>
</compile_context>

<pallas_src>
import jax
import jax.numpy as jnp
from jax import lax
from jax.experimental import pallas as pl
from jax.experimental.pallas import tpu as pltpu

# ------------------------- problem sizes (small) -------------------------
N, H, W = 2, 16, 16          # batch, spatial
C_HALF = 64                  # parent / skip channels
C_IN = 128                   # concatenated channels (module is hard-coded to 128)
C_OUT = 64                   # per-child output channels
N_CHILD = 4
K_TAPS = 9                   # 3x3 conv taps
NHW = N * H * W
BN_EPS = 1e-5


# ------------------------------ kernel -----------------------------------
def _elu(x):
    # ELU(alpha=1): x if x > 0 else exp(x) - 1  (exp argument clamped for safety)
    return jnp.where(x > 0, x, jnp.exp(jnp.minimum(x, 0.0)) - 1.0)


def _batchnorm_train(x, gamma, beta):
    # Training-mode BN: biased batch statistics over all rows (N*H*W), per channel.
    # Single-pass: var = E[x^2] - E[x]^2 (clamped at 0 for numerical safety).
    inv_n = 1.0 / x.shape[0]
    s = jnp.sum(x, axis=0, keepdims=True)
    ss = jnp.sum(x * x, axis=0, keepdims=True)
    mean = s * inv_n
    var = jnp.maximum(ss * inv_n - mean * mean, 0.0)
    return (x - mean) * (lax.rsqrt(var + BN_EPS) * gamma) + beta


def adj_decoder_kernel(
    xpad_ref,      # (N, H+2, W+2, 128) bf16  padded concat(parent, skip), NHWC
    wconv_ref,     # (9, 128, 128)      bf16  3x3 taps (spatially flipped), tap-major
    bng_ref,       # (1, 128)           f32   BN(128) gamma
    bnb_ref,       # (1, 128)           f32   BN(128) beta
    wc_ref,        # (128, 256)         bf16  four fused 1x1 conv weights (branch-major)
    bncg_ref,      # (1, 256)           f32   four BN(64) gammas, concatenated
    bncb_ref,      # (1, 256)           f32   four BN(64) betas, concatenated
    out_ref,       # (NHW, 256)         f32   four child features, lane-dense slab
):
    # ---- 3x3 "transpose" conv (stride=1, pad=1): in-kernel tap accumulation ----
    # One (NHW,128)x(128,128) MXU matmul per tap, f32 accumulation.  The kx=1,2
    # views are sublane-unaligned slices (small VMEM relayout, accepted — it is
    # far cheaper than shipping a 9x im2col patch matrix through HBM).
    # (conv bias omitted: cancelled exactly by training-mode BN mean subtraction)
    acc = jnp.zeros((NHW, C_IN), jnp.float32)
    for t in range(K_TAPS):
        ky, kx = divmod(t, 3)
        view = xpad_ref[:, ky:ky + H, kx:kx + W, :].reshape(NHW, C_IN)
        acc = acc + jnp.dot(view, wconv_ref[t],
                            preferred_element_type=jnp.float32)    # (NHW, 128) f32

    # ---- BN(128) + ELU (f32 elementwise) ----
    v = _elu(_batchnorm_train(acc, bng_ref[...], bnb_ref[...]))

    # ---- four 1x1 conv branches fused into one 256-wide matmul + BN + ELU ----
    # (child biases likewise cancelled by their BNs; per-channel stats over the
    #  fused 256 lanes are identical to four independent 64-lane BNs)
    c = jnp.dot(v.astype(jnp.bfloat16), wc_ref[...],
                preferred_element_type=jnp.float32)                 # (NHW, 256) f32
    out_ref[...] = _elu(_batchnorm_train(c, bncg_ref[...], bncb_ref[...]))


# ------------------------------ wrapper -----------------------------------
def _full_spec(shape):
    nd = len(shape)
    return pl.BlockSpec(shape, lambda i, nd=nd: (0,) * nd)


@jax.jit
def adj_decoder_forward(parent_nchw, skip_nchw, params):
    """parent/skip: (N, 64, H, W) float32 (PyTorch NCHW). Returns 4 x (N, 64, H, W)."""
    # ONE concat in NCHW (same order as torch.cat((parent, skip), 1)),
    # then ONE NCHW -> NHWC transpose, bf16 cast, and the zero pad.
    x_nchw = jnp.concatenate([parent_nchw, skip_nchw], axis=1)        # (N, 128, H, W)
    x = jnp.transpose(x_nchw, (0, 2, 3, 1)).astype(jnp.bfloat16)      # (N, H, W, 128)
    xpad = jnp.pad(x, ((0, 0), (1, 1), (1, 1), (0, 0)))               # (N, H+2, W+2, 128)

    # 3x3 taps, tap-major, bf16 for the MXU.
    w_conv = params["w_conv_taps"].astype(jnp.bfloat16)               # (9, 128, 128)

    # Fuse the four 1x1 child convs: (4, 128, 64) -> (128, 4*64), branch-major columns.
    w_child = jnp.transpose(params["w_child"], (1, 0, 2)).reshape(
        C_IN, N_CHILD * C_OUT).astype(jnp.bfloat16)
    bncg = params["bnc_gamma"].reshape(1, N_CHILD * C_OUT)
    bncb = params["bnc_beta"].reshape(1, N_CHILD * C_OUT)

    ins = (xpad, w_conv, params["bn_gamma"], params["bn_beta"],
           w_child, bncg, bncb)

    cost = pl.CostEstimate(
        flops=2 * NHW * C_IN * (K_TAPS * C_IN + N_CHILD * C_OUT),
        transcendentals=NHW * (C_IN + N_CHILD * C_OUT),
        bytes_accessed=(xpad.size * 2 + w_conv.size * 2 + w_child.size * 2
                        + 2 * (C_IN + N_CHILD * C_OUT) * 4
                        + NHW * N_CHILD * C_OUT * 4),
    )

    out = pl.pallas_call(
        adj_decoder_kernel,
        grid=(1,),
        in_specs=[_full_spec(a.shape) for a in ins],
        out_specs=_full_spec((NHW, N_CHILD * C_OUT)),
        out_shape=jax.ShapeDtypeStruct((NHW, N_CHILD * C_OUT), jnp.float32),
        compiler_params=pltpu.CompilerParams(dimension_semantics=("arbitrary",)),
        cost_estimate=cost,
    )(*ins)

    # (NHW, 256) -> (N, H, W, 4, 64) -> ONE transpose to (4, N, 64, H, W) -> 4 slices.
    out5 = jnp.transpose(out.reshape(N, H, W, N_CHILD, C_OUT), (3, 0, 4, 1, 2))
    return tuple(out5[i] for i in range(N_CHILD))


# ------------------------- deterministic params ---------------------------
def make_params(key):
    ks = jax.random.split(key, 16)

    # ConvTranspose2d(128, 128, k=3, s=1, p=1): weight (Cin, Cout, 3, 3), bias (128,)
    wt = 0.05 * jax.random.normal(ks[0], (C_IN, C_IN, 3, 3), jnp.float32)
    b_conv = 0.05 * jax.random.normal(ks[1], (C_IN,), jnp.float32)
    # equivalent correlation taps: tap[ky,kx][cin,cout] = wt[cin, cout, 2-ky, 2-kx]
    w_conv_taps = jnp.stack(
        [wt[:, :, 2 - ky, 2 - kx] for ky in range(3) for kx in range(3)], axis=0
    )                                                       # (9, 128, 128)

    # four ConvTranspose2d(128, 64, k=1): weight (Cin, Cout, 1, 1) -> (128, 64)
    w_child = jnp.stack(
        [0.05 * jax.random.normal(ks[2 + i], (C_IN, C_OUT), jnp.float32)
         for i in range(4)], axis=0)                        # (4, 128, 64)
    b_child = jnp.stack(
        [0.05 * jax.random.normal(ks[6 + i], (C_OUT,), jnp.float32)
         for i in range(4)], axis=0)                        # (4, 64)

    # BatchNorm affine params (deterministically perturbed from the 1/0 defaults)
    bn_gamma = 1.0 + 0.1 * jax.random.normal(ks[10], (C_IN,), jnp.float32)
    bn_beta = 0.1 * jax.random.normal(ks[11], (C_IN,), jnp.float32)
    bnc_gamma = 1.0 + 0.1 * jax.random.normal(ks[12], (4, C_OUT), jnp.float32)
    bnc_beta = 0.1 * jax.random.normal(ks[13], (4, C_OUT), jnp.float32)

    return {
        "w_conv_taps": w_conv_taps,
        # Conv/child biases exist in the module but are mathematically cancelled
        # by the training-mode BatchNorm mean subtraction, so the kernel omits them.
        "b_conv": b_conv.reshape(1, C_IN),
        "bn_gamma": bn_gamma.reshape(1, C_IN),
        "bn_beta": bn_beta.reshape(1, C_IN),
        "w_child": w_child,
        "b_child": b_child,
        "bnc_gamma": bnc_gamma,
        "bnc_beta": bnc_beta,
    }


# --------------------------------- main ------------------------------------
if __name__ == "__main__":
    key = jax.random.PRNGKey(0)
    k_parent, k_skip, k_params = jax.random.split(key, 3)

    parent_feature = jax.random.normal(k_parent, (N, C_HALF, H, W), jnp.float32)
    skip_feature = jax.random.normal(k_skip, (N, C_HALF, H, W), jnp.float32)
    params = make_params(k_params)

    # TODO(synk): training-mode BatchNorm running_mean/var side-effect updates
    # (and the module's unused nn.Tanh) are not reproduced; forward outputs match.
    c1, c2, c3, c4 = adj_decoder_forward(parent_feature, skip_feature, params)
    jax.block_until_ready((c1, c2, c3, c4))

    assert c1.shape == (N, C_OUT, H, W)
    assert all(c.shape == (N, C_OUT, H, W) for c in (c1, c2, c3, c4))
    assert all(bool(jnp.all(jnp.isfinite(c))) for c in (c1, c2, c3, c4))
    print("KERNEL_OK")
</pallas_src>

<mosaic_0001>
module attributes {stable_mosaic.version = 11 : i64} {
  func.func @adj_decoder_kernel(%arg0: i32, %arg1: memref<2x18x18x128xbf16, #tpu.memory_space<vmem>>, %arg2: memref<9x128x128xbf16, #tpu.memory_space<vmem>>, %arg3: memref<1x128xf32, #tpu.memory_space<vmem>>, %arg4: memref<1x128xf32, #tpu.memory_space<vmem>>, %arg5: memref<128x256xbf16, #tpu.memory_space<vmem>>, %arg6: memref<1x256xf32, #tpu.memory_space<vmem>>, %arg7: memref<1x256xf32, #tpu.memory_space<vmem>>, %arg8: memref<512x256xf32, #tpu.memory_space<vmem>>) attributes {dimension_semantics = [#tpu.dimension_semantics<arbitrary>], iteration_bounds = array<i64: 1>, scalar_prefetch = 0 : i64, scratch_operands = 0 : i64, tpu.core_type = #tpu.core_type<tc>, window_params = [{pipeline_mode = #tpu.pipeline_mode<synchronous>, transform_indices = @transform_0, window_bounds = array<i64: 2, 18, 18, 128>}, {pipeline_mode = #tpu.pipeline_mode<synchronous>, transform_indices = @transform_1, window_bounds = array<i64: 9, 128, 128>}, {pipeline_mode = #tpu.pipeline_mode<synchronous>, transform_indices = @transform_2, window_bounds = array<i64: 1, 128>}, {pipeline_mode = #tpu.pipeline_mode<synchronous>, transform_indices = @transform_3, window_bounds = array<i64: 1, 128>}, {pipeline_mode = #tpu.pipeline_mode<synchronous>, transform_indices = @transform_4, window_bounds = array<i64: 128, 256>}, {pipeline_mode = #tpu.pipeline_mode<synchronous>, transform_indices = @transform_5, window_bounds = array<i64: 1, 256>}, {pipeline_mode = #tpu.pipeline_mode<synchronous>, transform_indices = @transform_6, window_bounds = array<i64: 1, 256>}, {pipeline_mode = #tpu.pipeline_mode<synchronous>, transform_indices = @transform_7, window_bounds = array<i64: 512, 256>}]} {
    %cst = arith.constant 0.000000e+00 : f32
    %0 = vector.broadcast %cst : f32 to vector<512x128xf32>
    %c0 = arith.constant 0 : index
    %c0_0 = arith.constant 0 : index
    %c0_1 = arith.constant 0 : index
    %c0_2 = arith.constant 0 : index
    %1 = vector.load %arg1[%c0, %c0_0, %c0_1, %c0_2] : memref<2x18x18x128xbf16, #tpu.memory_space<vmem>>, vector<2x16x16x128xbf16>
    %2 = vector.shape_cast %1 : vector<2x16x16x128xbf16> to vector<512x128xbf16>
    %c0_3 = arith.constant 0 : index
    %c0_4 = arith.constant 0 : index
    %c0_5 = arith.constant 0 : index
    %3 = vector.load %arg2[%c0_3, %c0_4, %c0_5] : memref<9x128x128xbf16, #tpu.memory_space<vmem>>, vector<1x128x128xbf16>
    %4 = vector.shape_cast %3 : vector<1x128x128xbf16> to vector<128x128xbf16>
    %cst_6 = arith.constant dense<0.000000e+00> : vector<512x128xf32>
    %5 = tpu.matmul %2, %4, %cst_6 {dimension_numbers = #tpu.dot_dimension_numbers<[1], [0], [0], [1], [0, 0, 1, 1], [], []>} : vector<512x128xbf16>, vector<128x128xbf16>, vector<512x128xf32> -> vector<512x128xf32>
    %6 = arith.addf %0, %5 : vector<512x128xf32>
    %c0_7 = arith.constant 0 : index
    %c0_8 = arith.constant 0 : index
    %c1 = arith.constant 1 : index
    %c0_9 = arith.constant 0 : index
    %7 = vector.load %arg1[%c0_7, %c0_8, %c1, %c0_9] : memref<2x18x18x128xbf16, #tpu.memory_space<vmem>>, vector<2x16x16x128xbf16>
    %8 = vector.shape_cast %7 : vector<2x16x16x128xbf16> to vector<512x128xbf16>
    %c1_10 = arith.constant 1 : index
    %c0_11 = arith.constant 0 : index
    %c0_12 = arith.constant 0 : index
    %9 = vector.load %arg2[%c1_10, %c0_11, %c0_12] : memref<9x128x128xbf16, #tpu.memory_space<vmem>>, vector<1x128x128xbf16>
    %10 = vector.shape_cast %9 : vector<1x128x128xbf16> to vector<128x128xbf16>
    %cst_13 = arith.constant dense<0.000000e+00> : vector<512x128xf32>
    %11 = tpu.matmul %8, %10, %cst_13 {dimension_numbers = #tpu.dot_dimension_numbers<[1], [0], [0], [1], [0, 0, 1, 1], [], []>} : vector<512x128xbf16>, vector<128x128xbf16>, vector<512x128xf32> -> vector<512x128xf32>
    %12 = arith.addf %6, %11 : vector<512x128xf32>
    %c0_14 = arith.constant 0 : index
    %c0_15 = arith.constant 0 : index
    %c2 = arith.constant 2 : index
    %c0_16 = arith.constant 0 : index
    %13 = vector.load %arg1[%c0_14, %c0_15, %c2, %c0_16] : memref<2x18x18x128xbf16, #tpu.memory_space<vmem>>, vector<2x16x16x128xbf16>
    %14 = vector.shape_cast %13 : vector<2x16x16x128xbf16> to vector<512x128xbf16>
    %c2_17 = arith.constant 2 : index
    %c0_18 = arith.constant 0 : index
    %c0_19 = arith.constant 0 : index
    %15 = vector.load %arg2[%c2_17, %c0_18, %c0_19] : memref<9x128x128xbf16, #tpu.memory_space<vmem>>, vector<1x128x128xbf16>
    %16 = vector.shape_cast %15 : vector<1x128x128xbf16> to vector<128x128xbf16>
    %cst_20 = arith.constant dense<0.000000e+00> : vector<512x128xf32>
    %17 = tpu.matmul %14, %16, %cst_20 {dimension_numbers = #tpu.dot_dimension_numbers<[1], [0], [0], [1], [0, 0, 1, 1], [], []>} : vector<512x128xbf16>, vector<128x128xbf16>, vector<512x128xf32> -> vector<512x128xf32>
    %18 = arith.addf %12, %17 : vector<512x128xf32>
    %c0_21 = arith.constant 0 : index
    %c1_22 = arith.constant 1 : index
    %c0_23 = arith.constant 0 : index
    %c0_24 = arith.constant 0 : index
    %19 = vector.load %arg1[%c0_21, %c1_22, %c0_23, %c0_24] : memref<2x18x18x128xbf16, #tpu.memory_space<vmem>>, vector<2x16x16x128xbf16>
    %20 = vector.shape_cast %19 : vector<2x16x16x128xbf16> to vector<512x128xbf16>
    %c3 = arith.constant 3 : index
    %c0_25 = arith.constant 0 : index
    %c0_26 = arith.constant 0 : index
    %21 = vector.load %arg2[%c3, %c0_25, %c0_26] : memref<9x128x128xbf16, #tpu.memory_space<vmem>>, vector<1x128x128xbf16>
    %22 = vector.shape_cast %21 : vector<1x128x128xbf16> to vector<128x128xbf16>
    %cst_27 = arith.constant dense<0.000000e+00> : vector<512x128xf32>
    %23 = tpu.matmul %20, %22, %cst_27 {dimension_numbers = #tpu.dot_dimension_numbers<[1], [0], [0], [1], [0, 0, 1, 1], [], []>} : vector<512x128xbf16>, vector<128x128xbf16>, vector<512x128xf32> -> vector<512x128xf32>
    %24 = arith.addf %18, %23 : vector<512x128xf32>
    %c0_28 = arith.constant 0 : index
    %c1_29 = arith.constant 1 : index
    %c1_30 = arith.constant 1 : index
    %c0_31 = arith.constant 0 : index
    %25 = vector.load %arg1[%c0_28, %c1_29, %c1_30, %c0_31] : memref<2x18x18x128xbf16, #tpu.memory_space<vmem>>, vector<2x16x16x128xbf16>
    %26 = vector.shape_cast %25 : vector<2x16x16x128xbf16> to vector<512x128xbf16>
    %c4 = arith.constant 4 : index
    %c0_32 = arith.constant 0 : index
    %c0_33 = arith.constant 0 : index
    %27 = vector.load %arg2[%c4, %c0_32, %c0_33] : memref<9x128x128xbf16, #tpu.memory_space<vmem>>, vector<1x128x128xbf16>
    %28 = vector.shape_cast %27 : vector<1x128x128xbf16> to vector<128x128xbf16>
    %cst_34 = arith.constant dense<0.000000e+00> : vector<512x128xf32>
    %29 = tpu.matmul %26, %28, %cst_34 {dimension_numbers = #tpu.dot_dimension_numbers<[1], [0], [0], [1], [0, 0, 1, 1], [], []>} : vector<512x128xbf16>, vector<128x128xbf16>, vector<512x128xf32> -> vector<512x128xf32>
    %30 = arith.addf %24, %29 : vector<512x128xf32>
    %c0_35 = arith.constant 0 : index
    %c1_36 = arith.constant 1 : index
    %c2_37 = arith.constant 2 : index
    %c0_38 = arith.constant 0 : index
    %31 = vector.load %arg1[%c0_35, %c1_36, %c2_37, %c0_38] : memref<2x18x18x128xbf16, #tpu.memory_space<vmem>>, vector<2x16x16x128xbf16>
    %32 = vector.shape_cast %31 : vector<2x16x16x128xbf16> to vector<512x128xbf16>
    %c5 = arith.constant 5 : index
    %c0_39 = arith.constant 0 : index
    %c0_40 = arith.constant 0 : index
    %33 = vector.load %arg2[%c5, %c0_39, %c0_40] : memref<9x128x128xbf16, #tpu.memory_space<vmem>>, vector<1x128x128xbf16>
    %34 = vector.shape_cast %33 : vector<1x128x128xbf16> to vector<128x128xbf16>
    %cst_41 = arith.constant dense<0.000000e+00> : vector<512x128xf32>
    %35 = tpu.matmul %32, %34, %cst_41 {dimension_numbers = #tpu.dot_dimension_numbers<[1], [0], [0], [1], [0, 0, 1, 1], [], []>} : vector<512x128xbf16>, vector<128x128xbf16>, vector<512x128xf32> -> vector<512x128xf32>
    %36 = arith.addf %30, %35 : vector<512x128xf32>
    %c0_42 = arith.constant 0 : index
    %c2_43 = arith.constant 2 : index
    %c0_44 = arith.constant 0 : index
    %c0_45 = arith.constant 0 : index
    %37 = vector.load %arg1[%c0_42, %c2_43, %c0_44, %c0_45] : memref<2x18x18x128xbf16, #tpu.memory_space<vmem>>, vector<2x16x16x128xbf16>
    %38 = vector.shape_cast %37 : vector<2x16x16x128xbf16> to vector<512x128xbf16>
    %c6 = arith.constant 6 : index
    %c0_46 = arith.constant 0 : index
    %c0_47 = arith.constant 0 : index
    %39 = vector.load %arg2[%c6, %c0_46, %c0_47] : memref<9x128x128xbf16, #tpu.memory_space<vmem>>, vector<1x128x128xbf16>
    %40 = vector.shape_cast %39 : vector<1x128x128xbf16> to vector<128x128xbf16>
    %cst_48 = arith.constant dense<0.000000e+00> : vector<512x128xf32>
    %41 = tpu.matmul %38, %40, %cst_48 {dimension_numbers = #tpu.dot_dimension_numbers<[1], [0], [0], [1], [0, 0, 1, 1], [], []>} : vector<512x128xbf16>, vector<128x128xbf16>, vector<512x128xf32> -> vector<512x128xf32>
    %42 = arith.addf %36, %41 : vector<512x128xf32>
    %c0_49 = arith.constant 0 : index
    %c2_50 = arith.constant 2 : index
    %c1_51 = arith.constant 1 : index
    %c0_52 = arith.constant 0 : index
    %43 = vector.load %arg1[%c0_49, %c2_50, %c1_51, %c0_52] : memref<2x18x18x128xbf16, #tpu.memory_space<vmem>>, vector<2x16x16x128xbf16>
    %44 = vector.shape_cast %43 : vector<2x16x16x128xbf16> to vector<512x128xbf16>
    %c7 = arith.constant 7 : index
    %c0_53 = arith.constant 0 : index
    %c0_54 = arith.constant 0 : index
    %45 = vector.load %arg2[%c7, %c0_53, %c0_54] : memref<9x128x128xbf16, #tpu.memory_space<vmem>>, vector<1x128x128xbf16>
    %46 = vector.shape_cast %45 : vector<1x128x128xbf16> to vector<128x128xbf16>
    %cst_55 = arith.constant dense<0.000000e+00> : vector<512x128xf32>
    %47 = tpu.matmul %44, %46, %cst_55 {dimension_numbers = #tpu.dot_dimension_numbers<[1], [0], [0], [1], [0, 0, 1, 1], [], []>} : vector<512x128xbf16>, vector<128x128xbf16>, vector<512x128xf32> -> vector<512x128xf32>
    %48 = arith.addf %42, %47 : vector<512x128xf32>
    %c0_56 = arith.constant 0 : index
    %c2_57 = arith.constant 2 : index
    %c2_58 = arith.constant 2 : index
    %c0_59 = arith.constant 0 : index
    %49 = vector.load %arg1[%c0_56, %c2_57, %c2_58, %c0_59] : memref<2x18x18x128xbf16, #tpu.memory_space<vmem>>, vector<2x16x16x128xbf16>
    %50 = vector.shape_cast %49 : vector<2x16x16x128xbf16> to vector<512x128xbf16>
    %c8 = arith.constant 8 : index
    %c0_60 = arith.constant 0 : index
    %c0_61 = arith.constant 0 : index
    %51 = vector.load %arg2[%c8, %c0_60, %c0_61] : memref<9x128x128xbf16, #tpu.memory_space<vmem>>, vector<1x128x128xbf16>
    %52 = vector.shape_cast %51 : vector<1x128x128xbf16> to vector<128x128xbf16>
    %cst_62 = arith.constant dense<0.000000e+00> : vector<512x128xf32>
    %53 = tpu.matmul %50, %52, %cst_62 {dimension_numbers = #tpu.dot_dimension_numbers<[1], [0], [0], [1], [0, 0, 1, 1], [], []>} : vector<512x128xbf16>, vector<128x128xbf16>, vector<512x128xf32> -> vector<512x128xf32>
    %54 = arith.addf %48, %53 : vector<512x128xf32>
    %c0_63 = arith.constant 0 : index
    %c0_64 = arith.constant 0 : index
    %55 = vector.load %arg3[%c0_63, %c0_64] : memref<1x128xf32, #tpu.memory_space<vmem>>, vector<1x128xf32>
    %c0_65 = arith.constant 0 : index
    %c0_66 = arith.constant 0 : index
    %56 = vector.load %arg4[%c0_65, %c0_66] : memref<1x128xf32, #tpu.memory_space<vmem>>, vector<1x128xf32>
    %cst_67 = arith.constant dense<0.000000e+00> : vector<128xf32>
    %57 = vector.multi_reduction <add>, %54, %cst_67 [0] : vector<512x128xf32> to vector<128xf32>
    %58 = vector.shape_cast %57 : vector<128xf32> to vector<1x128xf32>
    %59 = arith.mulf %54, %54 : vector<512x128xf32>
    %cst_68 = arith.constant dense<0.000000e+00> : vector<128xf32>
    %60 = vector.multi_reduction <add>, %59, %cst_68 [0] : vector<512x128xf32> to vector<128xf32>
    %61 = vector.shape_cast %60 : vector<128xf32> to vector<1x128xf32>
    %cst_69 = arith.constant 0.001953125 : f32
    %62 = vector.broadcast %cst_69 : f32 to vector<1x128xf32>
    %63 = arith.mulf %58, %62 : vector<1x128xf32>
    %cst_70 = arith.constant 0.001953125 : f32
    %64 = vector.broadcast %cst_70 : f32 to vector<1x128xf32>
    %65 = arith.mulf %61, %64 : vector<1x128xf32>
    %66 = arith.mulf %63, %63 : vector<1x128xf32>
    %67 = arith.subf %65, %66 : vector<1x128xf32>
    %cst_71 = arith.constant 0.000000e+00 : f32
    %68 = vector.broadcast %cst_71 : f32 to vector<1x128xf32>
    %69 = arith.maximumf %67, %68 : vector<1x128xf32>
    %70 = vector.broadcast %63 : vector<1x128xf32> to vector<512x128xf32>
    %71 = arith.subf %54, %70 : vector<512x128xf32>
    %cst_72 = arith.constant 9.99999974E-6 : f32
    %72 = vector.broadcast %cst_72 : f32 to vector<1x128xf32>
    %73 = arith.addf %69, %72 : vector<1x128xf32>
    %74 = math.rsqrt %73 : vector<1x128xf32>
    %75 = arith.mulf %74, %55 : vector<1x128xf32>
    %76 = vector.broadcast %75 : vector<1x128xf32> to vector<512x128xf32>
    %77 = arith.mulf %71, %76 : vector<512x128xf32>
    %78 = vector.broadcast %56 : vector<1x128xf32> to vector<512x128xf32>
    %79 = arith.addf %77, %78 : vector<512x128xf32>
    %cst_73 = arith.constant 0.000000e+00 : f32
    %80 = vector.broadcast %cst_73 : f32 to vector<512x128xf32>
    %81 = arith.cmpf ogt, %79, %80 : vector<512x128xf32>
    %cst_74 = arith.constant 0.000000e+00 : f32
    %82 = vector.broadcast %cst_74 : f32 to vector<512x128xf32>
    %83 = arith.minimumf %79, %82 : vector<512x128xf32>
    %84 = math.exp %83 : vector<512x128xf32>
    %cst_75 = arith.constant 1.000000e+00 : f32
    %85 = vector.broadcast %cst_75 : f32 to vector<512x128xf32>
    %86 = arith.subf %84, %85 : vector<512x128xf32>
    %87 = arith.select %81, %79, %86 : vector<512x128xi1>, vector<512x128xf32>
    %88 = arith.truncf %87 : vector<512x128xf32> to vector<512x128xbf16>
    %c0_76 = arith.constant 0 : index
    %c0_77 = arith.constant 0 : index
    %89 = vector.load %arg5[%c0_76, %c0_77] : memref<128x256xbf16, #tpu.memory_space<vmem>>, vector<128x256xbf16>
    %cst_78 = arith.constant dense<0.000000e+00> : vector<512x256xf32>
    %90 = tpu.matmul %88, %89, %cst_78 {dimension_numbers = #tpu.dot_dimension_numbers<[1], [0], [0], [1], [0, 0, 1, 1], [], []>} : vector<512x128xbf16>, vector<128x256xbf16>, vector<512x256xf32> -> vector<512x256xf32>
    %c0_79 = arith.constant 0 : index
    %c0_80 = arith.constant 0 : index
    %91 = vector.load %arg6[%c0_79, %c0_80] : memref<1x256xf32, #tpu.memory_space<vmem>>, vector<1x256xf32>
    %c0_81 = arith.constant 0 : index
    %c0_82 = arith.constant 0 : index
    %92 = vector.load %arg7[%c0_81, %c0_82] : memref<1x256xf32, #tpu.memory_space<vmem>>, vector<1x256xf32>
    %cst_83 = arith.constant dense<0.000000e+00> : vector<256xf32>
    %93 = vector.multi_reduction <add>, %90, %cst_83 [0] : vector<512x256xf32> to vector<256xf32>
    %94 = vector.shape_cast %93 : vector<256xf32> to vector<1x256xf32>
    %95 = arith.mulf %90, %90 : vector<512x256xf32>
    %cst_84 = arith.constant dense<0.000000e+00> : vector<256xf32>
    %96 = vector.multi_reduction <add>, %95, %cst_84 [0] : vector<512x256xf32> to vector<256xf32>
    %97 = vector.shape_cast %96 : vector<256xf32> to vector<1x256xf32>
    %cst_85 = arith.constant 0.001953125 : f32
    %98 = vector.broadcast %cst_85 : f32 to vector<1x256xf32>
    %99 = arith.mulf %94, %98 : vector<1x256xf32>
    %cst_86 = arith.constant 0.001953125 : f32
    %100 = vector.broadcast %cst_86 : f32 to vector<1x256xf32>
    %101 = arith.mulf %97, %100 : vector<1x256xf32>
    %102 = arith.mulf %99, %99 : vector<1x256xf32>
    %103 = arith.subf %101, %102 : vector<1x256xf32>
    %cst_87 = arith.constant 0.000000e+00 : f32
    %104 = vector.broadcast %cst_87 : f32 to vector<1x256xf32>
    %105 = arith.maximumf %103, %104 : vector<1x256xf32>
    %106 = vector.broadcast %99 : vector<1x256xf32> to vector<512x256xf32>
    %107 = arith.subf %90, %106 : vector<512x256xf32>
    %cst_88 = arith.constant 9.99999974E-6 : f32
    %108 = vector.broadcast %cst_88 : f32 to vector<1x256xf32>
    %109 = arith.addf %105, %108 : vector<1x256xf32>
    %110 = math.rsqrt %109 : vector<1x256xf32>
    %111 = arith.mulf %110, %91 : vector<1x256xf32>
    %112 = vector.broadcast %111 : vector<1x256xf32> to vector<512x256xf32>
    %113 = arith.mulf %107, %112 : vector<512x256xf32>
    %114 = vector.broadcast %92 : vector<1x256xf32> to vector<512x256xf32>
    %115 = arith.addf %113, %114 : vector<512x256xf32>
    %cst_89 = arith.constant 0.000000e+00 : f32
    %116 = vector.broadcast %cst_89 : f32 to vector<512x256xf32>
    %117 = arith.cmpf ogt, %115, %116 : vector<512x256xf32>
    %cst_90 = arith.constant 0.000000e+00 : f32
    %118 = vector.broadcast %cst_90 : f32 to vector<512x256xf32>
    %119 = arith.minimumf %115, %118 : vector<512x256xf32>
    %120 = math.exp %119 : vector<512x256xf32>
    %cst_91 = arith.constant 1.000000e+00 : f32
    %121 = vector.broadcast %cst_91 : f32 to vector<512x256xf32>
    %122 = arith.subf %120, %121 : vector<512x256xf32>
    %123 = arith.select %117, %115, %122 : vector<512x256xi1>, vector<512x256xf32>
    %c0_92 = arith.constant 0 : index
    %c0_93 = arith.constant 0 : index
    %124 = vector.load %arg8[%c0_92, %c0_93] : memref<512x256xf32, #tpu.memory_space<vmem>>, vector<512x256xf32>
    tpu.vector_store %arg8[%c0_92, %c0_93], %123 {strides = array<i32>} : memref<512x256xf32, #tpu.memory_space<vmem>>, vector<512x256xf32>,
    return
  }
  func.func @transform_0(%arg0: i32) -> (i32, i32, i32, i32) {
    %c0_i32 = arith.constant 0 : i32
    %c0_i32_0 = arith.constant 0 : i32
    %c0_i32_1 = arith.constant 0 : i32
    %c0_i32_2 = arith.constant 0 : i32
    %c0_i32_3 = arith.constant 0 : i32
    return %c0_i32, %c0_i32_0, %c0_i32_1, %c0_i32_2 : i32, i32, i32, i32
  }
  func.func @transform_1(%arg0: i32) -> (i32, i32, i32) {
    %c0_i32 = arith.constant 0 : i32
    %c0_i32_0 = arith.constant 0 : i32
    %c0_i32_1 = arith.constant 0 : i32
    %c0_i32_2 = arith.constant 0 : i32
    return %c0_i32, %c0_i32_0, %c0_i32_1 : i32, i32, i32
  }
  func.func @transform_2(%arg0: i32) -> (i32, i32) {
    %c0_i32 = arith.constant 0 : i32
    %c0_i32_0 = arith.constant 0 : i32
    %c0_i32_1 = arith.constant 0 : i32
    return %c0_i32, %c0_i32_0 : i32, i32
  }
  func.func @transform_3(%arg0: i32) -> (i32, i32) {
    %c0_i32 = arith.constant 0 : i32
    %c0_i32_0 = arith.constant 0 : i32
    %c0_i32_1 = arith.constant 0 : i32
    return %c0_i32, %c0_i32_0 : i32, i32
  }
  func.func @transform_4(%arg0: i32) -> (i32, i32) {
    %c0_i32 = arith.constant 0 : i32
    %c0_i32_0 = arith.constant 0 : i32
    %c0_i32_1 = arith.constant 0 : i32
    return %c0_i32, %c0_i32_0 : i32, i32
  }
  func.func @transform_5(%arg0: i32) -> (i32, i32) {
    %c0_i32 = arith.constant 0 : i32
    %c0_i32_0 = arith.constant 0 : i32
    %c0_i32_1 = arith.constant 0 : i32
    return %c0_i32, %c0_i32_0 : i32, i32
  }
  func.func @transform_6(%arg0: i32) -> (i32, i32) {
    %c0_i32 = arith.constant 0 : i32
    %c0_i32_0 = arith.constant 0 : i32
    %c0_i32_1 = arith.constant 0 : i32
    return %c0_i32, %c0_i32_0 : i32, i32
  }
  func.func @transform_7(%arg0: i32) -> (i32, i32) {
    %c0_i32 = arith.constant 0 : i32
    %c0_i32_0 = arith.constant 0 : i32
    %c0_i32_1 = arith.constant 0 : i32
    return %c0_i32, %c0_i32_0 : i32, i32
  }
}

</mosaic_0001>

<bundles_post_ra>
// kernel: adj_decoder_forward.1
= control target key start
LH: loop header
LB: loop body
LE: loop exit
PB: predicated region body
PF: predicated region fallthrough
CT: control target
= control target key end

     0   :  { %vm139_vm0 = vsmask.f32 3328  ;;  %vm140_vm1 = vsmask.f32 7440  ;;  %vm2017_vm3 = vcmask 1042432   ;;  %vm2018_vm4 = vcmask 1046532   ;;  %s24044_s1 = inlined_call_operand.vmem [shape: bf16[9,128,128], index: 1, kind: input, shape index: {}]   ;;  %s24045_s0 = inlined_call_operand.vmem [shape: bf16[2,18,18,128], index: 0, kind: input, shape index: {}]   ;;  %s24046_s4 = inlined_call_operand.vmem [shape: bf16[128,256], index: 4, kind: input, shape index: {}]   ;;  %s24047_s2 = inlined_call_operand.vmem [shape: f32[1,128], index: 2, kind: input, shape index: {}]   ;;  %s24048_s3 = inlined_call_operand.vmem [shape: f32[1,128], index: 3, kind: input, shape index: {}]   ;;  %s24049_s5 = inlined_call_operand.vmem [shape: f32[1,256], index: 5, kind: input, shape index: {}]   ;;  %s24050_s6 = inlined_call_operand.vmem [shape: f32[1,256], index: 6, kind: input, shape index: {}]   ;;  %s24051_s7 = inlined_call_operand.vmem [shape: f32[512,256], index: 7, kind: output, shape index: {}]  }
   0x1   :  { %v14557_v0 = vld [vmem:[%s24044_s1 + $0x40] sm:$0xff]   ;;  %v14559_v2 = vld [vmem:[%s24044_s1 + $0x48] sm:$0xff]   ;;  %v14561_v4 = vld [vmem:[%s24044_s1 + $0x50] sm:$0xff]  }
   0x2   :  { %v14558_v1 = vld [vmem:[%s24044_s1 + $0xc0] sm:$0xff]   ;;  %13308 = vmatprep.subr.bf16.mxu1 %v14557_v0  ;;  %v14560_v3 = vld [vmem:[%s24044_s1 + $0xc8] sm:$0xff]   ;;  %v14562_v5 = vld [vmem:[%s24044_s1 + $0xd0] sm:$0xff]  }
   0x3   :  { %13548 = vmatprep.subr.bf16.mxu0 %v14558_v1  ;;  %13309 = vmatpush3.bf16.msra.mxu1 %v14557_v0  ;;  %v14563_v6 = vld [vmem:[%s24044_s1 + $0x58] sm:$0xff]   ;;  %v14565_v8 = vld [vmem:[%s24044_s1 + $0x60] sm:$0xff]   ;;  %v14567_v10 = vld [vmem:[%s24044_s1 + $0x68] sm:$0xff]  }
   0x4   :  { %13549 = vmatpush3.bf16.msra.mxu0 %v14558_v1  ;;  %13310 = vmatprep.subr.bf16.mxu1 %v14559_v2  ;;  %v14564_v7 = vld [vmem:[%s24044_s1 + $0xd8] sm:$0xff]   ;;  %v14566_v9 = vld [vmem:[%s24044_s1 + $0xe0] sm:$0xff]   ;;  %v14568_v11 = vld [vmem:[%s24044_s1 + $0xe8] sm:$0xff]  }
   0x5   :  { %13550 = vmatprep.subr.bf16.mxu0 %v14560_v3  ;;  %v27_v12 = vld [vmem:[%s24045_s0] sm:$0xf]  ;;  %v28_v13 = vld [vmem:[%s24045_s0 + $0x4] sm:$0xf]  ;;  %v107_v14 = vld [vmem:[%s24045_s0 + $0x8] sm:$0x1] }
   0x6   :  { %v143_v15 = vshrl.u32 %v27_v12, 16  ;;  %v146_v16 = vshll.u32 %v27_v12, 16  ;;  %v152_v17 = vshll.u32 %v28_v13, 16  ;;  %v156_v18 = vshrl.u32 %v28_v13, 16  ;;  %v14569_v19 = vld [vmem:[%s24044_s1 + $0x70] sm:$0xff]   ;;  %vm15485_vm2 = vmor %vm139_vm0, %vm140_vm1  ;;  %v14571_v44 = vld [vmem:[%s24044_s1 + $0x78] sm:$0xff]  }
   0x7   :  { %13311 = vmatpush3.bf16.msra.mxu1 %v14559_v2  ;;  %v162_v20 = vshll.u32 %v107_v14, 16  ;;  %v14573_v21 = vld [vmem:[%s24045_s0 + $0xc] sm:$0xff]   ;;  %v108_v30 = vld [vmem:[%s24045_s0 + $0x14] sm:$0x1]  ;;  %v31_v47 = vld [vmem:[%s24045_s0 + $0x18] sm:$0xf] }
   0x8   :  { %13551 = vmatpush3.bf16.msra.mxu0 %v14560_v3  ;;  %13312 = vmatprep.subr.bf16.mxu1 %v14561_v4  ;;  %v14570_v22 = vld [vmem:[%s24044_s1 + $0xf0] sm:$0xff]   ;;  %v145_v23 = vrot.slane %v143_v15, 4  ;;  %v148_v24 = vrot.slane %v146_v16, 5  ;;  %v154_v25 = vrot.slane %v152_v17, 5  ;;  %v158_v26 = vrot.slane %v156_v18, 4  ;;  %v14572_v48 = vld [vmem:[%s24044_s1 + $0xf8] sm:$0xff]   ;;  %vm16568_vm5 = vmor %vm2017_vm3, %vm2018_vm4 }
   0x9   :  { %13552 = vmatprep.subr.bf16.mxu0 %v14562_v5  ;;  %v29_v27 = vld [vmem:[%s24045_s0 + $0xc] sm:$0xf]  ;;  %v164_v28 = vrot.slane %v162_v20, 5  ;;  %v30_v29 = vld [vmem:[%s24045_s0 + $0x10] sm:$0xf]  ;;  %13564 = vmatprep.mubr.bf16.mxu0 %v14573_v21  ;;  %v186_v39 = vshll.u32 %v108_v30, 16 }
   0xa   :  { %v167_v31 = vshrl.u32 %v29_v27, 16  ;;  %v149_v32 = vor.u32 %v148_v24, %v145_v23  ;;  %v159_v33 = vor.u32 %v158_v26, %v154_v25  ;;  %v170_v34 = vshll.u32 %v29_v27, 16  ;;  %v32_v52 = vld [vmem:[%s24045_s0 + $0x1c] sm:$0xf]  ;;  %v109_v53 = vld [vmem:[%s24045_s0 + $0x20] sm:$0x1] }
   0xb   :  { %13313 = vmatpush3.bf16.msra.mxu1 %v14561_v4  ;;  %v176_v35 = vshll.u32 %v30_v29, 16  ;;  %v180_v38 = vshrl.u32 %v30_v29, 16  ;;  %v188_v46 = vrot.slane %v186_v39, 5  ;;  %v191_v54 = vshrl.u32 %v31_v47, 16  ;;  %v33_v63 = vld [vmem:[%s24045_s0 + $0x24] sm:$0xf] }
   0xc   :  { %13553 = vmatpush3.bf16.msra.mxu0 %v14562_v5  ;;  %13314 = vmatprep.subr.bf16.mxu1 %v14563_v6  ;;  %v169_v37 = vrot.slane %v167_v31, 4  ;;  %v150_v40 = vrot.slane %v149_v32, 4  ;;  %v160_v41 = vrot.slane %v159_v33, 4  ;;  %v172_v42 = vrot.slane %v170_v34, 5  ;;  %v34_v3 = vld [vmem:[%s24045_s0 + $0x28] sm:$0xf] }
   0xd   :  { %13554 = vmatprep.subr.bf16.mxu0 %v14564_v7  ;;  %v178_v43 = vrot.slane %v176_v35, 5  ;;  %v182_v45 = vrot.slane %v180_v38, 4  ;;  %v194_v57 = vshll.u32 %v31_v47, 16  ;;  %v200_v58 = vshll.u32 %v32_v52, 16  ;;  %v14576_v14 = vld [vmem:[%s24045_s0 + $0x24] sm:$0xff]  }
   0xe   :  { %v155_v49 = vsel %vm15485_vm2, %v150_v40, %v154_v25  ;;  %v165_v50 = vsel %vm15485_vm2, %v160_v41, %v164_v28  ;;  %v173_v51 = vor.u32 %v172_v42, %v169_v37  ;;  %v193_v60 = vrot.slane %v191_v54, 4  ;;  %v14578_v24 = vld [vmem:[%s24044_s1 + $0x108] sm:$0xff]   ;;  %v35_v25 = vld [vmem:[%s24045_s0 + $0x30] sm:$0xf]  ;;  %v36_v29 = vld [vmem:[%s24045_s0 + $0x34] sm:$0xf] }
   0xf   :  { %13315 = vmatpush3.bf16.msra.mxu1 %v14563_v6  ;;  %v11787_v55 = vcombine.low %v155_v49, %v165_v50  ;;  %v183_v56 = vor.u32 %v182_v45, %v178_v43  ;;  %v204_v61 = vshrl.u32 %v32_v52, 16  ;;  %v210_v62 = vshll.u32 %v109_v53, 16  ;;  %v14574_v6 = vld [vmem:[%s24045_s0 + $0x18] sm:$0xff]   ;;  %v38_v45 = vld [vmem:[%s24045_s0 + $0x40] sm:$0xf]  ;;  %v14581_v52 = vld [vmem:[%s24044_s1 + $0x110] sm:$0xff]  }
  0x10   :  { %13555 = vmatpush3.bf16.msra.mxu0 %v14564_v7  ;;  %13316 = vmatprep.subr.bf16.mxu1 %v14565_v8  ;;  %v174_v59 = vrot.slane %v173_v51, 4  ;;  %v196_v1 = vrot.slane %v194_v57, 5  ;;  %v202_v2 = vrot.slane %v200_v58, 5  ;;  %v215_v4 = vshrl.u32 %v33_v63, 16  ;;  %v14575_v7 = vld [vmem:[%s24044_s1 + $0x100] sm:$0xff]  }
  0x11   :  { %13556 = vmatprep.subr.bf16.mxu0 %v14566_v9  ;;  %v184_v0 = vrot.slane %v183_v56, 4  ;;  %13324 = vmatprep.mubr.bf16.mxu1 %v11787_v55  ;;  %v224_v16 = vshll.u32 %v34_v3, 16  ;;  %v228_v20 = vshrl.u32 %v34_v3, 16  ;;  %v111_v30 = vld [vmem:[%s24045_s0 + $0x38] sm:$0x1]  ;;  %v239_v33 = vshrl.u32 %v35_v25, 16 }
  0x12   :  { %v179_v5 = vsel %vm15485_vm2, %v174_v59, %v178_v43  ;;  %v197_v13 = vor.u32 %v196_v1, %v193_v60  ;;  %v217_v15 = vrot.slane %v215_v4, 4  ;;  %v242_v34 = vshll.u32 %v35_v25, 16  ;;  %v37_v40 = vld [vmem:[%s24045_s0 + $0x3c] sm:$0xf]  ;;  %v112_v51 = vld [vmem:[%s24045_s0 + $0x44] sm:$0x1] }
  0x13   :  { %13317 = vmatpush3.bf16.msra.mxu1 %v14565_v8  ;;  %v206_v8 = vrot.slane %v204_v61, 4  ;;  %v189_v12 = vsel %vm15485_vm2, %v184_v0, %v188_v46  ;;  %v230_v28 = vrot.slane %v228_v20, 4  ;;  %v248_v39 = vshll.u32 %v36_v29, 16  ;;  %v14579_v55 = vld [vmem:[%s24045_s0 + $0x3c] sm:$0xff]   ;;  %v14580_v25 = vld [vmem:[%s24045_s0 + $0x48] sm:$0xff]  }
  0x14   :  { %13557 = vmatpush3.bf16.msra.mxu0 %v14566_v9  ;;  %13318 = vmatprep.subr.bf16.mxu1 %v14567_v10  ;;  %v212_v9 = vrot.slane %v210_v62, 5  ;;  %v11788_v17 = vcombine.low %v179_v5, %v189_v12  ;;  %v198_v21 = vrot.slane %v197_v13, 4  ;;  %v241_v42 = vrot.slane %v239_v33, 4  ;;  %v14584_v62 = vld [vmem:[%s24044_s1 + $0x118] sm:$0xff]   ;;  %v15343_v36 = vld [vmem:[%s24045_s0 + $0x34] sm:$0xf] }
  0x15   :  { %13558 = vmatprep.subr.bf16.mxu0 %v14568_v11  ;;  %v207_v18 = vor.u32 %v206_v8, %v202_v2  ;;  %v244_v43 = vrot.slane %v242_v34, 5  ;;  %v250_v49 = vrot.slane %v248_v39, 5  ;;  %v258_v50 = vshll.u32 %v111_v30, 16  ;;  %v14587_v39 = vld [vmem:[%s24044_s1 + $0x120] sm:$0xff]  }
  0x16   :  { %v203_v31 = vsel %vm15485_vm2, %v198_v21, %v202_v2  ;;  %v263_v56 = vshrl.u32 %v37_v40, 16  ;;  %v266_v57 = vshll.u32 %v37_v40, 16  ;;  %v272_v60 = vshll.u32 %v38_v45, 16  ;;  %v41_v21 = vld [vmem:[%s24045_s0 + $0x54] sm:$0xf] }
  0x17   :  { %13319 = vmatpush3.bf16.msra.mxu1 %v14567_v10  ;;  %v110_v10 = vld [vmem:[%s24045_s0 + $0x2c] sm:$0x1]  ;;  %v208_v26 = vrot.slane %v207_v18, 4  ;;  %v245_v53 = vor.u32 %v244_v43, %v241_v42  ;;  %v260_v59 = vrot.slane %v258_v50, 5  ;;  %v276_v61 = vshrl.u32 %v38_v45, 16 }
  0x18   :  { %13559 = vmatpush3.bf16.msra.mxu0 %v14568_v11  ;;  %13320 = vmatprep.subr.bf16.mxu1 %v14569_v19  ;;  %v218_v11 = vshll.u32 %v33_v63, 16  ;;  %v234_v23 = vshll.u32 %v110_v10, 16  ;;  %v265_v2 = vrot.slane %v263_v56, 4  ;;  %v268_v3 = vrot.slane %v266_v57, 5  ;;  %v40_v10 = vld [vmem:[%s24045_s0 + $0x4c] sm:$0xf] }
  0x19   :  { %13560 = vmatprep.subr.bf16.mxu0 %v14570_v22  ;;  %v213_v35 = vsel %vm15485_vm2, %v208_v26, %v212_v9  ;;  %v246_v0 = vrot.slane %v245_v53, 4  ;;  %v274_v4 = vrot.slane %v272_v60, 5  ;;  %v278_v5 = vrot.slane %v276_v61, 4  ;;  %v45_v61 = vld [vmem:[%s24045_s0 + $0x6c] sm:$0xf] }
  0x1a   :  { %v236_v32 = vrot.slane %v234_v23, 5  ;;  %v11789_v41 = vcombine.low %v203_v31, %v213_v35  ;;  %v269_v13 = vor.u32 %v268_v3, %v265_v2  ;;  %v300_v20 = vshrl.u32 %v40_v10, 16  ;;  %v14582_v31 = vld [vmem:[%s24045_s0 + $0x54] sm:$0xff]   ;;  %v46_v3 = vld [vmem:[%s24045_s0 + $0x70] sm:$0xf] }
  0x1b   :  { %13321 = vmatpush3.bf16.msra.mxu1 %v14569_v19  ;;  %v220_v19 = vrot.slane %v218_v11, 5  ;;  %v251_v8 = vsel %vm15485_vm2, %v246_v0, %v250_v49  ;;  %v113_v11 = vld [vmem:[%s24045_s0 + $0x50] sm:$0x1]  ;;  %v311_v33 = vshrl.u32 %v41_v21, 16 }
  0x1c   :  { %13561 = vmatpush3.bf16.msra.mxu0 %v14570_v22  ;;  %13322 = vmatprep.subr.bf16.mxu1 %v14571_v44  ;;  %v226_v22 = vrot.slane %v224_v16, 5  ;;  %v270_v23 = vrot.slane %v269_v13, 4  ;;  %v306_v30 = vshll.u32 %v113_v11, 16  ;;  %v359_v13 = vshrl.u32 %v45_v61, 16 }
  0x1d   :  { %13562 = vmatprep.subr.bf16.mxu0 %v14572_v48  ;;  %v221_v27 = vor.u32 %v220_v19, %v217_v15  ;;  %v296_v19 = vshll.u32 %v40_v10, 16  ;;  %v313_v43 = vrot.slane %v311_v33, 4 }
  0x1e   :  { %v231_v38 = vor.u32 %v230_v28, %v226_v22  ;;  %v275_v34 = vsel %vm15485_vm2, %v270_v23, %v274_v4  ;;  %v308_v42 = vrot.slane %v306_v30, 5 }
  0x1f   :  { %13323 = vmatpush3.bf16.msra.mxu1 %v14571_v44  ;;  %v222_v37 = vrot.slane %v221_v27, 4  ;;  %v252_v44 = vshrl.u32 %v36_v29, 16  ;;  %v42_v27 = vld [vmem:[%s24045_s0 + $0x58] sm:$0xf]  ;;  %v298_v28 = vrot.slane %v296_v19, 5  ;;  %v302_v29 = vrot.slane %v300_v20, 4 }
  0x20   :  { %13563 = vmatpush3.bf16.msra.mxu0 %v14572_v48  ;;  %v232_v47 = vrot.slane %v231_v38, 4  ;;  %v14577_v48 = vld [vmem:[%s24045_s0 + $0x30] sm:$0xff]   ;;  %v314_v38 = vshll.u32 %v41_v21, 16  ;;  %v361_v20 = vrot.slane %v359_v13, 4  ;;  %v368_v21 = vshll.u32 %v46_v3, 16 }
  0x21   :  { %13628 = vmatprep.subr.bf16.mxu0 %v14575_v7  ;;  %v227_v46 = vsel %vm15485_vm2, %v222_v37, %v226_v22  ;;  %v254_v54 = vrot.slane %v252_v44, 4  ;;  %v119_v13 = vld [vmem:[%s24045_s0 + $0x98] sm:$0x1] }
  0x22   :  { %13325 = vmatmul.mubr.bf16.vlgmr.msra.gmra.mrb[0].mxu1 %v11788_v17  ;;  %v237_v58 = vsel %vm15485_vm2, %v232_v47, %v236_v32  ;;  %v114_v32 = vld [vmem:[%s24045_s0 + $0x5c] sm:$0x1]  ;;  %v316_v45 = vrot.slane %v314_v38, 5  ;;  %v324_v47 = vshrl.u32 %v42_v27, 16 }
  0x23   :  { %13565 = vmatmul.mubr.bf16.vlgmr.msra.gmra.mrb[0].mxu0 %v14574_v6  ;;  %13328 = vmatprep.mubr.bf16.mxu1 %v11789_v41  ;;  %v11790_v63 = vcombine.low %v227_v46, %v237_v58  ;;  %v255_v1 = vor.u32 %v254_v54, %v250_v49  ;;  %v282_v6 = vshll.u32 %v112_v51, 16  ;;  %v303_v41 = vor.u32 %v302_v29, %v298_v28  ;;  %v44_v51 = vld [vmem:[%s24045_s0 + $0x64] sm:$0xf] }
  0x24   :  { %13629 = vmatpush3.bf16.msra.mxu0 %v14575_v7  ;;  %13568 = vmatprep.mubr.bf16.mxu0 %v14576_v14  ;;  %v39_v7 = vld [vmem:[%s24045_s0 + $0x48] sm:$0xf]  ;;  %v279_v14 = vor.u32 %v278_v5, %v274_v4  ;;  %v320_v46 = vshll.u32 %v42_v27, 16  ;;  %v330_v50 = vshll.u32 %v114_v32, 16  ;;  %v317_v54 = vor.u32 %v316_v45, %v313_v43  ;;  %v47_v27 = vld [vmem:[%s24045_s0 + $0x78] sm:$0xf] }
  0x25   :  { %13630 = vmatprep.subr.bf16.mxu0 %v14578_v24  ;;  %v256_v9 = vrot.slane %v255_v1, 4  ;;  %v287_v12 = vshrl.u32 %v39_v7, 16  ;;  %v284_v15 = vrot.slane %v282_v6, 5  ;;  %v290_v16 = vshll.u32 %v39_v7, 16  ;;  %v14583_v1 = vld [vmem:[%s24045_s0 + $0x60] sm:$0xff]  }
  0x26   :  { %v304_v49 = vrot.slane %v303_v41, 4  ;;  %v326_v56 = vrot.slane %v324_v47, 4  ;;  %v332_v58 = vrot.slane %v330_v50, 5  ;;  %v344_v2 = vshll.u32 %v44_v51, 16  ;;  %v117_v32 = vld [vmem:[%s24045_s0 + $0x80] sm:$0x1] }
  0x27   :  { %v261_v17 = vsel %vm15485_vm2, %v256_v9, %v260_v59  ;;  %v289_v18 = vrot.slane %v287_v12, 4  ;;  %v292_v26 = vrot.slane %v290_v16, 5  ;;  %v348_v6 = vshrl.u32 %v44_v51, 16  ;;  %v14585_v12 = vld [vmem:[%s24045_s0 + $0x6c] sm:$0xff]   ;;  %v14586_v41 = vld [vmem:[%s24045_s0 + $0x78] sm:$0xff]  }
  0x28   :  { %13631 = vmatpush3.bf16.msra.mxu0 %v14578_v24  ;;  %v11791_v22 = vcombine.low %v251_v8, %v261_v17  ;;  %v280_v24 = vrot.slane %v279_v14, 4  ;;  %v309_v57 = vsel %vm15485_vm2, %v304_v49, %v308_v42  ;;  %v116_v8 = vld [vmem:[%s24045_s0 + $0x74] sm:$0x1]  ;;  %v346_v11 = vrot.slane %v344_v2, 5  ;;  %v50_v49 = vld [vmem:[%s24045_s0 + $0x88] sm:$0xf] }
  0x29   :  { %13632 = vmatprep.subr.bf16.mxu0 %v14581_v52  ;;  %v293_v37 = vor.u32 %v292_v26, %v289_v18  ;;  %v362_v17 = vshll.u32 %v45_v61, 16  ;;  %v14590_v18 = vld [vmem:[%s24044_s1 + $0x128] sm:$0xff]   ;;  %v370_v29 = vrot.slane %v368_v21, 5  ;;  %v383_v33 = vshrl.u32 %v47_v27, 16  ;;  %v14593_v50 = vld [vmem:[%s24044_s1 + $0x130] sm:$0xff]  }
  0x2a   :  { %13329 = vmatmul.mubr.bf16.gmra.mrb[4].mxu1 %v11790_v63  ;;  %v285_v35 = vsel %vm15485_vm2, %v280_v24, %v284_v15  ;;  %v318_v63 = vrot.slane %v317_v54, 4  ;;  %v350_v15 = vrot.slane %v348_v6, 4  ;;  %v386_v38 = vshll.u32 %v47_v27, 16  ;;  %v14591_v27 = vld [vmem:[%s24045_s0 + $0x9c] sm:$0xff]  }
  0x2b   :  { %13569 = vmatmul.mubr.bf16.gmra.mrb[4].mxu0 %v14577_v48  ;;  %13332 = vmatprep.mubr.bf16.mxu1 %v11791_v22  ;;  %v11792_v40 = vcombine.low %v275_v34, %v285_v35  ;;  %v294_v44 = vrot.slane %v293_v37, 4  ;;  %v43_v48 = vld [vmem:[%s24045_s0 + $0x60] sm:$0xf]  ;;  %v372_v22 = vshrl.u32 %v46_v3, 16  ;;  %v364_v26 = vrot.slane %v362_v17, 5 }
  0x2c   :  { %13572 = vmatprep.mubr.bf16.mxu0 %v14579_v55  ;;  %13633 = vmatpush3.bf16.msra.mxu0 %v14581_v52  ;;  %v115_v52 = vld [vmem:[%s24045_s0 + $0x68] sm:$0x1]  ;;  %v322_v55 = vrot.slane %v320_v46, 5  ;;  %v335_v59 = vshrl.u32 %v43_v48, 16  ;;  %v338_v60 = vshll.u32 %v43_v48, 16  ;;  %v385_v42 = vrot.slane %v383_v33, 4 }
  0x2d   :  { %13634 = vmatprep.subr.bf16.mxu0 %v14584_v62  ;;  %v299_v53 = vsel %vm15485_vm2, %v294_v44, %v298_v28  ;;  %v354_v7 = vshll.u32 %v115_v52, 16  ;;  %v48_v28 = vld [vmem:[%s24045_s0 + $0x7c] sm:$0xf]  ;;  %v374_v30 = vrot.slane %v372_v22, 4  ;;  %v365_v37 = vor.u32 %v364_v26, %v361_v20  ;;  %v49_v44 = vld [vmem:[%s24045_s0 + $0x84] sm:$0xf] }
  0x2e   :  { %v327_v0 = vor.u32 %v326_v56, %v322_v55  ;;  %v337_v4 = vrot.slane %v335_v59, 4  ;;  %v340_v5 = vrot.slane %v338_v60, 5  ;;  %v323_v9 = vsel %vm15485_vm2, %v318_v63, %v322_v55  ;;  %v14588_v55 = vld [vmem:[%s24045_s0 + $0x84] sm:$0xff]   ;;  %v118_v56 = vld [vmem:[%s24045_s0 + $0x8c] sm:$0x1]  ;;  %v14589_v20 = vld [vmem:[%s24045_s0 + $0x90] sm:$0xff]  }
  0x2f   :  { %v356_v16 = vrot.slane %v354_v7, 5  ;;  %v392_v43 = vshll.u32 %v48_v28, 16  ;;  %v366_v46 = vrot.slane %v365_v37, 4  ;;  %v388_v47 = vrot.slane %v386_v38, 5  ;;  %v15696_v22 = vld [vmem:[%s24044_s1 + $0x140] sm:$0xff]  }
  0x30   :  { %13635 = vmatpush3.bf16.msra.mxu0 %v14584_v62  ;;  %v11793_v62 = vcombine.low %v299_v53, %v309_v57  ;;  %v328_v10 = vrot.slane %v327_v0, 4  ;;  %v341_v14 = vor.u32 %v340_v5, %v337_v4  ;;  %v396_v48 = vshrl.u32 %v48_v28, 16  ;;  %v51_v5 = vld [vmem:[%s24045_s0 + $0x90] sm:$0xf]  ;;  %v54_v33 = vld [vmem:[%s24045_s0 + $0xa0] sm:$0xf] }
  0x31   :  { %13636 = vmatprep.subr.bf16.mxu0 %v14587_v39  ;;  %v394_v53 = vrot.slane %v392_v43, 5  ;;  %v402_v54 = vshll.u32 %v117_v32, 16  ;;  %v371_v57 = vsel %vm15485_vm2, %v366_v46, %v370_v29  ;;  %v407_v60 = vshrl.u32 %v49_v44, 16  ;;  %v53_v32 = vld [vmem:[%s24045_s0 + $0x9c] sm:$0xf] }
  0x32   :  { %13333 = vmatmul.mubr.bf16.gmra.mrb[8].mxu1 %v11792_v40  ;;  %v333_v19 = vsel %vm15485_vm2, %v328_v10, %v332_v58  ;;  %v342_v24 = vrot.slane %v341_v14, 4  ;;  %v389_v58 = vor.u32 %v388_v47, %v385_v42  ;;  %v398_v59 = vrot.slane %v396_v48, 4  ;;  %v52_v10 = vld [vmem:[%s24045_s0 + $0x94] sm:$0xf]  ;;  %v120_v38 = vld [vmem:[%s24045_s0 + $0xa4] sm:$0x1] }
  0x33   :  { %13573 = vmatmul.mubr.bf16.gmra.mrb[8].mxu0 %v14580_v25  ;;  %13336 = vmatprep.mubr.bf16.mxu1 %v11793_v62  ;;  %v11794_v23 = vcombine.low %v323_v9, %v333_v19  ;;  %v351_v25 = vor.u32 %v350_v15, %v346_v11  ;;  %v404_v62 = vrot.slane %v402_v54, 5  ;;  %v410_v63 = vshll.u32 %v49_v44, 16  ;;  %v14602_v54 = vld [vmem:[%s24044_s1 + $0x10] sm:$0xff]  }
  0x34   :  { %13576 = vmatprep.mubr.bf16.mxu0 %v14582_v31  ;;  %13637 = vmatpush3.bf16.msra.mxu0 %v14587_v39  ;;  %v378_v31 = vshll.u32 %v116_v8, 16  ;;  %v347_v34 = vsel %vm15485_vm2, %v342_v24, %v346_v11  ;;  %v375_v39 = vor.u32 %v374_v30, %v370_v29  ;;  %v416_v0 = vshll.u32 %v50_v49, 16 }
  0x35   :  { %13638 = vmatprep.subr.bf16.mxu0 %v14590_v18  ;;  %v352_v35 = vrot.slane %v351_v25, 4  ;;  %v390_v2 = vrot.slane %v389_v58, 4  ;;  %v399_v3 = vor.u32 %v398_v59, %v394_v53  ;;  %v409_v4 = vrot.slane %v407_v60, 4  ;;  %v55_v59 = vld [vmem:[%s24045_s0 + $0xa8] sm:$0xf] }
  0x36   :  { %v380_v40 = vrot.slane %v378_v31, 5  ;;  %v376_v52 = vrot.slane %v375_v39, 4  ;;  %v412_v6 = vrot.slane %v410_v63, 5  ;;  %v418_v7 = vrot.slane %v416_v0, 5  ;;  %v56_v63 = vld [vmem:[%s24045_s0 + $0xac] sm:$0xf] }
  0x37   :  { %v357_v45 = vsel %vm15485_vm2, %v352_v35, %v356_v16  ;;  %v420_v8 = vshrl.u32 %v50_v49, 16  ;;  %v426_v9 = vshll.u32 %v118_v56, 16  ;;  %v395_v11 = vsel %vm15485_vm2, %v390_v2, %v394_v53  ;;  %v14596_v16 = vld [vmem:[%s24044_s1 + $0x138] sm:$0xff]   ;;  %v14601_v49 = vld [vmem:[%s24044_s1 + $0x8] sm:$0xff]   ;;  %v121_v0 = vld [vmem:[%s24045_s0 + $0xb0] sm:$0x1] }
  0x38   :  { %13639 = vmatpush3.bf16.msra.mxu0 %v14590_v18  ;;  %v11795_v51 = vcombine.low %v347_v34, %v357_v45  ;;  %v381_v61 = vsel %vm15485_vm2, %v376_v52, %v380_v40  ;;  %v431_v14 = vshrl.u32 %v51_v5, 16  ;;  %v434_v15 = vshll.u32 %v51_v5, 16  ;;  %v14599_v40 = vld [vmem:[%s24044_s1] sm:$0xff]  }
  0x39   :  { %13640 = vmatprep.subr.bf16.mxu0 %v14593_v50  ;;  %v413_v17 = vor.u32 %v412_v6, %v409_v4  ;;  %v422_v18 = vrot.slane %v420_v8, 4  ;;  %v428_v19 = vrot.slane %v426_v9, 5  ;;  %v440_v21 = vshll.u32 %v52_v10, 16  ;;  %13388 = vmatprep.subr.bf16.mxu1 %v14599_v40  ;;  %v14594_v6 = vld [vmem:[%s24045_s0 + $0xb4] sm:$0xff]  }
  0x3a   :  { %13337 = vmatmul.mubr.bf16.gmra.mrb[12].mxu1 %v11794_v23  ;;  %v433_v24 = vrot.slane %v431_v14, 4  ;;  %v436_v25 = vrot.slane %v434_v15, 5  ;;  %v444_v26 = vshrl.u32 %v52_v10, 16  ;;  %v450_v37 = vshll.u32 %v119_v13, 16 }
  0x3b   :  { %13577 = vmatmul.mubr.bf16.gmra.mrb[12].mxu0 %v14583_v1  ;;  %13340 = vmatprep.mubr.bf16.mxu1 %v11795_v51  ;;  %v11796_v1 = vcombine.low %v371_v57, %v381_v61  ;;  %v414_v29 = vrot.slane %v413_v17, 4  ;;  %v423_v30 = vor.u32 %v422_v18, %v418_v7  ;;  %v442_v31 = vrot.slane %v440_v21, 5  ;;  %v58_v17 = vld [vmem:[%s24045_s0 + $0xb8] sm:$0xf] }
  0x3c   :  { %13580 = vmatprep.mubr.bf16.mxu0 %v14585_v12  ;;  %13641 = vmatpush3.bf16.msra.mxu0 %v14593_v50  ;;  %v400_v12 = vrot.slane %v399_v3, 4  ;;  %v437_v34 = vor.u32 %v436_v25, %v433_v24  ;;  %v446_v35 = vrot.slane %v444_v26, 4  ;;  %v455_v39 = vshrl.u32 %v53_v32, 16 }
  0x3d   :  { %13642 = vmatprep.subr.bf16.mxu0 %v14596_v16  ;;  %v424_v42 = vrot.slane %v423_v30, 4  ;;  %v458_v43 = vshll.u32 %v53_v32, 16  ;;  %v464_v44 = vshll.u32 %v54_v33, 16  ;;  %v452_v47 = vrot.slane %v450_v37, 5  ;;  %13389 = vmatpush3.bf16.msra.mxu1 %v14599_v40  ;;  %v14604_v32 = vld [vmem:[%s24044_s1 + $0x20] sm:$0xff]  }
  0x3e   :  { %v405_v23 = vsel %vm15485_vm2, %v400_v12, %v404_v62  ;;  %v438_v45 = vrot.slane %v437_v34, 4  ;;  %v447_v46 = vor.u32 %v446_v35, %v442_v31  ;;  %v457_v48 = vrot.slane %v455_v39, 4  ;;  %13390 = vmatprep.subr.bf16.mxu1 %v14601_v49  ;;  %v14592_v62 = vld [vmem:[%s24045_s0 + $0xa8] sm:$0xff]   ;;  %v57_v12 = vld [vmem:[%s24045_s0 + $0xb4] sm:$0xf] }
  0x3f   :  { %v11797_v28 = vcombine.low %v395_v11, %v405_v23  ;;  %v429_v50 = vsel %vm15485_vm2, %v424_v42, %v428_v19  ;;  %v460_v51 = vrot.slane %v458_v43, 5  ;;  %v466_v52 = vrot.slane %v464_v44, 5  ;;  %v60_v42 = vld [vmem:[%s24045_s0 + $0xdc] sm:$0xf] }
  0x40   :  { %13643 = vmatpush3.bf16.msra.mxu0 %v14596_v16  ;;  %v468_v53 = vshrl.u32 %v54_v33, 16  ;;  %v443_v56 = vsel %vm15485_vm2, %v438_v45, %v442_v31  ;;  %v448_v57 = vrot.slane %v447_v46, 4  ;;  %v474_v58 = vshll.u32 %v120_v38, 16  ;;  %v123_v45 = vld [vmem:[%s24045_s0 + $0xe0] sm:$0x1] }
  0x41   :  { %13708 = vmatprep.subr.bf16.mxu0 %v15696_v22  ;;  %v461_v60 = vor.u32 %v460_v51, %v457_v48  ;;  %v482_v4 = vshll.u32 %v55_v59, 16  ;;  %v488_v5 = vshll.u32 %v56_v63, 16  ;;  %13391 = vmatpush3.bf16.msra.mxu1 %v14601_v49  ;;  %v492_v15 = vshrl.u32 %v56_v63, 16  ;;  %v14595_v51 = vld [vmem:[%s24045_s0 + $0xc0] sm:$0xff]   ;;  %v14606_v63 = vld [vmem:[%s24044_s1 + $0x28] sm:$0xff]  }
  0x42   :  { %13341 = vmatmul.mubr.bf16.gmra.mrb[16].mxu1 %v11796_v1  ;;  %v470_v61 = vrot.slane %v468_v53, 4  ;;  %v479_v1 = vshrl.u32 %v55_v59, 16  ;;  %v453_v2 = vsel %vm15485_vm2, %v448_v57, %v452_v47  ;;  %v476_v3 = vrot.slane %v474_v58, 5  ;;  %13392 = vmatprep.subr.bf16.mxu1 %v14602_v54  ;;  %v12075_v53 = vld [vmem:[%s24045_s0 + $0xc] sm:$0xf] }
  0x43   :  { %13581 = vmatmul.mubr.bf16.gmra.mrb[16].mxu0 %v14586_v41  ;;  %13344 = vmatprep.mubr.bf16.mxu1 %v11797_v28  ;;  %v419_v41 = vsel %vm15485_vm2, %v414_v29, %v418_v7  ;;  %v14603_v7 = vld [vmem:[%s24044_s1 + $0x18] sm:$0xff]   ;;  %v11799_v8 = vcombine.low %v443_v56, %v453_v2  ;;  %v462_v9 = vrot.slane %v461_v60, 4  ;;  %v484_v13 = vrot.slane %v482_v4, 5  ;;  %v12076_v58 = vld [vmem:[%s24045_s0 + $0x10] sm:$0xf] }
  0x44   :  { %13584 = vmatprep.mubr.bf16.mxu0 %v14588_v55  ;;  %v11798_v55 = vcombine.low %v419_v41, %v429_v50  ;;  %v471_v10 = vor.u32 %v470_v61, %v466_v52  ;;  %v481_v11 = vrot.slane %v479_v1, 4  ;;  %v490_v14 = vrot.slane %v488_v5, 5  ;;  %v59_v41 = vld [vmem:[%s24045_s0 + $0xd8] sm:$0xf] }
  0x45   :  { %v498_v16 = vshll.u32 %v121_v0, 16  ;;  %v467_v18 = vsel %vm15485_vm2, %v462_v9, %v466_v52  ;;  %v503_v21 = vshrl.u32 %v57_v12, 16  ;;  %v506_v23 = vshll.u32 %v57_v12, 16  ;;  %13393 = vmatpush3.bf16.msra.mxu1 %v14602_v54  ;;  %v61_v9 = vld [vmem:[%s24045_s0 + $0xe4] sm:$0xf] }
  0x46   :  { %v472_v19 = vrot.slane %v471_v10, 4  ;;  %v485_v24 = vor.u32 %v484_v13, %v481_v11  ;;  %v494_v25 = vrot.slane %v492_v15, 4  ;;  %v516_v31 = vshrl.u32 %v58_v17, 16  ;;  %13394 = vmatprep.subr.bf16.mxu1 %v14603_v7 }
  0x47   :  { %v500_v26 = vrot.slane %v498_v16, 5  ;;  %v505_v29 = vrot.slane %v503_v21, 4  ;;  %v508_v30 = vrot.slane %v506_v23, 5  ;;  %v527_v46 = vshrl.u32 %v59_v41, 16 }
  0x48   :  { %v477_v28 = vsel %vm15485_vm2, %v472_v19, %v476_v3  ;;  %v486_v34 = vrot.slane %v485_v24, 4  ;;  %v495_v35 = vor.u32 %v494_v25, %v490_v14  ;;  %v518_v39 = vrot.slane %v516_v31, 4  ;;  %v12077_v3 = vld [vmem:[%s24045_s0 + $0x14] sm:$0x1]  ;;  %v124_v19 = vld [vmem:[%s24045_s0 + $0xec] sm:$0x1] }
  0x49   :  { %v11800_v33 = vcombine.low %v467_v18, %v477_v28  ;;  %v509_v38 = vor.u32 %v508_v30, %v505_v29  ;;  %v530_v47 = vshll.u32 %v59_v41, 16  ;;  %v536_v52 = vshll.u32 %v60_v42, 16  ;;  %13395 = vmatpush3.bf16.msra.mxu1 %v14603_v7  ;;  %v12078_v29 = vld [vmem:[%s24045_s0 + $0x18] sm:$0xf] }
  0x4a   :  { %13345 = vmatmul.mubr.bf16.gmra.mrb[20].mxu1 %v11798_v55  ;;  %v491_v43 = vsel %vm15485_vm2, %v486_v34, %v490_v14  ;;  %v496_v44 = vrot.slane %v495_v35, 4  ;;  %v529_v55 = vrot.slane %v527_v46, 4  ;;  %v540_v57 = vshrl.u32 %v60_v42, 16  ;;  %13396 = vmatprep.subr.bf16.mxu1 %v14604_v32  ;;  %v62_v14 = vld [vmem:[%s24045_s0 + $0xe8] sm:$0xf] }
  0x4b   :  { %13585 = vmatmul.mubr.bf16.gmra.mrb[20].mxu0 %v14589_v20  ;;  %13348 = vmatprep.mubr.bf16.mxu1 %v11799_v8  ;;  %v122_v20 = vld [vmem:[%s24045_s0 + $0xbc] sm:$0x1]  ;;  %v510_v48 = vrot.slane %v509_v38, 4  ;;  %v532_v56 = vrot.slane %v530_v47, 5  ;;  %v546_v2 = vshll.u32 %v123_v45, 16  ;;  %v3562_v4 = vshrl.u32 %v12075_v53, 16 }
  0x4c   :  { %13588 = vmatprep.mubr.bf16.mxu0 %v14591_v27  ;;  %v512_v27 = vshll.u32 %v58_v17, 16  ;;  %v522_v40 = vshll.u32 %v122_v20, 16  ;;  %v501_v54 = vsel %vm15485_vm2, %v496_v44, %v500_v26  ;;  %v542_v1 = vrot.slane %v540_v57, 4 }
  0x4d   :  { %v11801_v59 = vcombine.low %v491_v43, %v501_v54  ;;  %v533_v0 = vor.u32 %v532_v56, %v529_v55  ;;  %v3571_v7 = vshll.u32 %v12076_v58, 16  ;;  %v3575_v8 = vshrl.u32 %v12076_v58, 16  ;;  %13397 = vmatpush3.bf16.msra.mxu1 %v14604_v32  ;;  %v12079_v43 = vld [vmem:[%s24045_s0 + $0x1c] sm:$0xf] }
  0x4e   :  { %v514_v37 = vrot.slane %v512_v27, 5  ;;  %v524_v50 = vrot.slane %v522_v40, 5  ;;  %v548_v13 = vrot.slane %v546_v2, 5  ;;  %v3564_v15 = vrot.slane %v3562_v4, 4  ;;  %13398 = vmatprep.subr.bf16.mxu1 %v14606_v63  ;;  %v125_v4 = vld [vmem:[%s24045_s0 + $0xf8] sm:$0x1] }
  0x4f   :  { %v534_v11 = vrot.slane %v533_v0, 4  ;;  %v3573_v17 = vrot.slane %v3571_v7, 5  ;;  %v3577_v18 = vrot.slane %v3575_v8, 4  ;;  %v3581_v23 = vshll.u32 %v12077_v3, 16 }
  0x50   :  { %v519_v49 = vor.u32 %v518_v39, %v514_v37  ;;  %v515_v60 = vsel %vm15485_vm2, %v510_v48, %v514_v37  ;;  %v551_v24 = vshrl.u32 %v61_v9, 16  ;;  %v554_v27 = vshll.u32 %v61_v9, 16  ;;  %v14607_v39 = vld [vmem:[%s24044_s1 + $0x30] sm:$0xff]   ;;  %v12080_v48 = vld [vmem:[%s24045_s0 + $0x20] sm:$0x1] }
  0x51   :  { %v3578_v26 = vor.u32 %v3577_v18, %v3573_v17  ;;  %v560_v28 = vshll.u32 %v62_v14, 16  ;;  %v3583_v31 = vrot.slane %v3581_v23, 5  ;;  %13399 = vmatpush3.bf16.msra.mxu1 %v14606_v63  ;;  %v570_v42 = vshll.u32 %v124_v19, 16  ;;  %v12082_v18 = vld [vmem:[%s24045_s0 + $0x28] sm:$0xf] }
  0x52   :  { %13349 = vmatmul.mubr.bf16.gmra.mrb[24].mxu1 %v11800_v33  ;;  %v520_v61 = vrot.slane %v519_v49, 4  ;;  %v553_v32 = vrot.slane %v551_v24, 4  ;;  %v564_v33 = vshrl.u32 %v62_v14, 16  ;;  %v556_v38 = vrot.slane %v554_v27, 5  ;;  %13400 = vmatprep.subr.bf16.mxu1 %v14607_v39  ;;  %v12083_v24 = vld [vmem:[%s24045_s0 + $0x2c] sm:$0x1] }
  0x53   :  { %13589 = vmatmul.mubr.bf16.gmra.mrb[24].mxu0 %v14592_v62  ;;  %v538_v62 = vrot.slane %v536_v52, 5  ;;  %13352 = vmatprep.mubr.bf16.mxu1 %v11801_v59  ;;  %v3579_v37 = vrot.slane %v3578_v26, 4  ;;  %v562_v40 = vrot.slane %v560_v28, 5  ;;  %v3586_v44 = vshrl.u32 %v12078_v29, 16 }
  0x54   :  { %13592 = vmatprep.mubr.bf16.mxu0 %v14594_v6  ;;  %v525_v5 = vsel %vm15485_vm2, %v520_v61, %v524_v50  ;;  %v3565_v6 = vshll.u32 %v12075_v53, 16  ;;  %v566_v41 = vrot.slane %v564_v33, 4  ;;  %v557_v47 = vor.u32 %v556_v38, %v553_v32  ;;  %v63_v50 = vld [vmem:[%s24045_s0 + $0xf0] sm:$0xf]  ;;  %v64_v61 = vld [vmem:[%s24045_s0 + $0xf4] sm:$0xf] }
  0x55   :  { %v11802_v10 = vcombine.low %v515_v60, %v525_v5  ;;  %v543_v12 = vor.u32 %v542_v1, %v538_v62  ;;  %v539_v20 = vsel %vm15485_vm2, %v534_v11, %v538_v62  ;;  %v3584_v46 = vsel %vm15485_vm2, %v3579_v37, %v3583_v31  ;;  %13401 = vmatpush3.bf16.msra.mxu1 %v14607_v39  ;;  %v12081_v5 = vld [vmem:[%s24045_s0 + $0x24] sm:$0xf] }
  0x56   :  { %v3567_v16 = vrot.slane %v3565_v6, 5  ;;  %v3589_v49 = vshll.u32 %v12078_v29, 16  ;;  %v567_v52 = vor.u32 %v566_v41, %v562_v40  ;;  %v572_v53 = vrot.slane %v570_v42, 5  ;;  %v14598_v41 = vld [vmem:[%s24044_s1 + $0x148] sm:$0xff]  }
  0x57   :  { %v544_v21 = vrot.slane %v543_v12, 4  ;;  %v3588_v54 = vrot.slane %v3586_v44, 4  ;;  %v558_v55 = vrot.slane %v557_v47, 4  ;;  %v3595_v57 = vshll.u32 %v12079_v43, 16 }
  0x58   :  { %v3568_v25 = vor.u32 %v3567_v16, %v3564_v15  ;;  %v3591_v56 = vrot.slane %v3589_v49, 5  ;;  %v3599_v58 = vshrl.u32 %v12079_v43, 16  ;;  %v568_v59 = vrot.slane %v567_v52, 4 }
  0x59   :  { %v549_v30 = vsel %vm15485_vm2, %v544_v21, %v548_v13  ;;  %v3605_v60 = vshll.u32 %v12080_v48, 16  ;;  %v575_v62 = vshrl.u32 %v63_v50, 16  ;;  %v578_v63 = vshll.u32 %v63_v50, 16 }
  0x5a   :  { %13353 = vmatmul.mubr.bf16.gmra.mrb[28].mxu1 %v11802_v10  ;;  %v11803_v34 = vcombine.low %v539_v20, %v549_v30  ;;  %v3569_v35 = vrot.slane %v3568_v25, 4  ;;  %v563_v0 = vsel %vm15485_vm2, %v558_v55, %v562_v40  ;;  %v3592_v1 = vor.u32 %v3591_v56, %v3588_v54  ;;  %v14608_v10 = vld [vmem:[%s24044_s1 + $0x38] sm:$0xff]   ;;  %v12085_v56 = vld [vmem:[%s24045_s0 + $0x34] sm:$0xf] }
  0x5b   :  { %13593 = vmatmul.mubr.bf16.gmra.mrb[28].mxu0 %v14595_v51  ;;  %v3597_v2 = vrot.slane %v3595_v57, 5  ;;  %v3601_v3 = vrot.slane %v3599_v58, 4  ;;  %v573_v6 = vsel %vm15485_vm2, %v568_v59, %v572_v53  ;;  %v3607_v7 = vrot.slane %v3605_v60, 5  ;;  %13402 = vmatprep.subr.bf16.mxu1 %v14608_v10  ;;  %v65_v30 = vld [vmem:[%s24045_s0 + $0xfc] sm:$0xf] }
  0x5c   :  { %13356 = vmatprep.mubr.bf16.mxu1 %v11803_v34  ;;  %v3574_v45 = vsel %vm15485_vm2, %v3569_v35, %v3573_v17  ;;  %v577_v8 = vrot.slane %v575_v62, 4  ;;  %v580_v9 = vrot.slane %v578_v63, 5  ;;  %v11804_v11 = vcombine.low %v563_v0, %v573_v6  ;;  %13403 = vmatpush3.bf16.msra.mxu1 %v14608_v10  ;;  %v66_v35 = vld [vmem:[%s24045_s0 + $0x100] sm:$0xf]  ;;  %v67_v10 = vld [vmem:[%s24045_s0 + $0x108] sm:$0xf] }
  0x5d   :  { %v12187_v51 = vcombine.low %v3574_v45, %v3584_v46  ;;  %v3593_v12 = vrot.slane %v3592_v1, 4  ;;  %v3602_v13 = vor.u32 %v3601_v3, %v3597_v2  ;;  %v584_v14 = vshll.u32 %v64_v61, 16  ;;  %v126_v45 = vld [vmem:[%s24045_s0 + $0x104] sm:$0x1]  ;;  %v12086_v3 = vld [vmem:[%s24045_s0 + $0x38] sm:$0x1] }
  0x5e   :  { %v581_v15 = vor.u32 %v580_v9, %v577_v8  ;;  %v588_v16 = vshrl.u32 %v64_v61, 16  ;;  %v594_v17 = vshll.u32 %v125_v4, 16  ;;  %v3610_v19 = vshrl.u32 %v12081_v5, 16  ;;  %v14600_v61 = vld [vmem:[%s24044_s1 + $0x150] sm:$0xff]  }
  0x5f   :  { %13644 = vmatprep.mubr.bf16.mxu0 %v12187_v51  ;;  %v3598_v20 = vsel %vm15485_vm2, %v3593_v12, %v3597_v2  ;;  %v3603_v21 = vrot.slane %v3602_v13, 4  ;;  %v586_v23 = vrot.slane %v584_v14, 5  ;;  %v3613_v25 = vshll.u32 %v12081_v5, 16  ;;  %v12084_v51 = vld [vmem:[%s24045_s0 + $0x30] sm:$0xf] }
  0x60   :  { %v582_v26 = vrot.slane %v581_v15, 4  ;;  %v590_v27 = vrot.slane %v588_v16, 4  ;;  %v596_v28 = vrot.slane %v594_v17, 5  ;;  %v3612_v29 = vrot.slane %v3610_v19, 4  ;;  %v68_v15 = vld [vmem:[%s24045_s0 + $0x10c] sm:$0xf] }
  0x61   :  { %v3608_v31 = vsel %vm15485_vm2, %v3603_v21, %v3607_v7  ;;  %v3615_v32 = vrot.slane %v3613_v25, 5  ;;  %v3619_v33 = vshll.u32 %v12082_v18, 16  ;;  %v3623_v34 = vshrl.u32 %v12082_v18, 16  ;;  %v14605_v16 = vld [vmem:[%s24044_s1 + $0x158] sm:$0xff]  }
  0x62   :  { %13357 = vmatmul.mubr.bf16.gmra.mrb[32].mxu1 %v11804_v11  ;;  %v12188_v37 = vcombine.low %v3598_v20, %v3608_v31  ;;  %v587_v38 = vsel %vm15485_vm2, %v582_v26, %v586_v23  ;;  %v591_v39 = vor.u32 %v590_v27, %v586_v23  ;;  %v3629_v40 = vshll.u32 %v12083_v24, 16  ;;  %v127_v24 = vld [vmem:[%s24045_s0 + $0x110] sm:$0x1]  ;;  %v12087_v31 = vld [vmem:[%s24045_s0 + $0x3c] sm:$0xf] }
  0x63   :  { %v3616_v42 = vor.u32 %v3615_v32, %v3612_v29  ;;  %v3621_v43 = vrot.slane %v3619_v33, 5  ;;  %v3625_v44 = vrot.slane %v3623_v34, 4  ;;  %v599_v46 = vshrl.u32 %v65_v30, 16 }
  0x64   :  { %13645 = vmatmul.mubr.bf16.vlgmr.msra.gmra.mrb[0].mxu0 %v12188_v37  ;;  %v592_v47 = vrot.slane %v591_v39, 4  ;;  %v3631_v48 = vrot.slane %v3629_v40, 5  ;;  %v602_v49 = vshll.u32 %v65_v30, 16  ;;  %v608_v50 = vshll.u32 %v66_v35, 16  ;;  %v12088_v37 = vld [vmem:[%s24045_s0 + $0x40] sm:$0xf] }
  0x65   :  { %13709 = vmatpush3.bf16.msra.mxu0 %v15696_v22  ;;  %v3617_v52 = vrot.slane %v3616_v42, 4  ;;  %v3626_v53 = vor.u32 %v3625_v44, %v3621_v43  ;;  %v601_v54 = vrot.slane %v599_v46, 4  ;;  %v612_v55 = vshrl.u32 %v66_v35, 16 }
  0x66   :  { %v597_v57 = vsel %vm15485_vm2, %v592_v47, %v596_v28  ;;  %v604_v58 = vrot.slane %v602_v49, 5  ;;  %v610_v59 = vrot.slane %v608_v50, 5  ;;  %v618_v60 = vshll.u32 %v126_v45, 16  ;;  %13710 = vmatprep.subr.bf16.mxu0 %v14598_v41  ;;  %v12089_v45 = vld [vmem:[%s24045_s0 + $0x44] sm:$0x1] }
  0x67   :  { %v11805_v22 = vcombine.low %v587_v38, %v597_v57  ;;  %v3622_v62 = vsel %vm15485_vm2, %v3617_v52, %v3621_v43  ;;  %v3627_v63 = vrot.slane %v3626_v53, 4  ;;  %v614_v0 = vrot.slane %v612_v55, 4  ;;  %v14611_v38 = vld [vmem:[%s24044_s1 + $0x160] sm:$0xff]   ;;  %v69_v52 = vld [vmem:[%s24045_s0 + $0x114] sm:$0xf] }
  0x68   :  { %v605_v1 = vor.u32 %v604_v58, %v601_v54  ;;  %v620_v2 = vrot.slane %v618_v60, 5  ;;  %v3634_v4 = vshrl.u32 %v12084_v51, 16  ;;  %v3637_v5 = vshll.u32 %v12084_v51, 16  ;;  %v70_v57 = vld [vmem:[%s24045_s0 + $0x118] sm:$0xf] }
  0x69   :  { %13360 = vmatprep.mubr.bf16.mxu1 %v11805_v22  ;;  %v3632_v6 = vsel %vm15485_vm2, %v3627_v63, %v3631_v48  ;;  %v615_v7 = vor.u32 %v614_v0, %v610_v59  ;;  %v3643_v8 = vshll.u32 %v12085_v56, 16  ;;  %v3647_v9 = vshrl.u32 %v12085_v56, 16  ;;  %13711 = vmatpush3.bf16.msra.mxu0 %v14598_v41  ;;  %v128_v63 = vld [vmem:[%s24045_s0 + $0x11c] sm:$0x1] }
  0x6a   :  { %v12189_v11 = vcombine.low %v3622_v62, %v3632_v6  ;;  %v606_v12 = vrot.slane %v605_v1, 4  ;;  %v3636_v13 = vrot.slane %v3634_v4, 4  ;;  %v3639_v14 = vrot.slane %v3637_v5, 5  ;;  %13712 = vmatprep.subr.bf16.mxu0 %v14600_v61  ;;  %v12090_v6 = vld [vmem:[%s24045_s0 + $0x48] sm:$0xf] }
  0x6b   :  { %v616_v17 = vrot.slane %v615_v7, 4  ;;  %v3645_v18 = vrot.slane %v3643_v8, 5  ;;  %v3649_v19 = vrot.slane %v3647_v9, 4  ;;  %v3653_v20 = vshll.u32 %v12086_v3, 16 }
  0x6c   :  { %13648 = vmatprep.mubr.bf16.mxu0 %v12189_v11  ;;  %v611_v21 = vsel %vm15485_vm2, %v606_v12, %v610_v59  ;;  %v3640_v23 = vor.u32 %v3639_v14, %v3636_v13  ;;  %v623_v25 = vshrl.u32 %v67_v10, 16  ;;  %v626_v26 = vshll.u32 %v67_v10, 16  ;;  %v12091_v11 = vld [vmem:[%s24045_s0 + $0x4c] sm:$0xf] }
  0x6d   :  { %v621_v27 = vsel %vm15485_vm2, %v616_v17, %v620_v2  ;;  %v3650_v28 = vor.u32 %v3649_v19, %v3645_v18  ;;  %v3655_v29 = vrot.slane %v3653_v20, 5  ;;  %v632_v30 = vshll.u32 %v68_v15, 16  ;;  %13713 = vmatpush3.bf16.msra.mxu0 %v14600_v61  ;;  %v12092_v20 = vld [vmem:[%s24045_s0 + $0x50] sm:$0x1] }
  0x6e   :  { %v11806_v32 = vcombine.low %v611_v21, %v621_v27  ;;  %v3641_v33 = vrot.slane %v3640_v23, 4  ;;  %v625_v34 = vrot.slane %v623_v25, 4  ;;  %v628_v35 = vrot.slane %v626_v26, 5  ;;  %13714 = vmatprep.subr.bf16.mxu0 %v14605_v16  ;;  %v71_v21 = vld [vmem:[%s24045_s0 + $0x120] sm:$0xf]  ;;  %v14616_v23 = vld [vmem:[%s24044_s1 + $0x168] sm:$0xff]  }
  0x6f   :  { %v3651_v39 = vrot.slane %v3650_v28, 4  ;;  %v634_v40 = vrot.slane %v632_v30, 5  ;;  %v636_v41 = vshrl.u32 %v68_v15, 16  ;;  %v642_v42 = vshll.u32 %v127_v24, 16  ;;  %v72_v28 = vld [vmem:[%s24045_s0 + $0x124] sm:$0xf] }
  0x70   :  { %13361 = vmatmul.mubr.bf16.gmra.mrb[36].mxu1 %v11806_v32  ;;  %v3646_v43 = vsel %vm15485_vm2, %v3641_v33, %v3645_v18  ;;  %v629_v44 = vor.u32 %v628_v35, %v625_v34  ;;  %v3658_v46 = vshrl.u32 %v12087_v31, 16  ;;  %v3661_v47 = vshll.u32 %v12087_v31, 16 }
  0x71   :  { %v3656_v48 = vsel %vm15485_vm2, %v3651_v39, %v3655_v29  ;;  %v638_v49 = vrot.slane %v636_v41, 4  ;;  %v644_v50 = vrot.slane %v642_v42, 5  ;;  %v3667_v51 = vshll.u32 %v12088_v37, 16  ;;  %13715 = vmatpush3.bf16.msra.mxu0 %v14605_v16 }
  0x72   :  { %v12190_v53 = vcombine.low %v3646_v43, %v3656_v48  ;;  %v630_v54 = vrot.slane %v629_v44, 4  ;;  %v3660_v55 = vrot.slane %v3658_v46, 4  ;;  %v3663_v56 = vrot.slane %v3661_v47, 5  ;;  %13716 = vmatprep.subr.bf16.mxu0 %v14611_v38 }
  0x73   :  { %v639_v58 = vor.u32 %v638_v49, %v634_v40  ;;  %v3669_v59 = vrot.slane %v3667_v51, 5  ;;  %v3671_v60 = vshrl.u32 %v12088_v37, 16  ;;  %v3677_v61 = vshll.u32 %v12089_v45, 16  ;;  %v129_v45 = vld [vmem:[%s24045_s0 + $0x128] sm:$0x1] }
  0x74   :  { %13649 = vmatmul.mubr.bf16.gmra.mrb[4].mxu0 %v12190_v53  ;;  %v635_v22 = vsel %vm15485_vm2, %v630_v54, %v634_v40  ;;  %v3664_v62 = vor.u32 %v3663_v56, %v3660_v55  ;;  %v647_v0 = vshrl.u32 %v69_v52, 16  ;;  %v650_v1 = vshll.u32 %v69_v52, 16  ;;  %v12093_v51 = vld [vmem:[%s24045_s0 + $0x54] sm:$0xf]  ;;  %v12094_v56 = vld [vmem:[%s24045_s0 + $0x58] sm:$0xf] }
  0x75   :  { %v640_v2 = vrot.slane %v639_v58, 4  ;;  %v3673_v3 = vrot.slane %v3671_v60, 4  ;;  %v3679_v4 = vrot.slane %v3677_v61, 5  ;;  %v656_v5 = vshll.u32 %v70_v57, 16  ;;  %13717 = vmatpush3.bf16.msra.mxu0 %v14611_v38 }
  0x76   :  { %v3665_v7 = vrot.slane %v3664_v62, 4  ;;  %v649_v8 = vrot.slane %v647_v0, 4  ;;  %v652_v9 = vrot.slane %v650_v1, 5  ;;  %v660_v10 = vshrl.u32 %v70_v57, 16  ;;  %13718 = vmatprep.subr.bf16.mxu0 %v14616_v23 }
  0x77   :  { %v645_v12 = vsel %vm15485_vm2, %v640_v2, %v644_v50  ;;  %v3674_v13 = vor.u32 %v3673_v3, %v3669_v59  ;;  %v658_v14 = vrot.slane %v656_v5, 5  ;;  %v666_v15 = vshll.u32 %v128_v63, 16  ;;  %v12095_v3 = vld [vmem:[%s24045_s0 + $0x5c] sm:$0x1]  ;;  %v73_v5 = vld [vmem:[%s24045_s0 + $0x12c] sm:$0xf] }
  0x78   :  { %v11807_v16 = vcombine.low %v635_v22, %v645_v12  ;;  %v3670_v17 = vsel %vm15485_vm2, %v3665_v7, %v3669_v59  ;;  %v653_v18 = vor.u32 %v652_v9, %v649_v8  ;;  %v662_v19 = vrot.slane %v660_v10, 4  ;;  %v74_v10 = vld [vmem:[%s24045_s0 + $0x130] sm:$0xf] }
  0x79   :  { %v3675_v24 = vrot.slane %v3674_v13, 4  ;;  %v668_v25 = vrot.slane %v666_v15, 5  ;;  %v3682_v26 = vshrl.u32 %v12090_v6, 16  ;;  %v3685_v27 = vshll.u32 %v12090_v6, 16  ;;  %13719 = vmatpush3.bf16.msra.mxu0 %v14616_v23 }
  0x7a   :  { %13364 = vmatprep.mubr.bf16.mxu1 %v11807_v16  ;;  %v654_v29 = vrot.slane %v653_v18, 4  ;;  %v663_v30 = vor.u32 %v662_v19, %v658_v14  ;;  %v3691_v31 = vshll.u32 %v12091_v11, 16  ;;  %v3695_v32 = vshrl.u32 %v12091_v11, 16 }
  0x7b   :  { %v3680_v33 = vsel %vm15485_vm2, %v3675_v24, %v3679_v4  ;;  %v3684_v34 = vrot.slane %v3682_v26, 4  ;;  %v3687_v35 = vrot.slane %v3685_v27, 5  ;;  %v3701_v37 = vshll.u32 %v12092_v20, 16 }
  0x7c   :  { %v12191_v38 = vcombine.low %v3670_v17, %v3680_v33  ;;  %v659_v39 = vsel %vm15485_vm2, %v654_v29, %v658_v14  ;;  %v664_v40 = vrot.slane %v663_v30, 4  ;;  %v3693_v41 = vrot.slane %v3691_v31, 5  ;;  %v12097_v30 = vld [vmem:[%s24045_s0 + $0x64] sm:$0xf] }
  0x7d   :  { %v3688_v42 = vor.u32 %v3687_v35, %v3684_v34  ;;  %v3697_v43 = vrot.slane %v3695_v32, 4  ;;  %v3703_v44 = vrot.slane %v3701_v37, 5  ;;  %v671_v46 = vshrl.u32 %v71_v21, 16 }
  0x7e   :  { %13652 = vmatprep.mubr.bf16.mxu0 %v12191_v38  ;;  %v669_v47 = vsel %vm15485_vm2, %v664_v40, %v668_v25  ;;  %v674_v48 = vshll.u32 %v71_v21, 16  ;;  %v680_v49 = vshll.u32 %v72_v28, 16  ;;  %v684_v50 = vshrl.u32 %v72_v28, 16  ;;  %v130_v21 = vld [vmem:[%s24045_s0 + $0x134] sm:$0x1] }
  0x7f   :  { %v11808_v52 = vcombine.low %v659_v39, %v669_v47  ;;  %v3689_v53 = vrot.slane %v3688_v42, 4  ;;  %v3698_v54 = vor.u32 %v3697_v43, %v3693_v41  ;;  %v673_v55 = vrot.slane %v671_v46, 4  ;;  %v12096_v25 = vld [vmem:[%s24045_s0 + $0x60] sm:$0xf]  ;;  %v12098_v39 = vld [vmem:[%s24045_s0 + $0x68] sm:$0x1] }
  0x80   :  { %v676_v57 = vrot.slane %v674_v48, 5  ;;  %v682_v58 = vrot.slane %v680_v49, 5  ;;  %v686_v59 = vrot.slane %v684_v50, 4  ;;  %v690_v60 = vshll.u32 %v129_v45, 16  ;;  %v75_v46 = vld [vmem:[%s24045_s0 + $0x138] sm:$0xf] }
  0x81   :  { %13365 = vmatmul.mubr.bf16.gmra.mrb[40].mxu1 %v11808_v52  ;;  %v3694_v61 = vsel %vm15485_vm2, %v3689_v53, %v3693_v41  ;;  %v3699_v22 = vrot.slane %v3698_v54, 4  ;;  %v3706_v62 = vshrl.u32 %v12093_v51, 16  ;;  %v3709_v63 = vshll.u32 %v12093_v51, 16  ;;  %v14621_v41 = vld [vmem:[%s24044_s1 + $0x170] sm:$0xff]  }
  0x82   :  { %v677_v0 = vor.u32 %v676_v57, %v673_v55  ;;  %v687_v1 = vor.u32 %v686_v59, %v682_v58  ;;  %v692_v2 = vrot.slane %v690_v60, 5  ;;  %v3715_v4 = vshll.u32 %v12094_v56, 16  ;;  %13720 = vmatprep.subr.bf16.mxu0 %v14621_v41  ;;  %v76_v55 = vld [vmem:[%s24045_s0 + $0x13c] sm:$0xf] }
  0x83   :  { %v3704_v6 = vsel %vm15485_vm2, %v3699_v22, %v3703_v44  ;;  %v3708_v7 = vrot.slane %v3706_v62, 4  ;;  %v3711_v8 = vrot.slane %v3709_v63, 5  ;;  %v3719_v9 = vshrl.u32 %v12094_v56, 16  ;;  %13721 = vmatpush3.bf16.msra.mxu0 %v14621_v41  ;;  %v131_v62 = vld [vmem:[%s24045_s0 + $0x140] sm:$0x1] }
  0x84   :  { %v12192_v11 = vcombine.low %v3694_v61, %v3704_v6  ;;  %v678_v12 = vrot.slane %v677_v0, 4  ;;  %v688_v13 = vrot.slane %v687_v1, 4  ;;  %v3717_v14 = vrot.slane %v3715_v4, 5  ;;  %v12099_v0 = vld [vmem:[%s24045_s0 + $0x6c] sm:$0xf] }
  0x85   :  { %v3712_v15 = vor.u32 %v3711_v8, %v3708_v7  ;;  %v3721_v16 = vrot.slane %v3719_v9, 4  ;;  %v3725_v17 = vshll.u32 %v12095_v3, 16  ;;  %v695_v18 = vshrl.u32 %v73_v5, 16 }
  0x86   :  { %13653 = vmatmul.mubr.bf16.gmra.mrb[8].mxu0 %v12192_v11  ;;  %v683_v19 = vsel %vm15485_vm2, %v678_v12, %v682_v58  ;;  %v693_v20 = vsel %vm15485_vm2, %v688_v13, %v692_v2  ;;  %v698_v23 = vshll.u32 %v73_v5, 16  ;;  %v704_v24 = vshll.u32 %v74_v10, 16  ;;  %v12100_v5 = vld [vmem:[%s24045_s0 + $0x70] sm:$0xf] }
  0x87   :  { %v11809_v26 = vcombine.low %v683_v19, %v693_v20  ;;  %v3713_v27 = vrot.slane %v3712_v15, 4  ;;  %v3722_v28 = vor.u32 %v3721_v16, %v3717_v14  ;;  %v3727_v29 = vrot.slane %v3725_v17, 5  ;;  %v12101_v17 = vld [vmem:[%s24045_s0 + $0x74] sm:$0x1]  ;;  %v77_v19 = vld [vmem:[%s24045_s0 + $0x144] sm:$0xf] }
  0x88   :  { %v697_v31 = vrot.slane %v695_v18, 4  ;;  %v700_v32 = vrot.slane %v698_v23, 5  ;;  %v706_v33 = vrot.slane %v704_v24, 5  ;;  %v708_v34 = vshrl.u32 %v74_v10, 16 }
  0x89   :  { %13368 = vmatprep.mubr.bf16.mxu1 %v11809_v26  ;;  %v3718_v35 = vsel %vm15485_vm2, %v3713_v27, %v3717_v14  ;;  %v3723_v37 = vrot.slane %v3722_v28, 4  ;;  %v714_v38 = vshll.u32 %v130_v21, 16  ;;  %v3730_v40 = vshrl.u32 %v12096_v25, 16 }
  0x8a   :  { %v701_v42 = vor.u32 %v700_v32, %v697_v31  ;;  %v710_v43 = vrot.slane %v708_v34, 4  ;;  %v3733_v44 = vshll.u32 %v12096_v25, 16  ;;  %v3739_v45 = vshll.u32 %v12097_v30, 16  ;;  %v78_v25 = vld [vmem:[%s24045_s0 + $0x148] sm:$0xf] }
  0x8b   :  { %v3728_v47 = vsel %vm15485_vm2, %v3723_v37, %v3727_v29  ;;  %v716_v48 = vrot.slane %v714_v38, 5  ;;  %v3732_v49 = vrot.slane %v3730_v40, 4  ;;  %v3743_v50 = vshrl.u32 %v12097_v30, 16  ;;  %v132_v34 = vld [vmem:[%s24045_s0 + $0x14c] sm:$0x1] }
  0x8c   :  { %v12193_v51 = vcombine.low %v3718_v35, %v3728_v47  ;;  %v702_v52 = vrot.slane %v701_v42, 4  ;;  %v711_v53 = vor.u32 %v710_v43, %v706_v33  ;;  %v3735_v54 = vrot.slane %v3733_v44, 5  ;;  %v12102_v44 = vld [vmem:[%s24045_s0 + $0x78] sm:$0xf] }
  0x8d   :  { %v3741_v56 = vrot.slane %v3739_v45, 5  ;;  %v3745_v57 = vrot.slane %v3743_v50, 4  ;;  %v3749_v58 = vshll.u32 %v12098_v39, 16  ;;  %v719_v59 = vshrl.u32 %v75_v46, 16 }
  0x8e   :  { %13656 = vmatprep.mubr.bf16.mxu0 %v12193_v51  ;;  %v707_v60 = vsel %vm15485_vm2, %v702_v52, %v706_v33  ;;  %v712_v61 = vrot.slane %v711_v53, 4  ;;  %v3736_v22 = vor.u32 %v3735_v54, %v3732_v49  ;;  %v722_v63 = vshll.u32 %v75_v46, 16  ;;  %v12103_v49 = vld [vmem:[%s24045_s0 + $0x7c] sm:$0xf] }
  0x8f   :  { %v3746_v1 = vor.u32 %v3745_v57, %v3741_v56  ;;  %v3751_v2 = vrot.slane %v3749_v58, 5  ;;  %v721_v3 = vrot.slane %v719_v59, 4  ;;  %v728_v4 = vshll.u32 %v76_v55, 16  ;;  %v14626_v58 = vld [vmem:[%s24044_s1 + $0x178] sm:$0xff]  }
  0x90   :  { %v717_v6 = vsel %vm15485_vm2, %v712_v61, %v716_v48  ;;  %v3737_v7 = vrot.slane %v3736_v22, 4  ;;  %v724_v8 = vrot.slane %v722_v63, 5  ;;  %v732_v9 = vshrl.u32 %v76_v55, 16  ;;  %v12104_v61 = vld [vmem:[%s24045_s0 + $0x80] sm:$0x1]  ;;  %13722 = vmatprep.subr.bf16.mxu0 %v14626_v58 }
  0x91   :  { %v11810_v10 = vcombine.low %v707_v60, %v717_v6  ;;  %v3747_v11 = vrot.slane %v3746_v1, 4  ;;  %v730_v12 = vrot.slane %v728_v4, 5  ;;  %v738_v13 = vshll.u32 %v131_v62, 16  ;;  %13723 = vmatpush3.bf16.msra.mxu0 %v14626_v58 }
  0x92   :  { %v3742_v14 = vsel %vm15485_vm2, %v3737_v7, %v3741_v56  ;;  %v725_v15 = vor.u32 %v724_v8, %v721_v3  ;;  %v734_v16 = vrot.slane %v732_v9, 4  ;;  %v3754_v18 = vshrl.u32 %v12099_v0, 16  ;;  %v79_v3 = vld [vmem:[%s24045_s0 + $0x150] sm:$0xf]  ;;  %v80_v8 = vld [vmem:[%s24045_s0 + $0x154] sm:$0xf] }
  0x93   :  { %13369 = vmatmul.mubr.bf16.gmra.mrb[44].mxu1 %v11810_v10  ;;  %v3752_v20 = vsel %vm15485_vm2, %v3747_v11, %v3751_v2  ;;  %v740_v21 = vrot.slane %v738_v13, 5  ;;  %v3757_v23 = vshll.u32 %v12099_v0, 16  ;;  %v3763_v24 = vshll.u32 %v12100_v5, 16  ;;  %v133_v13 = vld [vmem:[%s24045_s0 + $0x158] sm:$0x1] }
  0x94   :  { %v12194_v26 = vcombine.low %v3742_v14, %v3752_v20  ;;  %v726_v27 = vrot.slane %v725_v15, 4  ;;  %v735_v28 = vor.u32 %v734_v16, %v730_v12  ;;  %v3756_v29 = vrot.slane %v3754_v18, 4 }
  0x95   :  { %v3759_v30 = vrot.slane %v3757_v23, 5  ;;  %v3765_v31 = vrot.slane %v3763_v24, 5  ;;  %v3767_v32 = vshrl.u32 %v12100_v5, 16  ;;  %v3773_v33 = vshll.u32 %v12101_v17, 16  ;;  %v12105_v23 = vld [vmem:[%s24045_s0 + $0x84] sm:$0xf] }
  0x96   :  { %13657 = vmatmul.mubr.bf16.gmra.mrb[12].mxu0 %v12194_v26  ;;  %v731_v35 = vsel %vm15485_vm2, %v726_v27, %v730_v12  ;;  %v736_v37 = vrot.slane %v735_v28, 4  ;;  %v743_v38 = vshrl.u32 %v77_v19, 16  ;;  %v746_v39 = vshll.u32 %v77_v19, 16  ;;  %v12106_v28 = vld [vmem:[%s24045_s0 + $0x88] sm:$0xf] }
  0x97   :  { %v3760_v40 = vor.u32 %v3759_v30, %v3756_v29  ;;  %v3769_v41 = vrot.slane %v3767_v32, 4  ;;  %v3775_v42 = vrot.slane %v3773_v33, 5  ;;  %v752_v43 = vshll.u32 %v78_v25, 16 }
  0x98   :  { %v741_v45 = vsel %vm15485_vm2, %v736_v37, %v740_v21  ;;  %v745_v46 = vrot.slane %v743_v38, 4  ;;  %v748_v47 = vrot.slane %v746_v39, 5  ;;  %v756_v48 = vshrl.u32 %v78_v25, 16 }
  0x99   :  { %v11811_v50 = vcombine.low %v731_v35, %v741_v45  ;;  %v3761_v51 = vrot.slane %v3760_v40, 4  ;;  %v3770_v52 = vor.u32 %v3769_v41, %v3765_v31  ;;  %v754_v53 = vrot.slane %v752_v43, 5  ;;  %v12107_v41 = vld [vmem:[%s24045_s0 + $0x8c] sm:$0x1]  ;;  %v81_v43 = vld [vmem:[%s24045_s0 + $0x15c] sm:$0xf] }
  0x9a   :  { %v749_v54 = vor.u32 %v748_v47, %v745_v46  ;;  %v758_v55 = vrot.slane %v756_v48, 4  ;;  %v762_v56 = vshll.u32 %v132_v34, 16  ;;  %v3778_v57 = vshrl.u32 %v12102_v44, 16  ;;  %v82_v48 = vld [vmem:[%s24045_s0 + $0x160] sm:$0xf] }
  0x9b   :  { %13372 = vmatprep.mubr.bf16.mxu1 %v11811_v50  ;;  %v3766_v59 = vsel %vm15485_vm2, %v3761_v51, %v3765_v31  ;;  %v3771_v60 = vrot.slane %v3770_v52, 4  ;;  %v3781_v22 = vshll.u32 %v12102_v44, 16  ;;  %v3787_v62 = vshll.u32 %v12103_v49, 16 }
  0x9c   :  { %v750_v63 = vrot.slane %v749_v54, 4  ;;  %v759_v0 = vor.u32 %v758_v55, %v754_v53  ;;  %v764_v1 = vrot.slane %v762_v56, 5  ;;  %v3780_v2 = vrot.slane %v3778_v57, 4  ;;  %v134_v56 = vld [vmem:[%s24045_s0 + $0x164] sm:$0x1] }
  0x9d   :  { %v3776_v4 = vsel %vm15485_vm2, %v3771_v60, %v3775_v42  ;;  %v3783_v5 = vrot.slane %v3781_v22, 5  ;;  %v3789_v6 = vrot.slane %v3787_v62, 5  ;;  %v3791_v7 = vshrl.u32 %v12103_v49, 16  ;;  %v12108_v22 = vld [vmem:[%s24045_s0 + $0x90] sm:$0xf] }
  0x9e   :  { %v12195_v9 = vcombine.low %v3766_v59, %v3776_v4  ;;  %v755_v10 = vsel %vm15485_vm2, %v750_v63, %v754_v53  ;;  %v760_v11 = vrot.slane %v759_v0, 4  ;;  %v3797_v12 = vshll.u32 %v12104_v61, 16 }
  0x9f   :  { %v3784_v14 = vor.u32 %v3783_v5, %v3780_v2  ;;  %v3793_v15 = vrot.slane %v3791_v7, 4  ;;  %v767_v16 = vshrl.u32 %v79_v3, 16  ;;  %v770_v17 = vshll.u32 %v79_v3, 16  ;;  %v12109_v2 = vld [vmem:[%s24045_s0 + $0x94] sm:$0xf] }
  0xa0   :  { %13660 = vmatprep.mubr.bf16.mxu0 %v12195_v9  ;;  %v765_v18 = vsel %vm15485_vm2, %v760_v11, %v764_v1  ;;  %v3799_v19 = vrot.slane %v3797_v12, 5  ;;  %v776_v20 = vshll.u32 %v80_v8, 16  ;;  %v780_v21 = vshrl.u32 %v80_v8, 16  ;;  %v14631_v12 = vld [vmem:[%s24044_s1 + $0x180] sm:$0xff]  }
  0xa1   :  { %v11812_v24 = vcombine.low %v755_v10, %v765_v18  ;;  %v3785_v25 = vrot.slane %v3784_v14, 4  ;;  %v3794_v26 = vor.u32 %v3793_v15, %v3789_v6  ;;  %v769_v27 = vrot.slane %v767_v16, 4  ;;  %v12110_v10 = vld [vmem:[%s24045_s0 + $0x98] sm:$0x1]  ;;  %13788 = vmatprep.subr.bf16.mxu0 %v14631_v12 }
  0xa2   :  { %v772_v29 = vrot.slane %v770_v17, 5  ;;  %v778_v30 = vrot.slane %v776_v20, 5  ;;  %v782_v31 = vrot.slane %v780_v21, 4  ;;  %v786_v32 = vshll.u32 %v133_v13, 16  ;;  %v83_v17 = vld [vmem:[%s24045_s0 + $0x168] sm:$0xf] }
  0xa3   :  { %13373 = vmatmul.mubr.bf16.gmra.mrb[48].mxu1 %v11812_v24  ;;  %v3790_v33 = vsel %vm15485_vm2, %v3785_v25, %v3789_v6  ;;  %v3795_v34 = vrot.slane %v3794_v26, 4  ;;  %v3802_v35 = vshrl.u32 %v12105_v23, 16  ;;  %v3805_v37 = vshll.u32 %v12105_v23, 16 }
  0xa4   :  { %v773_v38 = vor.u32 %v772_v29, %v769_v27  ;;  %v783_v39 = vor.u32 %v782_v31, %v778_v30  ;;  %v788_v40 = vrot.slane %v786_v32, 5  ;;  %v3811_v42 = vshll.u32 %v12106_v28, 16  ;;  %v84_v27 = vld [vmem:[%s24045_s0 + $0x16c] sm:$0xf] }
  0xa5   :  { %v3800_v44 = vsel %vm15485_vm2, %v3795_v34, %v3799_v19  ;;  %v3804_v45 = vrot.slane %v3802_v35, 4  ;;  %v3807_v46 = vrot.slane %v3805_v37, 5  ;;  %v3815_v47 = vshrl.u32 %v12106_v28, 16  ;;  %v135_v35 = vld [vmem:[%s24045_s0 + $0x170] sm:$0x1] }
  0xa6   :  { %v12196_v49 = vcombine.low %v3790_v33, %v3800_v44  ;;  %v774_v50 = vrot.slane %v773_v38, 4  ;;  %v784_v51 = vrot.slane %v783_v39, 4  ;;  %v3813_v52 = vrot.slane %v3811_v42, 5  ;;  %v12111_v42 = vld [vmem:[%s24045_s0 + $0x9c] sm:$0xf] }
  0xa7   :  { %v3808_v53 = vor.u32 %v3807_v46, %v3804_v45  ;;  %v3817_v54 = vrot.slane %v3815_v47, 4  ;;  %v3821_v55 = vshll.u32 %v12107_v41, 16  ;;  %v791_v57 = vshrl.u32 %v81_v43, 16  ;;  %v12112_v47 = vld [vmem:[%s24045_s0 + $0xa0] sm:$0xf] }
  0xa8   :  { %13661 = vmatmul.mubr.bf16.gmra.mrb[16].mxu0 %v12196_v49  ;;  %v779_v58 = vsel %vm15485_vm2, %v774_v50, %v778_v30  ;;  %v789_v59 = vsel %vm15485_vm2, %v784_v51, %v788_v40  ;;  %v794_v60 = vshll.u32 %v81_v43, 16  ;;  %v800_v61 = vshll.u32 %v82_v48, 16 }
  0xa9   :  { %v11813_v62 = vcombine.low %v779_v58, %v789_v59  ;;  %v3809_v63 = vrot.slane %v3808_v53, 4  ;;  %v3818_v0 = vor.u32 %v3817_v54, %v3813_v52  ;;  %v3823_v1 = vrot.slane %v3821_v55, 5  ;;  %v12113_v55 = vld [vmem:[%s24045_s0 + $0xa4] sm:$0x1] }
  0xaa   :  { %v793_v3 = vrot.slane %v791_v57, 4  ;;  %v796_v4 = vrot.slane %v794_v60, 5  ;;  %v802_v5 = vrot.slane %v800_v61, 5  ;;  %v804_v6 = vshrl.u32 %v82_v48, 16  ;;  %v85_v61 = vld [vmem:[%s24045_s0 + $0x174] sm:$0xf] }
  0xab   :  { %13376 = vmatprep.mubr.bf16.mxu1 %v11813_v62  ;;  %v3814_v7 = vsel %vm15485_vm2, %v3809_v63, %v3813_v52  ;;  %v3819_v8 = vrot.slane %v3818_v0, 4  ;;  %v810_v9 = vshll.u32 %v134_v56, 16  ;;  %v3826_v11 = vshrl.u32 %v12108_v22, 16 }
  0xac   :  { %v797_v13 = vor.u32 %v796_v4, %v793_v3  ;;  %v806_v14 = vrot.slane %v804_v6, 4  ;;  %v3829_v15 = vshll.u32 %v12108_v22, 16  ;;  %v3835_v16 = vshll.u32 %v12109_v2, 16 }
  0xad   :  { %v3824_v18 = vsel %vm15485_vm2, %v3819_v8, %v3823_v1  ;;  %v812_v19 = vrot.slane %v810_v9, 5  ;;  %v3828_v20 = vrot.slane %v3826_v11, 4  ;;  %v3839_v21 = vshrl.u32 %v12109_v2, 16  ;;  %v86_v1 = vld [vmem:[%s24045_s0 + $0x178] sm:$0xf] }
  0xae   :  { %v12197_v23 = vcombine.low %v3814_v7, %v3824_v18  ;;  %v798_v24 = vrot.slane %v797_v13, 4  ;;  %v807_v25 = vor.u32 %v806_v14, %v802_v5  ;;  %v3831_v26 = vrot.slane %v3829_v15, 5  ;;  %v136_v8 = vld [vmem:[%s24045_s0 + $0x17c] sm:$0x1]  ;;  %v12114_v15 = vld [vmem:[%s24045_s0 + $0xa8] sm:$0xf] }
  0xaf   :  { %v3837_v28 = vrot.slane %v3835_v16, 5  ;;  %v3841_v29 = vrot.slane %v3839_v21, 4  ;;  %v3845_v30 = vshll.u32 %v12110_v10, 16  ;;  %v815_v31 = vshrl.u32 %v83_v17, 16 }
  0xb0   :  { %13664 = vmatprep.mubr.bf16.mxu0 %v12197_v23  ;;  %v803_v32 = vsel %vm15485_vm2, %v798_v24, %v802_v5  ;;  %v808_v33 = vrot.slane %v807_v25, 4  ;;  %v3832_v34 = vor.u32 %v3831_v26, %v3828_v20  ;;  %v818_v37 = vshll.u32 %v83_v17, 16  ;;  %v12115_v20 = vld [vmem:[%s24045_s0 + $0xac] sm:$0xf]  ;;  %v12116_v26 = vld [vmem:[%s24045_s0 + $0xb0] sm:$0x1] }
  0xb1   :  { %v3842_v38 = vor.u32 %v3841_v29, %v3837_v28  ;;  %v3847_v39 = vrot.slane %v3845_v30, 5  ;;  %v817_v40 = vrot.slane %v815_v31, 4  ;;  %v824_v41 = vshll.u32 %v84_v27, 16  ;;  %v87_v31 = vld [vmem:[%s24045_s0 + $0x180] sm:$0xf] }
  0xb2   :  { %v813_v43 = vsel %vm15485_vm2, %v808_v33, %v812_v19  ;;  %v3833_v44 = vrot.slane %v3832_v34, 4  ;;  %v820_v45 = vrot.slane %v818_v37, 5  ;;  %v828_v46 = vshrl.u32 %v84_v27, 16  ;;  %v88_v37 = vld [vmem:[%s24045_s0 + $0x184] sm:$0xf] }
  0xb3   :  { %v11814_v48 = vcombine.low %v803_v32, %v813_v43  ;;  %v3843_v49 = vrot.slane %v3842_v38, 4  ;;  %v826_v50 = vrot.slane %v824_v41, 5  ;;  %v834_v51 = vshll.u32 %v135_v35, 16 }
  0xb4   :  { %v3838_v52 = vsel %vm15485_vm2, %v3833_v44, %v3837_v28  ;;  %v821_v53 = vor.u32 %v820_v45, %v817_v40  ;;  %v830_v54 = vrot.slane %v828_v46, 4  ;;  %v3850_v56 = vshrl.u32 %v12111_v42, 16 }
  0xb5   :  { %13377 = vmatmul.mubr.bf16.gmra.mrb[52].mxu1 %v11814_v48  ;;  %v3848_v57 = vsel %vm15485_vm2, %v3843_v49, %v3847_v39  ;;  %v836_v58 = vrot.slane %v834_v51, 5  ;;  %v3853_v59 = vshll.u32 %v12111_v42, 16  ;;  %v3859_v60 = vshll.u32 %v12112_v47, 16 }
  0xb6   :  { %v12198_v22 = vcombine.low %v3838_v52, %v3848_v57  ;;  %v822_v62 = vrot.slane %v821_v53, 4  ;;  %v831_v63 = vor.u32 %v830_v54, %v826_v50  ;;  %v3852_v0 = vrot.slane %v3850_v56, 4  ;;  %v137_v52 = vld [vmem:[%s24045_s0 + $0x188] sm:$0x1] }
  0xb7   :  { %v3855_v2 = vrot.slane %v3853_v59, 5  ;;  %v3861_v3 = vrot.slane %v3859_v60, 5  ;;  %v3863_v4 = vshrl.u32 %v12112_v47, 16  ;;  %v3869_v5 = vshll.u32 %v12113_v55, 16  ;;  %v12117_v59 = vld [vmem:[%s24045_s0 + $0xb4] sm:$0xf] }
  0xb8   :  { %13665 = vmatmul.mubr.bf16.gmra.mrb[20].mxu0 %v12198_v22  ;;  %v827_v6 = vsel %vm15485_vm2, %v822_v62, %v826_v50  ;;  %v832_v7 = vrot.slane %v831_v63, 4  ;;  %v839_v9 = vshrl.u32 %v85_v61, 16  ;;  %v842_v10 = vshll.u32 %v85_v61, 16  ;;  %v12118_v63 = vld [vmem:[%s24045_s0 + $0xb8] sm:$0xf] }
  0xb9   :  { %v3856_v11 = vor.u32 %v3855_v2, %v3852_v0  ;;  %v3865_v12 = vrot.slane %v3863_v4, 4  ;;  %v3871_v13 = vrot.slane %v3869_v5, 5  ;;  %v848_v14 = vshll.u32 %v86_v1, 16 }
  0xba   :  { %v837_v16 = vsel %vm15485_vm2, %v832_v7, %v836_v58  ;;  %v841_v17 = vrot.slane %v839_v9, 4  ;;  %v844_v18 = vrot.slane %v842_v10, 5  ;;  %v852_v19 = vshrl.u32 %v86_v1, 16 }
  0xbb   :  { %v11815_v21 = vcombine.low %v827_v6, %v837_v16  ;;  %v3857_v23 = vrot.slane %v3856_v11, 4  ;;  %v3866_v24 = vor.u32 %v3865_v12, %v3861_v3  ;;  %v850_v25 = vrot.slane %v848_v14, 5  ;;  %v12119_v12 = vld [vmem:[%s24045_s0 + $0xbc] sm:$0x1]  ;;  %v89_v14 = vld [vmem:[%s24045_s0 + $0x18c] sm:$0xf] }
  0xbc   :  { %v845_v27 = vor.u32 %v844_v18, %v841_v17  ;;  %v854_v28 = vrot.slane %v852_v19, 4  ;;  %v858_v29 = vshll.u32 %v136_v8, 16  ;;  %v3874_v30 = vshrl.u32 %v12114_v15, 16  ;;  %v16189_v8 = vld [vmem:[%s24044_s1 + $0x80] sm:$0xff]   ;;  %v90_v19 = vld [vmem:[%s24045_s0 + $0x190] sm:$0xf] }
  0xbd   :  { %13380 = vmatprep.mubr.bf16.mxu1 %v11815_v21  ;;  %v3862_v32 = vsel %vm15485_vm2, %v3857_v23, %v3861_v3  ;;  %v3867_v33 = vrot.slane %v3866_v24, 4  ;;  %v3877_v34 = vshll.u32 %v12114_v15, 16  ;;  %v3883_v35 = vshll.u32 %v12115_v20, 16  ;;  %13468 = vmatprep.subr.bf16.mxu1 %v16189_v8 }
  0xbe   :  { %v846_v38 = vrot.slane %v845_v27, 4  ;;  %v855_v39 = vor.u32 %v854_v28, %v850_v25  ;;  %v860_v40 = vrot.slane %v858_v29, 5  ;;  %v3876_v41 = vrot.slane %v3874_v30, 4 }
  0xbf   :  { %v3872_v42 = vsel %vm15485_vm2, %v3867_v33, %v3871_v13  ;;  %v3879_v43 = vrot.slane %v3877_v34, 5  ;;  %v3885_v44 = vrot.slane %v3883_v35, 5  ;;  %v3887_v45 = vshrl.u32 %v12115_v20, 16  ;;  %v12120_v34 = vld [vmem:[%s24045_s0 + $0xc0] sm:$0xf] }
  0xc0   :  { %v12199_v46 = vcombine.low %v3862_v32, %v3872_v42  ;;  %v851_v47 = vsel %vm15485_vm2, %v846_v38, %v850_v25  ;;  %v856_v48 = vrot.slane %v855_v39, 4  ;;  %v3893_v49 = vshll.u32 %v12116_v26, 16  ;;  %v138_v25 = vld [vmem:[%s24045_s0 + $0x194] sm:$0x1] }
  0xc1   :  { %v3880_v50 = vor.u32 %v3879_v43, %v3876_v41  ;;  %v3889_v51 = vrot.slane %v3887_v45, 4  ;;  %v863_v53 = vshrl.u32 %v87_v31, 16  ;;  %v866_v54 = vshll.u32 %v87_v31, 16 }
  0xc2   :  { %13668 = vmatprep.mubr.bf16.mxu0 %v12199_v46  ;;  %v861_v55 = vsel %vm15485_vm2, %v856_v48, %v860_v40  ;;  %v3895_v56 = vrot.slane %v3893_v49, 5  ;;  %v872_v57 = vshll.u32 %v88_v37, 16  ;;  %v876_v58 = vshrl.u32 %v88_v37, 16  ;;  %v12121_v40 = vld [vmem:[%s24045_s0 + $0xc4] sm:$0xf] }
  0xc3   :  { %v11816_v60 = vcombine.low %v851_v47, %v861_v55  ;;  %v3881_v61 = vrot.slane %v3880_v50, 4  ;;  %v3890_v22 = vor.u32 %v3889_v51, %v3885_v44  ;;  %v865_v62 = vrot.slane %v863_v53, 4  ;;  %v12122_v51 = vld [vmem:[%s24045_s0 + $0xc8] sm:$0x1] }
  0xc4   :  { %v868_v0 = vrot.slane %v866_v54, 5  ;;  %v874_v1 = vrot.slane %v872_v57, 5  ;;  %v878_v2 = vrot.slane %v876_v58, 4  ;;  %v882_v3 = vshll.u32 %v137_v52, 16  ;;  %v12123_v58 = vld [vmem:[%s24045_s0 + $0xe4] sm:$0xf] }
  0xc5   :  { %13381 = vmatmul.mubr.bf16.gmra.mrb[56].mxu1 %v11816_v60  ;;  %v3886_v4 = vsel %vm15485_vm2, %v3881_v61, %v3885_v44  ;;  %v3891_v5 = vrot.slane %v3890_v22, 4  ;;  %v3898_v6 = vshrl.u32 %v12117_v59, 16  ;;  %v3901_v7 = vshll.u32 %v12117_v59, 16 }
  0xc6   :  { %v869_v9 = vor.u32 %v868_v0, %v865_v62  ;;  %v879_v10 = vor.u32 %v878_v2, %v874_v1  ;;  %v884_v11 = vrot.slane %v882_v3, 5  ;;  %v3907_v13 = vshll.u32 %v12118_v63, 16  ;;  %v12124_v62 = vld [vmem:[%s24045_s0 + $0xe8] sm:$0xf]  ;;  %v15139_v2 = vld [vmem:[%s24045_s0] sm:$0xf] }
  0xc7   :  { %v3896_v15 = vsel %vm15485_vm2, %v3891_v5, %v3895_v56  ;;  %v3900_v16 = vrot.slane %v3898_v6, 4  ;;  %v3903_v17 = vrot.slane %v3901_v7, 5  ;;  %v3911_v18 = vshrl.u32 %v12118_v63, 16  ;;  %v15140_v3 = vld [vmem:[%s24045_s0 + $0x4] sm:$0xf] }
  0xc8   :  { %v12200_v20 = vcombine.low %v3886_v4, %v3896_v15  ;;  %v870_v21 = vrot.slane %v869_v9, 4  ;;  %v880_v23 = vrot.slane %v879_v10, 4  ;;  %v3909_v24 = vrot.slane %v3907_v13, 5  ;;  %v12125_v9 = vld [vmem:[%s24045_s0 + $0xec] sm:$0x1] }
  0xc9   :  { %v3904_v26 = vor.u32 %v3903_v17, %v3900_v16  ;;  %v3913_v27 = vrot.slane %v3911_v18, 4  ;;  %v3917_v28 = vshll.u32 %v12119_v12, 16  ;;  %v887_v29 = vshrl.u32 %v89_v14, 16  ;;  %v12126_v15 = vld [vmem:[%s24045_s0 + $0xf0] sm:$0xf] }
  0xca   :  { %13669 = vmatmul.mubr.bf16.gmra.mrb[24].mxu0 %v12200_v20  ;;  %v875_v30 = vsel %vm15485_vm2, %v870_v21, %v874_v1  ;;  %v885_v31 = vsel %vm15485_vm2, %v880_v23, %v884_v11  ;;  %v890_v32 = vshll.u32 %v89_v14, 16  ;;  %v896_v33 = vshll.u32 %v90_v19, 16  ;;  %v12127_v20 = vld [vmem:[%s24045_s0 + $0xf4] sm:$0xf] }
  0xcb   :  { %v11817_v35 = vcombine.low %v875_v30, %v885_v31  ;;  %v3905_v37 = vrot.slane %v3904_v26, 4  ;;  %v3914_v38 = vor.u32 %v3913_v27, %v3909_v24  ;;  %v3919_v39 = vrot.slane %v3917_v28, 5  ;;  %v15142_v30 = vld [vmem:[%s24045_s0 + $0x10] sm:$0xf] }
  0xcc   :  { %v889_v41 = vrot.slane %v887_v29, 4  ;;  %v892_v42 = vrot.slane %v890_v32, 5  ;;  %v898_v43 = vrot.slane %v896_v33, 5  ;;  %v900_v44 = vshrl.u32 %v90_v19, 16  ;;  %v15141_v29 = vld [vmem:[%s24045_s0 + $0xc] sm:$0xf] }
  0xcd   :  { %13384 = vmatprep.mubr.bf16.mxu1 %v11817_v35  ;;  %v3910_v45 = vsel %vm15485_vm2, %v3905_v37, %v3909_v24  ;;  %v3915_v46 = vrot.slane %v3914_v38, 4  ;;  %v906_v47 = vshll.u32 %v138_v25, 16  ;;  %v3922_v48 = vshrl.u32 %v12120_v34, 16  ;;  %v12128_v32 = vld [vmem:[%s24045_s0 + $0xf8] sm:$0x1] }
  0xce   :  { %v893_v49 = vor.u32 %v892_v42, %v889_v41  ;;  %v902_v50 = vrot.slane %v900_v44, 4  ;;  %v3925_v52 = vshll.u32 %v12120_v34, 16  ;;  %v3931_v53 = vshll.u32 %v12121_v40, 16  ;;  %v12129_v38 = vld [vmem:[%s24045_s0 + $0xfc] sm:$0xf] }
  0xcf   :  { %v3920_v54 = vsel %vm15485_vm2, %v3915_v46, %v3919_v39  ;;  %v908_v55 = vrot.slane %v906_v47, 5  ;;  %v3924_v56 = vrot.slane %v3922_v48, 4  ;;  %v3935_v57 = vshrl.u32 %v12121_v40, 16  ;;  %v12130_v39 = vld [vmem:[%s24045_s0 + $0x100] sm:$0xf] }
  0xd0   :  { %v12201_v59 = vcombine.low %v3910_v45, %v3920_v54  ;;  %v894_v60 = vrot.slane %v893_v49, 4  ;;  %v903_v61 = vor.u32 %v902_v50, %v898_v43  ;;  %v3927_v22 = vrot.slane %v3925_v52, 5  ;;  %v12131_v48 = vld [vmem:[%s24045_s0 + $0x104] sm:$0x1]  ;;  %v15143_v52 = vld [vmem:[%s24045_s0 + $0x18] sm:$0xf] }
  0xd1   :  { %v3933_v63 = vrot.slane %v3931_v53, 5  ;;  %v3937_v0 = vrot.slane %v3935_v57, 4  ;;  %v3941_v1 = vshll.u32 %v12122_v51, 16  ;;  %v11827_v4 = vcombine.low %v15139_v2, %v15140_v3  ;;  %v15144_v53 = vld [vmem:[%s24045_s0 + $0x1c] sm:$0xf] }
  0xd2   :  { %13672 = vmatprep.mubr.bf16.mxu0 %v12201_v59  ;;  %v899_v5 = vsel %vm15485_vm2, %v894_v60, %v898_v43  ;;  %v904_v6 = vrot.slane %v903_v61, 4  ;;  %v3928_v7 = vor.u32 %v3927_v22, %v3924_v56  ;;  %v3946_v10 = vshrl.u32 %v12123_v58, 16 }
  0xd3   :  { %v3938_v11 = vor.u32 %v3937_v0, %v3933_v63  ;;  %v3943_v12 = vrot.slane %v3941_v1, 5  ;;  %v3949_v13 = vshll.u32 %v12123_v58, 16  ;;  %v3955_v14 = vshll.u32 %v12124_v62, 16 }
  0xd4   :  { %v909_v16 = vsel %vm15485_vm2, %v904_v6, %v908_v55  ;;  %v3929_v17 = vrot.slane %v3928_v7, 4  ;;  %v3948_v18 = vrot.slane %v3946_v10, 4  ;;  %v3959_v19 = vshrl.u32 %v12124_v62, 16  ;;  %v12132_v55 = vld [vmem:[%s24045_s0 + $0x108] sm:$0xf] }
  0xd5   :  { %v11818_v21 = vcombine.low %v899_v5, %v909_v16  ;;  %v3939_v23 = vrot.slane %v3938_v11, 4  ;;  %v3951_v24 = vrot.slane %v3949_v13, 5  ;;  %v3957_v25 = vrot.slane %v3955_v14, 5  ;;  %v12134_v10 = vld [vmem:[%s24045_s0 + $0x110] sm:$0x1] }
  0xd6   :  { %v3934_v26 = vsel %vm15485_vm2, %v3929_v17, %v3933_v63  ;;  %v3961_v27 = vrot.slane %v3959_v19, 4  ;;  %v3965_v28 = vshll.u32 %v12125_v9, 16  ;;  %v11828_v31 = vcombine.low %v15141_v29, %v15142_v30  ;;  %v12133_v63 = vld [vmem:[%s24045_s0 + $0x10c] sm:$0xf]  ;;  %v15145_v13 = vld [vmem:[%s24045_s0 + $0x24] sm:$0xf] }
  0xd7   :  { %13385 = vmatmul.mubr.bf16.gmra.mrb[60].mxu1 %v11818_v21  ;;  %v3944_v33 = vsel %vm15485_vm2, %v3939_v23, %v3943_v12  ;;  %v3952_v34 = vor.u32 %v3951_v24, %v3948_v18  ;;  %v3970_v35 = vshrl.u32 %v12126_v15, 16  ;;  %v3973_v37 = vshll.u32 %v12126_v15, 16  ;;  %v15146_v14 = vld [vmem:[%s24045_s0 + $0x28] sm:$0xf]  ;;  %v12135_v17 = vld [vmem:[%s24045_s0 + $0x114] sm:$0xf] }
  0xd8   :  { %v12202_v40 = vcombine.low %v3934_v26, %v3944_v33  ;;  %13404 = vmatprep.mubr.bf16.mxu1 %v11827_v4  ;;  %v3962_v41 = vor.u32 %v3961_v27, %v3957_v25  ;;  %v3967_v42 = vrot.slane %v3965_v28, 5  ;;  %v3979_v43 = vshll.u32 %v12127_v20, 16  ;;  %v14643_v4 = vld [vmem:[%s24044_s1 + $0x88] sm:$0xff]   ;;  %v12136_v27 = vld [vmem:[%s24045_s0 + $0x118] sm:$0xf]  ;;  %v14646_v28 = vld [vmem:[%s24044_s1 + $0x90] sm:$0xff]  }
  0xd9   :  { %v3953_v44 = vrot.slane %v3952_v34, 4  ;;  %v3972_v45 = vrot.slane %v3970_v35, 4  ;;  %v3975_v46 = vrot.slane %v3973_v37, 5  ;;  %v3983_v47 = vshrl.u32 %v12127_v20, 16  ;;  %v15147_v35 = vld [vmem:[%s24045_s0 + $0x30] sm:$0xf] }
  0xda   :  { %13673 = vmatmul.mubr.bf16.gmra.mrb[28].mxu0 %v12202_v40  ;;  %v3963_v49 = vrot.slane %v3962_v41, 4  ;;  %v3981_v50 = vrot.slane %v3979_v43, 5  ;;  %v3989_v51 = vshll.u32 %v12128_v32, 16  ;;  %v11829_v54 = vcombine.low %v15143_v52, %v15144_v53  ;;  %v15148_v37 = vld [vmem:[%s24045_s0 + $0x34] sm:$0xf] }
  0xdb   :  { %v3958_v56 = vsel %vm15485_vm2, %v3953_v44, %v3957_v25  ;;  %v3976_v57 = vor.u32 %v3975_v46, %v3972_v45  ;;  %v3985_v58 = vrot.slane %v3983_v47, 4  ;;  %v3994_v59 = vshrl.u32 %v12129_v38, 16  ;;  %v12138_v44 = vld [vmem:[%s24045_s0 + $0x120] sm:$0xf] }
  0xdc   :  { %v3968_v60 = vsel %vm15485_vm2, %v3963_v49, %v3967_v42  ;;  %v3991_v61 = vrot.slane %v3989_v51, 5  ;;  %v3997_v22 = vshll.u32 %v12129_v38, 16  ;;  %v4003_v62 = vshll.u32 %v12130_v39, 16  ;;  %v12139_v49 = vld [vmem:[%s24045_s0 + $0x124] sm:$0xf] }
  0xdd   :  { %v12203_v0 = vcombine.low %v3958_v56, %v3968_v60  ;;  %v3977_v1 = vrot.slane %v3976_v57, 4  ;;  %v3986_v2 = vor.u32 %v3985_v58, %v3981_v50  ;;  %v3996_v3 = vrot.slane %v3994_v59, 4  ;;  %v12140_v59 = vld [vmem:[%s24045_s0 + $0x128] sm:$0x1] }
  0xde   :  { %v3999_v5 = vrot.slane %v3997_v22, 5  ;;  %v4005_v6 = vrot.slane %v4003_v62, 5  ;;  %v4007_v7 = vshrl.u32 %v12130_v39, 16  ;;  %v4013_v9 = vshll.u32 %v12131_v48, 16  ;;  %v12137_v39 = vld [vmem:[%s24045_s0 + $0x11c] sm:$0x1] }
  0xdf   :  { %13676 = vmatprep.mubr.bf16.mxu0 %v12203_v0  ;;  %13405 = vmatmul.mubr.bf16.vlgmr.msra.gmra.mrb[0].mxu1 %v11828_v31  ;;  %v3982_v11 = vsel %vm15485_vm2, %v3977_v1, %v3981_v50  ;;  %v3987_v12 = vrot.slane %v3986_v2, 4  ;;  %v11830_v15 = vcombine.low %v15145_v13, %v15146_v14  ;;  %v4018_v16 = vshrl.u32 %v12132_v55, 16  ;;  %v14647_v50 = vld [vmem:[%s24044_s1 + $0x98] sm:$0xff]   ;;  %v12141_v1 = vld [vmem:[%s24045_s0 + $0x12c] sm:$0xf] }
  0xe0   :  { %13408 = vmatprep.mubr.bf16.mxu1 %v11829_v54  ;;  %v4000_v18 = vor.u32 %v3999_v5, %v3996_v3  ;;  %v4009_v19 = vrot.slane %v4007_v7, 4  ;;  %v4015_v20 = vrot.slane %v4013_v9, 5  ;;  %v4021_v21 = vshll.u32 %v12132_v55, 16  ;;  %13469 = vmatpush3.bf16.msra.mxu1 %v16189_v8  ;;  %v15149_v62 = vld [vmem:[%s24045_s0 + $0x3c] sm:$0xf] }
  0xe1   :  { %v3992_v23 = vsel %vm15485_vm2, %v3987_v12, %v3991_v61  ;;  %v4020_v24 = vrot.slane %v4018_v16, 4  ;;  %v4027_v25 = vshll.u32 %v12133_v63, 16  ;;  %v4031_v26 = vshrl.u32 %v12133_v63, 16  ;;  %13470 = vmatprep.subr.bf16.mxu1 %v14643_v4  ;;  %v15150_v63 = vld [vmem:[%s24045_s0 + $0x40] sm:$0xf] }
  0xe2   :  { %v12204_v29 = vcombine.low %v3982_v11, %v3992_v23  ;;  %v4001_v30 = vrot.slane %v4000_v18, 4  ;;  %v4010_v31 = vor.u32 %v4009_v19, %v4005_v6  ;;  %v4023_v32 = vrot.slane %v4021_v21, 5  ;;  %v12142_v12 = vld [vmem:[%s24045_s0 + $0x130] sm:$0xf]  ;;  %v15151_v21 = vld [vmem:[%s24045_s0 + $0x48] sm:$0xf] }
  0xe3   :  { %v4029_v8 = vrot.slane %v4027_v25, 5  ;;  %v4033_v33 = vrot.slane %v4031_v26, 4  ;;  %v4037_v34 = vshll.u32 %v12134_v10, 16  ;;  %v11831_v38 = vcombine.low %v15147_v35, %v15148_v37  ;;  %v15152_v23 = vld [vmem:[%s24045_s0 + $0x4c] sm:$0xf] }
  0xe4   :  { %13677 = vmatmul.mubr.bf16.gmra.mrb[32].mxu0 %v12204_v29  ;;  %v4006_v40 = vsel %vm15485_vm2, %v4001_v30, %v4005_v6  ;;  %v4011_v41 = vrot.slane %v4010_v31, 4  ;;  %v4024_v42 = vor.u32 %v4023_v32, %v4020_v24  ;;  %v4042_v43 = vshrl.u32 %v12135_v17, 16  ;;  %13471 = vmatpush3.bf16.msra.mxu1 %v14643_v4  ;;  %v14650_v6 = vld [vmem:[%s24044_s1 + $0xa0] sm:$0xff]   ;;  %v12144_v25 = vld [vmem:[%s24045_s0 + $0x138] sm:$0xf]  ;;  %v14652_v30 = vld [vmem:[%s24044_s1 + $0xa8] sm:$0xff]  }
  0xe5   :  { %v4034_v45 = vor.u32 %v4033_v33, %v4029_v8  ;;  %v4039_v46 = vrot.slane %v4037_v34, 5  ;;  %v4045_v47 = vshll.u32 %v12135_v17, 16  ;;  %v4051_v48 = vshll.u32 %v12136_v27, 16  ;;  %13472 = vmatprep.subr.bf16.mxu1 %v14646_v28  ;;  %v12143_v17 = vld [vmem:[%s24045_s0 + $0x134] sm:$0x1] }
  0xe6   :  { %v4016_v51 = vsel %vm15485_vm2, %v4011_v41, %v4015_v20  ;;  %v4025_v52 = vrot.slane %v4024_v42, 4  ;;  %v4044_v53 = vrot.slane %v4042_v43, 4  ;;  %v4055_v54 = vshrl.u32 %v12136_v27, 16  ;;  %v12145_v43 = vld [vmem:[%s24045_s0 + $0x13c] sm:$0xf] }
  0xe7   :  { %v12205_v55 = vcombine.low %v4006_v40, %v4016_v51  ;;  %13409 = vmatmul.mubr.bf16.gmra.mrb[4].mxu1 %v11830_v15  ;;  %v4035_v56 = vrot.slane %v4034_v45, 4  ;;  %v4047_v57 = vrot.slane %v4045_v47, 5  ;;  %v4053_v58 = vrot.slane %v4051_v48, 5  ;;  %v15154_v47 = vld [vmem:[%s24045_s0 + $0x58] sm:$0xf] }
  0xe8   :  { %v4030_v60 = vsel %vm15485_vm2, %v4025_v52, %v4029_v8  ;;  %13412 = vmatprep.mubr.bf16.mxu1 %v11831_v38  ;;  %v4057_v61 = vrot.slane %v4055_v54, 4  ;;  %v4061_v22 = vshll.u32 %v12137_v39, 16  ;;  %v11832_v0 = vcombine.low %v15149_v62, %v15150_v63  ;;  %13473 = vmatpush3.bf16.msra.mxu1 %v14646_v28  ;;  %v12146_v54 = vld [vmem:[%s24045_s0 + $0x140] sm:$0x1] }
  0xe9   :  { %13680 = vmatprep.mubr.bf16.mxu0 %v12205_v55  ;;  %v4040_v2 = vsel %vm15485_vm2, %v4035_v56, %v4039_v46  ;;  %v4048_v3 = vor.u32 %v4047_v57, %v4044_v53  ;;  %v4066_v4 = vshrl.u32 %v12138_v44, 16  ;;  %v4069_v5 = vshll.u32 %v12138_v44, 16  ;;  %13474 = vmatprep.subr.bf16.mxu1 %v14647_v50  ;;  %v15153_v46 = vld [vmem:[%s24045_s0 + $0x54] sm:$0xf] }
  0xea   :  { %v12206_v7 = vcombine.low %v4030_v60, %v4040_v2  ;;  %v4058_v9 = vor.u32 %v4057_v61, %v4053_v58  ;;  %v4063_v10 = vrot.slane %v4061_v22, 5  ;;  %v4075_v11 = vshll.u32 %v12139_v49, 16  ;;  %v12147_v60 = vld [vmem:[%s24045_s0 + $0x144] sm:$0xf] }
  0xeb   :  { %v4049_v13 = vrot.slane %v4048_v3, 4  ;;  %v4068_v14 = vrot.slane %v4066_v4, 4  ;;  %v4071_v15 = vrot.slane %v4069_v5, 5  ;;  %v4079_v16 = vshrl.u32 %v12139_v49, 16  ;;  %v15155_v4 = vld [vmem:[%s24045_s0 + $0x60] sm:$0xf] }
  0xec   :  { %13681 = vmatmul.mubr.bf16.gmra.mrb[36].mxu0 %v12206_v7  ;;  %v4059_v18 = vrot.slane %v4058_v9, 4  ;;  %v4077_v19 = vrot.slane %v4075_v11, 5  ;;  %v4085_v20 = vshll.u32 %v12140_v59, 16  ;;  %v11833_v24 = vcombine.low %v15151_v21, %v15152_v23  ;;  %13475 = vmatpush3.bf16.msra.mxu1 %v14647_v50  ;;  %v14655_v50 = vld [vmem:[%s24044_s1 + $0xb0] sm:$0xff]   ;;  %v15156_v5 = vld [vmem:[%s24045_s0 + $0x64] sm:$0xf] }
  0xed   :  { %v4054_v26 = vsel %vm15485_vm2, %v4049_v13, %v4053_v58  ;;  %v4072_v27 = vor.u32 %v4071_v15, %v4068_v14  ;;  %v4081_v28 = vrot.slane %v4079_v16, 4  ;;  %v4090_v29 = vshrl.u32 %v12141_v1, 16  ;;  %13476 = vmatprep.subr.bf16.mxu1 %v14650_v6  ;;  %v12149_v7 = vld [vmem:[%s24045_s0 + $0x14c] sm:$0x1]  ;;  %v14656_v9 = vld [vmem:[%s24044_s1 + $0xb8] sm:$0xff]  }
  0xee   :  { %v4064_v31 = vsel %vm15485_vm2, %v4059_v18, %v4063_v10  ;;  %v4087_v32 = vrot.slane %v4085_v20, 5  ;;  %v4093_v8 = vshll.u32 %v12141_v1, 16  ;;  %v4099_v33 = vshll.u32 %v12142_v12, 16  ;;  %v12150_v14 = vld [vmem:[%s24045_s0 + $0x150] sm:$0xf] }
  0xef   :  { %v12207_v34 = vcombine.low %v4054_v26, %v4064_v31  ;;  %13413 = vmatmul.mubr.bf16.gmra.mrb[8].mxu1 %v11832_v0  ;;  %v4073_v35 = vrot.slane %v4072_v27, 4  ;;  %v4082_v37 = vor.u32 %v4081_v28, %v4077_v19  ;;  %v4092_v38 = vrot.slane %v4090_v29, 4  ;;  %v12148_v0 = vld [vmem:[%s24045_s0 + $0x148] sm:$0xf] }
  0xf0   :  { %13416 = vmatprep.mubr.bf16.mxu1 %v11833_v24  ;;  %v4095_v39 = vrot.slane %v4093_v8, 5  ;;  %v4101_v40 = vrot.slane %v4099_v33, 5  ;;  %v4103_v41 = vshrl.u32 %v12142_v12, 16  ;;  %v4109_v42 = vshll.u32 %v12143_v17, 16  ;;  %13477 = vmatpush3.bf16.msra.mxu1 %v14650_v6  ;;  %v15158_v8 = vld [vmem:[%s24045_s0 + $0x70] sm:$0xf] }
  0xf1   :  { %13684 = vmatprep.mubr.bf16.mxu0 %v12207_v34  ;;  %v4078_v44 = vsel %vm15485_vm2, %v4073_v35, %v4077_v19  ;;  %v4083_v45 = vrot.slane %v4082_v37, 4  ;;  %v11834_v48 = vcombine.low %v15153_v46, %v15154_v47  ;;  %v4114_v49 = vshrl.u32 %v12144_v25, 16  ;;  %13478 = vmatprep.subr.bf16.mxu1 %v14652_v30  ;;  %v12151_v19 = vld [vmem:[%s24045_s0 + $0x154] sm:$0xf]  ;;  %v12152_v37 = vld [vmem:[%s24045_s0 + $0x158] sm:$0x1] }
  0xf2   :  { %v4096_v51 = vor.u32 %v4095_v39, %v4092_v38  ;;  %v4105_v52 = vrot.slane %v4103_v41, 4  ;;  %v4111_v53 = vrot.slane %v4109_v42, 5  ;;  %v4117_v55 = vshll.u32 %v12144_v25, 16 }
  0xf3   :  { %v4088_v56 = vsel %vm15485_vm2, %v4083_v45, %v4087_v32  ;;  %v4116_v57 = vrot.slane %v4114_v49, 4  ;;  %v4123_v58 = vshll.u32 %v12145_v43, 16  ;;  %v4127_v59 = vshrl.u32 %v12145_v43, 16  ;;  %v15157_v32 = vld [vmem:[%s24045_s0 + $0x6c] sm:$0xf] }
  0xf4   :  { %v12208_v61 = vcombine.low %v4078_v44, %v4088_v56  ;;  %v4097_v22 = vrot.slane %v4096_v51, 4  ;;  %v4106_v62 = vor.u32 %v4105_v52, %v4101_v40  ;;  %v4119_v63 = vrot.slane %v4117_v55, 5  ;;  %13479 = vmatpush3.bf16.msra.mxu1 %v14652_v30  ;;  %v12154_v45 = vld [vmem:[%s24045_s0 + $0x160] sm:$0xf]  ;;  %v15160_v55 = vld [vmem:[%s24045_s0 + $0x78] sm:$0xf] }
  0xf5   :  { %v4125_v1 = vrot.slane %v4123_v58, 5  ;;  %v4129_v2 = vrot.slane %v4127_v59, 4  ;;  %v4133_v3 = vshll.u32 %v12146_v54, 16  ;;  %v11835_v6 = vcombine.low %v15155_v4, %v15156_v5  ;;  %13480 = vmatprep.subr.bf16.mxu1 %v14655_v50  ;;  %v15159_v51 = vld [vmem:[%s24044_s1 + $0xc0] sm:$0xff]   ;;  %v15161_v56 = vld [vmem:[%s24045_s0 + $0x7c] sm:$0xf] }
  0xf6   :  { %13685 = vmatmul.mubr.bf16.gmra.mrb[40].mxu0 %v12208_v61  ;;  %v4102_v10 = vsel %vm15485_vm2, %v4097_v22, %v4101_v40  ;;  %v4107_v11 = vrot.slane %v4106_v62, 4  ;;  %v4120_v12 = vor.u32 %v4119_v63, %v4116_v57  ;;  %v4138_v13 = vshrl.u32 %v12147_v60, 16  ;;  %v12153_v40 = vld [vmem:[%s24045_s0 + $0x15c] sm:$0xf]  ;;  %v12156_v58 = vld [vmem:[%s24045_s0 + $0x168] sm:$0xf] }
  0xf7   :  { %13417 = vmatmul.mubr.bf16.gmra.mrb[12].mxu1 %v11834_v48  ;;  %v4130_v15 = vor.u32 %v4129_v2, %v4125_v1  ;;  %v4135_v16 = vrot.slane %v4133_v3, 5  ;;  %v4141_v17 = vshll.u32 %v12147_v60, 16  ;;  %v4147_v18 = vshll.u32 %v12148_v0, 16 }
  0xf8   :  { %v4112_v20 = vsel %vm15485_vm2, %v4107_v11, %v4111_v53  ;;  %v4121_v21 = vrot.slane %v4120_v12, 4  ;;  %13420 = vmatprep.mubr.bf16.mxu1 %v11835_v6  ;;  %v4140_v23 = vrot.slane %v4138_v13, 4  ;;  %v4151_v24 = vshrl.u32 %v12148_v0, 16  ;;  %13481 = vmatpush3.bf16.msra.mxu1 %v14655_v50  ;;  %v12155_v50 = vld [vmem:[%s24045_s0 + $0x164] sm:$0x1] }
  0xf9   :  { %v12209_v25 = vcombine.low %v4102_v10, %v4112_v20  ;;  %v4131_v26 = vrot.slane %v4130_v15, 4  ;;  %v4143_v27 = vrot.slane %v4141_v17, 5  ;;  %v4149_v28 = vrot.slane %v4147_v18, 5  ;;  %13482 = vmatprep.subr.bf16.mxu1 %v14656_v9  ;;  %v12157_v11 = vld [vmem:[%s24045_s0 + $0x16c] sm:$0xf] }
  0xfa   :  { %v4126_v29 = vsel %vm15485_vm2, %v4121_v21, %v4125_v1  ;;  %v4153_v30 = vrot.slane %v4151_v24, 4  ;;  %v4157_v31 = vshll.u32 %v12149_v7, 16  ;;  %v11836_v33 = vcombine.low %v15157_v32, %v15158_v8  ;;  %v15163_v15 = vld [vmem:[%s24045_s0 + $0x88] sm:$0xf]  ;;  %v12158_v17 = vld [vmem:[%s24045_s0 + $0x170] sm:$0x1] }
  0xfb   :  { %13688 = vmatprep.mubr.bf16.mxu0 %v12209_v25  ;;  %v4136_v34 = vsel %vm15485_vm2, %v4131_v26, %v4135_v16  ;;  %v4144_v35 = vor.u32 %v4143_v27, %v4140_v23  ;;  %v4162_v38 = vshrl.u32 %v12150_v14, 16  ;;  %v4165_v39 = vshll.u32 %v12150_v14, 16  ;;  %v15162_v14 = vld [vmem:[%s24045_s0 + $0x84] sm:$0xf]  ;;  %v12160_v25 = vld [vmem:[%s24045_s0 + $0x178] sm:$0xf] }
  0xfc   :  { %v12210_v41 = vcombine.low %v4126_v29, %v4136_v34  ;;  %v4154_v42 = vor.u32 %v4153_v30, %v4149_v28  ;;  %v4159_v43 = vrot.slane %v4157_v31, 5  ;;  %v4171_v44 = vshll.u32 %v12151_v19, 16  ;;  %13483 = vmatpush3.bf16.msra.mxu1 %v14656_v9 }
  0xfd   :  { %v4145_v46 = vrot.slane %v4144_v35, 4  ;;  %v4164_v47 = vrot.slane %v4162_v38, 4  ;;  %v4167_v48 = vrot.slane %v4165_v39, 5  ;;  %v4175_v49 = vshrl.u32 %v12151_v19, 16  ;;  %14028 = vmatprep.subr.bf16.mxu1 %v15159_v51  ;;  %v12159_v19 = vld [vmem:[%s24045_s0 + $0x174] sm:$0xf] }
  0xfe   :  { %13689 = vmatmul.mubr.bf16.gmra.mrb[44].mxu0 %v12210_v41  ;;  %v4155_v52 = vrot.slane %v4154_v42, 4  ;;  %v4173_v53 = vrot.slane %v4171_v44, 5  ;;  %v4181_v54 = vshll.u32 %v12152_v37, 16  ;;  %v11837_v57 = vcombine.low %v15160_v55, %v15161_v56  ;;  %v15164_v37 = vld [vmem:[%s24045_s0 + $0x90] sm:$0xf] }
  0xff   :  { %v4150_v59 = vsel %vm15485_vm2, %v4145_v46, %v4149_v28  ;;  %13421 = vmatmul.mubr.bf16.gmra.mrb[16].mxu1 %v11836_v33  ;;  %v4168_v60 = vor.u32 %v4167_v48, %v4164_v47  ;;  %v4177_v61 = vrot.slane %v4175_v49, 4  ;;  %v4186_v22 = vshrl.u32 %v12153_v40, 16  ;;  %v15165_v38 = vld [vmem:[%s24045_s0 + $0x94] sm:$0xf] }
 0x100   :  { %v4160_v62 = vsel %vm15485_vm2, %v4155_v52, %v4159_v43  ;;  %v4183_v63 = vrot.slane %v4181_v54, 5  ;;  %13424 = vmatprep.mubr.bf16.mxu1 %v11837_v57  ;;  %v4189_v0 = vshll.u32 %v12153_v40, 16  ;;  %v4195_v1 = vshll.u32 %v12154_v45, 16  ;;  %v12161_v40 = vld [vmem:[%s24045_s0 + $0x17c] sm:$0x1] }
 0x101   :  { %v12211_v2 = vcombine.low %v4150_v59, %v4160_v62  ;;  %v4169_v3 = vrot.slane %v4168_v60, 4  ;;  %v4178_v4 = vor.u32 %v4177_v61, %v4173_v53  ;;  %v4188_v5 = vrot.slane %v4186_v22, 4  ;;  %v15166_v22 = vld [vmem:[%s24045_s0 + $0x9c] sm:$0xf]  ;;  %v15167_v62 = vld [vmem:[%s24045_s0 + $0xa0] sm:$0xf] }
 0x102   :  { %v4191_v6 = vrot.slane %v4189_v0, 5  ;;  %v4197_v7 = vrot.slane %v4195_v1, 5  ;;  %v4199_v9 = vshrl.u32 %v12154_v45, 16  ;;  %v4205_v10 = vshll.u32 %v12155_v50, 16  ;;  %v12164_v0 = vld [vmem:[%s24045_s0 + $0x188] sm:$0x1] }
 0x103   :  { %13692 = vmatprep.mubr.bf16.mxu0 %v12211_v2  ;;  %v4174_v12 = vsel %vm15485_vm2, %v4169_v3, %v4173_v53  ;;  %v4179_v13 = vrot.slane %v4178_v4, 4  ;;  %v11838_v16 = vcombine.low %v15162_v14, %v15163_v15  ;;  %v4210_v18 = vshrl.u32 %v12156_v58, 16  ;;  %v12162_v53 = vld [vmem:[%s24045_s0 + $0x180] sm:$0xf]  ;;  %v12165_v1 = vld [vmem:[%s24045_s0 + $0x18c] sm:$0xf] }
 0x104   :  { %v4192_v20 = vor.u32 %v4191_v6, %v4188_v5  ;;  %v4201_v21 = vrot.slane %v4199_v9, 4  ;;  %v4207_v23 = vrot.slane %v4205_v10, 5  ;;  %v4213_v24 = vshll.u32 %v12156_v58, 16  ;;  %v12163_v58 = vld [vmem:[%s24045_s0 + $0x184] sm:$0xf] }
 0x105   :  { %v4184_v26 = vsel %vm15485_vm2, %v4179_v13, %v4183_v63  ;;  %v4212_v27 = vrot.slane %v4210_v18, 4  ;;  %v4219_v28 = vshll.u32 %v12157_v11, 16  ;;  %v4223_v29 = vshrl.u32 %v12157_v11, 16  ;;  %v12166_v6 = vld [vmem:[%s24045_s0 + $0x190] sm:$0xf] }
 0x106   :  { %v12212_v30 = vcombine.low %v4174_v12, %v4184_v26  ;;  %v4193_v31 = vrot.slane %v4192_v20, 4  ;;  %v4202_v32 = vor.u32 %v4201_v21, %v4197_v7  ;;  %v4215_v8 = vrot.slane %v4213_v24, 5  ;;  %v15168_v20 = vld [vmem:[%s24045_s0 + $0xa8] sm:$0xf]  ;;  %v15169_v21 = vld [vmem:[%s24045_s0 + $0xac] sm:$0xf] }
 0x107   :  { %13425 = vmatmul.mubr.bf16.gmra.mrb[20].mxu1 %v11838_v16  ;;  %v4221_v33 = vrot.slane %v4219_v28, 5  ;;  %v4225_v34 = vrot.slane %v4223_v29, 4  ;;  %v4229_v35 = vshll.u32 %v12158_v17, 16  ;;  %v11839_v39 = vcombine.low %v15164_v37, %v15165_v38  ;;  %v12167_v16 = vld [vmem:[%s24045_s0 + $0x194] sm:$0x1] }
 0x108   :  { %13693 = vmatmul.mubr.bf16.gmra.mrb[48].mxu0 %v12212_v30  ;;  %v4198_v41 = vsel %vm15485_vm2, %v4193_v31, %v4197_v7  ;;  %v4203_v42 = vrot.slane %v4202_v32, 4  ;;  %v4216_v43 = vor.u32 %v4215_v8, %v4212_v27  ;;  %v4234_v44 = vshrl.u32 %v12159_v19, 16  ;;  %v12168_v32 = vld [vmem:[%s24045_s0 + $0x198] sm:$0xf]  ;;  %v12169_v37 = vld [vmem:[%s24045_s0 + $0x19c] sm:$0xf] }
 0x109   :  { %v4226_v45 = vor.u32 %v4225_v34, %v4221_v33  ;;  %v4231_v46 = vrot.slane %v4229_v35, 5  ;;  %13428 = vmatprep.mubr.bf16.mxu1 %v11839_v39  ;;  %v4237_v47 = vshll.u32 %v12159_v19, 16  ;;  %v4243_v48 = vshll.u32 %v12160_v25, 16 }
 0x10a   :  { %v4208_v49 = vsel %vm15485_vm2, %v4203_v42, %v4207_v23  ;;  %v4217_v50 = vrot.slane %v4216_v43, 4  ;;  %v4236_v51 = vrot.slane %v4234_v44, 4  ;;  %v4247_v52 = vshrl.u32 %v12160_v25, 16  ;;  %v12170_v42 = vld [vmem:[%s24045_s0 + $0x1a0] sm:$0x1] }
 0x10b   :  { %v12213_v54 = vcombine.low %v4198_v41, %v4208_v49  ;;  %v4227_v55 = vrot.slane %v4226_v45, 4  ;;  %v4239_v56 = vrot.slane %v4237_v47, 5  ;;  %v4245_v57 = vrot.slane %v4243_v48, 5  ;;  %v15170_v45 = vld [vmem:[%s24045_s0 + $0xb4] sm:$0xf] }
 0x10c   :  { %v4222_v59 = vsel %vm15485_vm2, %v4217_v50, %v4221_v33  ;;  %v4249_v60 = vrot.slane %v4247_v52, 4  ;;  %v4253_v61 = vshll.u32 %v12161_v40, 16  ;;  %v11840_v63 = vcombine.low %v15166_v22, %v15167_v62 }
 0x10d   :  { %13696 = vmatprep.mubr.bf16.mxu0 %v12213_v54  ;;  %v4232_v2 = vsel %vm15485_vm2, %v4227_v55, %v4231_v46  ;;  %v4240_v3 = vor.u32 %v4239_v56, %v4236_v51  ;;  %v4258_v4 = vshrl.u32 %v12162_v53, 16  ;;  %v4261_v5 = vshll.u32 %v12162_v53, 16  ;;  %v15171_v46 = vld [vmem:[%s24045_s0 + $0xb8] sm:$0xf]  ;;  %v12227_v53 = vld [vmem:[%s24045_s0 + $0xc] sm:$0xe] }
 0x10e   :  { %v12214_v7 = vcombine.low %v4222_v59, %v4232_v2  ;;  %v4250_v9 = vor.u32 %v4249_v60, %v4245_v57  ;;  %v4255_v10 = vrot.slane %v4253_v61, 5  ;;  %v4267_v11 = vshll.u32 %v12163_v58, 16 }
 0x10f   :  { %v4241_v12 = vrot.slane %v4240_v3, 4  ;;  %13429 = vmatmul.mubr.bf16.gmra.mrb[24].mxu1 %v11840_v63  ;;  %v4260_v13 = vrot.slane %v4258_v4, 4  ;;  %v4263_v14 = vrot.slane %v4261_v5, 5  ;;  %v4271_v15 = vshrl.u32 %v12163_v58, 16 }
 0x110   :  { %13697 = vmatmul.mubr.bf16.gmra.mrb[52].mxu0 %v12214_v7  ;;  %v4251_v17 = vrot.slane %v4250_v9, 4  ;;  %v4269_v18 = vrot.slane %v4267_v11, 5  ;;  %v4277_v19 = vshll.u32 %v12164_v0, 16  ;;  %v11841_v23 = vcombine.low %v15168_v20, %v15169_v21  ;;  %v15172_v0 = vld [vmem:[%s24045_s0 + $0xd8] sm:$0xf] }
 0x111   :  { %v4246_v24 = vsel %vm15485_vm2, %v4241_v12, %v4245_v57  ;;  %v4264_v25 = vor.u32 %v4263_v14, %v4260_v13  ;;  %v4273_v26 = vrot.slane %v4271_v15, 4  ;;  %v4282_v27 = vshrl.u32 %v12165_v1, 16  ;;  %v15174_v14 = vld [vmem:[%s24045_s0 + $0x10] sm:$0xf]  ;;  %v15176_v20 = vld [vmem:[%s24045_s0 + $0xe4] sm:$0xf] }
 0x112   :  { %v4256_v28 = vsel %vm15485_vm2, %v4251_v17, %v4255_v10  ;;  %v4279_v29 = vrot.slane %v4277_v19, 5  ;;  %13432 = vmatprep.mubr.bf16.mxu1 %v11841_v23  ;;  %v4285_v30 = vshll.u32 %v12165_v1, 16  ;;  %v4291_v31 = vshll.u32 %v12166_v6, 16  ;;  %v15173_v1 = vld [vmem:[%s24045_s0 + $0xdc] sm:$0xf] }
 0x113   :  { %v12215_v8 = vcombine.low %v4246_v24, %v4256_v28  ;;  %v4265_v33 = vrot.slane %v4264_v25, 4  ;;  %v4274_v34 = vor.u32 %v4273_v26, %v4269_v18  ;;  %v4284_v35 = vrot.slane %v4282_v27, 4  ;;  %v15177_v21 = vld [vmem:[%s24045_s0 + $0xe8] sm:$0xf]  ;;  %v12229_v25 = vld [vmem:[%s24045_s0 + $0x24] sm:$0xe] }
 0x114   :  { %v4287_v38 = vrot.slane %v4285_v30, 5  ;;  %v4293_v39 = vrot.slane %v4291_v31, 5  ;;  %v4295_v40 = vshrl.u32 %v12166_v6, 16  ;;  %v4301_v41 = vshll.u32 %v12167_v16, 16  ;;  %v12228_v6 = vld [vmem:[%s24045_s0 + $0x18] sm:$0xe] }
 0x115   :  { %13700 = vmatprep.mubr.bf16.mxu0 %v12215_v8  ;;  %v4270_v43 = vsel %vm15485_vm2, %v4265_v33, %v4269_v18  ;;  %v4275_v44 = vrot.slane %v4274_v34, 4  ;;  %v11842_v47 = vcombine.low %v15170_v45, %v15171_v46  ;;  %v4306_v48 = vshrl.u32 %v12168_v32, 16  ;;  %v15175_v16 = vld [vmem:[%s24045_s0 + $0x14] sm:$0x1]  ;;  %v15180_v33 = vld [vmem:[%s24045_s0 + $0xf0] sm:$0xf] }
 0x116   :  { %v4288_v49 = vor.u32 %v4287_v38, %v4284_v35  ;;  %v4297_v50 = vrot.slane %v4295_v40, 4  ;;  %v4303_v51 = vrot.slane %v4301_v41, 5  ;;  %v4309_v52 = vshll.u32 %v12168_v32, 16  ;;  %v15179_v32 = vld [vmem:[%s24045_s0 + $0x20] sm:$0x1] }
 0x117   :  { %v4280_v54 = vsel %vm15485_vm2, %v4275_v44, %v4279_v29  ;;  %13433 = vmatmul.mubr.bf16.gmra.mrb[28].mxu1 %v11842_v47  ;;  %v4308_v55 = vrot.slane %v4306_v48, 4  ;;  %v4315_v56 = vshll.u32 %v12169_v37, 16  ;;  %v4319_v57 = vshrl.u32 %v12169_v37, 16  ;;  %v15178_v29 = vld [vmem:[%s24045_s0 + $0x1c] sm:$0xf] }
 0x118   :  { %v12216_v58 = vcombine.low %v4270_v43, %v4280_v54  ;;  %v4289_v59 = vrot.slane %v4288_v49, 4  ;;  %v4298_v60 = vor.u32 %v4297_v50, %v4293_v39  ;;  %v4311_v61 = vrot.slane %v4309_v52, 5  ;;  %v15181_v34 = vld [vmem:[%s24045_s0 + $0xf4] sm:$0xf]  ;;  %v15183_v44 = vld [vmem:[%s24045_s0 + $0x2c] sm:$0x1] }
 0x119   :  { %v4317_v22 = vrot.slane %v4315_v56, 5  ;;  %v4321_v62 = vrot.slane %v4319_v57, 4  ;;  %v4325_v63 = vshll.u32 %v12170_v42, 16  ;;  %v11843_v2 = vcombine.low %v15172_v0, %v15173_v1  ;;  %v15182_v42 = vld [vmem:[%s24045_s0 + $0x28] sm:$0xf] }
 0x11a   :  { %13701 = vmatmul.mubr.bf16.gmra.mrb[56].mxu0 %v12216_v58  ;;  %v4294_v3 = vsel %vm15485_vm2, %v4289_v59, %v4293_v39  ;;  %v4299_v4 = vrot.slane %v4298_v60, 4  ;;  %v4312_v5 = vor.u32 %v4311_v61, %v4308_v55  ;;  %v12259_v10 = vrot.slane %v12227_v53, 9  ;;  %v15184_v49 = vld [vmem:[%s24045_s0 + $0xfc] sm:$0xf]  ;;  %v15185_v50 = vld [vmem:[%s24045_s0 + $0x100] sm:$0xf] }
 0x11b   :  { %v4322_v7 = vor.u32 %v4321_v62, %v4317_v22  ;;  %v4327_v9 = vrot.slane %v4325_v63, 5  ;;  %13436 = vmatprep.mubr.bf16.mxu1 %v11843_v2  ;;  %v5005_v15 = vrot.slane %v15174_v14, 5  ;;  %v5008_v17 = vrot.slane %v15175_v16, 5  ;;  %v12230_v52 = vld [vmem:[%s24045_s0 + $0x30] sm:$0xe] }
 0x11c   :  { %v4304_v11 = vsel %vm15485_vm2, %v4299_v4, %v4303_v51  ;;  %v4313_v12 = vrot.slane %v4312_v5, 4  ;;  %v11844_v23 = vcombine.low %v15176_v20, %v15177_v21  ;;  %v12260_v24 = vrot.slane %v12228_v6, 9  ;;  %v15186_v53 = vld [vmem:[%s24045_s0 + $0x34] sm:$0xf]  ;;  %v15187_v56 = vld [vmem:[%s24045_s0 + $0x108] sm:$0xf] }
 0x11d   :  { %v12217_v18 = vcombine.low %v4294_v3, %v4304_v11  ;;  %v4323_v19 = vrot.slane %v4322_v7, 4  ;;  %v5006_v27 = vsel %vm16568_vm5, %v12259_v10, %v5005_v15  ;;  %v5007_v28 = vrot.slane %v5005_v15, 4  ;;  %v15188_v57 = vld [vmem:[%s24045_s0 + $0x10c] sm:$0xf]  ;;  %v15189_v59 = vld [vmem:[%s24045_s0 + $0x40] sm:$0xf] }
 0x11e   :  { %v4318_v26 = vsel %vm15485_vm2, %v4313_v12, %v4317_v22  ;;  %v5012_v30 = vrot.slane %v15178_v29, 5  ;;  %v5015_v8 = vrot.slane %v15179_v32, 5  ;;  %v11845_v35 = vcombine.low %v15180_v33, %v15181_v34  ;;  %v12231_v22 = vld [vmem:[%s24045_s0 + $0x3c] sm:$0xe]  ;;  %v15190_v2 = vld [vmem:[%s24045_s0 + $0x38] sm:$0x1] }
 0x11f   :  { %13704 = vmatprep.mubr.bf16.mxu0 %v12217_v18  ;;  %v4328_v31 = vsel %vm15485_vm2, %v4323_v19, %v4327_v9  ;;  %13437 = vmatmul.mubr.bf16.gmra.mrb[32].mxu1 %v11844_v23  ;;  %v5009_v38 = vsel %vm16568_vm5, %v5007_v28, %v5008_v17  ;;  %v12261_v40 = vrot.slane %v12229_v25, 9  ;;  %v5019_v43 = vrot.slane %v15182_v42, 5  ;;  %v15191_v6 = vld [vmem:[%s24045_s0 + $0x44] sm:$0x1]  ;;  %v14636_v9 = vld [vmem:[%s24044_s1 + $0x188] sm:$0xff]   ;;  %v14642_v28 = vld [vmem:[%s24044_s1 + $0x190] sm:$0xff]  }
 0x120   :  { %v12218_v37 = vcombine.low %v4318_v26, %v4328_v31  ;;  %v5014_v39 = vrot.slane %v5012_v30, 4  ;;  %v12307_v41 = vcombine.low %v5006_v27, %v5009_v38  ;;  %13440 = vmatprep.mubr.bf16.mxu1 %v11845_v35  ;;  %v5022_v45 = vrot.slane %v15183_v44, 5  ;;  %v15192_v10 = vld [vmem:[%s24044_s1 + $0x180] sm:$0xff]   ;;  %v15193_v14 = vld [vmem:[%s24045_s0 + $0x114] sm:$0xf] }
 0x121   :  { %v5013_v46 = vsel %vm16568_vm5, %v12260_v24, %v5012_v30  ;;  %v5021_v48 = vrot.slane %v5019_v43, 4  ;;  %v11846_v51 = vcombine.low %v15184_v49, %v15185_v50  ;;  %v5026_v54 = vrot.slane %v15186_v53, 5  ;;  %v15194_v15 = vld [vmem:[%s24045_s0 + $0x118] sm:$0xf]  ;;  %v12232_v17 = vld [vmem:[%s24045_s0 + $0x48] sm:$0xe] }
 0x122   :  { %13705 = vmatmul.mubr.bf16.gmra.mrb[60].mxu0 %v12218_v37  ;;  %v5016_v47 = vsel %vm16568_vm5, %v5014_v39, %v5015_v8  ;;  %v5020_v55 = vsel %vm16568_vm5, %v12261_v40, %v5019_v43  ;;  %v11847_v58 = vcombine.low %v15187_v56, %v15188_v57  ;;  %v5033_v60 = vrot.slane %v15189_v59, 5  ;;  %v15195_v18 = vld [vmem:[%s24045_s0 + $0x4c] sm:$0xf]  ;;  %v15196_v23 = vld [vmem:[%s24045_s0 + $0x120] sm:$0xf]  ;;  %v14651_v40 = vld [vmem:[%s24044_s1 + $0x198] sm:$0xff]  }
 0x123   :  { %13724 = vmatprep.mubr.bf16.mxu0 %v12307_v41  ;;  %v5023_v61 = vsel %vm16568_vm5, %v5021_v48, %v5022_v45  ;;  %v12308_v62 = vcombine.low %v5013_v46, %v5016_v47  ;;  %v12262_v63 = vrot.slane %v12230_v52, 9  ;;  %v5028_v1 = vrot.slane %v5026_v54, 4  ;;  %v15197_v24 = vld [vmem:[%s24045_s0 + $0x124] sm:$0xf]  ;;  %v15198_v26 = vld [vmem:[%s24045_s0 + $0x58] sm:$0xf] }
 0x124   :  { %v12309_v0 = vcombine.low %v5020_v55, %v5023_v61  ;;  %v5029_v3 = vrot.slane %v15190_v2, 5  ;;  %v12263_v4 = vrot.slane %v12231_v22, 9  ;;  %v5035_v5 = vrot.slane %v5033_v60, 4  ;;  %v12233_v29 = vld [vmem:[%s24045_s0 + $0x54] sm:$0xe]  ;;  %v14657_v57 = vld [vmem:[%s24044_s1 + $0x1a0] sm:$0xff]  }
 0x125   :  { %v5036_v7 = vrot.slane %v15191_v6, 5  ;;  %v5027_v11 = vsel %vm16568_vm5, %v12262_v63, %v5026_v54  ;;  %v11848_v16 = vcombine.low %v15193_v14, %v15194_v15  ;;  %v5040_v19 = vrot.slane %v15195_v18, 5  ;;  %v15199_v33 = vld [vmem:[%s24045_s0 + $0x50] sm:$0x1]  ;;  %v15200_v38 = vld [vmem:[%s24045_s0 + $0x5c] sm:$0x1] }
 0x126   :  { %v5030_v12 = vsel %vm16568_vm5, %v5028_v1, %v5029_v3  ;;  %v5034_v20 = vsel %vm16568_vm5, %v12263_v4, %v5033_v60  ;;  %v11849_v25 = vcombine.low %v15196_v23, %v15197_v24  ;;  %v5047_v27 = vrot.slane %v15198_v26, 5  ;;  %v15201_v43 = vld [vmem:[%s24045_s0 + $0x12c] sm:$0xf]  ;;  %v15202_v44 = vld [vmem:[%s24045_s0 + $0x130] sm:$0xf] }
 0x127   :  { %13441 = vmatmul.mubr.bf16.gmra.mrb[36].mxu1 %v11846_v51  ;;  %v5037_v21 = vsel %vm16568_vm5, %v5035_v5, %v5036_v7  ;;  %v12310_v30 = vcombine.low %v5027_v11, %v5030_v12  ;;  %v12264_v31 = vrot.slane %v12232_v17, 9  ;;  %v5042_v8 = vrot.slane %v5040_v19, 4  ;;  %v12234_v46 = vld [vmem:[%s24045_s0 + $0x60] sm:$0xe]  ;;  %v15203_v47 = vld [vmem:[%s24045_s0 + $0x64] sm:$0xf] }
 0x128   :  { %13444 = vmatprep.mubr.bf16.mxu1 %v11847_v58  ;;  %v12311_v32 = vcombine.low %v5034_v20, %v5037_v21  ;;  %v5043_v34 = vrot.slane %v15199_v33, 5  ;;  %v12265_v35 = vrot.slane %v12233_v29, 9  ;;  %v5049_v37 = vrot.slane %v5047_v27, 4  ;;  %v15204_v51 = vld [vmem:[%s24045_s0 + $0x138] sm:$0xf]  ;;  %v14658_v22 = vld [vmem:[%s24044_s1 + $0x1a8] sm:$0xff]  }
 0x129   :  { %v5050_v39 = vrot.slane %v15200_v38, 5  ;;  %v5041_v41 = vsel %vm16568_vm5, %v12264_v31, %v5040_v19  ;;  %v11850_v45 = vcombine.low %v15201_v43, %v15202_v44  ;;  %v5054_v48 = vrot.slane %v15203_v47, 5  ;;  %v15205_v52 = vld [vmem:[%s24045_s0 + $0x13c] sm:$0xf]  ;;  %v12235_v54 = vld [vmem:[%s24045_s0 + $0x6c] sm:$0xe] }
 0x12a   :  { %13725 = vmatmul.mubr.bf16.vlgmr.msra.gmra.mrb[0].mxu0 %v12308_v62  ;;  %v5044_v42 = vsel %vm16568_vm5, %v5042_v8, %v5043_v34  ;;  %v5048_v49 = vsel %vm16568_vm5, %v12265_v35, %v5047_v27  ;;  %v11851_v53 = vcombine.low %v15204_v51, %v15205_v52  ;;  %v15206_v55 = vld [vmem:[%s24045_s0 + $0x70] sm:$0xf]  ;;  %v12266_v59 = vrot.slane %v12234_v46, 9  ;;  %v15207_v60 = vld [vmem:[%s24045_s0 + $0x68] sm:$0x1]  ;;  %v14660_v33 = vld [vmem:[%s24044_s1 + $0x1b8] sm:$0xff]  }
 0x12b   :  { %13789 = vmatpush3.bf16.msra.mxu0 %v15192_v10  ;;  %13728 = vmatprep.mubr.bf16.mxu0 %v12309_v0  ;;  %v5051_v50 = vsel %vm16568_vm5, %v5049_v37, %v5050_v39  ;;  %v5061_v56 = vrot.slane %v15206_v55, 5  ;;  %v12312_v58 = vcombine.low %v5041_v41, %v5044_v42  ;;  %v5057_v61 = vrot.slane %v15207_v60, 5  ;;  %v15208_v2 = vld [vmem:[%s24045_s0 + $0x74] sm:$0x1]  ;;  %v15209_v6 = vld [vmem:[%s24045_s0 + $0x144] sm:$0xf] }
 0x12c   :  { %13790 = vmatprep.subr.bf16.mxu0 %v14636_v9  ;;  %v12313_v62 = vcombine.low %v5048_v49, %v5051_v50  ;;  %v5056_v63 = vrot.slane %v5054_v48, 4  ;;  %v12267_v0 = vrot.slane %v12235_v54, 9  ;;  %v5064_v3 = vrot.slane %v15208_v2, 5  ;;  %v15210_v7 = vld [vmem:[%s24045_s0 + $0x148] sm:$0xf]  ;;  %v14659_v21 = vld [vmem:[%s24044_s1 + $0x1b0] sm:$0xff]  }
 0x12d   :  { %v5063_v1 = vrot.slane %v5061_v56, 4  ;;  %v5055_v4 = vsel %vm16568_vm5, %v12266_v59, %v5054_v48  ;;  %v12236_v10 = vld [vmem:[%s24045_s0 + $0x78] sm:$0xe]  ;;  %v15211_v11 = vld [vmem:[%s24045_s0 + $0x7c] sm:$0xf]  ;;  %v16824_v51 = vld [vmem:[%s24044_s1 + $0x1c0] sm:$0xff]  }
 0x12e   :  { %v5058_v5 = vsel %vm16568_vm5, %v5056_v63, %v5057_v61  ;;  %v5068_v12 = vrot.slane %v15211_v11, 5  ;;  %v5062_v14 = vsel %vm16568_vm5, %v12267_v0, %v5061_v56  ;;  %v15213_v17 = vld [vmem:[%s24045_s0 + $0x154] sm:$0xf]  ;;  %v15214_v19 = vld [vmem:[%s24045_s0 + $0x88] sm:$0xf] }
 0x12f   :  { %13445 = vmatmul.mubr.bf16.gmra.mrb[40].mxu1 %v11848_v16  ;;  %13791 = vmatpush3.bf16.msra.mxu0 %v14636_v9  ;;  %v11852_v9 = vcombine.low %v15209_v6, %v15210_v7  ;;  %v5065_v15 = vsel %vm16568_vm5, %v5063_v1, %v5064_v3  ;;  %v15212_v16 = vld [vmem:[%s24045_s0 + $0x150] sm:$0xf]  ;;  %v5075_v20 = vrot.slane %v15214_v19, 5  ;;  %v12237_v23 = vld [vmem:[%s24045_s0 + $0x84] sm:$0xe]  ;;  %v12314_v24 = vcombine.low %v5055_v4, %v5058_v5 }
 0x130   :  { %13448 = vmatprep.mubr.bf16.mxu1 %v11849_v25  ;;  %13792 = vmatprep.subr.bf16.mxu0 %v14642_v28  ;;  %v11853_v18 = vcombine.low %v15212_v16, %v15213_v17  ;;  %v12268_v25 = vrot.slane %v12236_v10, 9  ;;  %v12315_v26 = vcombine.low %v5062_v14, %v5065_v15  ;;  %v5070_v27 = vrot.slane %v5068_v12, 4  ;;  %v15217_v37 = vld [vmem:[%s24045_s0 + $0x15c] sm:$0xf]  ;;  %v15218_v38 = vld [vmem:[%s24045_s0 + $0x160] sm:$0xf] }
 0x131   :  { %v5077_v31 = vrot.slane %v5075_v20, 4  ;;  %v11854_v39 = vcombine.low %v15217_v37, %v15218_v38  ;;  %v15219_v41 = vld [vmem:[%s24045_s0 + $0x94] sm:$0xf]  ;;  %v12239_v43 = vld [vmem:[%s24045_s0 + $0x9c] sm:$0xe] }
 0x132   :  { %13729 = vmatmul.mubr.bf16.gmra.mrb[4].mxu0 %v12310_v30  ;;  %v12269_v30 = vrot.slane %v12237_v23, 9  ;;  %v5069_v34 = vsel %vm16568_vm5, %v12268_v25, %v5068_v12  ;;  %v5082_v42 = vrot.slane %v15219_v41, 5  ;;  %v15220_v46 = vld [vmem:[%s24045_s0 + $0x168] sm:$0xf]  ;;  %v15221_v47 = vld [vmem:[%s24045_s0 + $0x16c] sm:$0xf] }
 0x133   :  { %13732 = vmatprep.mubr.bf16.mxu0 %v12311_v32  ;;  %13793 = vmatpush3.bf16.msra.mxu0 %v14642_v28  ;;  %v15215_v28 = vld [vmem:[%s24045_s0 + $0x80] sm:$0x1]  ;;  %v15216_v32 = vld [vmem:[%s24045_s0 + $0x8c] sm:$0x1]  ;;  %v11855_v48 = vcombine.low %v15220_v46, %v15221_v47  ;;  %v15223_v56 = vld [vmem:[%s24045_s0 + $0x98] sm:$0x1] }
 0x134   :  { %13794 = vmatprep.subr.bf16.mxu0 %v14651_v40  ;;  %v5071_v29 = vrot.slane %v15215_v28, 5  ;;  %v5078_v8 = vrot.slane %v15216_v32, 5  ;;  %v5076_v44 = vsel %vm16568_vm5, %v12269_v30, %v5075_v20  ;;  %v15222_v49 = vld [vmem:[%s24045_s0 + $0xa0] sm:$0xf]  ;;  %v5084_v55 = vrot.slane %v5082_v42, 4 }
 0x135   :  { %v5089_v50 = vrot.slane %v15222_v49, 5  ;;  %v15224_v60 = vld [vmem:[%s24045_s0 + $0xa4] sm:$0x1]  ;;  %v15226_v63 = vld [vmem:[%s24045_s0 + $0xac] sm:$0xf] }
 0x136   :  { %v5072_v35 = vsel %vm16568_vm5, %v5070_v27, %v5071_v29  ;;  %v5092_v61 = vrot.slane %v15224_v60, 5  ;;  %v5096_v0 = vrot.slane %v15226_v63, 5  ;;  %v1921_v1 = vld [vmem:[%s24045_s0] sm:$0xe]  ;;  %v15227_v4 = vld [vmem:[%s24045_s0 + $0x174] sm:$0xf] }
 0x137   :  { %13449 = vmatmul.mubr.bf16.gmra.mrb[44].mxu1 %v11850_v45  ;;  %13795 = vmatpush3.bf16.msra.mxu0 %v14651_v40  ;;  %v12238_v40 = vld [vmem:[%s24045_s0 + $0x90] sm:$0xe]  ;;  %v5079_v45 = vsel %vm16568_vm5, %v5077_v31, %v5078_v8  ;;  %v12316_v52 = vcombine.low %v5069_v34, %v5072_v35  ;;  %v5091_v59 = vrot.slane %v5089_v50, 4  ;;  %v15228_v5 = vld [vmem:[%s24045_s0 + $0x178] sm:$0xf]  ;;  %v11867_v20 = vrot.slane %v1921_v1, 9 }
 0x138   :  { %13452 = vmatprep.mubr.bf16.mxu1 %v11851_v53  ;;  %13796 = vmatprep.subr.bf16.mxu0 %v14657_v57  ;;  %v12270_v53 = vrot.slane %v12238_v40, 9  ;;  %v12317_v54 = vcombine.low %v5076_v44, %v5079_v45  ;;  %v11856_v6 = vcombine.low %v15227_v4, %v15228_v5  ;;  %v12240_v7 = vld [vmem:[%s24045_s0 + $0xa8] sm:$0xe]  ;;  %v15229_v12 = vld [vmem:[%s24045_s0 + $0x180] sm:$0xf]  ;;  %v5098_v25 = vrot.slane %v5096_v0, 4 }
 0x139   :  { %v5093_v11 = vsel %vm16568_vm5, %v5091_v59, %v5092_v61  ;;  %v15230_v14 = vld [vmem:[%s24045_s0 + $0x184] sm:$0xf]  ;;  %v15231_v16 = vld [vmem:[%s24045_s0 + $0xb8] sm:$0xf]  ;;  %v12242_v28 = vld [vmem:[%s24045_s0 + $0xc0] sm:$0xe] }
 0x13a   :  { %13733 = vmatmul.mubr.bf16.gmra.mrb[8].mxu0 %v12312_v58  ;;  %v12271_v58 = vrot.slane %v12239_v43, 9  ;;  %v5083_v2 = vsel %vm16568_vm5, %v12270_v53, %v5082_v42  ;;  %v11857_v15 = vcombine.low %v15229_v12, %v15230_v14  ;;  %v5103_v17 = vrot.slane %v15231_v16, 5  ;;  %v15234_v31 = vld [vmem:[%s24045_s0 + $0xbc] sm:$0x1]  ;;  %v15236_v35 = vld [vmem:[%s24045_s0 + $0xc4] sm:$0xf] }
 0x13b   :  { %13736 = vmatprep.mubr.bf16.mxu0 %v12313_v62  ;;  %13797 = vmatpush3.bf16.msra.mxu0 %v14657_v57  ;;  %v5085_v57 = vrot.slane %v15223_v56, 5  ;;  %v5106_v32 = vrot.slane %v15234_v31, 5  ;;  %v5110_v37 = vrot.slane %v15236_v35, 5  ;;  %v1922_v40 = vld [vmem:[%s24045_s0 + $0xc] sm:$0xe]  ;;  %v12274_v53 = vrot.slane %v12242_v28, 9 }
 0x13c   :  { %13798 = vmatprep.subr.bf16.mxu0 %v14658_v22  ;;  %v5090_v10 = vsel %vm16568_vm5, %v12271_v58, %v5089_v50  ;;  %v5105_v8 = vrot.slane %v5103_v17, 4  ;;  %v15237_v41 = vld [vmem:[%s24045_s0 + $0x1c] sm:$0xf]  ;;  %v15238_v43 = vld [vmem:[%s24045_s0 + $0x14] sm:$0x1]  ;;  %v11868_v61 = vrot.slane %v1922_v40, 9 }
 0x13d   :  { %v5086_v3 = vsel %vm16568_vm5, %v5084_v55, %v5085_v57  ;;  %v12319_v29 = vcombine.low %v5090_v10, %v5093_v11  ;;  %v2036_v42 = vrot.slane %v15237_v41, 5  ;;  %v2032_v44 = vrot.slane %v15238_v43, 5  ;;  %v15239_v47 = vld [vmem:[%s24045_s0 + $0x18c] sm:$0xf]  ;;  %v1923_v50 = vld [vmem:[%s24045_s0 + $0x18] sm:$0xe] }
 0x13e   :  { %v12318_v23 = vcombine.low %v5083_v2, %v5086_v3  ;;  %v12243_v56 = vld [vmem:[%s24045_s0 + $0xe4] sm:$0xe]  ;;  %v15242_v57 = vld [vmem:[%s24045_s0 + $0xe8] sm:$0xf]  ;;  %v5107_v59 = vsel %vm16568_vm5, %v5105_v8, %v5106_v32  ;;  %v16934_v63 = vld [vmem:[%s24045_s0 + $0xf0] sm:$0xe]  ;;  %v5111_v12 = vsel %vm16568_vm5, %v12274_v53, %v5110_v37 }
 0x13f   :  { %13453 = vmatmul.mubr.bf16.gmra.mrb[48].mxu1 %v11852_v9  ;;  %13799 = vmatpush3.bf16.msra.mxu0 %v14658_v22  ;;  %v15225_v22 = vld [vmem:[%s24045_s0 + $0x4] sm:$0xf]  ;;  %v12241_v9 = vld [vmem:[%s24045_s0 + $0xb4] sm:$0xe]  ;;  %v5117_v58 = vrot.slane %v15242_v57, 5  ;;  %v2038_v1 = vrot.slane %v2036_v42, 4 }
 0x140   :  { %13456 = vmatprep.mubr.bf16.mxu1 %v11853_v18  ;;  %13800 = vmatprep.subr.bf16.mxu0 %v14659_v21  ;;  %v2022_v62 = vrot.slane %v15225_v22, 5  ;;  %v15232_v18 = vld [vmem:[%s24045_s0 + $0x8] sm:$0x1]  ;;  %v12273_v30 = vrot.slane %v12241_v9, 9  ;;  %v15243_v2 = vld [vmem:[%s24045_s0 + $0x20] sm:$0x1] }
 0x141   :  { %v2025_v19 = vrot.slane %v15232_v18, 5  ;;  %v2039_v3 = vrot.slane %v15243_v2, 5  ;;  %v12275_v5 = vrot.slane %v12243_v56, 9  ;;  %v5119_v9 = vrot.slane %v5117_v58, 4  ;;  %v15244_v10 = vld [vmem:[%s24045_s0 + $0xec] sm:$0x1] }
 0x142   :  { %13737 = vmatmul.mubr.bf16.gmra.mrb[12].mxu0 %v12314_v24  ;;  %v12272_v24 = vrot.slane %v12240_v7, 9  ;;  %v2023_v38 = vsel %vm16568_vm5, %v11867_v20, %v2022_v62  ;;  %v5120_v11 = vrot.slane %v15244_v10, 5  ;;  %v15245_v16 = vld [vmem:[%s24045_s0 + $0x28] sm:$0xf]  ;;  %v1925_v18 = vld [vmem:[%s24045_s0 + $0x30] sm:$0xe] }
 0x143   :  { %13740 = vmatprep.mubr.bf16.mxu0 %v12315_v26  ;;  %13801 = vmatpush3.bf16.msra.mxu0 %v14659_v21  ;;  %v2024_v21 = vrot.slane %v2022_v62, 4  ;;  %v15233_v26 = vld [vmem:[%s24045_s0 + $0xb0] sm:$0x1]  ;;  %v5112_v62 = vrot.slane %v5110_v37, 4  ;;  %v12245_v8 = vld [vmem:[%s24045_s0 + $0xfc] sm:$0xe] }
 0x144   :  { %13802 = vmatprep.subr.bf16.mxu0 %v14660_v33  ;;  %v5099_v27 = vrot.slane %v15233_v26, 5  ;;  %v5097_v45 = vsel %vm16568_vm5, %v12272_v24, %v5096_v0  ;;  %v11869_v0 = vrot.slane %v1923_v50, 9  ;;  %v12276_v26 = vrot.slane %v16934_v63, 9  ;;  %v15251_v43 = vld [vmem:[%s24045_s0 + $0x38] sm:$0x1] }
 0x145   :  { %v5121_v31 = vsel %vm16568_vm5, %v5119_v9, %v5120_v11  ;;  %v11871_v41 = vrot.slane %v1925_v18, 9  ;;  %v12247_v9 = vld [vmem:[%s24045_s0 + $0x114] sm:$0xe]  ;;  %v15258_v10 = vld [vmem:[%s24045_s0 + $0x118] sm:$0xf] }
 0x146   :  { %v5100_v46 = vsel %vm16568_vm5, %v5098_v25, %v5099_v27  ;;  %v2037_v20 = vsel %vm16568_vm5, %v11869_v0, %v2036_v42  ;;  %v5118_v25 = vsel %vm16568_vm5, %v12275_v5, %v5117_v58  ;;  %v15247_v27 = vld [vmem:[%s24045_s0 + $0xf4] sm:$0xf]  ;;  %v15253_v58 = vld [vmem:[%s24045_s0 + $0x40] sm:$0xf]  ;;  %v15256_v0 = vld [vmem:[%s24044_s1 + $0xc8] sm:$0xff]   ;;  %v5145_v11 = vrot.slane %v15258_v10, 5 }
 0x147   :  { %13457 = vmatmul.mubr.bf16.gmra.mrb[52].mxu1 %v11854_v39  ;;  %13803 = vmatpush3.bf16.msra.mxu0 %v14660_v33  ;;  %v15235_v33 = vld [vmem:[%s24045_s0 + $0x10] sm:$0xf]  ;;  %v2026_v39 = vsel %vm16568_vm5, %v2024_v21, %v2025_v19  ;;  %v12320_v4 = vcombine.low %v5097_v45, %v5100_v46  ;;  %v2040_v21 = vsel %vm16568_vm5, %v2038_v1, %v2039_v3  ;;  %v5124_v28 = vrot.slane %v15247_v27, 5  ;;  %v15257_v5 = vld [vmem:[%s24045_s0 + $0x10c] sm:$0xf] }
 0x148   :  { %13460 = vmatprep.mubr.bf16.mxu1 %v11855_v48  ;;  %13868 = vmatprep.subr.bf16.mxu0 %v16824_v51  ;;  %v2029_v34 = vrot.slane %v15235_v33, 5  ;;  %v16912_v48 = vld [vmem:[%s24045_s0 + $0x190] sm:$0xf]  ;;  %v11915_v60 = vcombine.low %v2023_v38, %v2026_v39  ;;  %v15249_v33 = vld [vmem:[%s24045_s0 + $0x100] sm:$0xf]  ;;  %v11917_v37 = vcombine.low %v2037_v20, %v2040_v21  ;;  %v12323_v50 = vcombine.low %v5118_v25, %v5121_v31 }
 0x149   :  { %v11858_v49 = vcombine.low %v15239_v47, %v16912_v48  ;;  %v15250_v39 = vld [vmem:[%s24045_s0 + $0x2c] sm:$0x1]  ;;  %v5126_v46 = vrot.slane %v5124_v28, 4  ;;  %v12277_v47 = vrot.slane %v12245_v8, 9  ;;  %v5125_v1 = vsel %vm16568_vm5, %v12276_v26, %v5124_v28  ;;  %v15261_v25 = vld [vmem:[%s24044_s1 + $0xd0] sm:$0xff]  }
 0x14a   :  { %13741 = vmatmul.mubr.bf16.gmra.mrb[16].mxu0 %v12316_v52  ;;  %v5104_v52 = vsel %vm16568_vm5, %v12273_v30, %v5103_v17  ;;  %v2031_v22 = vrot.slane %v2029_v34, 4  ;;  %v2030_v14 = vsel %vm16568_vm5, %v11868_v61, %v2029_v34  ;;  %v2043_v17 = vrot.slane %v15245_v16, 5  ;;  %v15262_v28 = vld [vmem:[%s24045_s0 + $0x110] sm:$0x1]  ;;  %v15263_v8 = vld [vmem:[%s24045_s0 + $0x11c] sm:$0x1] }
 0x14b   :  { %13744 = vmatprep.mubr.bf16.mxu0 %v12317_v54  ;;  %v15241_v54 = vld [vmem:[%s24045_s0 + $0xc8] sm:$0x1]  ;;  %v12321_v7 = vcombine.low %v5104_v52, %v5107_v59  ;;  %v5131_v34 = vrot.slane %v15249_v33, 5  ;;  %v2046_v40 = vrot.slane %v15250_v39, 5  ;;  %v15252_v52 = vld [vmem:[%s24045_s0 + $0x104] sm:$0x1] }
 0x14c   :  { %v5113_v55 = vrot.slane %v15241_v54, 5  ;;  %v2045_v38 = vrot.slane %v2043_v17, 4  ;;  %v5134_v53 = vrot.slane %v15252_v52, 5  ;;  %v1927_v54 = vld [vmem:[%s24045_s0 + $0x48] sm:$0xe]  ;;  %v2057_v59 = vrot.slane %v15253_v58, 5 }
 0x14d   :  { %v5132_v3 = vsel %vm16568_vm5, %v12277_v47, %v5131_v34  ;;  %v5148_v33 = vrot.slane %v15263_v8, 5  ;;  %v15267_v47 = vld [vmem:[%s24045_s0 + $0x124] sm:$0xf] }
 0x14e   :  { %v5114_v19 = vsel %vm16568_vm5, %v5112_v62, %v5113_v55  ;;  %v5133_v55 = vrot.slane %v5131_v34, 4  ;;  %v2047_v57 = vsel %vm16568_vm5, %v2045_v38, %v2046_v40  ;;  %v15255_v62 = vld [vmem:[%s24045_s0 + $0x4c] sm:$0xf]  ;;  %v2059_v18 = vrot.slane %v2057_v59, 4 }
 0x14f   :  { %13461 = vmatmul.mubr.bf16.gmra.mrb[56].mxu1 %v11856_v6  ;;  %v1924_v6 = vld [vmem:[%s24045_s0 + $0x24] sm:$0xe]  ;;  %v12322_v45 = vcombine.low %v5111_v12, %v5114_v19  ;;  %v2064_v63 = vrot.slane %v15255_v62, 5  ;;  %v11873_v19 = vrot.slane %v1927_v54, 9 }
 0x150   :  { %13464 = vmatprep.mubr.bf16.mxu1 %v11857_v15  ;;  %v2033_v15 = vsel %vm16568_vm5, %v2031_v22, %v2032_v44  ;;  %v11870_v35 = vrot.slane %v1924_v6, 9  ;;  %v2053_v44 = vrot.slane %v15251_v43, 5  ;;  %v5138_v6 = vrot.slane %v15257_v5, 5 }
 0x151   :  { %v11916_v32 = vcombine.low %v2030_v14, %v2033_v15  ;;  %v15259_v14 = vld [vmem:[%s24045_s0 + $0x44] sm:$0x1]  ;;  %v5135_v16 = vsel %vm16568_vm5, %v5133_v55, %v5134_v53  ;;  %v2066_v21 = vrot.slane %v2064_v63, 4  ;;  %v2065_v39 = vsel %vm16568_vm5, %v11873_v19, %v2064_v63  ;;  %v12248_v55 = vld [vmem:[%s24045_s0 + $0x120] sm:$0xe] }
 0x152   :  { %13745 = vmatmul.mubr.bf16.gmra.mrb[20].mxu0 %v12318_v23  ;;  %v15246_v23 = vld [vmem:[%s24045_s0 + $0x34] sm:$0xf]  ;;  %v2044_v56 = vsel %vm16568_vm5, %v11870_v35, %v2043_v17  ;;  %v2060_v15 = vrot.slane %v15259_v14, 5  ;;  %v5140_v27 = vrot.slane %v5138_v6, 4  ;;  %v12325_v31 = vcombine.low %v5132_v3, %v5135_v16  ;;  %v15271_v3 = vld [vmem:[%s24044_s1 + $0xe0] sm:$0xff]  }
 0x153   :  { %13748 = vmatprep.mubr.bf16.mxu0 %v12319_v29  ;;  %v2050_v24 = vrot.slane %v15246_v23, 5  ;;  %v15248_v29 = vld [vmem:[%s24045_s0 + $0xf8] sm:$0x1]  ;;  %v15260_v23 = vld [vmem:[%s24045_s0 + $0x50] sm:$0x1]  ;;  %v12280_v5 = vrot.slane %v12248_v55, 9 }
 0x154   :  { %v5127_v30 = vrot.slane %v15248_v29, 5  ;;  %v5141_v29 = vrot.slane %v15262_v28, 5  ;;  %v2061_v35 = vsel %vm16568_vm5, %v2059_v18, %v2060_v15  ;;  %v15273_v14 = vld [vmem:[%s24045_s0 + $0x134] sm:$0x1]  ;;  %v15274_v18 = vld [vmem:[%s24045_s0 + $0x70] sm:$0xf] }
 0x155   :  { %v2052_v42 = vrot.slane %v2050_v24, 4  ;;  %v2051_v61 = vsel %vm16568_vm5, %v11871_v41, %v2050_v24  ;;  %v2067_v24 = vrot.slane %v15260_v23, 5  ;;  %v1928_v41 = vld [vmem:[%s24045_s0 + $0x54] sm:$0xe]  ;;  %v5162_v15 = vrot.slane %v15273_v14, 5 }
 0x156   :  { %v5128_v2 = vsel %vm16568_vm5, %v5126_v46, %v5127_v30  ;;  %v12279_v30 = vrot.slane %v12247_v9, 9  ;;  %v5142_v46 = vsel %vm16568_vm5, %v5140_v27, %v5141_v29  ;;  %v2085_v19 = vrot.slane %v15274_v18, 5  ;;  %v1930_v23 = vld [vmem:[%s24045_s0 + $0x6c] sm:$0xe]  ;;  %v15277_v29 = vld [vmem:[%s24045_s0 + $0x13c] sm:$0xf] }
 0x157   :  { %13465 = vmatmul.mubr.bf16.gmra.mrb[60].mxu1 %v11858_v49  ;;  %v1926_v49 = vld [vmem:[%s24045_s0 + $0x3c] sm:$0xe]  ;;  %v2054_v22 = vsel %vm16568_vm5, %v2052_v42, %v2053_v44  ;;  %v12324_v20 = vcombine.low %v5125_v1, %v5128_v2  ;;  %v2068_v40 = vsel %vm16568_vm5, %v2066_v21, %v2067_v24  ;;  %v15265_v42 = vld [vmem:[%s24045_s0 + $0x64] sm:$0xf]  ;;  %v15270_v1 = vld [vmem:[%s24045_s0 + $0x68] sm:$0x1] }
 0x158   :  { %13484 = vmatprep.mubr.bf16.mxu1 %v11915_v60  ;;  %v15254_v60 = vld [vmem:[%s24044_s1 + $0xc0] sm:$0xff]   ;;  %v11872_v12 = vrot.slane %v1926_v49, 9  ;;  %v11919_v17 = vcombine.low %v2051_v61, %v2054_v22  ;;  %v2078_v43 = vrot.slane %v15265_v42, 5  ;;  %v15266_v44 = vld [vmem:[%s24044_s1 + $0xd8] sm:$0xff]   ;;  %v5152_v49 = vrot.slane %v15267_v47, 5 }
 0x159   :  { %v5146_v52 = vsel %vm16568_vm5, %v12279_v30, %v5145_v11  ;;  %v11921_v58 = vcombine.low %v2065_v39, %v2068_v40  ;;  %v15269_v22 = vld [vmem:[%s24045_s0 + $0x5c] sm:$0x1]  ;;  %v2081_v2 = vrot.slane %v15270_v1, 5  ;;  %v5166_v30 = vrot.slane %v15277_v29, 5  ;;  %v12251_v39 = vld [vmem:[%s24045_s0 + $0x144] sm:$0xe] }
 0x15a   :  { %13749 = vmatmul.mubr.bf16.gmra.mrb[24].mxu0 %v12320_v4  ;;  %v12246_v4 = vld [vmem:[%s24045_s0 + $0x108] sm:$0xe]  ;;  %v2058_v34 = vsel %vm16568_vm5, %v11872_v12, %v2057_v59  ;;  %v12249_v59 = vld [vmem:[%s24045_s0 + $0x12c] sm:$0xe]  ;;  %v2074_v62 = vrot.slane %v15269_v22, 5  ;;  %v5153_v27 = vsel %vm16568_vm5, %v12280_v5, %v5152_v49  ;;  %v11876_v40 = vrot.slane %v1930_v23, 9 }
 0x15b   :  { %13752 = vmatprep.mubr.bf16.mxu0 %v12321_v7  ;;  %v11918_v7 = vcombine.low %v2044_v56, %v2047_v57  ;;  %v12278_v26 = vrot.slane %v12246_v4, 9  ;;  %v11920_v54 = vcombine.low %v2058_v34, %v2061_v35  ;;  %v15268_v56 = vld [vmem:[%s24045_s0 + $0x130] sm:$0xf]  ;;  %v15275_v24 = vld [vmem:[%s24045_s0 + $0x7c] sm:$0xf] }
 0x15c   :  { %v5159_v57 = vrot.slane %v15268_v56, 5  ;;  %v12250_v34 = vld [vmem:[%s24045_s0 + $0x138] sm:$0xe]  ;;  %v15278_v35 = vld [vmem:[%s24045_s0 + $0x148] sm:$0xf] }
 0x15d   :  { %v15279_v42 = vld [vmem:[%s24045_s0 + $0x74] sm:$0x1]  ;;  %v15286_v5 = vld [vmem:[%s24044_s1 + $0xf8] sm:$0xff]  }
 0x15e   :  { %v5161_v12 = vrot.slane %v5159_v57, 4 }
 0x15f   :  { %13485 = vmatmul.mubr.bf16.vlgmr.msra.gmra.mrb[0].mxu1 %v11916_v32  ;;  %v5147_v32 = vrot.slane %v5145_v11, 4  ;;  %v12281_v11 = vrot.slane %v12249_v59, 9  ;;  %v15283_v59 = vld [vmem:[%s24045_s0 + $0x14c] sm:$0x1] }
 0x160   :  { %13488 = vmatprep.mubr.bf16.mxu1 %v11917_v37  ;;  %14036 = vmatpush3.bf16.msra.mxu1 %v15254_v60  ;;  %v15264_v37 = vld [vmem:[%s24045_s0 + $0x58] sm:$0xf]  ;;  %v11874_v60 = vrot.slane %v1928_v41, 9  ;;  %v5163_v8 = vsel %vm16568_vm5, %v5161_v12, %v5162_v15  ;;  %v2087_v41 = vrot.slane %v2085_v19, 4 }
 0x161   :  { %14029 = vmatprep.subr.bf16.mxu1 %v15256_v0  ;;  %v2071_v38 = vrot.slane %v15264_v37, 5  ;;  %v5149_v53 = vsel %vm16568_vm5, %v5147_v32, %v5148_v33  ;;  %v5160_v32 = vsel %vm16568_vm5, %v12281_v11, %v5159_v57  ;;  %v5173_v37 = vrot.slane %v15278_v35, 5  ;;  %v1933_v11 = vld [vmem:[%s24045_s0 + $0x90] sm:$0xe] }
 0x162   :  { %13753 = vmatmul.mubr.bf16.gmra.mrb[28].mxu0 %v12322_v45  ;;  %v5139_v45 = vsel %vm16568_vm5, %v12278_v26, %v5138_v6  ;;  %v5154_v6 = vrot.slane %v5152_v49, 4  ;;  %v12327_v10 = vcombine.low %v5146_v52, %v5149_v53  ;;  %v15276_v26 = vld [vmem:[%s24044_s1 + $0xe8] sm:$0xff]   ;;  %v15281_v49 = vld [vmem:[%s24044_s1 + $0xf0] sm:$0xff]   ;;  %v12282_v52 = vrot.slane %v12250_v34, 9 }
 0x163   :  { %13756 = vmatprep.mubr.bf16.mxu0 %v12323_v50  ;;  %v1929_v50 = vld [vmem:[%s24045_s0 + $0x60] sm:$0xe]  ;;  %v2073_v61 = vrot.slane %v2071_v38, 4  ;;  %v12326_v4 = vcombine.low %v5139_v45, %v5142_v46  ;;  %v2072_v16 = vsel %vm16568_vm5, %v11874_v60, %v2071_v38  ;;  %v15280_v46 = vld [vmem:[%s24045_s0 + $0x80] sm:$0x1]  ;;  %v5168_v53 = vrot.slane %v5166_v30, 4 }
 0x164   :  { %14037 = vmatpush3.bf16.msra.mxu1 %v15256_v0  ;;  %v11875_v63 = vrot.slane %v1929_v50, 9  ;;  %v2080_v0 = vrot.slane %v2078_v43, 4  ;;  %v2095_v47 = vrot.slane %v15280_v46, 5  ;;  %v12329_v56 = vcombine.low %v5160_v32, %v5163_v8  ;;  %v15291_v8 = vld [vmem:[%s24045_s0 + $0x158] sm:$0x1] }
 0x165   :  { %14030 = vmatprep.subr.bf16.mxu1 %v15261_v25  ;;  %v12283_v57 = vrot.slane %v12251_v39, 9  ;;  %v5176_v60 = vrot.slane %v15283_v59, 5  ;;  %v1934_v46 = vld [vmem:[%s24045_s0 + $0x9c] sm:$0xe]  ;;  %v12254_v59 = vld [vmem:[%s24045_s0 + $0x168] sm:$0xe] }
 0x166   :  { %v2082_v21 = vsel %vm16568_vm5, %v2080_v0, %v2081_v2  ;;  %v1932_v2 = vld [vmem:[%s24045_s0 + $0x84] sm:$0xe] }
 0x167   :  { %13489 = vmatmul.mubr.bf16.gmra.mrb[4].mxu1 %v11918_v7  ;;  %v15272_v7 = vld [vmem:[%s24045_s0 + $0x128] sm:$0x1]  ;;  %v5174_v12 = vsel %vm16568_vm5, %v12283_v57, %v5173_v37 }
 0x168   :  { %13492 = vmatprep.mubr.bf16.mxu1 %v11919_v17  ;;  %14038 = vmatpush3.bf16.msra.mxu1 %v15261_v25  ;;  %v5155_v9 = vrot.slane %v15272_v7, 5  ;;  %v2075_v17 = vsel %vm16568_vm5, %v2073_v61, %v2074_v62  ;;  %v2092_v25 = vrot.slane %v15275_v24, 5  ;;  %v2086_v61 = vsel %vm16568_vm5, %v11876_v40, %v2085_v19  ;;  %v15284_v62 = vld [vmem:[%s24045_s0 + $0x88] sm:$0xf]  ;;  %v15289_v24 = vld [vmem:[%s24045_s0 + $0x8c] sm:$0x1] }
 0x169   :  { %14031 = vmatprep.subr.bf16.mxu1 %v15266_v44  ;;  %v11922_v33 = vcombine.low %v2072_v16, %v2075_v17  ;;  %v12252_v16 = vld [vmem:[%s24045_s0 + $0x150] sm:$0xe]  ;;  %v15288_v17 = vld [vmem:[%s24045_s0 + $0x160] sm:$0xf] }
 0x16a   :  { %13757 = vmatmul.mubr.bf16.gmra.mrb[32].mxu0 %v12324_v20  ;;  %v2079_v20 = vsel %vm16568_vm5, %v11875_v63, %v2078_v43  ;;  %v5156_v28 = vsel %vm16568_vm5, %v5154_v6, %v5155_v9  ;;  %v2088_v43 = vrot.slane %v15279_v42, 5  ;;  %v2094_v45 = vrot.slane %v2092_v25, 4  ;;  %v15287_v9 = vld [vmem:[%s24045_s0 + $0x154] sm:$0xf]  ;;  %v15293_v42 = vld [vmem:[%s24045_s0 + $0xa0] sm:$0xf] }
 0x16b   :  { %13760 = vmatprep.mubr.bf16.mxu0 %v12325_v31  ;;  %v1931_v31 = vld [vmem:[%s24045_s0 + $0x78] sm:$0xe]  ;;  %v11923_v38 = vcombine.low %v2079_v20, %v2082_v21  ;;  %v12328_v50 = vcombine.low %v5153_v27, %v5156_v28  ;;  %v2099_v63 = vrot.slane %v15284_v62, 5  ;;  %v5167_v6 = vsel %vm16568_vm5, %v12282_v52, %v5166_v30  ;;  %v12253_v20 = vld [vmem:[%s24045_s0 + $0x15c] sm:$0xe] }
 0x16c   :  { %14039 = vmatpush3.bf16.msra.mxu1 %v15266_v44  ;;  %v11877_v44 = vrot.slane %v1931_v31, 9  ;;  %v2089_v22 = vsel %vm16568_vm5, %v2087_v41, %v2088_v43  ;;  %v2096_v1 = vsel %vm16568_vm5, %v2094_v45, %v2095_v47  ;;  %v5187_v18 = vrot.slane %v15288_v17, 5  ;;  %v15290_v28 = vld [vmem:[%s24045_s0 + $0x98] sm:$0x1]  ;;  %v15294_v47 = vld [vmem:[%s24045_s0 + $0xac] sm:$0xf] }
 0x16d   :  { %14032 = vmatprep.subr.bf16.mxu1 %v15271_v3  ;;  %v11924_v15 = vcombine.low %v2086_v61, %v2089_v22  ;;  %v11878_v21 = vrot.slane %v1932_v2, 9  ;;  %v2101_v23 = vrot.slane %v2099_v63, 4  ;;  %v2109_v29 = vrot.slane %v15290_v28, 5  ;;  %v12255_v62 = vld [vmem:[%s24045_s0 + $0x174] sm:$0xe] }
 0x16e   :  { %v2093_v0 = vsel %vm16568_vm5, %v11877_v44, %v2092_v25  ;;  %v2102_v25 = vrot.slane %v15289_v24, 5  ;;  %v12284_v31 = vrot.slane %v12252_v16, 9  ;;  %v12285_v35 = vrot.slane %v12253_v20, 9  ;;  %v15300_v17 = vld [vmem:[%s24045_s0 + $0x17c] sm:$0x1] }
 0x16f   :  { %13493 = vmatmul.mubr.bf16.gmra.mrb[8].mxu1 %v11920_v54  ;;  %v15282_v54 = vld [vmem:[%s24045_s0 + $0x140] sm:$0x1]  ;;  %v11925_v19 = vcombine.low %v2093_v0, %v2096_v1  ;;  %v2100_v40 = vsel %vm16568_vm5, %v11878_v21, %v2099_v63  ;;  %v2113_v43 = vrot.slane %v15293_v42, 5  ;;  %v11880_v63 = vrot.slane %v1934_v46, 9  ;;  %v15297_v1 = vld [vmem:[%s24045_s0 + $0xa4] sm:$0x1] }
 0x170   :  { %13496 = vmatprep.mubr.bf16.mxu1 %v11921_v58  ;;  %14040 = vmatpush3.bf16.msra.mxu1 %v15271_v3  ;;  %v5169_v55 = vrot.slane %v15282_v54, 5  ;;  %v5175_v58 = vrot.slane %v5173_v37, 4  ;;  %v15285_v3 = vld [vmem:[%s24045_s0 + $0x94] sm:$0xf]  ;;  %v5189_v37 = vrot.slane %v5187_v18, 4  ;;  %v2103_v41 = vsel %vm16568_vm5, %v2101_v23, %v2102_v25 }
 0x171   :  { %14033 = vmatprep.subr.bf16.mxu1 %v15276_v26  ;;  %v2115_v0 = vrot.slane %v2113_v43, 4  ;;  %v2116_v2 = vrot.slane %v15297_v1, 5  ;;  %v15301_v21 = vld [vmem:[%s24045_s0 + $0xb8] sm:$0xf] }
 0x172   :  { %13761 = vmatmul.mubr.bf16.gmra.mrb[36].mxu0 %v12326_v4  ;;  %v2106_v4 = vrot.slane %v15285_v3, 5  ;;  %v5170_v7 = vsel %vm16568_vm5, %v5168_v53, %v5169_v55  ;;  %v5177_v14 = vsel %vm16568_vm5, %v5175_v58, %v5176_v60  ;;  %v15295_v53 = vld [vmem:[%s24045_s0 + $0x16c] sm:$0xf]  ;;  %v1935_v55 = vld [vmem:[%s24045_s0 + $0xa8] sm:$0xe]  ;;  %v11926_v58 = vcombine.low %v2100_v40, %v2103_v41 }
 0x173   :  { %13764 = vmatprep.mubr.bf16.mxu0 %v12327_v10  ;;  %v5180_v10 = vrot.slane %v15287_v9, 5  ;;  %v12330_v30 = vcombine.low %v5167_v6, %v5170_v7  ;;  %v12331_v34 = vcombine.low %v5174_v12, %v5177_v14  ;;  %v5194_v54 = vrot.slane %v15295_v53, 5  ;;  %v15296_v60 = vld [vmem:[%s24045_s0 + $0x178] sm:$0xf]  ;;  %v12257_v41 = vld [vmem:[%s24045_s0 + $0x18c] sm:$0xe] }
 0x174   :  { %14041 = vmatpush3.bf16.msra.mxu1 %v15276_v26  ;;  %v11879_v26 = vrot.slane %v1933_v11, 9  ;;  %v2108_v27 = vrot.slane %v2106_v4, 4  ;;  %v5201_v61 = vrot.slane %v15296_v60, 5  ;;  %v11881_v3 = vrot.slane %v1935_v55, 9  ;;  %v15299_v11 = vld [vmem:[%s24045_s0 + $0x170] sm:$0x1] }
 0x175   :  { %14034 = vmatprep.subr.bf16.mxu1 %v15281_v49  ;;  %v5182_v32 = vrot.slane %v5180_v10, 4  ;;  %v12286_v9 = vrot.slane %v12254_v59, 9  ;;  %v5197_v12 = vrot.slane %v15299_v11, 5  ;;  %v2117_v20 = vsel %vm16568_vm5, %v2115_v0, %v2116_v2  ;;  %v15307_v55 = vld [vmem:[%s24045_s0 + $0x188] sm:$0x1] }
 0x176   :  { %v2107_v44 = vsel %vm16568_vm5, %v11879_v26, %v2106_v4  ;;  %v2110_v45 = vsel %vm16568_vm5, %v2108_v27, %v2109_v29  ;;  %v5203_v16 = vrot.slane %v5201_v61, 4  ;;  %v2127_v23 = vrot.slane %v15301_v21, 5  ;;  %v1936_v26 = vld [vmem:[%s24045_s0 + $0xb4] sm:$0xe]  ;;  %v15302_v27 = vld [vmem:[%s24045_s0 + $0xdc] sm:$0xf] }
 0x177   :  { %13497 = vmatmul.mubr.bf16.gmra.mrb[12].mxu1 %v11922_v33  ;;  %v5183_v33 = vrot.slane %v15291_v8, 5  ;;  %v11927_v22 = vcombine.low %v2107_v44, %v2110_v45  ;;  %v2134_v28 = vrot.slane %v15302_v27, 5  ;;  %v5195_v29 = vsel %vm16568_vm5, %v12286_v9, %v5194_v54  ;;  %v1937_v8 = vld [vmem:[%s24045_s0 + $0xd8] sm:$0xe]  ;;  %v15305_v44 = vld [vmem:[%s24045_s0 + $0xbc] sm:$0x1] }
 0x178   :  { %13500 = vmatprep.mubr.bf16.mxu1 %v11923_v38  ;;  %14042 = vmatpush3.bf16.msra.mxu1 %v15281_v49  ;;  %v15292_v38 = vld [vmem:[%s24045_s0 + $0x164] sm:$0x1]  ;;  %v2120_v49 = vrot.slane %v15294_v47, 5  ;;  %v11882_v42 = vrot.slane %v1936_v26, 9  ;;  %v2130_v45 = vrot.slane %v15305_v44, 5  ;;  %v11883_v46 = vrot.slane %v1937_v8, 9 }
 0x179   :  { %14035 = vmatprep.subr.bf16.mxu1 %v15286_v5  ;;  %v5190_v39 = vrot.slane %v15292_v38, 5  ;;  %v5184_v52 = vsel %vm16568_vm5, %v5182_v32, %v5183_v33  ;;  %v15304_v38 = vld [vmem:[%s24045_s0 + $0x190] sm:$0xf]  ;;  %v2136_v47 = vrot.slane %v2134_v28, 4  ;;  %v15308_v60 = vld [vmem:[%s24045_s0 + $0x194] sm:$0x1] }
 0x17a   :  { %13765 = vmatmul.mubr.bf16.gmra.mrb[40].mxu0 %v12328_v50  ;;  %v5181_v50 = vsel %vm16568_vm5, %v12284_v31, %v5180_v10  ;;  %v2122_v4 = vrot.slane %v2120_v49, 4  ;;  %v5196_v10 = vrot.slane %v5194_v54, 4  ;;  %v2121_v24 = vsel %vm16568_vm5, %v11881_v3, %v2120_v49  ;;  %v15303_v31 = vld [vmem:[%s24045_s0 + $0x184] sm:$0xf]  ;;  %v15306_v49 = vld [vmem:[%s24045_s0 + $0xe0] sm:$0x1] }
 0x17b   :  { %13768 = vmatprep.mubr.bf16.mxu0 %v12329_v56  ;;  %v5188_v56 = vsel %vm16568_vm5, %v12285_v35, %v5187_v18  ;;  %v5191_v57 = vsel %vm16568_vm5, %v5189_v37, %v5190_v39  ;;  %v12332_v7 = vcombine.low %v5181_v50, %v5184_v52  ;;  %v5204_v18 = vrot.slane %v15300_v17, 5  ;;  %v12256_v37 = vld [vmem:[%s24045_s0 + $0x180] sm:$0xe]  ;;  %v1938_v3 = vld [vmem:[%s24045_s0 + $0xe4] sm:$0xe] }
 0x17c   :  { %14043 = vmatpush3.bf16.msra.mxu1 %v15286_v5  ;;  %v15298_v5 = vld [vmem:[%s24045_s0 + $0xb0] sm:$0x1]  ;;  %v12333_v14 = vcombine.low %v5188_v56, %v5191_v57  ;;  %v5208_v32 = vrot.slane %v15303_v31, 5  ;;  %v5215_v39 = vrot.slane %v15304_v38, 5  ;;  %v2137_v50 = vrot.slane %v15306_v49, 5 }
 0x17d   :  { %v2123_v6 = vrot.slane %v15298_v5, 5  ;;  %v12288_v53 = vrot.slane %v12256_v37, 9  ;;  %v5211_v56 = vrot.slane %v15307_v55, 5  ;;  %v2135_v1 = vsel %vm16568_vm5, %v11883_v46, %v2134_v28  ;;  %v1939_v9 = vld [vmem:[%s24045_s0 + $0xf0] sm:$0xe] }
 0x17e   :  { %v5210_v54 = vrot.slane %v5208_v32, 4  ;;  %v5217_v59 = vrot.slane %v5215_v39, 4  ;;  %v2138_v2 = vsel %vm16568_vm5, %v2136_v47, %v2137_v50  ;;  %v15314_v31 = vld [vmem:[%s24045_s0 + $0x1a0] sm:$0x1]  ;;  %v15317_v50 = vld [vmem:[%s24045_s0 + $0x104] sm:$0x1] }
 0x17f   :  { %13501 = vmatmul.mubr.bf16.gmra.mrb[16].mxu1 %v11924_v15  ;;  %v12287_v15 = vrot.slane %v12255_v62, 9  ;;  %v2124_v25 = vsel %vm16568_vm5, %v2122_v4, %v2123_v6  ;;  %v15310_v4 = vld [vmem:[%s24045_s0 + $0xf4] sm:$0xf]  ;;  %v5209_v6 = vsel %vm16568_vm5, %v12288_v53, %v5208_v32  ;;  %v11931_v17 = vcombine.low %v2135_v1, %v2138_v2  ;;  %v15318_v55 = vld [vmem:[%s24045_s0 + $0x110] sm:$0x1] }
 0x180   :  { %13504 = vmatprep.mubr.bf16.mxu1 %v11925_v19  ;;  %v2114_v19 = vsel %vm16568_vm5, %v11880_v63, %v2113_v43  ;;  %v11929_v40 = vcombine.low %v2121_v24, %v2124_v25  ;;  %v2129_v43 = vrot.slane %v2127_v23, 4  ;;  %v15309_v63 = vld [vmem:[%s24045_s0 + $0xe8] sm:$0xf]  ;;  %v2148_v5 = vrot.slane %v15310_v4, 5  ;;  %v15313_v25 = vld [vmem:[%s24045_s0 + $0xf8] sm:$0x1] }
 0x181   :  { %v5202_v33 = vsel %vm16568_vm5, %v12287_v15, %v5201_v61  ;;  %v11928_v35 = vcombine.low %v2114_v19, %v2117_v20  ;;  %v5218_v61 = vrot.slane %v15308_v60, 5  ;;  %v2141_v0 = vrot.slane %v15309_v63, 5  ;;  %v15312_v20 = vld [vmem:[%s24045_s0 + $0xec] sm:$0x1]  ;;  %v15320_v1 = vld [vmem:[%s24045_s0 + $0x124] sm:$0xf] }
 0x182   :  { %13769 = vmatmul.mubr.bf16.gmra.mrb[44].mxu0 %v12330_v30  ;;  %v5198_v30 = vsel %vm16568_vm5, %v5196_v10, %v5197_v12  ;;  %v2131_v62 = vsel %vm16568_vm5, %v2129_v43, %v2130_v45  ;;  %v2144_v21 = vrot.slane %v15312_v20, 5  ;;  %v2150_v24 = vrot.slane %v2148_v5, 4  ;;  %v14668_v20 = vld [vmem:[%s24044_s1 + $0x1c8] sm:$0xff]  }
 0x183   :  { %13772 = vmatprep.mubr.bf16.mxu0 %v12331_v34  ;;  %v5205_v34 = vsel %vm16568_vm5, %v5203_v16, %v5204_v18  ;;  %v12334_v52 = vcombine.low %v5195_v29, %v5198_v30  ;;  %v5219_v11 = vsel %vm16568_vm5, %v5217_v59, %v5218_v61  ;;  %v12258_v16 = vld [vmem:[%s24045_s0 + $0x198] sm:$0xe]  ;;  %v11884_v18 = vrot.slane %v1938_v3, 9  ;;  %v1943_v3 = vld [vmem:[%s24045_s0 + $0x120] sm:$0xe] }
 0x184   :  { %v12335_v57 = vcombine.low %v5202_v33, %v5205_v34  ;;  %v2143_v19 = vrot.slane %v2141_v0, 4  ;;  %v2151_v26 = vrot.slane %v15313_v25, 5  ;;  %v12290_v29 = vrot.slane %v12258_v16, 9  ;;  %v15315_v34 = vld [vmem:[%s24045_s0 + $0x100] sm:$0xf]  ;;  %v14662_v16 = vld [vmem:[%s24045_s0 + $0x24] sm:$0xff]  }
 0x185   :  { %v5225_v32 = vrot.slane %v15314_v31, 5  ;;  %v2142_v8 = vsel %vm16568_vm5, %v11884_v18, %v2141_v0  ;;  %v15319_v61 = vld [vmem:[%s24045_s0 + $0x118] sm:$0xf]  ;;  %v1942_v0 = vld [vmem:[%s24045_s0 + $0x114] sm:$0xe]  ;;  %v2176_v2 = vrot.slane %v15320_v1, 5 }
 0x186   :  { %v2145_v33 = vsel %vm16568_vm5, %v2143_v19, %v2144_v21  ;;  %v2152_v38 = vsel %vm16568_vm5, %v2150_v24, %v2151_v26  ;;  %v15323_v21 = vld [vmem:[%s24045_s0 + $0x130] sm:$0xf]  ;;  %v1944_v26 = vld [vmem:[%s24045_s0 + $0x12c] sm:$0xe]  ;;  %v14667_v1 = vld [vmem:[%s24045_s0 + $0x54] sm:$0xff]  }
 0x187   :  { %13505 = vmatmul.mubr.bf16.gmra.mrb[20].mxu1 %v11926_v58  ;;  %v12289_v58 = vrot.slane %v12257_v41, 9  ;;  %v11932_v45 = vcombine.low %v2142_v8, %v2145_v33  ;;  %v15325_v33 = vld [vmem:[%s24045_s0 + $0x134] sm:$0x1] }
 0x188   :  { %13508 = vmatprep.mubr.bf16.mxu1 %v11927_v22  ;;  %v2128_v22 = vsel %vm16568_vm5, %v11882_v42, %v2127_v23  ;;  %v11885_v23 = vrot.slane %v1939_v9, 9  ;;  %v1941_v42 = vld [vmem:[%s24045_s0 + $0x108] sm:$0xe]  ;;  %v15321_v9 = vld [vmem:[%s24045_s0 + $0x11c] sm:$0x1] }
 0x189   :  { %v5216_v10 = vsel %vm16568_vm5, %v12289_v58, %v5215_v39  ;;  %v11930_v12 = vcombine.low %v2128_v22, %v2131_v62  ;;  %v1940_v39 = vld [vmem:[%s24045_s0 + $0xfc] sm:$0xe]  ;;  %v11887_v53 = vrot.slane %v1941_v42, 9  ;;  %v2169_v22 = vrot.slane %v15319_v61, 5  ;;  %v14685_v61 = vld [vmem:[%s24044_s1 + $0x1e0] sm:$0xff]  }
 0x18a   :  { %13773 = vmatmul.mubr.bf16.gmra.mrb[48].mxu0 %v12332_v7  ;;  %v5212_v7 = vsel %vm16568_vm5, %v5210_v54, %v5211_v56  ;;  %v12337_v28 = vcombine.low %v5216_v10, %v5219_v11  ;;  %v2149_v37 = vsel %vm16568_vm5, %v11885_v23, %v2148_v5  ;;  %v11886_v47 = vrot.slane %v1940_v39, 9  ;;  %v14661_v58 = vld [vmem:[%s24045_s0 + $0x18] sm:$0xff]  }
 0x18b   :  { %13776 = vmatprep.mubr.bf16.mxu0 %v12333_v14  ;;  %v15311_v14 = vld [vmem:[%s24045_s0 + $0x19c] sm:$0xf]  ;;  %v12336_v27 = vcombine.low %v5209_v6, %v5212_v7  ;;  %v11933_v46 = vcombine.low %v2149_v37, %v2152_v38  ;;  %v2165_v56 = vrot.slane %v15318_v55, 5  ;;  %v11888_v6 = vrot.slane %v1942_v0, 9 }
 0x18c   :  { %v5222_v15 = vrot.slane %v15311_v14, 5  ;;  %v2171_v7 = vrot.slane %v2169_v22, 4  ;;  %v2172_v10 = vrot.slane %v15321_v9, 5  ;;  %v11889_v11 = vrot.slane %v1943_v3, 9  ;;  %v15322_v14 = vld [vmem:[%s24045_s0 + $0x128] sm:$0x1] }
 0x18d   :  { %v2170_v18 = vsel %vm16568_vm5, %v11888_v6, %v2169_v22  ;;  %v2183_v23 = vrot.slane %v15323_v21, 5 }
 0x18e   :  { %v5224_v30 = vrot.slane %v5222_v15, 4  ;;  %v5223_v43 = vsel %vm16568_vm5, %v12290_v29, %v5222_v15  ;;  %v2179_v15 = vrot.slane %v15322_v14, 5  ;;  %v2173_v19 = vsel %vm16568_vm5, %v2171_v7, %v2172_v10  ;;  %v1945_v29 = vld [vmem:[%s24045_s0 + $0x138] sm:$0xe]  ;;  %v14694_v7 = vld [vmem:[%s24044_s1 + $0x1e8] sm:$0xff]  }
 0x18f   :  { %13509 = vmatmul.mubr.bf16.gmra.mrb[24].mxu1 %v11928_v35  ;;  %v2155_v35 = vrot.slane %v15315_v34, 5  ;;  %v2177_v24 = vsel %vm16568_vm5, %v11889_v11, %v2176_v2  ;;  %v2185_v8 = vrot.slane %v2183_v23, 4  ;;  %v2186_v34 = vrot.slane %v15325_v33, 5  ;;  %v1948_v11 = vld [vmem:[%s24045_s0 + $0x15c] sm:$0xe] }
 0x190   :  { %13512 = vmatprep.mubr.bf16.mxu1 %v11929_v40  ;;  %v15316_v40 = vld [vmem:[%s24045_s0 + $0x10c] sm:$0xf]  ;;  %v5226_v44 = vsel %vm16568_vm5, %v5224_v30, %v5225_v32  ;;  %v11936_v30 = vcombine.low %v2170_v18, %v2173_v19  ;;  %v11890_v32 = vrot.slane %v1944_v26, 9  ;;  %v11891_v37 = vrot.slane %v1945_v29, 9  ;;  %v15334_v26 = vld [vmem:[%s24045_s0 + $0x170] sm:$0x1] }
 0x191   :  { %v2162_v41 = vrot.slane %v15316_v40, 5  ;;  %v2157_v49 = vrot.slane %v2155_v35, 4  ;;  %v2156_v59 = vsel %vm16568_vm5, %v11886_v47, %v2155_v35  ;;  %v14673_v35 = vld [vmem:[%s24044_s1 + $0x1d0] sm:$0xff]   ;;  %v14665_v40 = vld [vmem:[%s24045_s0 + $0x3c] sm:$0xff]   ;;  %v11894_v18 = vrot.slane %v1948_v11, 9 }
 0x192   :  { %13777 = vmatmul.mubr.bf16.gmra.mrb[52].mxu0 %v12334_v52  ;;  %v2158_v52 = vrot.slane %v15317_v50, 5  ;;  %v2184_v42 = vsel %vm16568_vm5, %v11890_v32, %v2183_v23  ;;  %v1946_v50 = vld [vmem:[%s24045_s0 + $0x144] sm:$0xe]  ;;  %v14703_v23 = vld [vmem:[%s24044_s1 + $0x1f0] sm:$0xff]   ;;  %v14671_v29 = vld [vmem:[%s24045_s0 + $0x78] sm:$0xff]  }
 0x193   :  { %13780 = vmatprep.mubr.bf16.mxu0 %v12335_v57  ;;  %v2164_v54 = vrot.slane %v2162_v41, 4  ;;  %v12338_v57 = vcombine.low %v5223_v43, %v5226_v44  ;;  %v2163_v62 = vsel %vm16568_vm5, %v11887_v53, %v2162_v41  ;;  %v14666_v41 = vld [vmem:[%s24045_s0 + $0x48] sm:$0xff]   ;;  %v2187_v43 = vsel %vm16568_vm5, %v2185_v8, %v2186_v34  ;;  %v15335_v32 = vld [vmem:[%s24045_s0 + $0x178] sm:$0xf]  ;;  %v14686_v11 = vld [vmem:[%s24045_s0 + $0xfc] sm:$0xff]  }
 0x194   :  { %v2159_v60 = vsel %vm16568_vm5, %v2157_v49, %v2158_v52  ;;  %v15327_v44 = vld [vmem:[%s24045_s0 + $0x148] sm:$0xf]  ;;  %v15328_v52 = vld [vmem:[%s24045_s0 + $0x154] sm:$0xf]  ;;  %v11938_v55 = vcombine.low %v2184_v42, %v2187_v43  ;;  %v2225_v8 = vrot.slane %v15335_v32, 5  ;;  %v14712_v33 = vld [vmem:[%s24044_s1 + $0x1f8] sm:$0xff]  }
 0x195   :  { %v2166_v63 = vsel %vm16568_vm5, %v2164_v54, %v2165_v56  ;;  %v11934_v4 = vcombine.low %v2156_v59, %v2159_v60  ;;  %v2204_v53 = vrot.slane %v15328_v52, 5  ;;  %v1947_v54 = vld [vmem:[%s24045_s0 + $0x150] sm:$0xe]  ;;  %v15329_v59 = vld [vmem:[%s24045_s0 + $0x14c] sm:$0x1] }
 0x196   :  { %v11935_v5 = vcombine.low %v2163_v62, %v2166_v63  ;;  %v2200_v60 = vrot.slane %v15329_v59, 5  ;;  %v11893_v22 = vrot.slane %v1947_v54, 9  ;;  %v15330_v63 = vld [vmem:[%s24045_s0 + $0x158] sm:$0x1]  ;;  %v2227_v43 = vrot.slane %v2225_v8, 4  ;;  %v14674_v54 = vld [vmem:[%s24045_s0 + $0x90] sm:$0xff]  }
 0x197   :  { %13513 = vmatmul.mubr.bf16.gmra.mrb[28].mxu1 %v11930_v12  ;;  %v2178_v12 = vrot.slane %v2176_v2, 4  ;;  %v2206_v62 = vrot.slane %v2204_v53, 4  ;;  %v2207_v0 = vrot.slane %v15330_v63, 5  ;;  %v14669_v2 = vld [vmem:[%s24045_s0 + $0x60] sm:$0xff]   ;;  %v12467_v32 = vld [vmem:[%s24045_s0 + $0x18] sm:$0xf] }
 0x198   :  { %13516 = vmatprep.mubr.bf16.mxu1 %v11931_v17  ;;  %v14664_v17 = vld [vmem:[%s24045_s0 + $0x30] sm:$0xff]   ;;  %v2205_v9 = vsel %vm16568_vm5, %v11893_v22, %v2204_v53  ;;  %v14672_v53 = vld [vmem:[%s24045_s0 + $0x84] sm:$0xff]  }
 0x199   :  { %v2180_v25 = vsel %vm16568_vm5, %v2178_v12, %v2179_v15  ;;  %v2208_v10 = vsel %vm16568_vm5, %v2206_v62, %v2207_v0  ;;  %v15332_v12 = vld [vmem:[%s24045_s0 + $0x16c] sm:$0xf]  ;;  %v1949_v15 = vld [vmem:[%s24045_s0 + $0x168] sm:$0xe] }
 0x19a   :  { %13781 = vmatmul.mubr.bf16.gmra.mrb[56].mxu0 %v12336_v27  ;;  %v15324_v27 = vld [vmem:[%s24045_s0 + $0x13c] sm:$0xf]  ;;  %v11937_v31 = vcombine.low %v2177_v24, %v2180_v25  ;;  %v2218_v14 = vrot.slane %v15332_v12, 5  ;;  %v11895_v24 = vrot.slane %v1949_v15, 9  ;;  %v14680_v12 = vld [vmem:[%s24045_s0 + $0xcc] sm:$0xff]  }
 0x19b   :  { %13784 = vmatprep.mubr.bf16.mxu0 %v12337_v28  ;;  %v2190_v28 = vrot.slane %v15324_v27, 5  ;;  %v2221_v27 = vrot.slane %v15334_v26, 5  ;;  %v14688_v15 = vld [vmem:[%s24045_s0 + $0x108] sm:$0xff]  }
 0x19c   :  { %v2220_v25 = vrot.slane %v2218_v14, 4  ;;  %v2219_v34 = vsel %vm16568_vm5, %v11895_v24, %v2218_v14  ;;  %v14682_v14 = vld [vmem:[%s24045_s0 + $0xf0] sm:$0xff]   ;;  %v14697_v24 = vld [vmem:[%s24045_s0 + $0x138] sm:$0xff]  }
 0x19d   :  { %v2192_v38 = vrot.slane %v2190_v28, 4  ;;  %v2191_v47 = vsel %vm16568_vm5, %v11891_v37, %v2190_v28  ;;  %v14670_v28 = vld [vmem:[%s24045_s0 + $0x6c] sm:$0xff]   ;;  %v1950_v37 = vld [vmem:[%s24045_s0 + $0x174] sm:$0xe] }
 0x19e   :  { %v11896_v42 = vrot.slane %v1950_v37, 9  ;;  %v14693_v26 = vld [vmem:[%s24045_s0 + $0x12c] sm:$0xff]   ;;  %v6545_v37 = vshrl.u32 %v12467_v32, 16 }
 0x19f   :  { %13517 = vmatmul.mubr.bf16.gmra.mrb[32].mxu1 %v11932_v45  ;;  %v2197_v45 = vrot.slane %v15327_v44, 5  ;;  %v15337_v44 = vld [vmem:[%s24045_s0 + $0x17c] sm:$0x1] }
 0x1a0   :  { %13520 = vmatprep.mubr.bf16.mxu1 %v11933_v46  ;;  %v14678_v46 = vld [vmem:[%s24044_s1 + $0x1d8] sm:$0xff]  }
 0x1a2   :  { %13785 = vmatmul.mubr.bf16.gmra.mrb[60].mxu0 %v12338_v57  ;;  %v11892_v57 = vrot.slane %v1946_v50, 9  ;;  %v15338_v50 = vld [vmem:[%s24045_s0 + $0x188] sm:$0x1] }
 0x1a3   :  { %13804 = vmatprep.mubr.bf16.mxu0 %v14661_v58  ;;  %v2199_v58 = vrot.slane %v2197_v45, 4  ;;  %v2235_v52 = vrot.slane %v15338_v50, 5 }
 0x1a4   :  { %v2198_v3 = vsel %vm16568_vm5, %v11892_v57, %v2197_v45  ;;  %v2228_v45 = vrot.slane %v15337_v44, 5  ;;  %v2239_v57 = vrot.slane %v16912_v48, 5  ;;  %v15339_v48 = vld [vmem:[%s24045_s0 + $0x194] sm:$0x1] }
 0x1a5   :  { %v2242_v0 = vrot.slane %v15339_v48, 5 }
 0x1a6   :  { %v2241_v63 = vrot.slane %v2239_v57, 4 }
 0x1a7   :  { %13521 = vmatmul.mubr.bf16.gmra.mrb[36].mxu1 %v11934_v4  ;;  %v2201_v4 = vsel %vm16568_vm5, %v2199_v58, %v2200_v60  ;;  %v1952_v60 = vld [vmem:[%s24045_s0 + $0x18c] sm:$0xe] }
 0x1a8   :  { %13524 = vmatprep.mubr.bf16.mxu1 %v11935_v5  ;;  %v15331_v5 = vld [vmem:[%s24045_s0 + $0x160] sm:$0xf]  ;;  %v11898_v62 = vrot.slane %v1952_v60, 9 }
 0x1a9   :  { %v2211_v6 = vrot.slane %v15331_v5, 5 }
 0x1aa   :  { %13805 = vmatmul.mubr.bf16.vlgmr.msra.gmra.mrb[0].mxu0 %v14662_v16  ;;  %v11940_v16 = vcombine.low %v2198_v3, %v2201_v4  ;;  %v2240_v3 = vsel %vm16568_vm5, %v11898_v62, %v2239_v57  ;;  %v2243_v4 = vsel %vm16568_vm5, %v2241_v63, %v2242_v0  ;;  %v12472_v62 = vld [vmem:[%s24045_s0 + $0x2c] sm:$0x1]  ;;  %v14710_v0 = vld [vmem:[%s24045_s0 + $0x180] sm:$0xff]  }
 0x1ab   :  { %13869 = vmatpush3.bf16.msra.mxu0 %v16824_v51  ;;  %13808 = vmatprep.mubr.bf16.mxu0 %v14664_v17  ;;  %v15326_v51 = vld [vmem:[%s24045_s0 + $0x140] sm:$0x1]  ;;  %v11941_v17 = vcombine.low %v2205_v9, %v2208_v10  ;;  %v2213_v19 = vrot.slane %v2211_v6, 4  ;;  %v11946_v5 = vcombine.low %v2240_v3, %v2243_v4  ;;  %v14683_v10 = vld [vmem:[%s24045_s0 + $0xf0] sm:$0xff]  }
 0x1ac   :  { %13870 = vmatprep.subr.bf16.mxu0 %v14668_v20  ;;  %v2193_v39 = vrot.slane %v15326_v51, 5  ;;  %v14679_v9 = vld [vmem:[%s24045_s0 + $0xc0] sm:$0xff]  }
 0x1ae   :  { %v2194_v49 = vsel %vm16568_vm5, %v2192_v38, %v2193_v39  ;;  %v15336_v38 = vld [vmem:[%s24045_s0 + $0x184] sm:$0xf]  ;;  %v1951_v39 = vld [vmem:[%s24045_s0 + $0x180] sm:$0xe] }
 0x1af   :  { %13525 = vmatmul.mubr.bf16.gmra.mrb[40].mxu1 %v11936_v30  ;;  %13871 = vmatpush3.bf16.msra.mxu0 %v14668_v20  ;;  %v11939_v56 = vcombine.low %v2191_v47, %v2194_v49  ;;  %v15333_v20 = vld [vmem:[%s24045_s0 + $0x164] sm:$0x1]  ;;  %v2212_v30 = vsel %vm16568_vm5, %v11894_v18, %v2211_v6  ;;  %v2232_v51 = vrot.slane %v15336_v38, 5  ;;  %v11897_v47 = vrot.slane %v1951_v39, 9  ;;  %v14687_v18 = vld [vmem:[%s24045_s0 + $0x108] sm:$0xff]  }
 0x1b0   :  { %13528 = vmatprep.mubr.bf16.mxu1 %v11937_v31  ;;  %13872 = vmatprep.subr.bf16.mxu0 %v14673_v35  ;;  %v2214_v21 = vrot.slane %v15333_v20, 5  ;;  %v14681_v6 = vld [vmem:[%s24045_s0 + $0xe4] sm:$0xff]   ;;  %v14695_v20 = vld [vmem:[%s24045_s0 + $0x12c] sm:$0xff]   ;;  %v6548_v38 = vshll.u32 %v12467_v32, 16 }
 0x1b1   :  { %v2234_v49 = vrot.slane %v2232_v51, 4  ;;  %v2233_v58 = vsel %vm16568_vm5, %v11897_v47, %v2232_v51  ;;  %v14708_v51 = vld [vmem:[%s24045_s0 + $0x174] sm:$0xff]   ;;  %v14705_v47 = vld [vmem:[%s24045_s0 + $0x168] sm:$0xff]  }
 0x1b2   :  { %13809 = vmatmul.mubr.bf16.gmra.mrb[4].mxu0 %v14665_v40  ;;  %v2215_v31 = vsel %vm16568_vm5, %v2213_v19, %v2214_v21  ;;  %v14692_v19 = vld [vmem:[%s24045_s0 + $0x120] sm:$0xff]   ;;  %v14689_v21 = vld [vmem:[%s24045_s0 + $0x114] sm:$0xff]   ;;  %v6550_v50 = vrot.slane %v6548_v38, 5 }
 0x1b3   :  { %13812 = vmatprep.mubr.bf16.mxu0 %v14666_v41  ;;  %13873 = vmatpush3.bf16.msra.mxu0 %v14673_v35  ;;  %v2222_v35 = vsel %vm16568_vm5, %v2220_v25, %v2221_v27  ;;  %v11942_v40 = vcombine.low %v2212_v30, %v2215_v31  ;;  %v2236_v59 = vsel %vm16568_vm5, %v2234_v49, %v2235_v52  ;;  %v14699_v25 = vld [vmem:[%s24045_s0 + $0x144] sm:$0xff]   ;;  %v14696_v27 = vld [vmem:[%s24045_s0 + $0x138] sm:$0xff]   ;;  %v14700_v31 = vld [vmem:[%s24045_s0 + $0x150] sm:$0xff]   ;;  %v6547_v49 = vrot.slane %v6545_v37, 4 }
 0x1b4   :  { %13874 = vmatprep.subr.bf16.mxu0 %v14678_v46  ;;  %v11943_v41 = vcombine.low %v2219_v34, %v2222_v35  ;;  %v11945_v22 = vcombine.low %v2233_v58, %v2236_v59  ;;  %v14698_v30 = vld [vmem:[%s24045_s0 + $0x144] sm:$0xff]   ;;  %v12473_v52 = vld [vmem:[%s24045_s0 + $0x30] sm:$0xf] }
 0x1b5   :  { %v12471_v34 = vld [vmem:[%s24045_s0 + $0x28] sm:$0xf]  ;;  %v6593_v63 = vshrl.u32 %v12473_v52, 16  ;;  %v6596_v48 = vshll.u32 %v12473_v52, 16 }
 0x1b6   :  { %v14706_v35 = vld [vmem:[%s24045_s0 + $0x168] sm:$0xff]   ;;  %v6582_v44 = vshrl.u32 %v12471_v34, 16 }
 0x1b7   :  { %13529 = vmatmul.mubr.bf16.gmra.mrb[44].mxu1 %v11938_v55  ;;  %13875 = vmatpush3.bf16.msra.mxu0 %v14678_v46  ;;  %v17580_v46 = vld [vmem:[%s24044_s1 + $0x200] sm:$0xff]   ;;  %v2226_v55 = vsel %vm16568_vm5, %v11896_v42, %v2225_v8  ;;  %v12468_v8 = vld [vmem:[%s24045_s0 + $0x1c] sm:$0xf] }
 0x1b8   :  { %13532 = vmatprep.mubr.bf16.mxu1 %v11939_v56  ;;  %13876 = vmatprep.subr.bf16.mxu0 %v14685_v61  ;;  %v2229_v56 = vsel %vm16568_vm5, %v2227_v43, %v2228_v45  ;;  %v6554_v39 = vshll.u32 %v12468_v8, 16  ;;  %v6578_v43 = vshll.u32 %v12471_v34, 16  ;;  %v14702_v45 = vld [vmem:[%s24045_s0 + $0x15c] sm:$0xff]   ;;  %v6584_v60 = vrot.slane %v6582_v44, 4 }
 0x1ba   :  { %13813 = vmatmul.mubr.bf16.gmra.mrb[8].mxu0 %v14667_v1  ;;  %v14675_v1 = vld [vmem:[%s24045_s0 + $0x9c] sm:$0xff]   ;;  %v17721_v59 = vrot.slane %v6578_v43, 5 }
 0x1bb   :  { %13816 = vmatprep.mubr.bf16.mxu0 %v14669_v2  ;;  %13877 = vmatpush3.bf16.msra.mxu0 %v14685_v61  ;;  %v11944_v61 = vcombine.low %v2226_v55, %v2229_v56  ;;  %v14676_v2 = vld [vmem:[%s24045_s0 + $0xa8] sm:$0xff]   ;;  %v12474_v55 = vld [vmem:[%s24045_s0 + $0x34] sm:$0xf]  ;;  %v12476_v56 = vld [vmem:[%s24045_s0 + $0x3c] sm:$0xf] }
 0x1bc   :  { %13878 = vmatprep.subr.bf16.mxu0 %v14694_v7  ;;  %v6617_v3 = vshrl.u32 %v12476_v56, 16  ;;  %v6620_v4 = vshll.u32 %v12476_v56, 16  ;;  %v12481_v56 = vld [vmem:[%s24045_s0 + $0x50] sm:$0x1] }
 0x1bf   :  { %13533 = vmatmul.mubr.bf16.gmra.mrb[48].mxu1 %v11940_v16  ;;  %13879 = vmatpush3.bf16.msra.mxu0 %v14694_v7  ;;  %v14677_v7 = vld [vmem:[%s24045_s0 + $0xb4] sm:$0xff]  }
 0x1c0   :  { %13536 = vmatprep.mubr.bf16.mxu1 %v11941_v17  ;;  %13880 = vmatprep.subr.bf16.mxu0 %v14703_v23  ;;  %v14690_v16 = vld [vmem:[%s24045_s0 + $0x114] sm:$0xff]   ;;  %v14684_v17 = vld [vmem:[%s24045_s0 + $0xfc] sm:$0xff]  }
 0x1c2   :  { %13817 = vmatmul.mubr.bf16.gmra.mrb[12].mxu0 %v14670_v28  ;;  %v14701_v28 = vld [vmem:[%s24045_s0 + $0x150] sm:$0xff]  }
 0x1c3   :  { %13820 = vmatprep.mubr.bf16.mxu0 %v14671_v29  ;;  %13881 = vmatpush3.bf16.msra.mxu0 %v14703_v23  ;;  %v14691_v23 = vld [vmem:[%s24045_s0 + $0x120] sm:$0xff]  }
 0x1c4   :  { %13882 = vmatprep.subr.bf16.mxu0 %v14712_v33  ;;  %v14704_v29 = vld [vmem:[%s24045_s0 + $0x15c] sm:$0xff]  }
 0x1c7   :  { %13537 = vmatmul.mubr.bf16.gmra.mrb[52].mxu1 %v11942_v40  ;;  %13883 = vmatpush3.bf16.msra.mxu0 %v14712_v33  ;;  %v12470_v33 = vld [vmem:[%s24045_s0 + $0x24] sm:$0xf]  ;;  %v6558_v40 = vshrl.u32 %v12468_v8, 16 }
 0x1c8   :  { %13540 = vmatprep.mubr.bf16.mxu1 %v11943_v41  ;;  %13948 = vmatprep.subr.bf16.mxu0 %v17580_v46  ;;  %v6569_v41 = vshrl.u32 %v12470_v33, 16  ;;  %v6572_v42 = vshll.u32 %v12470_v33, 16 }
 0x1ca   :  { %13821 = vmatmul.mubr.bf16.gmra.mrb[16].mxu0 %v14672_v53  ;;  %v17713_v53 = vrot.slane %v6554_v39, 5  ;;  %v6571_v57 = vrot.slane %v6569_v41, 4  ;;  %v6574_v58 = vrot.slane %v6572_v42, 5 }
 0x1cb   :  { %13824 = vmatprep.mubr.bf16.mxu0 %v14674_v54  ;;  %v6560_v54 = vrot.slane %v6558_v40, 4  ;;  %v14715_v40 = vld [vmem:[%s24045_s0 + $0x198] sm:$0xff]  }
 0x1cf   :  { %13541 = vmatmul.mubr.bf16.gmra.mrb[56].mxu1 %v11944_v61  ;;  %v12477_v61 = vld [vmem:[%s24045_s0 + $0x40] sm:$0xf] }
 0x1d0   :  { %13544 = vmatprep.mubr.bf16.mxu1 %v11945_v22  ;;  %v12469_v22 = vld [vmem:[%s24045_s0 + $0x20] sm:$0x1] }
 0x1d2   :  { %13825 = vmatmul.mubr.bf16.gmra.mrb[20].mxu0 %v14675_v1  ;;  %v6602_v1 = vshll.u32 %v12474_v55, 16 }
 0x1d3   :  { %13828 = vmatprep.mubr.bf16.mxu0 %v14676_v2  ;;  %v6606_v2 = vshrl.u32 %v12474_v55, 16 }
 0x1d7   :  { %13545 = vmatmul.mubr.bf16.gmra.mrb[60].mxu1 %v11946_v5  ;;  %v14713_v5 = vld [vmem:[%s24045_s0 + $0x18c] sm:$0xff]  }
 0x1d8   :  { %13596 = vmatprep.mubr.bf16.mxu1 %v14681_v6  ;;  %v6551_v6 = vor.u32 %v6550_v50, %v6547_v49  ;;  %v12482_v49 = vld [vmem:[%s24045_s0 + $0x54] sm:$0xf] }
 0x1da   :  { %13829 = vmatmul.mubr.bf16.gmra.mrb[24].mxu0 %v14677_v7  ;;  %v6561_v7 = vor.u32 %v6560_v54, %v17713_v53 }
 0x1db   :  { %13832 = vmatprep.mubr.bf16.mxu0 %v14679_v9  ;;  %v6626_v9 = vshll.u32 %v12477_v61, 16 }
 0x1df   :  { %13597 = vmatmul.mubr.bf16.vlgmr.msra.gmra.mrb[32].mxu1 %v14683_v10  ;;  %v6630_v10 = vshrl.u32 %v12477_v61, 16 }
 0x1e0   :  { %13600 = vmatprep.mubr.bf16.mxu1 %v14686_v11  ;;  %v6564_v11 = vshll.u32 %v12469_v22, 16 }
 0x1e2   :  { %13833 = vmatmul.mubr.bf16.gmra.mrb[28].mxu0 %v14680_v12  ;;  %v6575_v12 = vor.u32 %v6574_v58, %v6571_v57  ;;  %v6566_v32 = vrot.slane %v6564_v11, 5  ;;  %v14711_v57 = vld [vmem:[%s24045_s0 + $0x18c] sm:$0xff]   ;;  %v12485_v11 = vld [vmem:[%s24045_s0 + $0x60] sm:$0xf] }
 0x1e3   :  { %13836 = vmatprep.mubr.bf16.mxu0 %v14682_v14  ;;  %v6585_v14 = vor.u32 %v6584_v60, %v17721_v59 }
 0x1e4   :  { %v6576_v8 = vrot.slane %v6575_v12, 4  ;;  %v12486_v12 = vld [vmem:[%s24045_s0 + $0x64] sm:$0xf] }
 0x1e5   :  { %v6586_v33 = vrot.slane %v6585_v14, 4 }
 0x1e6   :  { %v6581_v54 = vsel %vm15485_vm2, %v6576_v8, %v17721_v59  ;;  %v14714_v59 = vld [vmem:[%s24045_s0 + $0x198] sm:$0xff]  }
 0x1e7   :  { %13601 = vmatmul.mubr.bf16.gmra.mrb[36].mxu1 %v14688_v15  ;;  %v6588_v15 = vshll.u32 %v12472_v62, 16 }
 0x1e8   :  { %13604 = vmatprep.mubr.bf16.mxu1 %v14690_v16  ;;  %v14707_v16 = vld [vmem:[%s24045_s0 + $0x174] sm:$0xff]  }
 0x1e9   :  { %v6590_v34 = vrot.slane %v6588_v15, 5 }
 0x1ea   :  { %13837 = vmatmul.mubr.bf16.gmra.mrb[32].mxu0 %v14684_v17  ;;  %v14709_v17 = vld [vmem:[%s24045_s0 + $0x180] sm:$0xff]  }
 0x1eb   :  { %13840 = vmatprep.mubr.bf16.mxu0 %v14687_v18  ;;  %v12475_v18 = vld [vmem:[%s24045_s0 + $0x38] sm:$0x1]  ;;  %v6591_v55 = vsel %vm15485_vm2, %v6586_v33, %v6590_v34 }
 0x1ec   :  { %v6612_v38 = vshll.u32 %v12475_v18, 16  ;;  %v12488_v18 = vld [vmem:[%s24045_s0 + $0x6c] sm:$0xf] }
 0x1ed   :  { %v6713_v33 = vshrl.u32 %v12488_v18, 16  ;;  %v6716_v34 = vshll.u32 %v12488_v18, 16 }
 0x1ef   :  { %13605 = vmatmul.mubr.bf16.gmra.mrb[40].mxu1 %v14692_v19  ;;  %v6595_v19 = vrot.slane %v6593_v63, 4 }
 0x1f0   :  { %13608 = vmatprep.mubr.bf16.mxu1 %v14695_v20  ;;  %v6598_v20 = vrot.slane %v6596_v48, 5  ;;  %v6665_v48 = vshrl.u32 %v12482_v49, 16 }
 0x1f2   :  { %13841 = vmatmul.mubr.bf16.gmra.mrb[36].mxu0 %v14689_v21  ;;  %v17749_v21 = vrot.slane %v6602_v1, 5  ;;  %v6599_v37 = vor.u32 %v6598_v20, %v6595_v19 }
 0x1f3   :  { %13844 = vmatprep.mubr.bf16.mxu0 %v14691_v23  ;;  %v6608_v23 = vrot.slane %v6606_v2, 4 }
 0x1f4   :  { %v17786_v58 = vrot.slane %v6599_v37, 4 }
 0x1f5   :  { %v6609_v41 = vor.u32 %v6608_v23, %v17749_v21 }
 0x1f7   :  { %13609 = vmatmul.mubr.bf16.gmra.mrb[44].mxu1 %v14697_v24  ;;  %v6619_v24 = vrot.slane %v6617_v3, 4  ;;  %v17793_v22 = vrot.slane %v6609_v41, 4  ;;  %v6660_v3 = vshll.u32 %v12481_v56, 16  ;;  %v12487_v56 = vld [vmem:[%s24045_s0 + $0x68] sm:$0x1] }
 0x1f8   :  { %13612 = vmatprep.mubr.bf16.mxu1 %v14699_v25  ;;  %v6622_v25 = vrot.slane %v6620_v4, 5  ;;  %v12483_v4 = vld [vmem:[%s24045_s0 + $0x58] sm:$0xf] }
 0x1f9   :  { %v6678_v23 = vshrl.u32 %v12483_v4, 16 }
 0x1fa   :  { %13845 = vmatmul.mubr.bf16.gmra.mrb[40].mxu0 %v14693_v26  ;;  %v12479_v26 = vld [vmem:[%s24045_s0 + $0x48] sm:$0xf]  ;;  %v6623_v42 = vor.u32 %v6622_v25, %v6619_v24  ;;  %v12489_v24 = vld [vmem:[%s24045_s0 + $0x70] sm:$0xf]  ;;  %v12491_v25 = vld [vmem:[%s24045_s0 + $0x78] sm:$0xf] }
 0x1fb   :  { %13848 = vmatprep.mubr.bf16.mxu0 %v14696_v27  ;;  %v6552_v27 = vrot.slane %v6551_v6, 4  ;;  %v6644_v39 = vshll.u32 %v12479_v26, 16  ;;  %v17804_v6 = vcombine.low %v6581_v54, %v6591_v55  ;;  %v6726_v37 = vshrl.u32 %v12489_v24, 16 }
 0x1fc   :  { %v17795_v62 = vrot.slane %v6623_v42, 4  ;;  %v6680_v42 = vrot.slane %v6678_v23, 4 }
 0x1fd   :  { %v6557_v50 = vsel %vm15485_vm2, %v6552_v27, %v17713_v53  ;;  %v17788_v53 = vrot.slane %v6612_v38, 5  ;;  %v6646_v61 = vrot.slane %v6644_v39, 5  ;;  %v6689_v27 = vshrl.u32 %v12485_v11, 16  ;;  %v12492_v38 = vld [vmem:[%s24045_s0 + $0x7c] sm:$0xf] }
 0x1fe   :  { %v6740_v39 = vshll.u32 %v12491_v25, 16  ;;  %v6746_v54 = vshll.u32 %v12492_v38, 16  ;;  %v6750_v55 = vshrl.u32 %v12492_v38, 16 }
 0x1ff   :  { %13613 = vmatmul.mubr.bf16.gmra.mrb[48].mxu1 %v14701_v28  ;;  %v6562_v28 = vrot.slane %v6561_v7, 4  ;;  %v6605_v7 = vsel %vm15485_vm2, %v17786_v58, %v17749_v21  ;;  %v6615_v14 = vsel %vm15485_vm2, %v17793_v22, %v17788_v53  ;;  %v6662_v21 = vrot.slane %v6660_v3, 5 }
 0x200   :  { %13616 = vmatprep.mubr.bf16.mxu1 %v14704_v29  ;;  %v12478_v29 = vld [vmem:[%s24045_s0 + $0x44] sm:$0x1]  ;;  %v6728_v58 = vrot.slane %v6726_v37, 4 }
 0x201   :  { %v6636_v43 = vshll.u32 %v12478_v29, 16  ;;  %v6567_v52 = vsel %vm15485_vm2, %v6562_v28, %v6566_v32  ;;  %v6692_v28 = vshll.u32 %v12485_v11, 16  ;;  %v6698_v29 = vshll.u32 %v12486_v12, 16 }
 0x202   :  { %13849 = vmatmul.mubr.bf16.gmra.mrb[44].mxu0 %v14698_v30  ;;  %v17757_v30 = vrot.slane %v6626_v9, 5 }
 0x203   :  { %13852 = vmatprep.mubr.bf16.mxu0 %v14700_v31  ;;  %v6632_v31 = vrot.slane %v6630_v10, 4  ;;  %v17797_v63 = vrot.slane %v6636_v43, 5  ;;  %v6668_v10 = vshll.u32 %v12482_v49, 16 }
 0x204   :  { %v6629_v15 = vsel %vm15485_vm2, %v17795_v62, %v17757_v30 }
 0x205   :  { %v6633_v44 = vor.u32 %v6632_v31, %v17757_v30  ;;  %v6702_v30 = vshrl.u32 %v12486_v12, 16  ;;  %v14716_v31 = vld [vmem:[%s24045_s0 + $0x1a4] sm:$0xff]   ;;  %v6670_v8 = vrot.slane %v6668_v10, 5 }
 0x206   :  { %v12495_v10 = vld [vmem:[%s24045_s0 + $0x88] sm:$0xf] }
 0x207   :  { %13617 = vmatmul.mubr.bf16.gmra.mrb[52].mxu1 %v14706_v35  ;;  %v12480_v35 = vld [vmem:[%s24045_s0 + $0x4c] sm:$0xf]  ;;  %v6704_v49 = vrot.slane %v6702_v30, 4 }
 0x208   :  { %13620 = vmatprep.mubr.bf16.mxu1 %v14708_v51  ;;  %v6641_v51 = vshrl.u32 %v12479_v26, 16  ;;  %v12484_v26 = vld [vmem:[%s24045_s0 + $0x5c] sm:$0x1] }
 0x209   :  { %v6684_v43 = vshll.u32 %v12484_v26, 16  ;;  %v6774_v26 = vshrl.u32 %v12495_v10, 16 }
 0x20a   :  { %13853 = vmatmul.mubr.bf16.gmra.mrb[48].mxu0 %v14702_v45  ;;  %v6650_v45 = vshll.u32 %v12480_v35, 16  ;;  %v6643_v60 = vrot.slane %v6641_v51, 4  ;;  %v6737_v51 = vshrl.u32 %v12491_v25, 16  ;;  %v6770_v25 = vshll.u32 %v12495_v10, 16 }
 0x20b   :  { %13856 = vmatprep.mubr.bf16.mxu0 %v14705_v47  ;;  %v6654_v47 = vshrl.u32 %v12480_v35, 16  ;;  %v6722_v35 = vshll.u32 %v12489_v24, 16 }
 0x20c   :  { %v17799_v1 = vrot.slane %v6650_v45, 5  ;;  %v6647_v9 = vor.u32 %v6646_v61, %v6643_v60  ;;  %v6694_v45 = vrot.slane %v6692_v28, 5  ;;  %v6739_v53 = vrot.slane %v6737_v51, 4  ;;  %v14719_v51 = vld [vmem:[%s24044_s1 + $0x210] sm:$0xff]  }
 0x20d   :  { %v6656_v2 = vrot.slane %v6654_v47, 4  ;;  %v17850_v47 = vrot.slane %v6698_v29, 5  ;;  %v6742_v60 = vrot.slane %v6740_v39, 5  ;;  %v12581_v61 = vcombine.low %v6605_v7, %v6615_v14 }
 0x20e   :  { %v6648_v32 = vrot.slane %v6647_v9, 4  ;;  %v17875_v7 = vrot.slane %v6746_v54, 5  ;;  %v6752_v9 = vrot.slane %v6750_v55, 4 }
 0x20f   :  { %13621 = vmatmul.mubr.bf16.gmra.mrb[56].mxu1 %v14710_v0  ;;  %v6634_v0 = vrot.slane %v6633_v44, 4  ;;  %v6657_v20 = vor.u32 %v6656_v2, %v17799_v1  ;;  %v6691_v44 = vrot.slane %v6689_v27, 4  ;;  %v17869_v2 = vrot.slane %v6684_v43, 5  ;;  %v12497_v27 = vld [vmem:[%s24045_s0 + $0x90] sm:$0xf] }
 0x210   :  { %13624 = vmatprep.mubr.bf16.mxu1 %v14713_v5  ;;  %v12579_v5 = vcombine.low %v6557_v50, %v6567_v52  ;;  %v6715_v50 = vrot.slane %v6713_v33, 4  ;;  %v6718_v52 = vrot.slane %v6716_v34, 5  ;;  %v6653_v22 = vsel %vm15485_vm2, %v6648_v32, %v17799_v1  ;;  %v12498_v32 = vld [vmem:[%s24045_s0 + $0x94] sm:$0xf] }
 0x211   :  { %v6639_v19 = vsel %vm15485_vm2, %v6634_v0, %v17797_v63  ;;  %v12490_v63 = vld [vmem:[%s24045_s0 + $0x74] sm:$0x1]  ;;  %v6695_v3 = vor.u32 %v6694_v45, %v6691_v44  ;;  %v6705_v1 = vor.u32 %v6704_v49, %v17850_v47  ;;  %v6753_v30 = vor.u32 %v6752_v9, %v17875_v7 }
 0x212   :  { %13857 = vmatmul.mubr.bf16.gmra.mrb[52].mxu0 %v14707_v16  ;;  %v17824_v16 = vrot.slane %v6665_v48, 4  ;;  %v6719_v11 = vor.u32 %v6718_v52, %v6715_v50  ;;  %v6732_v14 = vshll.u32 %v12490_v63, 16  ;;  %v6785_v39 = vshrl.u32 %v12497_v27, 16 }
 0x213   :  { %13860 = vmatprep.mubr.bf16.mxu0 %v14709_v17  ;;  %v6674_v17 = vshll.u32 %v12483_v4, 16  ;;  %v12494_v4 = vld [vmem:[%s24045_s0 + $0x84] sm:$0xf]  ;;  %v17887_v24 = vrot.slane %v6695_v3, 4  ;;  %v6706_v28 = vrot.slane %v6705_v1, 4  ;;  %v6794_v43 = vshll.u32 %v12498_v32, 16 }
 0x214   :  { %v6671_v62 = vor.u32 %v6670_v8, %v17824_v16  ;;  %v6743_v16 = vor.u32 %v6742_v60, %v6739_v53  ;;  %v6720_v8 = vrot.slane %v6719_v11, 4  ;;  %v6734_v34 = vrot.slane %v6732_v14, 5  ;;  %v12501_v53 = vld [vmem:[%s24045_s0 + $0xa0] sm:$0xf] }
 0x215   :  { %v17848_v41 = vrot.slane %v6674_v17, 5  ;;  %v6798_v44 = vshrl.u32 %v12498_v32, 16  ;;  %v6754_v50 = vrot.slane %v6753_v30, 4  ;;  %v6701_v54 = vsel %vm15485_vm2, %v17887_v24, %v17850_v47 }
 0x216   :  { %v6672_v18 = vrot.slane %v6671_v62, 4  ;;  %v6818_v9 = vshll.u32 %v12501_v53, 16 }
 0x217   :  { %13625 = vmatmul.mubr.bf16.gmra.mrb[60].mxu1 %v14715_v40  ;;  %v6658_v40 = vrot.slane %v6657_v20, 4  ;;  %v6681_v0 = vor.u32 %v6680_v42, %v17848_v41  ;;  %v6761_v20 = vshrl.u32 %v12494_v4, 16  ;;  %v17904_v42 = vrot.slane %v6770_v25, 5 }
 0x218   :  { %v6677_v45 = vsel %vm15485_vm2, %v6672_v18, %v17848_v41 }
 0x219   :  { %v6663_v48 = vsel %vm15485_vm2, %v6658_v40, %v6662_v21  ;;  %v6764_v21 = vshll.u32 %v12494_v4, 16  ;;  %v6682_v23 = vrot.slane %v6681_v0, 4  ;;  %v6763_v37 = vrot.slane %v6761_v20, 4  ;;  %v14721_v20 = vld [vmem:[%s24044_s1 + $0x220] sm:$0xff]  }
 0x21a   :  { %13861 = vmatmul.mubr.bf16.gmra.mrb[56].mxu0 %v14711_v57  ;;  %v17855_v57 = vrot.slane %v6722_v35, 5  ;;  %v12583_v17 = vcombine.low %v6653_v22, %v6663_v48  ;;  %v6744_v35 = vrot.slane %v6743_v16, 4  ;;  %v6788_v40 = vshll.u32 %v12497_v27, 16  ;;  %v12499_v48 = vld [vmem:[%s24045_s0 + $0x98] sm:$0x1] }
 0x21b   :  { %13864 = vmatprep.mubr.bf16.mxu0 %v14714_v59  ;;  %v17857_v59 = vcombine.low %v6629_v15, %v6639_v19  ;;  %v12493_v15 = vld [vmem:[%s24045_s0 + $0x80] sm:$0x1]  ;;  %v14718_v19 = vld [vmem:[%s24044_s1 + $0x208] sm:$0xff]   ;;  %v6766_v38 = vrot.slane %v6764_v21, 5  ;;  %v6687_v49 = vsel %vm15485_vm2, %v6682_v23, %v17869_v2  ;;  %v17939_v0 = vrot.slane %v6794_v43, 5 }
 0x21c   :  { %v6729_v12 = vor.u32 %v6728_v58, %v17855_v57  ;;  %v12500_v58 = vld [vmem:[%s24045_s0 + $0x9c] sm:$0xf]  ;;  %v6790_v22 = vrot.slane %v6788_v40, 5  ;;  %v6749_v62 = vsel %vm15485_vm2, %v6744_v35, %v17875_v7  ;;  %v6800_v2 = vrot.slane %v6798_v44, 4  ;;  %v12502_v27 = vld [vmem:[%s24045_s0 + $0xa4] sm:$0x1] }
 0x21d   :  { %v6767_v47 = vor.u32 %v6766_v38, %v6763_v37  ;;  %v6809_v1 = vshrl.u32 %v12500_v58, 16  ;;  %v12584_v7 = vcombine.low %v6677_v45, %v6687_v49  ;;  %v14722_v40 = vld [vmem:[%s24044_s1 + $0x228] sm:$0xff]   ;;  %v6828_v43 = vshll.u32 %v12502_v27, 16  ;;  %v12509_v49 = vld [vmem:[%s24045_s0 + $0xc0] sm:$0xf] }
 0x21e   :  { %v6730_v33 = vrot.slane %v6729_v12, 4  ;;  %v6822_v12 = vshrl.u32 %v12501_v53, 16 }
 0x21f   :  { %v17955_v16 = vrot.slane %v6767_v47, 4 }
 0x220   :  { %v6735_v60 = vsel %vm15485_vm2, %v6730_v33, %v6734_v34  ;;  %v6824_v33 = vrot.slane %v6822_v12, 4 }
 0x222   :  { %13865 = vmatmul.mubr.bf16.gmra.mrb[60].mxu0 %v14716_v31  ;;  %v6756_v31 = vshll.u32 %v12493_v15, 16 }
 0x223   :  { %13884 = vmatprep.mubr.bf16.mxu0 %v12579_v5  ;;  %v6708_v5 = vshll.u32 %v12487_v56, 16  ;;  %v6725_v56 = vsel %vm15485_vm2, %v6720_v8, %v17855_v57  ;;  %v14720_v57 = vld [vmem:[%s24044_s1 + $0x218] sm:$0xff]  }
 0x224   :  { %v6758_v52 = vrot.slane %v6756_v31, 5  ;;  %v17965_v23 = vcombine.low %v6725_v56, %v6735_v60  ;;  %v17978_v31 = vrot.slane %v6818_v9, 5  ;;  %v12507_v8 = vld [vmem:[%s24045_s0 + $0xb8] sm:$0xf]  ;;  %v12505_v56 = vld [vmem:[%s24045_s0 + $0xb0] sm:$0x1] }
 0x225   :  { %v6710_v29 = vrot.slane %v6708_v5, 5  ;;  %v6812_v5 = vshll.u32 %v12500_v58, 16  ;;  %v6866_v44 = vshll.u32 %v12507_v8, 16  ;;  %v6870_v45 = vshrl.u32 %v12507_v8, 16  ;;  %v12510_v58 = vld [vmem:[%s24045_s0 + $0xc4] sm:$0xf] }
 0x226   :  { %v6759_v4 = vsel %vm15485_vm2, %v6754_v50, %v6758_v52  ;;  %v6773_v52 = vsel %vm15485_vm2, %v17955_v16, %v17904_v42  ;;  %v6830_v16 = vrot.slane %v6828_v43, 5  ;;  %v12511_v8 = vld [vmem:[%s24045_s0 + $0xc8] sm:$0x1] }
 0x227   :  { %v6711_v55 = vsel %vm15485_vm2, %v6706_v28, %v6710_v29  ;;  %v17967_v24 = vcombine.low %v6749_v62, %v6759_v4  ;;  %v12506_v28 = vld [vmem:[%s24045_s0 + $0xb4] sm:$0xf]  ;;  %v6811_v29 = vrot.slane %v6809_v1, 4  ;;  %v6814_v30 = vrot.slane %v6812_v5, 5 }
 0x228   :  { %v12585_v15 = vcombine.low %v6701_v54, %v6711_v55  ;;  %v14723_v4 = vld [vmem:[%s24044_s1 + $0x230] sm:$0xff]   ;;  %v18024_v5 = vrot.slane %v6866_v44, 5  ;;  %v6872_v9 = vrot.slane %v6870_v45, 4 }
 0x229   :  { %v6815_v55 = vor.u32 %v6814_v30, %v6811_v29  ;;  %v12513_v29 = vld [vmem:[%s24045_s0 + $0xd0] sm:$0xf]  ;;  %v14724_v30 = vld [vmem:[%s24044_s1 + $0x238] sm:$0xff]  }
 0x22a   :  { %13885 = vmatmul.mubr.bf16.vlgmr.msra.gmra.mrb[0].mxu0 %v17804_v6  ;;  %v12496_v6 = vld [vmem:[%s24045_s0 + $0x8c] sm:$0x1] }
 0x22b   :  { %13949 = vmatpush3.bf16.msra.mxu0 %v17580_v46  ;;  %13888 = vmatprep.mubr.bf16.mxu0 %v12581_v61  ;;  %v6776_v46 = vrot.slane %v6774_v26, 4  ;;  %v6780_v41 = vshll.u32 %v12496_v6, 16  ;;  %v6787_v61 = vrot.slane %v6785_v39, 4  ;;  %v6801_v26 = vor.u32 %v6800_v2, %v17939_v0 }
 0x22c   :  { %13950 = vmatprep.subr.bf16.mxu0 %v14718_v19  ;;  %v6860_v39 = vshll.u32 %v12506_v28, 16  ;;  %v6884_v2 = vshll.u32 %v12509_v49, 16 }
 0x22d   :  { %v6777_v63 = vor.u32 %v6776_v46, %v17904_v42  ;;  %v17948_v11 = vrot.slane %v6780_v41, 5  ;;  %v6791_v18 = vor.u32 %v6790_v22, %v6787_v61  ;;  %v6802_v46 = vrot.slane %v6801_v26, 4  ;;  %v12508_v22 = vld [vmem:[%s24045_s0 + $0xbc] sm:$0x1] }
 0x22e   :  { %v6825_v42 = vor.u32 %v6824_v33, %v17978_v31  ;;  %v6876_v27 = vshll.u32 %v12508_v22, 16 }
 0x22f   :  { %13951 = vmatpush3.bf16.msra.mxu0 %v14718_v19  ;;  %v6804_v19 = vshll.u32 %v12499_v48, 16  ;;  %v17969_v25 = vrot.slane %v6777_v63, 4  ;;  %v17983_v37 = vrot.slane %v6791_v18, 4  ;;  %v6862_v63 = vrot.slane %v6860_v39, 5  ;;  %v12512_v18 = vld [vmem:[%s24045_s0 + $0xcc] sm:$0xf] }
 0x230   :  { %13952 = vmatprep.subr.bf16.mxu0 %v14719_v51  ;;  %v6881_v48 = vshrl.u32 %v12509_v49, 16  ;;  %v6908_v39 = vshll.u32 %v12512_v18, 16 }
 0x231   :  { %v17985_v38 = vrot.slane %v6804_v19, 5  ;;  %v6783_v54 = vsel %vm15485_vm2, %v17969_v25, %v17948_v11  ;;  %v6894_v11 = vshrl.u32 %v12510_v58, 16  ;;  %v6797_v12 = vsel %vm15485_vm2, %v17983_v37, %v17939_v0 }
 0x232   :  { %13889 = vmatmul.mubr.bf16.gmra.mrb[4].mxu0 %v17857_v59  ;;  %v17942_v3 = vpop.f32.mrb[0].mxu1  ;;  %v12503_v59 = vld [vmem:[%s24045_s0 + $0xa8] sm:$0xf]  ;;  %v6826_v19 = vrot.slane %v6825_v42, 4  ;;  %v6852_v25 = vshll.u32 %v12505_v56, 16  ;;  %v6886_v0 = vrot.slane %v6884_v2, 5 }
 0x233   :  { %13892 = vmatprep.mubr.bf16.mxu0 %v12583_v17  ;;  %v17946_v10 = vpop.f32.mrb[1].mxu1  ;;  %13953 = vmatpush3.bf16.msra.mxu0 %v14719_v51  ;;  %v12504_v17 = vld [vmem:[%s24045_s0 + $0xac] sm:$0xf]  ;;  %v6833_v32 = vshrl.u32 %v12503_v59, 16  ;;  %v6836_v34 = vshll.u32 %v12503_v59, 16  ;;  %v6857_v51 = vshrl.u32 %v12506_v28, 16  ;;  %v6807_v59 = vsel %vm15485_vm2, %v6802_v46, %v17985_v38 }
 0x234   :  { %v17953_v14 = vpop.f32.mrb[2].mxu1  ;;  %13954 = vmatprep.subr.bf16.mxu0 %v14720_v57  ;;  %v6842_v35 = vshll.u32 %v12504_v17, 16  ;;  %v6846_v6 = vshrl.u32 %v12504_v17, 16  ;;  %v6883_v28 = vrot.slane %v6881_v48, 4  ;;  %v12589_v38 = vcombine.low %v6797_v12, %v6807_v59 }
 0x235   :  { %v17963_v21 = vpop.f32.mrb[3].mxu1  ;;  %v6835_v41 = vrot.slane %v6833_v32, 4  ;;  %v6838_v60 = vrot.slane %v6836_v34, 5  ;;  %v6859_v62 = vrot.slane %v6857_v51, 4  ;;  %v6873_v32 = vor.u32 %v6872_v9, %v18024_v5 }
 0x236   :  { %v18012_v47 = vrot.slane %v6842_v35, 5  ;;  %v6848_v61 = vrot.slane %v6846_v6, 4  ;;  %v6896_v34 = vrot.slane %v6894_v11, 4  ;;  %v6905_v35 = vshrl.u32 %v12512_v18, 16 }
 0x237   :  { %13955 = vmatpush3.bf16.msra.mxu0 %v14720_v57  ;;  %v6839_v17 = vor.u32 %v6838_v60, %v6835_v41  ;;  %v6863_v26 = vor.u32 %v6862_v63, %v6859_v62  ;;  %v12588_v6 = vcombine.low %v6773_v52, %v6783_v54  ;;  %v6831_v46 = vsel %vm15485_vm2, %v6826_v19, %v6830_v16  ;;  %v12518_v16 = vld [vmem:[%s24045_s0 + $0xfc] sm:$0xf] }
 0x238   :  { %13956 = vmatprep.subr.bf16.mxu0 %v14721_v20  ;;  %v6854_v45 = vrot.slane %v6852_v25, 5  ;;  %v6878_v52 = vrot.slane %v6876_v27, 5  ;;  %v6900_v54 = vshll.u32 %v12511_v8, 16  ;;  %v6907_v60 = vrot.slane %v6905_v35, 4  ;;  %v12521_v25 = vld [vmem:[%s24045_s0 + $0x108] sm:$0xf] }
 0x239   :  { %v6840_v43 = vrot.slane %v6839_v17, 4  ;;  %v6864_v41 = vrot.slane %v6863_v26, 4  ;;  %v6910_v22 = vrot.slane %v6908_v39, 5  ;;  %v6918_v62 = vshrl.u32 %v12513_v29, 16 }
 0x23a   :  { %13893 = vmatmul.mubr.bf16.gmra.mrb[8].mxu0 %v12584_v7  ;;  %v17993_v50 = vpop.f32.mrb[4].mxu1  ;;  %v6890_v7 = vshll.u32 %v12510_v58, 16  ;;  %v6874_v58 = vrot.slane %v6873_v32, 4  ;;  %v6902_v59 = vrot.slane %v6900_v54, 5  ;;  %v6956_v35 = vshll.u32 %v12518_v16, 16 }
 0x23b   :  { %24473 = vst [vmem:[#allocation2_spill] sm:$0xff] %v17993_v50  ;;  %13896 = vmatprep.mubr.bf16.mxu0 %v12585_v15  ;;  %v18009_v53 = vpop.f32.mrb[5].mxu1  ;;  %13957 = vmatpush3.bf16.msra.mxu0 %v14721_v20  ;;  %v6816_v15 = vrot.slane %v6815_v55, 4  ;;  %v6849_v20 = vor.u32 %v6848_v61, %v18012_v47  ;;  %v6914_v55 = vshll.u32 %v12513_v29, 16  ;;  %v12514_v61 = vld [vmem:[%s24045_s0 + $0xd4] sm:$0x1]  ;;  %v6869_v18 = vsel %vm15485_vm2, %v6864_v41, %v18024_v5 }
 0x23c   :  { %24474 = vst [vmem:[#allocation3_spill] sm:$0xff] %v18009_v53  ;;  %v18017_v57 = vpop.f32.mrb[6].mxu1  ;;  %13958 = vmatprep.subr.bf16.mxu0 %v14722_v40  ;;  %v18047_v33 = vrot.slane %v6890_v7, 5  ;;  %v6924_v17 = vshll.u32 %v12514_v61, 16  ;;  %v6911_v27 = vor.u32 %v6910_v22, %v6907_v60  ;;  %v12517_v5 = vld [vmem:[%s24045_s0 + $0xf8] sm:$0x1] }
 0x23d   :  { %24475 = vst [vmem:[#allocation4_spill] sm:$0xff] %v18017_v57  ;;  %v18022_v1 = vpop.f32.mrb[7].mxu1  ;;  %v6821_v51 = vsel %vm15485_vm2, %v6816_v15, %v17978_v31  ;;  %v6850_v44 = vrot.slane %v6849_v20, 4  ;;  %v6887_v31 = vor.u32 %v6886_v0, %v6883_v28  ;;  %v18079_v15 = vrot.slane %v6914_v55, 5  ;;  %v12519_v20 = vld [vmem:[%s24045_s0 + $0x100] sm:$0xf] }
 0x23e   :  { %24476 = vst [vmem:[#allocation5_spill] sm:$0xff] %v18022_v1  ;;  %v6897_v42 = vor.u32 %v6896_v34, %v18047_v33  ;;  %v12590_v2 = vcombine.low %v6821_v51, %v6831_v46  ;;  %v6920_v28 = vrot.slane %v6918_v62, 4  ;;  %v6953_v34 = vshrl.u32 %v12518_v16, 16  ;;  %v12525_v22 = vld [vmem:[%s24045_s0 + $0x118] sm:$0xf] }
 0x23f   :  { %13959 = vmatpush3.bf16.msra.mxu0 %v14722_v40  ;;  %v6855_v11 = vsel %vm15485_vm2, %v6850_v44, %v6854_v45  ;;  %v6888_v12 = vrot.slane %v6887_v31, 4  ;;  %v6962_v39 = vshll.u32 %v12519_v20, 16  ;;  %v6966_v46 = vshrl.u32 %v12519_v20, 16 }
 0x240   :  { %13960 = vmatprep.subr.bf16.mxu0 %v14723_v4  ;;  %v6898_v19 = vrot.slane %v6897_v42, 4  ;;  %v6980_v31 = vshll.u32 %v12521_v25, 16  ;;  %v18118_v54 = vrot.slane %v6911_v27, 4  ;;  %v6921_v55 = vor.u32 %v6920_v28, %v18079_v15 }
 0x241   :  { %v6948_v41 = vshll.u32 %v12517_v5, 16  ;;  %v6955_v60 = vrot.slane %v6953_v34, 4  ;;  %v6958_v61 = vrot.slane %v6956_v35, 5  ;;  %v18130_v62 = vrot.slane %v6962_v39, 5  ;;  %v18164_v39 = vld [vmem:[%s24045_s0 + $0x110] sm:$0x1] }
 0x242   :  { %13897 = vmatmul.mubr.bf16.gmra.mrb[12].mxu0 %v17965_v23  ;;  %v18050_v37 = vpop.f32.mrb[8].mxu1  ;;  %v12515_v23 = vld [vmem:[%s24045_s0 + $0xf0] sm:$0xf] }
 0x243   :  { %24477 = vst [vmem:[#allocation6_spill] sm:$0xff] %v18050_v37  ;;  %13900 = vmatprep.mubr.bf16.mxu0 %v17967_v24  ;;  %v18056_v40 = vpop.f32.mrb[9].mxu1  ;;  %13961 = vmatpush3.bf16.msra.mxu0 %v14723_v4  ;;  %v12516_v24 = vld [vmem:[%s24045_s0 + $0xf4] sm:$0xf]  ;;  %v6929_v63 = vshrl.u32 %v12515_v23, 16  ;;  %v6932_v48 = vshll.u32 %v12515_v23, 16  ;;  %v6845_v4 = vsel %vm15485_vm2, %v6840_v43, %v18012_v47  ;;  %v6879_v47 = vsel %vm15485_vm2, %v6874_v58, %v6878_v52 }
 0x244   :  { %24478 = vst [vmem:[#allocation7_spill] sm:$0xff] %v18056_v40  ;;  %v18063_v49 = vpop.f32.mrb[10].mxu1  ;;  %13962 = vmatprep.subr.bf16.mxu0 %v14724_v30  ;;  %v6938_v9 = vshll.u32 %v12516_v24, 16  ;;  %v6942_v7 = vshrl.u32 %v12516_v24, 16  ;;  %v6977_v43 = vshrl.u32 %v12521_v25, 16  ;;  %v18108_v45 = vcombine.low %v6869_v18, %v6879_v47 }
 0x245   :  { %24479 = vst [vmem:[#allocation8_spill] sm:$0xff] %v18063_v49  ;;  %v18068_v56 = vpop.f32.mrb[11].mxu1  ;;  %v6931_v0 = vrot.slane %v6929_v63, 4  ;;  %v6934_v29 = vrot.slane %v6932_v48, 5  ;;  %v6903_v23 = vsel %vm15485_vm2, %v6898_v19, %v6902_v59  ;;  %v12522_v52 = vld [vmem:[%s24045_s0 + $0x10c] sm:$0xf]  ;;  %v6917_v25 = vsel %vm15485_vm2, %v18118_v54, %v18079_v15 }
 0x246   :  { %24480 = vst [vmem:[#allocation9_spill] sm:$0xff] %v18068_v56  ;;  %v18102_v32 = vrot.slane %v6938_v9, 5  ;;  %v6944_v8 = vrot.slane %v6942_v7, 4  ;;  %v18121_v24 = vrot.slane %v6924_v17, 5  ;;  %v12524_v58 = vld [vmem:[%s24045_s0 + $0x114] sm:$0xf] }
 0x247   :  { %13963 = vmatpush3.bf16.msra.mxu0 %v14724_v30  ;;  %v6968_v63 = vrot.slane %v6966_v46, 4  ;;  %v6979_v48 = vrot.slane %v6977_v43, 4  ;;  %v18135_v9 = vld [vmem:[%s24045_s0 + $0x104] sm:$0x1]  ;;  %v6982_v7 = vrot.slane %v6980_v31, 5  ;;  %v7004_v59 = vshll.u32 %v12524_v58, 16 }
 0x248   :  { %v6945_v42 = vor.u32 %v6944_v8, %v18102_v32  ;;  %v6922_v47 = vrot.slane %v6921_v55, 4  ;;  %v7010_v19 = vshll.u32 %v12525_v22, 16  ;;  %v7014_v17 = vshrl.u32 %v12525_v22, 16  ;;  %v18157_v15 = vld [vmem:[%s24045_s0 + $0x124] sm:$0xf] }
 0x249   :  { %v6950_v5 = vrot.slane %v6948_v41, 5  ;;  %v6969_v8 = vor.u32 %v6968_v63, %v18130_v62  ;;  %v6972_v34 = vshll.u32 %v18135_v9, 16  ;;  %v6983_v46 = vor.u32 %v6982_v7, %v6979_v48 }
 0x24a   :  { %13901 = vmatmul.mubr.bf16.gmra.mrb[16].mxu0 %v12588_v6  ;;  %v18095_v26 = vpop.f32.mrb[12].mxu1  ;;  %v12591_v6 = vcombine.low %v6845_v4, %v6855_v11  ;;  %v6986_v4 = vshll.u32 %v12522_v52, 16  ;;  %v6990_v11 = vshrl.u32 %v12522_v52, 16  ;;  %v6946_v28 = vrot.slane %v6945_v42, 4  ;;  %v18169_v52 = vld [vmem:[%s24045_s0 + $0x11c] sm:$0x1] }
 0x24b   :  { %24481 = vst [vmem:[#allocation10_spill] sm:$0xff] %v18095_v26  ;;  %13904 = vmatprep.mubr.bf16.mxu0 %v12589_v38  ;;  %v18100_v30 = vpop.f32.mrb[13].mxu1  ;;  %v6893_v38 = vsel %vm15485_vm2, %v6888_v12, %v18047_v33  ;;  %v6935_v33 = vor.u32 %v6934_v29, %v6931_v0  ;;  %v7001_v12 = vshrl.u32 %v12524_v58, 16  ;;  %v6959_v29 = vor.u32 %v6958_v61, %v6955_v60 }
 0x24c   :  { %24482 = vst [vmem:[#allocation11_spill] sm:$0xff] %v18100_v30  ;;  %v18104_v51 = vpop.f32.mrb[14].mxu1  ;;  %v12593_v18 = vcombine.low %v6893_v38, %v6903_v23  ;;  %v18152_v35 = vrot.slane %v6986_v4, 5  ;;  %v6992_v43 = vrot.slane %v6990_v11, 4  ;;  %v7006_v23 = vrot.slane %v7004_v59, 5 }
 0x24d   :  { %24483 = vst [vmem:[#allocation12_spill] sm:$0xff] %v18104_v51  ;;  %v18106_v44 = vpop.f32.mrb[15].mxu1  ;;  %v6936_v27 = vrot.slane %v6935_v33, 4  ;;  %v7003_v38 = vrot.slane %v7001_v12, 4  ;;  %v18171_v31 = vrot.slane %v7010_v19, 5  ;;  %v7016_v54 = vrot.slane %v7014_v17, 4 }
 0x24e   :  { %24484 = vst [vmem:[#allocation13_spill] sm:$0xff] %v18106_v44  ;;  %v6927_v58 = vsel %vm15485_vm2, %v6922_v47, %v18121_v24  ;;  %v6951_v42 = vsel %vm15485_vm2, %v6946_v28, %v6950_v5  ;;  %v7034_v60 = vshll.u32 %v18157_v15, 16  ;;  %v18182_v61 = vrot.slane %v6959_v29, 4  ;;  %v12530_v11 = vld [vmem:[%s24045_s0 + $0x12c] sm:$0xf] }
 0x24f   :  { %v6941_v33 = vsel %vm15485_vm2, %v6936_v27, %v18102_v32  ;;  %v18184_v22 = vrot.slane %v6969_v8, 4  ;;  %v18186_v63 = vrot.slane %v6972_v34, 5  ;;  %v7038_v48 = vshrl.u32 %v18157_v15, 16 }
 0x250   :  { %v6993_v4 = vor.u32 %v6992_v43, %v18152_v35  ;;  %v6996_v24 = vshll.u32 %v18164_v39, 16  ;;  %v7007_v7 = vor.u32 %v7006_v23, %v7003_v38  ;;  %v7020_v32 = vshll.u32 %v18169_v52, 16  ;;  %v12533_v43 = vld [vmem:[%s24045_s0 + $0x138] sm:$0xf] }
 0x251   :  { %v18198_v59 = vrot.slane %v6983_v46, 4  ;;  %v7017_v47 = vor.u32 %v7016_v54, %v18171_v31  ;;  %v12594_v27 = vcombine.low %v6917_v25, %v6927_v58  ;;  %v12595_v5 = vcombine.low %v6941_v33, %v6951_v42 }
 0x252   :  { %13905 = vmatmul.mubr.bf16.gmra.mrb[20].mxu0 %v12590_v2  ;;  %v18137_v16 = vpop.f32.mrb[16].mxu1  ;;  %v12527_v2 = vld [vmem:[%s24045_s0 + $0x120] sm:$0xf]  ;;  %v18208_v29 = vrot.slane %v7034_v60, 5  ;;  %v7040_v25 = vrot.slane %v7038_v48, 4  ;;  %v7049_v34 = vshrl.u32 %v12530_v11, 16 }
 0x253   :  { %24485 = vst [vmem:[#allocation14_spill] sm:$0xff] %v18137_v16  ;;  %13908 = vmatprep.mubr.bf16.mxu0 %v12591_v6  ;;  %v18139_v20 = vpop.f32.mrb[17].mxu1  ;;  %v7025_v55 = vshrl.u32 %v12527_v2, 16  ;;  %v7028_v41 = vshll.u32 %v12527_v2, 16  ;;  %v18206_v2 = vld [vmem:[%s24045_s0 + $0x128] sm:$0x1] }
 0x254   :  { %24486 = vst [vmem:[#allocation15_spill] sm:$0xff] %v18139_v20  ;;  %v18148_v0 = vpop.f32.mrb[18].mxu1  ;;  %v7052_v46 = vshll.u32 %v12530_v11, 16  ;;  %v6994_v23 = vrot.slane %v6993_v4, 4  ;;  %v6998_v54 = vrot.slane %v6996_v24, 5  ;;  %v7018_v58 = vrot.slane %v7017_v47, 4 }
 0x255   :  { %24487 = vst [vmem:[#allocation16_spill] sm:$0xff] %v18148_v0  ;;  %v18159_v6 = vpop.f32.mrb[19].mxu1  ;;  %v7027_v19 = vrot.slane %v7025_v55, 4  ;;  %v7030_v17 = vrot.slane %v7028_v41, 5  ;;  %v7008_v55 = vrot.slane %v7007_v7, 4  ;;  %v7022_v41 = vrot.slane %v7020_v32, 5 }
 0x256   :  { %24488 = vst [vmem:[#allocation17_spill] sm:$0xff] %v18159_v6  ;;  %v7044_v42 = vshll.u32 %v18206_v2, 16  ;;  %v7073_v4 = vshrl.u32 %v12533_v43, 16  ;;  %v7076_v24 = vshll.u32 %v12533_v43, 16  ;;  %v6989_v7 = vsel %vm15485_vm2, %v18198_v59, %v18152_v35  ;;  %v18246_v11 = vld [vmem:[%s24045_s0 + $0x134] sm:$0x1] }
 0x257   :  { %v7031_v33 = vor.u32 %v7030_v17, %v7027_v19  ;;  %v7041_v32 = vor.u32 %v7040_v25, %v18208_v29  ;;  %v7051_v47 = vrot.slane %v7049_v34, 4  ;;  %v7054_v19 = vrot.slane %v7052_v46, 5  ;;  %v12536_v59 = vld [vmem:[%s24045_s0 + $0x144] sm:$0xf] }
 0x258   :  { %v7023_v34 = vsel %vm15485_vm2, %v7018_v58, %v7022_v41  ;;  %v18264_v43 = vrot.slane %v7044_v42, 5 }
 0x259   :  { %v18262_v46 = vrot.slane %v7031_v33, 4  ;;  %v7042_v33 = vrot.slane %v7041_v32, 4  ;;  %v7055_v42 = vor.u32 %v7054_v19, %v7051_v47 }
 0x25a   :  { %13909 = vmatmul.mubr.bf16.gmra.mrb[24].mxu0 %v18108_v45  ;;  %v18196_v12 = vpop.f32.mrb[20].mxu1  ;;  %v18213_v45 = vld [vmem:[%s24045_s0 + $0x130] sm:$0xf] }
 0x25b   :  { %24489 = vst [vmem:[#allocation18_spill] sm:$0xff] %v18196_v12  ;;  %13912 = vmatprep.mubr.bf16.mxu0 %v12593_v18  ;;  %v18201_v28 = vpop.f32.mrb[21].mxu1  ;;  %v6965_v18 = vsel %vm15485_vm2, %v18182_v61, %v18130_v62  ;;  %v7058_v60 = vshll.u32 %v18213_v45, 16  ;;  %v18231_v62 = vld [vmem:[%s24045_s0 + $0x13c] sm:$0xf]  ;;  %v6975_v61 = vsel %vm15485_vm2, %v18184_v22, %v18186_v63  ;;  %v7062_v48 = vshrl.u32 %v18213_v45, 16 }
 0x25c   :  { %24490 = vst [vmem:[#allocation19_spill] sm:$0xff] %v18201_v28  ;;  %v18215_v8 = vpop.f32.mrb[22].mxu1  ;;  %v6999_v22 = vsel %vm15485_vm2, %v6994_v23, %v6998_v54  ;;  %v7013_v63 = vsel %vm15485_vm2, %v7008_v55, %v18171_v31  ;;  %v7082_v17 = vshll.u32 %v18231_v62, 16  ;;  %v7086_v35 = vshrl.u32 %v18231_v62, 16  ;;  %v18271_v31 = vld [vmem:[%s24045_s0 + $0x148] sm:$0xf] }
 0x25d   :  { %24491 = vst [vmem:[#allocation20_spill] sm:$0xff] %v18215_v8  ;;  %v18224_v38 = vpop.f32.mrb[23].mxu1  ;;  %v18266_v23 = vrot.slane %v7058_v60, 5  ;;  %v7068_v55 = vshll.u32 %v18246_v11, 16  ;;  %v12596_v41 = vcombine.low %v6965_v18, %v6975_v61  ;;  %v18281_v60 = vld [vmem:[%s24045_s0 + $0x140] sm:$0x1]  ;;  %v12597_v61 = vcombine.low %v6989_v7, %v6999_v22 }
 0x25e   :  { %24492 = vst [vmem:[#allocation21_spill] sm:$0xff] %v18224_v38  ;;  %v7078_v38 = vrot.slane %v7076_v24, 5  ;;  %v7097_v24 = vshrl.u32 %v12536_v59, 16  ;;  %v7100_v18 = vshll.u32 %v12536_v59, 16  ;;  %v7106_v32 = vshll.u32 %v18271_v31, 16 }
 0x25f   :  { %v7110_v47 = vshrl.u32 %v18271_v31, 16  ;;  %v18296_v28 = vld [vmem:[%s24045_s0 + $0x154] sm:$0xf]  ;;  %v7037_v7 = vsel %vm15485_vm2, %v18262_v46, %v18208_v29  ;;  %v18302_v22 = vrot.slane %v7055_v42, 4  ;;  %v7047_v59 = vsel %vm15485_vm2, %v7042_v33, %v18264_v43  ;;  %v12542_v29 = vld [vmem:[%s24045_s0 + $0x15c] sm:$0xf] }
 0x260   :  { %v18322_v46 = vld [vmem:[%s24045_s0 + $0x160] sm:$0xf]  ;;  %v18326_v42 = vrot.slane %v7106_v32, 5  ;;  %v7130_v43 = vshll.u32 %v18296_v28, 16  ;;  %v7134_v33 = vshrl.u32 %v18296_v28, 16  ;;  %v7145_v20 = vshrl.u32 %v12542_v29, 16 }
 0x261   :  { %v7158_v32 = vshrl.u32 %v18322_v46, 16 }
 0x262   :  { %13913 = vmatmul.mubr.bf16.gmra.mrb[28].mxu0 %v12594_v27  ;;  %v18258_v25 = vpop.f32.mrb[24].mxu1  ;;  %v7064_v27 = vrot.slane %v7062_v48, 4  ;;  %v18288_v48 = vrot.slane %v7082_v17, 5 }
 0x263   :  { %24493 = vst [vmem:[#allocation22_spill] sm:$0xff] %v18258_v25  ;;  %13916 = vmatprep.mubr.bf16.mxu0 %v12595_v5  ;;  %v18273_v54 = vpop.f32.mrb[25].mxu1  ;;  %v7075_v25 = vrot.slane %v7073_v4, 4  ;;  %v12539_v5 = vld [vmem:[%s24045_s0 + $0x150] sm:$0xf]  ;;  %v7088_v4 = vrot.slane %v7086_v35, 4 }
 0x264   :  { %24494 = vst [vmem:[#allocation23_spill] sm:$0xff] %v18273_v54  ;;  %v18276_v58 = vpop.f32.mrb[26].mxu1  ;;  %v7065_v19 = vor.u32 %v7064_v27, %v18266_v23  ;;  %v7124_v17 = vshll.u32 %v12539_v5, 16  ;;  %v7092_v35 = vshll.u32 %v18281_v60, 16  ;;  %v7102_v27 = vrot.slane %v7100_v18, 5 }
 0x265   :  { %24495 = vst [vmem:[#allocation24_spill] sm:$0xff] %v18276_v58  ;;  %v18286_v54 = vpop.f32.mrb[27].mxu1  ;;  %v12598_v58 = vcombine.low %v7013_v63, %v7023_v34  ;;  %v7079_v8 = vor.u32 %v7078_v38, %v7075_v25  ;;  %v18304_v63 = vrot.slane %v7068_v55, 5  ;;  %v18310_v38 = vld [vmem:[%s24045_s0 + $0x14c] sm:$0x1]  ;;  %v7089_v25 = vor.u32 %v7088_v4, %v18288_v48 }
 0x266   :  { %24496 = vst [vmem:[#allocation25_spill] sm:$0xff] %v18286_v54  ;;  %v7121_v54 = vshrl.u32 %v12539_v5, 16  ;;  %v7099_v34 = vrot.slane %v7097_v24, 4  ;;  %v7112_v5 = vrot.slane %v7110_v47, 4  ;;  %v7066_v24 = vrot.slane %v7065_v19, 4 }
 0x267   :  { %v7080_v18 = vrot.slane %v7079_v8, 4  ;;  %v7126_v6 = vrot.slane %v7124_v17, 5  ;;  %v7090_v16 = vrot.slane %v7089_v25, 4  ;;  %v7094_v44 = vrot.slane %v7092_v35, 5 }
 0x268   :  { %v7123_v12 = vrot.slane %v7121_v54, 4  ;;  %v7103_v51 = vor.u32 %v7102_v27, %v7099_v34  ;;  %v7113_v8 = vor.u32 %v7112_v5, %v18326_v42  ;;  %v18343_v54 = vld [vmem:[%s24045_s0 + $0x158] sm:$0x1]  ;;  %v18345_v19 = vrot.slane %v7130_v43, 5  ;;  %v12545_v34 = vld [vmem:[%s24045_s0 + $0x168] sm:$0xf] }
 0x269   :  { %v7136_v17 = vrot.slane %v7134_v33, 4  ;;  %v7061_v25 = vsel %vm15485_vm2, %v18302_v22, %v18266_v23  ;;  %v7071_v35 = vsel %vm15485_vm2, %v7066_v24, %v18304_v63  ;;  %v7147_v27 = vrot.slane %v7145_v20, 4  ;;  %v18365_v23 = vld [vmem:[%s24045_s0 + $0x16c] sm:$0xf]  ;;  %v18373_v20 = vld [vmem:[%s24045_s0 + $0x164] sm:$0x1] }
 0x26a   :  { %13917 = vmatmul.mubr.bf16.gmra.mrb[32].mxu0 %v12596_v41  ;;  %v18324_v55 = vpop.f32.mrb[28].mxu1  ;;  %v7148_v41 = vshll.u32 %v12542_v29, 16  ;;  %v7160_v43 = vrot.slane %v7158_v32, 4  ;;  %v7095_v22 = vsel %vm15485_vm2, %v7090_v16, %v7094_v44  ;;  %v7104_v63 = vrot.slane %v7103_v51, 4 }
 0x26b   :  { %24497 = vst [vmem:[#allocation26_spill] sm:$0xff] %v18324_v55  ;;  %13920 = vmatprep.mubr.bf16.mxu0 %v12597_v61  ;;  %v18330_v4 = vpop.f32.mrb[29].mxu1  ;;  %v7154_v55 = vshll.u32 %v18322_v46, 16  ;;  %v7116_v61 = vshll.u32 %v18310_v38, 16  ;;  %v7169_v33 = vshrl.u32 %v12545_v34, 16  ;;  %v7172_v24 = vshll.u32 %v12545_v34, 16 }
 0x26c   :  { %24498 = vst [vmem:[#allocation27_spill] sm:$0xff] %v18330_v4  ;;  %v18332_v0 = vpop.f32.mrb[30].mxu1  ;;  %v12599_v4 = vcombine.low %v7037_v7, %v7047_v59  ;;  %v7085_v7 = vsel %vm15485_vm2, %v7080_v18, %v18288_v48  ;;  %v7127_v59 = vor.u32 %v7126_v6, %v7123_v12  ;;  %v7150_v29 = vrot.slane %v7148_v41, 5  ;;  %v18394_v34 = vld [vmem:[%s24045_s0 + $0x178] sm:$0xf] }
 0x26d   :  { %24499 = vst [vmem:[#allocation28_spill] sm:$0xff] %v18332_v0  ;;  %v18336_v47 = vpop.f32.mrb[31].mxu1  ;;  %v18360_v5 = vrot.slane %v7154_v55, 5  ;;  %v7118_v48 = vrot.slane %v7116_v61, 5  ;;  %v7140_v6 = vshll.u32 %v18343_v54, 16  ;;  %v7114_v12 = vrot.slane %v7113_v8, 4 }
 0x26e   :  { %24500 = vst [vmem:[#allocation29_spill] sm:$0xff] %v18336_v47  ;;  %v7137_v55 = vor.u32 %v7136_v17, %v18345_v19  ;;  %v7178_v18 = vshll.u32 %v18365_v23, 16  ;;  %v7182_v44 = vshrl.u32 %v18365_v23, 16  ;;  %v7128_v51 = vrot.slane %v7127_v59, 4  ;;  %v18389_v59 = vld [vmem:[%s24045_s0 + $0x170] sm:$0x1] }
 0x26f   :  { %v7151_v16 = vor.u32 %v7150_v29, %v7147_v27  ;;  %v7161_v41 = vor.u32 %v7160_v43, %v18360_v5  ;;  %v7164_v32 = vshll.u32 %v18373_v20, 16  ;;  %v12600_v61 = vcombine.low %v7061_v25, %v7071_v35 }
 0x270   :  { %v12601_v8 = vcombine.low %v7085_v7, %v7095_v22  ;;  %v7142_v17 = vrot.slane %v7140_v6, 5  ;;  %v7119_v27 = vsel %vm15485_vm2, %v7114_v12, %v7118_v48  ;;  %v7138_v25 = vrot.slane %v7137_v55, 4  ;;  %v18406_v6 = vld [vmem:[%s24045_s0 + $0x184] sm:$0xf] }
 0x271   :  { %v7171_v35 = vrot.slane %v7169_v33, 4  ;;  %v7174_v7 = vrot.slane %v7172_v24, 5  ;;  %v18401_v29 = vrot.slane %v7178_v18, 5  ;;  %v7184_v43 = vrot.slane %v7182_v44, 4 }
 0x272   :  { %13921 = vmatmul.mubr.bf16.gmra.mrb[36].mxu0 %v12598_v58  ;;  %v12548_v58 = vld [vmem:[%s24045_s0 + $0x174] sm:$0xf]  ;;  %v7133_v48 = vsel %vm15485_vm2, %v7128_v51, %v18345_v19  ;;  %v7152_v12 = vrot.slane %v7151_v16, 4  ;;  %v7162_v55 = vrot.slane %v7161_v41, 4  ;;  %v7166_v33 = vrot.slane %v7164_v32, 5 }
 0x273   :  { %13924 = vmatprep.mubr.bf16.mxu0 %v12599_v4  ;;  %v7109_v4 = vsel %vm15485_vm2, %v7104_v63, %v18326_v42  ;;  %v12551_v42 = vld [vmem:[%s24045_s0 + $0x180] sm:$0xf]  ;;  %v7193_v22 = vshrl.u32 %v12548_v58, 16  ;;  %v7196_v63 = vshll.u32 %v12548_v58, 16  ;;  %v7202_v24 = vshll.u32 %v18394_v34, 16 }
 0x274   :  { %v7206_v18 = vshrl.u32 %v18394_v34, 16  ;;  %v7217_v47 = vshrl.u32 %v12551_v42, 16  ;;  %v7220_v44 = vshll.u32 %v12551_v42, 16  ;;  %v7143_v58 = vsel %vm15485_vm2, %v7138_v25, %v7142_v17  ;;  %v18427_v25 = vld [vmem:[%s24045_s0 + $0x17c] sm:$0x1] }
 0x275   :  { %v7188_v0 = vshll.u32 %v18389_v59, 16  ;;  %v7226_v30 = vshll.u32 %v18406_v6, 16  ;;  %v7230_v26 = vshrl.u32 %v18406_v6, 16  ;;  %v7175_v19 = vor.u32 %v7174_v7, %v7171_v35 }
 0x276   :  { %v7185_v51 = vor.u32 %v7184_v43, %v18401_v29  ;;  %v7195_v16 = vrot.slane %v7193_v22, 4  ;;  %v7198_v41 = vrot.slane %v7196_v63, 5  ;;  %v12602_v32 = vcombine.low %v7109_v4, %v7119_v27  ;;  %v12554_v4 = vld [vmem:[%s24045_s0 + $0x18c] sm:$0xf] }
 0x277   :  { %v7167_v17 = vsel %vm15485_vm2, %v7162_v55, %v7166_v33  ;;  %v18429_v42 = vrot.slane %v7202_v24, 5  ;;  %v7219_v35 = vrot.slane %v7217_v47, 4  ;;  %v7222_v7 = vrot.slane %v7220_v44, 5  ;;  %v18445_v24 = vld [vmem:[%s24045_s0 + $0x190] sm:$0xf] }
 0x278   :  { %v12603_v27 = vcombine.low %v7133_v48, %v7143_v58  ;;  %v7190_v43 = vrot.slane %v7188_v0, 5  ;;  %v18439_v22 = vrot.slane %v7226_v30, 5  ;;  %v7232_v63 = vrot.slane %v7230_v26, 4  ;;  %v12557_v26 = vld [vmem:[%s24045_s0 + $0x198] sm:$0xf] }
 0x279   :  { %v7186_v55 = vrot.slane %v7185_v51, 4  ;;  %v7199_v33 = vor.u32 %v7198_v41, %v7195_v16  ;;  %v7212_v47 = vshll.u32 %v18427_v25, 16  ;;  %v7241_v58 = vshrl.u32 %v12554_v4, 16  ;;  %v18455_v30 = vld [vmem:[%s24045_s0 + $0x19c] sm:$0xf] }
 0x27a   :  { %13925 = vmatmul.mubr.bf16.gmra.mrb[40].mxu0 %v12600_v61  ;;  %v7157_v61 = vsel %vm15485_vm2, %v7152_v12, %v18360_v5  ;;  %v18437_v5 = vld [vmem:[%s24045_s0 + $0x188] sm:$0x1]  ;;  %v7176_v12 = vrot.slane %v7175_v19, 4  ;;  %v7233_v19 = vor.u32 %v7232_v63, %v18439_v22  ;;  %v7244_v51 = vshll.u32 %v12554_v4, 16 }
 0x27b   :  { %13928 = vmatprep.mubr.bf16.mxu0 %v12601_v8  ;;  %v7208_v8 = vrot.slane %v7206_v18, 4  ;;  %v12604_v48 = vcombine.low %v7157_v61, %v7167_v17  ;;  %v7223_v18 = vor.u32 %v7222_v7, %v7219_v35  ;;  %v7236_v44 = vshll.u32 %v18437_v5, 16 }
 0x27c   :  { %v7250_v16 = vshll.u32 %v18445_v24, 16  ;;  %v7254_v41 = vshrl.u32 %v18445_v24, 16  ;;  %v7181_v61 = vsel %vm15485_vm2, %v7176_v12, %v18401_v29  ;;  %v7191_v17 = vsel %vm15485_vm2, %v7186_v55, %v7190_v43  ;;  %v18470_v29 = vld [vmem:[%s24045_s0 + $0x194] sm:$0x1] }
 0x27d   :  { %v7209_v0 = vor.u32 %v7208_v8, %v18429_v42  ;;  %v7200_v8 = vrot.slane %v7199_v33, 4  ;;  %v7214_v35 = vrot.slane %v7212_v47, 5  ;;  %v7265_v7 = vshrl.u32 %v12557_v26, 16  ;;  %v12560_v47 = vld [vmem:[%s24045_s0 + $0x1a4] sm:$0xf] }
 0x27e   :  { %v7268_v56 = vshll.u32 %v12557_v26, 16  ;;  %v7278_v4 = vshrl.u32 %v18455_v30, 16  ;;  %v7224_v49 = vrot.slane %v7223_v18, 4  ;;  %v7238_v40 = vrot.slane %v7236_v44, 5  ;;  %v18478_v44 = vld [vmem:[%s24045_s0 + $0x1a8] sm:$0xf] }
 0x27f   :  { %v7210_v63 = vrot.slane %v7209_v0, 4  ;;  %v7243_v37 = vrot.slane %v7241_v58, 4  ;;  %v7246_v12 = vrot.slane %v7244_v51, 5  ;;  %v7252_v43 = vrot.slane %v7250_v16, 5 }
 0x280   :  { %v7256_v55 = vrot.slane %v7254_v41, 4  ;;  %v12605_v33 = vcombine.low %v7181_v61, %v7191_v17  ;;  %v7267_v26 = vrot.slane %v7265_v7, 4  ;;  %v7270_v1 = vrot.slane %v7268_v56, 5  ;;  %v18489_v56 = vld [vmem:[%s24045_s0 + $0x1a0] sm:$0x1] }
 0x281   :  { %v7280_v18 = vrot.slane %v7278_v4, 4  ;;  %v7205_v58 = vsel %vm15485_vm2, %v7200_v8, %v18429_v42  ;;  %v7260_v51 = vshll.u32 %v18470_v29, 16  ;;  %v7229_v16 = vsel %vm15485_vm2, %v7224_v49, %v18439_v22 }
 0x282   :  { %13929 = vmatmul.mubr.bf16.gmra.mrb[44].mxu0 %v12602_v32  ;;  %v7274_v32 = vshll.u32 %v18455_v30, 16  ;;  %v7247_v61 = vor.u32 %v7246_v12, %v7243_v37  ;;  %v7257_v42 = vor.u32 %v7256_v55, %v7252_v43  ;;  %v7289_v17 = vshrl.u32 %v12560_v47, 16 }
 0x283   :  { %13932 = vmatprep.mubr.bf16.mxu0 %v12603_v27  ;;  %v7234_v27 = vrot.slane %v7233_v19, 4  ;;  %v7215_v19 = vsel %vm15485_vm2, %v7210_v63, %v7214_v35  ;;  %v7292_v8 = vshll.u32 %v12560_v47, 16  ;;  %v7298_v35 = vshll.u32 %v18478_v44, 16  ;;  %v18502_v47 = vld [vmem:[%s24045_s0 + $0x1ac] sm:$0x1] }
 0x284   :  { %v7276_v0 = vrot.slane %v7274_v32, 5  ;;  %v7302_v7 = vshrl.u32 %v18478_v44, 16  ;;  %v7271_v32 = vor.u32 %v7270_v1, %v7267_v26  ;;  %v12606_v63 = vcombine.low %v7205_v58, %v7215_v19 }
 0x285   :  { %v7239_v41 = vsel %vm15485_vm2, %v7234_v27, %v7238_v40  ;;  %v7248_v53 = vrot.slane %v7247_v61, 4  ;;  %v7258_v49 = vrot.slane %v7257_v42, 4  ;;  %v7262_v22 = vrot.slane %v7260_v51, 5 }
 0x286   :  { %v7281_v4 = vor.u32 %v7280_v18, %v7276_v0  ;;  %v12607_v57 = vcombine.low %v7229_v16, %v7239_v41  ;;  %v7291_v50 = vrot.slane %v7289_v17, 4  ;;  %v7294_v40 = vrot.slane %v7292_v8, 5  ;;  %v15340_v41 = vld [vmem:[%s24045_s0 + $0x1c] sm:$0xf] }
 0x287   :  { %v7300_v37 = vrot.slane %v7298_v35, 5  ;;  %v7304_v27 = vrot.slane %v7302_v7, 4  ;;  %v7272_v12 = vrot.slane %v7271_v32, 4  ;;  %v7253_v1 = vsel %vm15485_vm2, %v7248_v53, %v7252_v43  ;;  %v12619_v53 = vld [vmem:[%s24045_s0 + $0x18] sm:$0xe] }
 0x288   :  { %v7282_v55 = vrot.slane %v7281_v4, 4  ;;  %v7263_v26 = vsel %vm15485_vm2, %v7258_v49, %v7262_v22  ;;  %v7295_v18 = vor.u32 %v7294_v40, %v7291_v50  ;;  %v7308_v19 = vshll.u32 %v18502_v47, 16  ;;  %v12620_v40 = vld [vmem:[%s24045_s0 + $0x24] sm:$0xe] }
 0x289   :  { %v7305_v58 = vor.u32 %v7304_v27, %v7300_v37  ;;  %v7277_v51 = vsel %vm15485_vm2, %v7272_v12, %v7276_v0  ;;  %v7988_v61 = vrot.slane %v15340_v41, 5  ;;  %v12651_v8 = vrot.slane %v12619_v53, 9  ;;  %v15341_v0 = vld [vmem:[%s24045_s0 + $0x20] sm:$0x1]  ;;  %v12621_v27 = vld [vmem:[%s24045_s0 + $0x30] sm:$0xe] }
 0x28a   :  { %13933 = vmatmul.mubr.bf16.gmra.mrb[48].mxu0 %v12604_v48  ;;  %v7284_v48 = vshll.u32 %v18489_v56, 16  ;;  %v7296_v43 = vrot.slane %v7295_v18, 4  ;;  %v7310_v17 = vrot.slane %v7308_v19, 5  ;;  %v7991_v7 = vrot.slane %v15341_v0, 5  ;;  %v15346_v53 = vld [vmem:[%s24045_s0 + $0x40] sm:$0xf] }
 0x28b   :  { %13936 = vmatprep.mubr.bf16.mxu0 %v12605_v33  ;;  %v7306_v42 = vrot.slane %v7305_v58, 4  ;;  %v7990_v35 = vrot.slane %v7988_v61, 4  ;;  %v7989_v49 = vsel %vm16568_vm5, %v12651_v8, %v7988_v61  ;;  %v12653_v58 = vrot.slane %v12621_v27, 9 }
 0x28c   :  { %v7286_v33 = vrot.slane %v7284_v48, 5  ;;  %v7301_v32 = vsel %vm15485_vm2, %v7296_v43, %v7300_v37  ;;  %v15342_v48 = vld [vmem:[%s24045_s0 + $0x28] sm:$0xf]  ;;  %v8002_v37 = vrot.slane %v15343_v36, 5 }
 0x28d   :  { %v7311_v4 = vsel %vm15485_vm2, %v7306_v42, %v7310_v17  ;;  %v7992_v22 = vsel %vm16568_vm5, %v7990_v35, %v7991_v7  ;;  %v12622_v42 = vld [vmem:[%s24045_s0 + $0x3c] sm:$0xe]  ;;  %v15347_v17 = vld [vmem:[%s24045_s0 + $0x4c] sm:$0xf]  ;;  %v12623_v35 = vld [vmem:[%s24045_s0 + $0x48] sm:$0xe] }
 0x28e   :  { %v7287_v16 = vsel %vm15485_vm2, %v7282_v55, %v7286_v33  ;;  %v12610_v12 = vcombine.low %v7301_v32, %v7311_v4  ;;  %v12699_v55 = vcombine.low %v7989_v49, %v7992_v22  ;;  %v12652_v33 = vrot.slane %v12620_v40, 9  ;;  %v15349_v40 = vld [vmem:[%s24045_s0 + $0x50] sm:$0x1] }
 0x28f   :  { %v12609_v50 = vcombine.low %v7277_v51, %v7287_v16  ;;  %v8004_v19 = vrot.slane %v8002_v37, 4  ;;  %v15345_v51 = vld [vmem:[%s24045_s0 + $0x38] sm:$0x1]  ;;  %v8016_v8 = vrot.slane %v15347_v17, 5  ;;  %v12654_v32 = vrot.slane %v12622_v42, 9 }
 0x290   :  { %v8005_v16 = vrot.slane %v15345_v51, 5  ;;  %v12655_v49 = vrot.slane %v12623_v35, 9  ;;  %v8019_v36 = vrot.slane %v15349_v40, 5  ;;  %v15353_v42 = vld [vmem:[%s24045_s0 + $0x68] sm:$0x1] }
 0x291   :  { %v8018_v22 = vrot.slane %v8016_v8, 4  ;;  %v8033_v17 = vrot.slane %v15353_v42, 5  ;;  %v15355_v40 = vld [vmem:[%s24045_s0 + $0x7c] sm:$0xf] }
 0x292   :  { %13937 = vmatmul.mubr.bf16.gmra.mrb[52].mxu0 %v12606_v63  ;;  %v7995_v63 = vrot.slane %v15342_v48, 5  ;;  %v8006_v43 = vsel %vm16568_vm5, %v8004_v19, %v8005_v16  ;;  %v15348_v48 = vld [vmem:[%s24045_s0 + $0x44] sm:$0x1]  ;;  %v12625_v19 = vld [vmem:[%s24045_s0 + $0x60] sm:$0xe] }
 0x293   :  { %13940 = vmatprep.mubr.bf16.mxu0 %v12607_v57  ;;  %v12608_v57 = vcombine.low %v7253_v1, %v7263_v26  ;;  %v15344_v26 = vld [vmem:[%s24045_s0 + $0x2c] sm:$0x1] }
 0x294   :  { %v7997_v1 = vrot.slane %v7995_v63, 4  ;;  %v7998_v18 = vrot.slane %v15344_v26, 5  ;;  %v7996_v41 = vsel %vm16568_vm5, %v12652_v33, %v7995_v63  ;;  %v8012_v63 = vrot.slane %v15348_v48, 5  ;;  %v12624_v26 = vld [vmem:[%s24045_s0 + $0x54] sm:$0xe] }
 0x295   :  { %v8017_v33 = vsel %vm16568_vm5, %v12655_v49, %v8016_v8 }
 0x296   :  { %v7999_v61 = vsel %vm16568_vm5, %v7997_v1, %v7998_v18  ;;  %v8020_v1 = vsel %vm16568_vm5, %v8018_v22, %v8019_v36  ;;  %v15351_v18 = vld [vmem:[%s24045_s0 + $0x64] sm:$0xf]  ;;  %v12626_v22 = vld [vmem:[%s24045_s0 + $0x6c] sm:$0xe]  ;;  %v8044_v36 = vrot.slane %v15355_v40, 5 }
 0x297   :  { %v12700_v0 = vcombine.low %v7996_v41, %v7999_v61  ;;  %v12703_v16 = vcombine.low %v8017_v33, %v8020_v1  ;;  %v12656_v41 = vrot.slane %v12624_v26, 9  ;;  %v12658_v33 = vrot.slane %v12626_v22, 9  ;;  %v15356_v26 = vld [vmem:[%s24045_s0 + $0x74] sm:$0x1] }
 0x29a   :  { %13941 = vmatmul.mubr.bf16.gmra.mrb[56].mxu0 %v12608_v57  ;;  %v8009_v57 = vrot.slane %v15346_v53, 5  ;;  %v15352_v53 = vld [vmem:[%s24045_s0 + $0x5c] sm:$0x1] }
 0x29b   :  { %13944 = vmatprep.mubr.bf16.mxu0 %v12609_v50  ;;  %v8003_v50 = vsel %vm16568_vm5, %v12653_v58, %v8002_v37  ;;  %v8030_v58 = vrot.slane %v15351_v18, 5  ;;  %v8040_v18 = vrot.slane %v15356_v26, 5  ;;  %v15361_v26 = vld [vmem:[%s24045_s0 + $0x98] sm:$0x1] }
 0x29c   :  { %v12701_v7 = vcombine.low %v8003_v50, %v8006_v43  ;;  %v8011_v4 = vrot.slane %v8009_v57, 4  ;;  %v8010_v37 = vsel %vm16568_vm5, %v12654_v32, %v8009_v57  ;;  %v8026_v57 = vrot.slane %v15352_v53, 5  ;;  %v15354_v32 = vld [vmem:[%s24045_s0 + $0x70] sm:$0xf] }
 0x29d   :  { %v12657_v50 = vrot.slane %v12625_v19, 9  ;;  %v8032_v43 = vrot.slane %v8030_v58, 4  ;;  %v8046_v19 = vrot.slane %v8044_v36, 4 }
 0x29e   :  { %v8013_v27 = vsel %vm16568_vm5, %v8011_v4, %v8012_v63  ;;  %v8037_v4 = vrot.slane %v15354_v32, 5  ;;  %v15359_v32 = vld [vmem:[%s24045_s0 + $0x94] sm:$0xf] }
 0x29f   :  { %v12702_v51 = vcombine.low %v8010_v37, %v8013_v27  ;;  %v8031_v63 = vsel %vm16568_vm5, %v12657_v50, %v8030_v58  ;;  %v8034_v49 = vsel %vm16568_vm5, %v8032_v43, %v8033_v17  ;;  %v12627_v27 = vld [vmem:[%s24045_s0 + $0x78] sm:$0xe]  ;;  %v15358_v50 = vld [vmem:[%s24045_s0 + $0x88] sm:$0xf] }
 0x2a0   :  { %v8039_v1 = vrot.slane %v8037_v4, 4  ;;  %v12659_v58 = vrot.slane %v12627_v27, 9  ;;  %v8051_v43 = vrot.slane %v15358_v50, 5 }
 0x2a2   :  { %13945 = vmatmul.mubr.bf16.gmra.mrb[60].mxu0 %v12610_v12  ;;  %v15350_v12 = vld [vmem:[%s24045_s0 + $0x58] sm:$0xf]  ;;  %v8041_v53 = vsel %vm16568_vm5, %v8039_v1, %v8040_v18  ;;  %v8045_v17 = vsel %vm16568_vm5, %v12659_v58, %v8044_v36  ;;  %v8053_v27 = vrot.slane %v8051_v43, 4  ;;  %v8061_v18 = vrot.slane %v15361_v26, 5  ;;  %v15365_v26 = vld [vmem:[%s24045_s0 + $0xb0] sm:$0x1] }
 0x2a3   :  { %13964 = vmatprep.mubr.bf16.mxu0 %v12699_v55  ;;  %v8023_v55 = vrot.slane %v15350_v12, 5 }
 0x2a5   :  { %v8025_v61 = vrot.slane %v8023_v55, 4  ;;  %v8024_v35 = vsel %vm16568_vm5, %v12656_v41, %v8023_v55  ;;  %v12705_v55 = vcombine.low %v8031_v63, %v8034_v49  ;;  %v12629_v49 = vld [vmem:[%s24045_s0 + $0x90] sm:$0xe] }
 0x2aa   :  { %13965 = vmatmul.mubr.bf16.vlgmr.msra.gmra.mrb[0].mxu0 %v12700_v0  ;;  %v8027_v0 = vsel %vm16568_vm5, %v8025_v61, %v8026_v57  ;;  %v8038_v61 = vsel %vm16568_vm5, %v12658_v33, %v8037_v4  ;;  %v8058_v4 = vrot.slane %v15359_v32, 5  ;;  %v12661_v33 = vrot.slane %v12629_v49, 9 }
 0x2ab   :  { %13968 = vmatprep.mubr.bf16.mxu0 %v12701_v7  ;;  %v12704_v12 = vcombine.low %v8024_v35, %v8027_v0  ;;  %v12628_v0 = vld [vmem:[%s24045_s0 + $0x84] sm:$0xe]  ;;  %v12706_v22 = vcombine.low %v8038_v61, %v8041_v53  ;;  %v15362_v61 = vld [vmem:[%s24045_s0 + $0xa0] sm:$0xf] }
 0x2ac   :  { %v12660_v36 = vrot.slane %v12628_v0, 9  ;;  %v8060_v1 = vrot.slane %v8058_v4, 4  ;;  %v8065_v53 = vrot.slane %v15362_v61, 5  ;;  %v15363_v0 = vld [vmem:[%s24045_s0 + $0xac] sm:$0xf] }
 0x2ad   :  { %v8072_v32 = vrot.slane %v15363_v0, 5 }
 0x2b2   :  { %13969 = vmatmul.mubr.bf16.gmra.mrb[4].mxu0 %v12702_v51  ;;  %v18600_v8 = vpop.f32.mrb[32].mxu1  ;;  %v15357_v51 = vld [vmem:[%s24045_s0 + $0x80] sm:$0x1] }
 0x2b3   :  { %13972 = vmatprep.mubr.bf16.mxu0 %v12703_v16  ;;  %v18606_v7 = vpop.f32.mrb[33].mxu1  ;;  %v8047_v16 = vrot.slane %v15357_v51, 5 }
 0x2b4   :  { %v18611_v48 = vpop.f32.mrb[34].mxu1 }
 0x2b5   :  { %v18623_v37 = vpop.f32.mrb[35].mxu1  ;;  %v8048_v35 = vsel %vm16568_vm5, %v8046_v19, %v8047_v16  ;;  %v8052_v19 = vsel %vm16568_vm5, %v12660_v36, %v8051_v43  ;;  %v12630_v43 = vld [vmem:[%s24045_s0 + $0x9c] sm:$0xe] }
 0x2b6   :  { %v12707_v40 = vcombine.low %v8045_v17, %v8048_v35  ;;  %v8059_v17 = vsel %vm16568_vm5, %v12661_v33, %v8058_v4  ;;  %v8062_v35 = vsel %vm16568_vm5, %v8060_v1, %v8061_v18  ;;  %v12662_v36 = vrot.slane %v12630_v43, 9 }
 0x2b7   :  { %v12709_v4 = vcombine.low %v8059_v17, %v8062_v35  ;;  %v8074_v1 = vrot.slane %v8072_v32, 4  ;;  %v8075_v18 = vrot.slane %v15365_v26, 5  ;;  %v15366_v35 = vld [vmem:[%s24045_s0 + $0xb8] sm:$0xf] }
 0x2b8   :  { %v8079_v43 = vrot.slane %v15366_v35, 5 }
 0x2ba   :  { %13973 = vmatmul.mubr.bf16.gmra.mrb[8].mxu0 %v12704_v12  ;;  %v18634_v41 = vpop.f32.mrb[36].mxu1  ;;  %v15360_v12 = vld [vmem:[%s24045_s0 + $0x8c] sm:$0x1]  ;;  %v8081_v26 = vrot.slane %v8079_v43, 4 }
 0x2bb   :  { %13976 = vmatprep.mubr.bf16.mxu0 %v12705_v55  ;;  %v18640_v57 = vpop.f32.mrb[37].mxu1  ;;  %v8054_v55 = vrot.slane %v15360_v12, 5  ;;  %v15364_v12 = vld [vmem:[%s24045_s0 + $0xa4] sm:$0x1] }
 0x2bc   :  { %v18645_v42 = vpop.f32.mrb[38].mxu1 }
 0x2bd   :  { %v18657_v63 = vpop.f32.mrb[39].mxu1  ;;  %v8055_v51 = vsel %vm16568_vm5, %v8053_v27, %v8054_v55  ;;  %v8067_v27 = vrot.slane %v8065_v53, 4  ;;  %v8068_v55 = vrot.slane %v15364_v12, 5  ;;  %v12633_v12 = vld [vmem:[%s24045_s0 + $0xc0] sm:$0xe] }
 0x2be   :  { %v12665_v35 = vrot.slane %v12633_v12, 9 }
 0x2c2   :  { %13977 = vmatmul.mubr.bf16.gmra.mrb[12].mxu0 %v12706_v22  ;;  %v18668_v58 = vpop.f32.mrb[40].mxu1  ;;  %v12631_v22 = vld [vmem:[%s24045_s0 + $0xa8] sm:$0xe] }
 0x2c3   :  { %13980 = vmatprep.mubr.bf16.mxu0 %v12707_v40  ;;  %v18674_v16 = vpop.f32.mrb[41].mxu1  ;;  %v12708_v40 = vcombine.low %v8052_v19, %v8055_v51  ;;  %v12663_v33 = vrot.slane %v12631_v22, 9  ;;  %v8066_v19 = vsel %vm16568_vm5, %v12662_v36, %v8065_v53  ;;  %v8069_v51 = vsel %vm16568_vm5, %v8067_v27, %v8068_v55  ;;  %v12632_v53 = vld [vmem:[%s24045_s0 + $0xb4] sm:$0xe] }
 0x2c4   :  { %v18679_v50 = vpop.f32.mrb[42].mxu1  ;;  %v12710_v55 = vcombine.low %v8066_v19, %v8069_v51 }
 0x2c5   :  { %v18691_v49 = vpop.f32.mrb[43].mxu1  ;;  %v8073_v22 = vsel %vm16568_vm5, %v12663_v33, %v8072_v32  ;;  %v12664_v33 = vrot.slane %v12632_v53, 9 }
 0x2c7   :  { %v8080_v19 = vsel %vm16568_vm5, %v12664_v33, %v8079_v43  ;;  %v12634_v43 = vld [vmem:[%s24045_s0 + $0xcc] sm:$0xe]  ;;  %v15371_v33 = vld [vmem:[%s24045_s0 + $0xf4] sm:$0xf] }
 0x2ca   :  { %13981 = vmatmul.mubr.bf16.gmra.mrb[16].mxu0 %v12708_v40  ;;  %v18702_v61 = vpop.f32.mrb[44].mxu1  ;;  %v8076_v40 = vsel %vm16568_vm5, %v8074_v1, %v8075_v18  ;;  %v15368_v1 = vld [vmem:[%s24045_s0 + $0xbc] sm:$0x1] }
 0x2cb   :  { %13984 = vmatprep.mubr.bf16.mxu0 %v12709_v4  ;;  %v18708_v17 = vpop.f32.mrb[45].mxu1  ;;  %v15367_v4 = vld [vmem:[%s24045_s0 + $0xc4] sm:$0xf]  ;;  %v12711_v32 = vcombine.low %v8073_v22, %v8076_v40  ;;  %v8082_v18 = vrot.slane %v15368_v1, 5  ;;  %v15370_v40 = vld [vmem:[%s24045_s0 + $0xd0] sm:$0xf] }
 0x2cc   :  { %24501 = vst [vmem:[#allocation30_spill] sm:$0xff] %v18708_v17  ;;  %v18713_v0 = vpop.f32.mrb[46].mxu1  ;;  %v8086_v36 = vrot.slane %v15367_v4, 5  ;;  %v15369_v4 = vld [vmem:[%s24045_s0 + $0xc8] sm:$0x1]  ;;  %v8093_v53 = vrot.slane %v15370_v40, 5 }
 0x2cd   :  { %24502 = vst [vmem:[#allocation31_spill] sm:$0xff] %v18713_v0  ;;  %v18725_v27 = vpop.f32.mrb[47].mxu1  ;;  %v8083_v51 = vsel %vm16568_vm5, %v8081_v26, %v8082_v18  ;;  %v8100_v26 = vrot.slane %v15371_v33, 5  ;;  %v12635_v18 = vld [vmem:[%s24045_s0 + $0xf0] sm:$0xe] }
 0x2ce   :  { %24503 = vst [vmem:[#allocation32_spill] sm:$0xff] %v18725_v27  ;;  %v8088_v0 = vrot.slane %v8086_v36, 4  ;;  %v8089_v27 = vrot.slane %v15369_v4, 5  ;;  %v12712_v4 = vcombine.low %v8080_v19, %v8083_v51  ;;  %v8095_v40 = vrot.slane %v8093_v53, 4  ;;  %v15373_v33 = vld [vmem:[%s24045_s0 + $0xf8] sm:$0x1] }
 0x2d2   :  { %13985 = vmatmul.mubr.bf16.gmra.mrb[20].mxu0 %v12710_v55  ;;  %v18736_v17 = vpop.f32.mrb[48].mxu1  ;;  %v8087_v55 = vsel %vm16568_vm5, %v12665_v35, %v8086_v36  ;;  %v12666_v35 = vrot.slane %v12634_v43, 9 }
 0x2d3   :  { %24504 = vst [vmem:[#allocation33_spill] sm:$0xff] %v18736_v17  ;;  %13988 = vmatprep.mubr.bf16.mxu0 %v12711_v32  ;;  %v18742_v22 = vpop.f32.mrb[49].mxu1  ;;  %v8090_v32 = vsel %vm16568_vm5, %v8088_v0, %v8089_v27  ;;  %v15372_v0 = vld [vmem:[%s24045_s0 + $0xd4] sm:$0x1] }
 0x2d4   :  { %24505 = vst [vmem:[#allocation34_spill] sm:$0xff] %v18742_v22  ;;  %v18747_v12 = vpop.f32.mrb[50].mxu1  ;;  %v12713_v36 = vcombine.low %v8087_v55, %v8090_v32  ;;  %v8096_v27 = vrot.slane %v15372_v0, 5  ;;  %v8102_v22 = vrot.slane %v8100_v26, 4  ;;  %v8094_v19 = vsel %vm16568_vm5, %v12666_v35, %v8093_v53  ;;  %v15374_v32 = vld [vmem:[%s24045_s0 + $0x100] sm:$0xf] }
 0x2d5   :  { %24506 = vst [vmem:[#allocation35_spill] sm:$0xff] %v18747_v12  ;;  %v18759_v1 = vpop.f32.mrb[51].mxu1  ;;  %v12667_v12 = vrot.slane %v12635_v18, 9  ;;  %v8107_v43 = vrot.slane %v15374_v32, 5  ;;  %v12636_v53 = vld [vmem:[%s24045_s0 + $0xfc] sm:$0xe] }
 0x2d6   :  { %24507 = vst [vmem:[#allocation36_spill] sm:$0xff] %v18759_v1  ;;  %v8103_v1 = vrot.slane %v15373_v33, 5  ;;  %v8097_v51 = vsel %vm16568_vm5, %v8095_v40, %v8096_v27  ;;  %v15375_v35 = vld [vmem:[%s24045_s0 + $0x10c] sm:$0xf]  ;;  %v12637_v27 = vld [vmem:[%s24045_s0 + $0x108] sm:$0xe] }
 0x2d7   :  { %v8114_v40 = vrot.slane %v15375_v35, 5  ;;  %v12714_v33 = vcombine.low %v8094_v19, %v8097_v51  ;;  %v8109_v32 = vrot.slane %v8107_v43, 4 }
 0x2da   :  { %13989 = vmatmul.mubr.bf16.gmra.mrb[24].mxu0 %v12712_v4  ;;  %v18770_v17 = vpop.f32.mrb[52].mxu1  ;;  %v8101_v4 = vsel %vm16568_vm5, %v12667_v12, %v8100_v26  ;;  %v12668_v26 = vrot.slane %v12636_v53, 9  ;;  %v8128_v53 = vrot.slane %v18157_v15, 5 }
 0x2db   :  { %24508 = vst [vmem:[#allocation37_spill] sm:$0xff] %v18770_v17  ;;  %13992 = vmatprep.mubr.bf16.mxu0 %v12713_v36  ;;  %v18776_v55 = vpop.f32.mrb[53].mxu1  ;;  %v8104_v36 = vsel %vm16568_vm5, %v8102_v22, %v8103_v1  ;;  %v8110_v22 = vrot.slane %v18135_v9, 5  ;;  %v12669_v1 = vrot.slane %v12637_v27, 9  ;;  %v15376_v9 = vld [vmem:[%s24045_s0 + $0x118] sm:$0xf] }
 0x2dc   :  { %24509 = vst [vmem:[#allocation38_spill] sm:$0xff] %v18776_v55  ;;  %v18781_v18 = vpop.f32.mrb[54].mxu1  ;;  %v12715_v12 = vcombine.low %v8101_v4, %v8104_v36  ;;  %v8117_v55 = vrot.slane %v18164_v39, 5  ;;  %v8108_v35 = vsel %vm16568_vm5, %v12668_v26, %v8107_v43  ;;  %v8121_v51 = vrot.slane %v15376_v9, 5  ;;  %v12638_v43 = vld [vmem:[%s24045_s0 + $0x114] sm:$0xe] }
 0x2dd   :  { %24510 = vst [vmem:[#allocation39_spill] sm:$0xff] %v18781_v18  ;;  %v18793_v0 = vpop.f32.mrb[55].mxu1  ;;  %v8116_v18 = vrot.slane %v8114_v40, 4  ;;  %v8115_v39 = vsel %vm16568_vm5, %v12669_v1, %v8114_v40  ;;  %v8124_v40 = vrot.slane %v18169_v52, 5 }
 0x2de   :  { %24511 = vst [vmem:[#allocation40_spill] sm:$0xff] %v18793_v0  ;;  %v8111_v0 = vsel %vm16568_vm5, %v8109_v32, %v8110_v22  ;;  %v12670_v32 = vrot.slane %v12638_v43, 9  ;;  %v8123_v22 = vrot.slane %v8121_v51, 4 }
 0x2df   :  { %v8118_v36 = vsel %vm16568_vm5, %v8116_v18, %v8117_v55  ;;  %v8130_v55 = vrot.slane %v8128_v53, 4  ;;  %v8131_v18 = vrot.slane %v18206_v2, 5 }
 0x2e0   :  { %v12717_v26 = vcombine.low %v8115_v39, %v8118_v36  ;;  %v8122_v15 = vsel %vm16568_vm5, %v12670_v32, %v8121_v51  ;;  %v12640_v36 = vld [vmem:[%s24045_s0 + $0x12c] sm:$0xe]  ;;  %v8142_v51 = vrot.slane %v18231_v62, 5 }
 0x2e1   :  { %v8132_v2 = vsel %vm16568_vm5, %v8130_v55, %v8131_v18  ;;  %v8149_v18 = vrot.slane %v18271_v31, 5 }
 0x2e2   :  { %13993 = vmatmul.mubr.bf16.gmra.mrb[28].mxu0 %v12714_v33  ;;  %v18800_v17 = vpop.f32.mrb[56].mxu1  ;;  %v12639_v33 = vld [vmem:[%s24045_s0 + $0x120] sm:$0xe] }
 0x2e3   :  { %13996 = vmatprep.mubr.bf16.mxu0 %v12715_v12  ;;  %v18806_v19 = vpop.f32.mrb[57].mxu1  ;;  %v12716_v12 = vcombine.low %v8108_v35, %v8111_v0  ;;  %v12671_v1 = vrot.slane %v12639_v33, 9  ;;  %v8135_v35 = vrot.slane %v18213_v45, 5  ;;  %v12641_v45 = vld [vmem:[%s24045_s0 + $0x138] sm:$0xe]  ;;  %v8151_v31 = vrot.slane %v8149_v18, 4 }
 0x2e4   :  { %v18811_v4 = vpop.f32.mrb[58].mxu1 }
 0x2e5   :  { %v18821_v27 = vpop.f32.mrb[59].mxu1  ;;  %v8129_v52 = vsel %vm16568_vm5, %v12671_v1, %v8128_v53  ;;  %v8137_v32 = vrot.slane %v8135_v35, 4  ;;  %v8138_v53 = vrot.slane %v18246_v11, 5  ;;  %v8145_v1 = vrot.slane %v18281_v60, 5  ;;  %v12642_v60 = vld [vmem:[%s24045_s0 + $0x144] sm:$0xe] }
 0x2e6   :  { %24512 = vst [vmem:[#allocation41_spill] sm:$0xff] %v18821_v27  ;;  %v8125_v27 = vsel %vm16568_vm5, %v8123_v22, %v8124_v40  ;;  %v12673_v22 = vrot.slane %v12641_v45, 9  ;;  %v8144_v40 = vrot.slane %v8142_v51, 4  ;;  %v8152_v45 = vrot.slane %v18310_v38, 5 }
 0x2e7   :  { %v12718_v33 = vcombine.low %v8122_v15, %v8125_v27  ;;  %v8139_v55 = vsel %vm16568_vm5, %v8137_v32, %v8138_v53  ;;  %v8156_v15 = vrot.slane %v18296_v28, 5  ;;  %v8163_v32 = vrot.slane %v18322_v46, 5 }
 0x2e8   :  { %v8143_v27 = vsel %vm16568_vm5, %v12673_v22, %v8142_v51  ;;  %v8146_v11 = vsel %vm16568_vm5, %v8144_v40, %v8145_v1  ;;  %v8153_v28 = vsel %vm16568_vm5, %v8151_v31, %v8152_v45  ;;  %v8170_v22 = vrot.slane %v18365_v23, 5  ;;  %v12645_v40 = vld [vmem:[%s24045_s0 + $0x168] sm:$0xe] }
 0x2e9   :  { %v8165_v46 = vrot.slane %v8163_v32, 4 }
 0x2ea   :  { %13997 = vmatmul.mubr.bf16.gmra.mrb[32].mxu0 %v12716_v12  ;;  %v18828_v9 = vpop.f32.mrb[60].mxu1  ;;  %v12719_v12 = vcombine.low %v8129_v52, %v8132_v2  ;;  %v12721_v2 = vcombine.low %v8143_v27, %v8146_v11  ;;  %v12677_v27 = vrot.slane %v12645_v40, 9  ;;  %v8172_v11 = vrot.slane %v8170_v22, 4 }
 0x2eb   :  { %14000 = vmatprep.mubr.bf16.mxu0 %v12717_v26  ;;  %v18834_v0 = vpop.f32.mrb[61].mxu1  ;;  %v12672_v26 = vrot.slane %v12640_v36, 9  ;;  %v12674_v36 = vrot.slane %v12642_v60, 9  ;;  %v8173_v60 = vrot.slane %v18389_v59, 5  ;;  %v12646_v59 = vld [vmem:[%s24045_s0 + $0x174] sm:$0xe] }
 0x2ec   :  { %v18837_v39 = vpop.f32.mrb[62].mxu1 }
 0x2ed   :  { %v18847_v43 = vpop.f32.mrb[63].mxu1  ;;  %v8136_v62 = vsel %vm16568_vm5, %v12672_v26, %v8135_v35  ;;  %v12643_v35 = vld [vmem:[%s24045_s0 + $0x150] sm:$0xe]  ;;  %v8150_v26 = vsel %vm16568_vm5, %v12674_v36, %v8149_v18  ;;  %v8166_v18 = vrot.slane %v18373_v20, 5  ;;  %v8174_v20 = vsel %vm16568_vm5, %v8172_v11, %v8173_v60  ;;  %v12647_v36 = vld [vmem:[%s24045_s0 + $0x180] sm:$0xe] }
 0x2ee   :  { %v12720_v52 = vcombine.low %v8136_v62, %v8139_v55  ;;  %v12675_v51 = vrot.slane %v12643_v35, 9  ;;  %v12722_v1 = vcombine.low %v8150_v26, %v8153_v28  ;;  %v8177_v35 = vrot.slane %v18394_v34, 5 }
 0x2ef   :  { %v8167_v23 = vsel %vm16568_vm5, %v8165_v46, %v8166_v18  ;;  %v8187_v28 = vrot.slane %v18437_v5, 5  ;;  %v12648_v5 = vld [vmem:[%s24045_s0 + $0x18c] sm:$0xe]  ;;  %v8205_v60 = vrot.slane %v18478_v44, 5 }
 0x2f0   :  { %v8157_v53 = vsel %vm16568_vm5, %v12675_v51, %v8156_v15  ;;  %v12678_v51 = vrot.slane %v12646_v59, 9  ;;  %v8179_v34 = vrot.slane %v8177_v35, 4  ;;  %v8208_v59 = vrot.slane %v18502_v47, 5 }
 0x2f2   :  { %14001 = vmatmul.mubr.bf16.gmra.mrb[36].mxu0 %v12718_v33  ;;  %v8158_v33 = vrot.slane %v8156_v15, 4 }
 0x2f3   :  { %14004 = vmatprep.mubr.bf16.mxu0 %v12719_v12  ;;  %v8159_v12 = vrot.slane %v18343_v54, 5  ;;  %v12644_v54 = vld [vmem:[%s24045_s0 + $0x15c] sm:$0xe] }
 0x2f4   :  { %v12676_v55 = vrot.slane %v12644_v54, 9  ;;  %v8198_v54 = vrot.slane %v18455_v30, 5 }
 0x2f5   :  { %v8160_v38 = vsel %vm16568_vm5, %v8158_v33, %v8159_v12  ;;  %v8180_v33 = vrot.slane %v18427_v25, 5  ;;  %v12679_v12 = vrot.slane %v12647_v36, 9 }
 0x2f6   :  { %v12723_v62 = vcombine.low %v8157_v53, %v8160_v38  ;;  %v8164_v15 = vsel %vm16568_vm5, %v12676_v55, %v8163_v32  ;;  %v8178_v32 = vsel %vm16568_vm5, %v12678_v51, %v8177_v35  ;;  %v8191_v53 = vrot.slane %v18445_v24, 5 }
 0x2f7   :  { %v12724_v31 = vcombine.low %v8164_v15, %v8167_v23  ;;  %v8194_v55 = vrot.slane %v18470_v29, 5  ;;  %v8200_v18 = vrot.slane %v8198_v54, 4 }
 0x2f8   :  { %v8193_v24 = vrot.slane %v8191_v53, 4 }
 0x2fa   :  { %14005 = vmatmul.mubr.bf16.gmra.mrb[40].mxu0 %v12720_v52  ;;  %v8171_v52 = vsel %vm16568_vm5, %v12677_v27, %v8170_v22  ;;  %v12649_v22 = vld [vmem:[%s24045_s0 + $0x198] sm:$0xe]  ;;  %v8201_v27 = vrot.slane %v18489_v56, 5  ;;  %v8195_v30 = vsel %vm16568_vm5, %v8193_v24, %v8194_v55  ;;  %v12650_v56 = vld [vmem:[%s24045_s0 + $0x1a4] sm:$0xe] }
 0x2fb   :  { %14008 = vmatprep.mubr.bf16.mxu0 %v12721_v2  ;;  %v8184_v2 = vrot.slane %v18406_v6, 5  ;;  %v12725_v45 = vcombine.low %v8171_v52, %v8174_v20  ;;  %v8181_v6 = vsel %vm16568_vm5, %v8179_v34, %v8180_v33  ;;  %v12681_v46 = vrot.slane %v12649_v22, 9 }
 0x2fc   :  { %v12726_v40 = vcombine.low %v8178_v32, %v8181_v6  ;;  %v8202_v29 = vsel %vm16568_vm5, %v8200_v18, %v8201_v27  ;;  %v12682_v52 = vrot.slane %v12650_v56, 9  ;;  %v8207_v20 = vrot.slane %v8205_v60, 4 }
 0x2fd   :  { %v8186_v26 = vrot.slane %v8184_v2, 4  ;;  %v8185_v38 = vsel %vm16568_vm5, %v12679_v12, %v8184_v2  ;;  %v8199_v15 = vsel %vm16568_vm5, %v12681_v46, %v8198_v54  ;;  %v24514_v54 = vld [vmem:[#allocation3_spill] sm:$0xff] }
 0x2fe   :  { %v12729_v35 = vcombine.low %v8199_v15, %v8202_v29  ;;  %v8206_v44 = vsel %vm16568_vm5, %v12682_v52, %v8205_v60  ;;  %v8209_v2 = vsel %vm16568_vm5, %v8207_v20, %v8208_v59  ;;  %v24517_v20 = vld [vmem:[#allocation6_spill] sm:$0xff] }
 0x2ff   :  { %v8188_v25 = vsel %vm16568_vm5, %v8186_v26, %v8187_v28  ;;  %v12730_v36 = vcombine.low %v8206_v44, %v8209_v2 }
 0x302   :  { %14009 = vmatmul.mubr.bf16.gmra.mrb[44].mxu0 %v12722_v1  ;;  %v12727_v1 = vcombine.low %v8185_v38, %v8188_v25 }
 0x303   :  { %14012 = vmatprep.mubr.bf16.mxu0 %v12723_v62  ;;  %v12680_v62 = vrot.slane %v12648_v5, 9 }
 0x305   :  { %v8192_v11 = vsel %vm16568_vm5, %v12680_v62, %v8191_v53  ;;  %v24513_v53 = vld [vmem:[#allocation2_spill] sm:$0xff]  ;;  %v24515_v62 = vld [vmem:[#allocation4_spill] sm:$0xff] }
 0x306   :  { %v12728_v23 = vcombine.low %v8192_v11, %v8195_v30  ;;  %v24516_v11 = vld [vmem:[#allocation5_spill] sm:$0xff] }
 0x30a   :  { %14013 = vmatmul.mubr.bf16.gmra.mrb[48].mxu0 %v12724_v31 }
 0x30b   :  { %14016 = vmatprep.mubr.bf16.mxu0 %v12725_v45 }
 0x312   :  { %14017 = vmatmul.mubr.bf16.gmra.mrb[52].mxu0 %v12726_v40 }
 0x313   :  { %14020 = vmatprep.mubr.bf16.mxu0 %v12727_v1 }
 0x31a   :  { %14021 = vmatmul.mubr.bf16.gmra.mrb[56].mxu0 %v12728_v23 }
 0x31b   :  { %14024 = vmatprep.mubr.bf16.mxu0 %v12729_v35 }
 0x322   :  { %14025 = vmatmul.mubr.bf16.gmra.mrb[60].mxu0 %v12730_v36 }
 0x37d   :  { %v13966_v31 = vpop.f32.mrb[0].mxu0 }
 0x37e   :  { %v18944_v45 = vadd.f32 %v13966_v31, %v17942_v3  ;;  %v8437_v51 = vpop.f32.mrb[1].mxu0  ;;  %v24518_v31 = vld [vmem:[#allocation7_spill] sm:$0xff] }
 0x37f   :  { %v18947_v34 = vadd.f32 %v8437_v51, %v17946_v10  ;;  %v13967_v33 = vpop.f32.mrb[2].mxu0 }
 0x380   :  { %v18950_v47 = vadd.f32 %v13967_v33, %v17953_v14  ;;  %v8440_v12 = vpop.f32.mrb[3].mxu0  ;;  %v8829_v10 = vmul.f32 %v18944_v45, %v18944_v45 }
 0x381   :  { %v18953_v26 = vadd.f32 %v8440_v12, %v17963_v21  ;;  %v8827_v13 = vmul.f32 %v18947_v34, %v18947_v34 }
 0x382   :  { %v8830_v25 = vmul.f32 %v18950_v47, %v18950_v47 }
 0x383   :  { %v8758_v28 = vadd.f32 %v18953_v26, %v18947_v34  ;;  %v8828_v3 = vmul.f32 %v18953_v26, %v18953_v26 }
 0x385   :  { %v8759_v32 = vadd.f32 %v18944_v45, %v8758_v28  ;;  %v8891_v14 = vadd.f32 %v8828_v3, %v8827_v13  ;;  %v13970_v6 = vpop.f32.mrb[4].mxu0  ;;  %v24519_v13 = vld [vmem:[#allocation8_spill] sm:$0xff] }
 0x386   :  { %v18965_v38 = vadd.f32 %v13970_v6, %v24513_v53  ;;  %v8453_v21 = vpop.f32.mrb[5].mxu0  ;;  %v24520_v6 = vld [vmem:[#allocation9_spill] sm:$0xff] }
 0x387   :  { %v8892_v5 = vadd.f32 %v8891_v14, %v8829_v10  ;;  %v18970_v22 = vadd.f32 %v8453_v21, %v24514_v54  ;;  %v8760_v40 = vadd.f32 %v18950_v47, %v8759_v32  ;;  %v13971_v1 = vpop.f32.mrb[6].mxu0 }
 0x388   :  { %v18974_v24 = vadd.f32 %v13971_v1, %v24515_v62  ;;  %v8456_v55 = vpop.f32.mrb[7].mxu0  ;;  %v8833_v56 = vmul.f32 %v18965_v38, %v18965_v38 }
 0x389   :  { %v8761_v46 = vadd.f32 %v18970_v22, %v8760_v40  ;;  %v8831_v18 = vmul.f32 %v18970_v22, %v18970_v22  ;;  %v8893_v27 = vadd.f32 %v8892_v5, %v8830_v25  ;;  %v18980_v30 = vadd.f32 %v8456_v55, %v24516_v11  ;;  %v24521_v55 = vld [vmem:[#allocation10_spill] sm:$0xff] }
 0x38a   :  { %v8834_v2 = vmul.f32 %v18974_v24, %v18974_v24 }
 0x38b   :  { %v8894_v60 = vadd.f32 %v8893_v27, %v8831_v18  ;;  %v8762_v15 = vadd.f32 %v18980_v30, %v8761_v46  ;;  %v8832_v29 = vmul.f32 %v18980_v30, %v18980_v30 }
 0x38d   :  { %v8763_v23 = vadd.f32 %v18965_v38, %v8762_v15  ;;  %v8895_v35 = vadd.f32 %v8894_v60, %v8832_v29  ;;  %v13974_v52 = vpop.f32.mrb[8].mxu0  ;;  %v24522_v60 = vld [vmem:[#allocation11_spill] sm:$0xff] }
 0x38e   :  { %v18989_v59 = vadd.f32 %v13974_v52, %v24517_v20  ;;  %v8469_v44 = vpop.f32.mrb[9].mxu0 }
 0x38f   :  { %v8896_v36 = vadd.f32 %v8895_v35, %v8833_v56  ;;  %v18994_v51 = vadd.f32 %v8469_v44, %v24518_v31  ;;  %v8764_v33 = vadd.f32 %v18974_v24, %v8763_v23  ;;  %v13975_v12 = vpop.f32.mrb[10].mxu0  ;;  %v24523_v23 = vld [vmem:[#allocation12_spill] sm:$0xff] }
 0x390   :  { %v18998_v28 = vadd.f32 %v13975_v12, %v24519_v13  ;;  %v8472_v3 = vpop.f32.mrb[11].mxu0  ;;  %v8837_v54 = vmul.f32 %v18989_v59, %v18989_v59 }
 0x391   :  { %v8765_v10 = vadd.f32 %v18994_v51, %v8764_v33  ;;  %v8835_v32 = vmul.f32 %v18994_v51, %v18994_v51  ;;  %v8897_v14 = vadd.f32 %v8896_v36, %v8834_v2  ;;  %v19004_v53 = vadd.f32 %v8472_v3, %v24520_v6  ;;  %v24524_v36 = vld [vmem:[#allocation13_spill] sm:$0xff]  ;;  %v24525_v6 = vld [vmem:[#allocation14_spill] sm:$0xff] }
 0x392   :  { %v8838_v27 = vmul.f32 %v18998_v28, %v18998_v28 }
 0x393   :  { %v8898_v21 = vadd.f32 %v8897_v14, %v8835_v32  ;;  %v8766_v25 = vadd.f32 %v19004_v53, %v8765_v10  ;;  %v8836_v5 = vmul.f32 %v19004_v53, %v19004_v53 }
 0x395   :  { %v8767_v40 = vadd.f32 %v18989_v59, %v8766_v25  ;;  %v8899_v1 = vadd.f32 %v8898_v21, %v8836_v5  ;;  %v13978_v62 = vpop.f32.mrb[12].mxu0 }
 0x396   :  { %v19013_v46 = vadd.f32 %v13978_v62, %v24521_v55  ;;  %v8485_v18 = vpop.f32.mrb[13].mxu0 }
 0x397   :  { %v8900_v11 = vadd.f32 %v8899_v1, %v8837_v54  ;;  %v19018_v15 = vadd.f32 %v8485_v18, %v24522_v60  ;;  %v8768_v29 = vadd.f32 %v18998_v28, %v8767_v40  ;;  %v13979_v56 = vpop.f32.mrb[14].mxu0  ;;  %v24526_v40 = vld [vmem:[#allocation15_spill] sm:$0xff]  ;;  %v24527_v18 = vld [vmem:[#allocation16_spill] sm:$0xff] }
 0x398   :  { %v19022_v35 = vadd.f32 %v13979_v56, %v24523_v23  ;;  %v8488_v52 = vpop.f32.mrb[15].mxu0  ;;  %v8841_v3 = vmul.f32 %v19013_v46, %v19013_v46  ;;  %v24528_v23 = vld [vmem:[#allocation17_spill] sm:$0xff] }
 0x399   :  { %v8769_v20 = vadd.f32 %v19018_v15, %v8768_v29  ;;  %v8839_v44 = vmul.f32 %v19018_v15, %v19018_v15  ;;  %v8901_v2 = vadd.f32 %v8900_v11, %v8838_v27  ;;  %v19028_v31 = vadd.f32 %v8488_v52, %v24524_v36 }
 0x39a   :  { %v8842_v5 = vmul.f32 %v19022_v35, %v19022_v35 }
 0x39b   :  { %v8902_v33 = vadd.f32 %v8901_v2, %v8839_v44  ;;  %v8770_v12 = vadd.f32 %v19028_v31, %v8769_v20  ;;  %v8840_v13 = vmul.f32 %v19028_v31, %v19028_v31 }
 0x39d   :  { %v8771_v10 = vadd.f32 %v19013_v46, %v8770_v12  ;;  %v8903_v32 = vadd.f32 %v8902_v33, %v8840_v13  ;;  %v13982_v14 = vpop.f32.mrb[16].mxu0 }
 0x39e   :  { %v19037_v21 = vadd.f32 %v13982_v14, %v24525_v6  ;;  %v8501_v25 = vpop.f32.mrb[17].mxu0 }
 0x39f   :  { %v8904_v54 = vadd.f32 %v8903_v32, %v8841_v3  ;;  %v19042_v1 = vadd.f32 %v8501_v25, %v24526_v40  ;;  %v8772_v62 = vadd.f32 %v19022_v35, %v8771_v10  ;;  %v13983_v55 = vpop.f32.mrb[18].mxu0  ;;  %v24529_v3 = vld [vmem:[#allocation18_spill] sm:$0xff]  ;;  %v24530_v25 = vld [vmem:[#allocation19_spill] sm:$0xff] }
 0x3a0   :  { %v19046_v27 = vadd.f32 %v13983_v55, %v24527_v18  ;;  %v8504_v11 = vpop.f32.mrb[19].mxu0  ;;  %v8845_v36 = vmul.f32 %v19037_v21, %v19037_v21 }
 0x3a1   :  { %v8773_v60 = vadd.f32 %v19042_v1, %v8772_v62  ;;  %v8843_v29 = vmul.f32 %v19042_v1, %v19042_v1  ;;  %v8905_v56 = vadd.f32 %v8904_v54, %v8842_v5  ;;  %v19052_v52 = vadd.f32 %v8504_v11, %v24528_v23  ;;  %v24531_v62 = vld [vmem:[#allocation20_spill] sm:$0xff] }
 0x3a2   :  { %v8846_v14 = vmul.f32 %v19046_v27, %v19046_v27 }
 0x3a3   :  { %v8906_v20 = vadd.f32 %v8905_v56, %v8843_v29  ;;  %v8774_v44 = vadd.f32 %v19052_v52, %v8773_v60  ;;  %v8844_v2 = vmul.f32 %v19052_v52, %v19052_v52  ;;  %v24532_v56 = vld [vmem:[#allocation21_spill] sm:$0xff] }
 0x3a5   :  { %v8775_v33 = vadd.f32 %v19037_v21, %v8774_v44  ;;  %v8907_v12 = vadd.f32 %v8906_v20, %v8844_v2  ;;  %v13986_v13 = vpop.f32.mrb[20].mxu0 }
 0x3a6   :  { %v19061_v10 = vadd.f32 %v13986_v13, %v24529_v3  ;;  %v8517_v32 = vpop.f32.mrb[21].mxu0  ;;  %v24533_v3 = vld [vmem:[#allocation22_spill] sm:$0xff] }
 0x3a7   :  { %v8908_v6 = vadd.f32 %v8907_v12, %v8845_v36  ;;  %v19066_v5 = vadd.f32 %v8517_v32, %v24530_v25  ;;  %v8776_v54 = vadd.f32 %v19046_v27, %v8775_v33  ;;  %v13987_v40 = vpop.f32.mrb[22].mxu0 }
 0x3a8   :  { %v19070_v55 = vadd.f32 %v13987_v40, %v24531_v62  ;;  %v8520_v18 = vpop.f32.mrb[23].mxu0  ;;  %v8849_v36 = vmul.f32 %v19061_v10, %v19061_v10 }
 0x3a9   :  { %v8777_v11 = vadd.f32 %v19066_v5, %v8776_v54  ;;  %v8847_v60 = vmul.f32 %v19066_v5, %v19066_v5  ;;  %v8909_v29 = vadd.f32 %v8908_v6, %v8846_v14  ;;  %v19076_v23 = vadd.f32 %v8520_v18, %v24532_v56  ;;  %v24535_v54 = vld [vmem:[#allocation23_spill] sm:$0xff] }
 0x3aa   :  { %v8850_v6 = vmul.f32 %v19070_v55, %v19070_v55 }
 0x3ab   :  { %v8910_v20 = vadd.f32 %v8909_v29, %v8847_v60  ;;  %v8778_v44 = vadd.f32 %v19076_v23, %v8777_v11  ;;  %v8848_v2 = vmul.f32 %v19076_v23, %v19076_v23  ;;  %v24537_v11 = vld [vmem:[#allocation24_spill] sm:$0xff] }
 0x3ad   :  { %v8779_v33 = vadd.f32 %v19061_v10, %v8778_v44  ;;  %v8911_v12 = vadd.f32 %v8910_v20, %v8848_v2  ;;  %v13990_v13 = vpop.f32.mrb[24].mxu0  ;;  %v24538_v2 = vld [vmem:[#allocation25_spill] sm:$0xff] }
 0x3ae   :  { %v19085_v32 = vadd.f32 %v13990_v13, %v24533_v3  ;;  %v8533_v14 = vpop.f32.mrb[25].mxu0 }
 0x3af   :  { %v8912_v25 = vadd.f32 %v8911_v12, %v8849_v36  ;;  %v19090_v40 = vadd.f32 %v8533_v14, %v24535_v54  ;;  %v8780_v62 = vadd.f32 %v19070_v55, %v8779_v33  ;;  %v13991_v18 = vpop.f32.mrb[26].mxu0 }
 0x3b0   :  { %24534 = vst [vmem:[#allocation2_spill] sm:$0xff] %v19085_v32  ;;  %v19094_v60 = vadd.f32 %v13991_v18, %v24537_v11  ;;  %v8536_v29 = vpop.f32.mrb[27].mxu0  ;;  %v8853_v3 = vmul.f32 %v19085_v32, %v19085_v32  ;;  %v24540_v18 = vld [vmem:[#allocation26_spill] sm:$0xff] }
 0x3b1   :  { %24536 = vst [vmem:[#allocation3_spill] sm:$0xff] %v19090_v40  ;;  %v8781_v56 = vadd.f32 %v19090_v40, %v8780_v62  ;;  %v8851_v20 = vmul.f32 %v19090_v40, %v19090_v40  ;;  %v8913_v44 = vadd.f32 %v8912_v25, %v8850_v6  ;;  %v19100_v13 = vadd.f32 %v8536_v29, %v24538_v2 }
 0x3b2   :  { %v8854_v25 = vmul.f32 %v19094_v60, %v19094_v60 }
 0x3b3   :  { %24539 = vst [vmem:[#allocation4_spill] sm:$0xff] %v19100_v13  ;;  %v8914_v36 = vadd.f32 %v8913_v44, %v8851_v20  ;;  %v8782_v12 = vadd.f32 %v19100_v13, %v8781_v56  ;;  %v8852_v33 = vmul.f32 %v19100_v13, %v19100_v13  ;;  %v24542_v20 = vld [vmem:[#allocation27_spill] sm:$0xff]  ;;  %v24543_v13 = vld [vmem:[#allocation28_spill] sm:$0xff] }
 0x3b5   :  { %v8783_v14 = vadd.f32 %v19085_v32, %v8782_v12  ;;  %v8915_v54 = vadd.f32 %v8914_v36, %v8852_v33  ;;  %v13994_v62 = vpop.f32.mrb[28].mxu0 }
 0x3b6   :  { %v19109_v11 = vadd.f32 %v13994_v62, %v24540_v18  ;;  %v8549_v6 = vpop.f32.mrb[29].mxu0  ;;  %v24545_v18 = vld [vmem:[#allocation29_spill] sm:$0xff] }
 0x3b7   :  { %v8916_v29 = vadd.f32 %v8915_v54, %v8853_v3  ;;  %v19114_v56 = vadd.f32 %v8549_v6, %v24542_v20  ;;  %v8784_v44 = vadd.f32 %v19094_v60, %v8783_v14  ;;  %v13995_v2 = vpop.f32.mrb[30].mxu0  ;;  %v14727_v3 = vld [vmem:[%s24046_s4 + $0x4] ss:$8 sps:$4 sm:$0xff]   ;;  %v14725_v14 = vld [vmem:[%s24046_s4] ss:$8 sps:$4 sm:$0xff]  }
 0x3b8   :  { %24541 = vst [vmem:[#allocation5_spill] sm:$0xff] %v19109_v11  ;;  %v19118_v40 = vadd.f32 %v13995_v2, %v24543_v13  ;;  %v8552_v12 = vpop.f32.mrb[31].mxu0  ;;  %9682 = vmatprep.subr.bf16.mxu1 %v14727_v3  ;;  %v14730_v2 = vld [vmem:[%s24046_s4 + $0x14] ss:$8 sps:$4 sm:$0xff]  }
 0x3b9   :  { %v8785_v36 = vadd.f32 %v19114_v56, %v8784_v44  ;;  %v8855_v33 = vmul.f32 %v19114_v56, %v19114_v56  ;;  %v8917_v62 = vadd.f32 %v8916_v29, %v8854_v25  ;;  %v19124_v32 = vadd.f32 %v8552_v12, %v24545_v18  ;;  %9683 = vmatpush1.bf16.msra.mxu1 %v14725_v14 }
 0x3ba   :  { %24544 = vst [vmem:[#allocation6_spill] sm:$0xff] %v19118_v40  ;;  %v8857_v25 = vmul.f32 %v19109_v11, %v19109_v11  ;;  %9684 = vmatprep.subr.bf16.mxu1 %v14730_v2 }
 0x3bb   :  { %v8918_v13 = vadd.f32 %v8917_v62, %v8855_v33  ;;  %v8786_v54 = vadd.f32 %v19124_v32, %v8785_v36  ;;  %v8856_v6 = vmul.f32 %v19124_v32, %v19124_v32  ;;  %v14728_v33 = vld [vmem:[%s24046_s4 + $0x10] ss:$8 sps:$4 sm:$0xff]   ;;  %v8858_v62 = vmul.f32 %v19118_v40, %v19118_v40 }
 0x3bd   :  { %v8787_v29 = vadd.f32 %v19109_v11, %v8786_v54  ;;  %v8919_v20 = vadd.f32 %v8918_v13, %v8856_v6  ;;  %v13998_v44 = vpop.f32.mrb[32].mxu0  ;;  %9685 = vmatpush1.bf16.msra.mxu1 %v14728_v33 }
 0x3be   :  { %v19142_v12 = vadd.f32 %v13998_v44, %v18600_v8  ;;  %v8565_v36 = vpop.f32.mrb[33].mxu0 }
 0x3bf   :  { %v8920_v18 = vadd.f32 %v8919_v20, %v8857_v25  ;;  %v19150_v3 = vadd.f32 %v8565_v36, %v18606_v7  ;;  %v8788_v14 = vadd.f32 %v19118_v40, %v8787_v29  ;;  %v13999_v13 = vpop.f32.mrb[34].mxu0  ;;  %v14733_v7 = vld [vmem:[%s24046_s4 + $0x24] ss:$8 sps:$4 sm:$0xff]  }
 0x3c0   :  { %24546 = vst [vmem:[#allocation7_spill] sm:$0xff] %v19142_v12  ;;  %v19154_v54 = vadd.f32 %v13999_v13, %v18611_v48  ;;  %v8568_v8 = vpop.f32.mrb[35].mxu0  ;;  %v14731_v48 = vld [vmem:[%s24046_s4 + $0x20] ss:$8 sps:$4 sm:$0xff]   ;;  %9686 = vmatprep.subr.bf16.mxu1 %v14733_v7  ;;  %v14734_v13 = vld [vmem:[%s24046_s4 + $0x30] ss:$8 sps:$4 sm:$0xff]  }
 0x3c1   :  { %24547 = vst [vmem:[#allocation8_spill] sm:$0xff] %v19150_v3  ;;  %v8789_v6 = vadd.f32 %v19150_v3, %v8788_v14  ;;  %v8859_v44 = vmul.f32 %v19150_v3, %v19150_v3  ;;  %v8921_v11 = vadd.f32 %v8920_v18, %v8858_v62  ;;  %v19160_v25 = vadd.f32 %v8568_v8, %v18623_v37  ;;  %v14736_v18 = vld [vmem:[%s24046_s4 + $0x34] ss:$8 sps:$4 sm:$0xff]  }
 0x3c2   :  { %24548 = vst [vmem:[#allocation9_spill] sm:$0xff] %v19154_v54  ;;  %9687 = vmatpush1.bf16.msra.mxu1 %v14731_v48  ;;  %v8861_v37 = vmul.f32 %v19142_v12, %v19142_v12  ;;  %v8862_v8 = vmul.f32 %v19154_v54, %v19154_v54 }
 0x3c3   :  { %24549 = vst [vmem:[#allocation10_spill] sm:$0xff] %v19160_v25  ;;  %v8922_v29 = vadd.f32 %v8921_v11, %v8859_v44  ;;  %v8790_v20 = vadd.f32 %v19160_v25, %v8789_v6  ;;  %v8860_v2 = vmul.f32 %v19160_v25, %v19160_v25  ;;  %9688 = vmatprep.subr.bf16.mxu1 %v14736_v18 }
 0x3c5   :  { %v8791_v36 = vadd.f32 %v19142_v12, %v8790_v20  ;;  %v8923_v33 = vadd.f32 %v8922_v29, %v8860_v2  ;;  %v14002_v62 = vpop.f32.mrb[36].mxu0 }
 0x3c6   :  { %v19178_v11 = vadd.f32 %v14002_v62, %v18634_v41  ;;  %v8581_v14 = vpop.f32.mrb[37].mxu0  ;;  %9689 = vmatpush1.bf16.msra.mxu1 %v14734_v13 }
 0x3c7   :  { %v8924_v6 = vadd.f32 %v8923_v33, %v8861_v37  ;;  %v19186_v44 = vadd.f32 %v8581_v14, %v18640_v57  ;;  %v8792_v7 = vadd.f32 %v19154_v54, %v8791_v36  ;;  %v14003_v48 = vpop.f32.mrb[38].mxu0  ;;  %v14739_v57 = vld [vmem:[%s24046_s4 + $0x44] ss:$8 sps:$4 sm:$0xff]  }
 0x3c8   :  { %24550 = vst [vmem:[#allocation11_spill] sm:$0xff] %v19178_v11  ;;  %v19190_v29 = vadd.f32 %v14003_v48, %v18645_v42  ;;  %v8584_v41 = vpop.f32.mrb[39].mxu0  ;;  %v14737_v42 = vld [vmem:[%s24046_s4 + $0x40] ss:$8 sps:$4 sm:$0xff]   ;;  %9690 = vmatprep.subr.bf16.mxu1 %v14739_v57 }
 0x3c9   :  { %24551 = vst [vmem:[#allocation12_spill] sm:$0xff] %v19186_v44  ;;  %v8793_v20 = vadd.f32 %v19186_v44, %v8792_v7  ;;  %v8863_v2 = vmul.f32 %v19186_v44, %v19186_v44  ;;  %v8925_v62 = vadd.f32 %v8924_v6, %v8862_v8  ;;  %v19196_v37 = vadd.f32 %v8584_v41, %v18657_v63  ;;  %v14742_v6 = vld [vmem:[%s24046_s4 + $0x54] ss:$8 sps:$4 sm:$0xff]   ;;  %v14740_v41 = vld [vmem:[%s24046_s4 + $0x50] ss:$8 sps:$4 sm:$0xff]  }
 0x3ca   :  { %24552 = vst [vmem:[#allocation13_spill] sm:$0xff] %v19190_v29  ;;  %9691 = vmatpush1.bf16.msra.mxu1 %v14737_v42  ;;  %v8865_v63 = vmul.f32 %v19178_v11, %v19178_v11 }
 0x3cb   :  { %24553 = vst [vmem:[#allocation14_spill] sm:$0xff] %v19196_v37  ;;  %v8926_v36 = vadd.f32 %v8925_v62, %v8863_v2  ;;  %v8794_v33 = vadd.f32 %v19196_v37, %v8793_v20  ;;  %v8864_v18 = vmul.f32 %v19196_v37, %v19196_v37  ;;  %v8866_v20 = vmul.f32 %v19190_v29, %v19190_v29 }
 0x3cc   :  { %9692 = vmatprep.subr.bf16.mxu1 %v14742_v6 }
 0x3cd   :  { %v8795_v14 = vadd.f32 %v19178_v11, %v8794_v33  ;;  %v8927_v13 = vadd.f32 %v8926_v36, %v8864_v18  ;;  %v14006_v8 = vpop.f32.mrb[40].mxu0 }
 0x3ce   :  { %v19214_v7 = vadd.f32 %v14006_v8, %v18668_v58  ;;  %v8597_v48 = vpop.f32.mrb[41].mxu0  ;;  %9693 = vmatpush1.bf16.msra.mxu1 %v14740_v41 }
 0x3cf   :  { %v8928_v2 = vadd.f32 %v8927_v13, %v8865_v63  ;;  %v19222_v62 = vadd.f32 %v8597_v48, %v18674_v16  ;;  %v8796_v57 = vadd.f32 %v19190_v29, %v8795_v14  ;;  %v14007_v42 = vpop.f32.mrb[42].mxu0  ;;  %v14745_v16 = vld [vmem:[%s24046_s4 + $0x64] ss:$8 sps:$4 sm:$0xff]  }
 0x3d0   :  { %24554 = vst [vmem:[#allocation15_spill] sm:$0xff] %v19214_v7  ;;  %v19226_v36 = vadd.f32 %v14007_v42, %v18679_v50  ;;  %v8600_v58 = vpop.f32.mrb[43].mxu0  ;;  %v14743_v50 = vld [vmem:[%s24046_s4 + $0x60] ss:$8 sps:$4 sm:$0xff]   ;;  %9694 = vmatprep.subr.bf16.mxu1 %v14745_v16 }
 0x3d1   :  { %24555 = vst [vmem:[#allocation16_spill] sm:$0xff] %v19222_v62  ;;  %v8797_v33 = vadd.f32 %v19222_v62, %v8796_v57  ;;  %v8867_v18 = vmul.f32 %v19222_v62, %v19222_v62  ;;  %v8929_v8 = vadd.f32 %v8928_v2, %v8866_v20  ;;  %v19232_v63 = vadd.f32 %v8600_v58, %v18691_v49  ;;  %v14748_v2 = vld [vmem:[%s24046_s4 + $0x74] ss:$8 sps:$4 sm:$0xff]   ;;  %v24573_v62 = vld [vmem:[#allocation39_spill] sm:$0xff] }
 0x3d2   :  { %24556 = vst [vmem:[#allocation17_spill] sm:$0xff] %v19226_v36  ;;  %9695 = vmatpush1.bf16.msra.mxu1 %v14743_v50  ;;  %v8869_v49 = vmul.f32 %v19214_v7, %v19214_v7  ;;  %v8870_v57 = vmul.f32 %v19226_v36, %v19226_v36 }
 0x3d3   :  { %24557 = vst [vmem:[#allocation18_spill] sm:$0xff] %v19232_v63  ;;  %v8930_v14 = vadd.f32 %v8929_v8, %v8867_v18  ;;  %v8798_v13 = vadd.f32 %v19232_v63, %v8797_v33  ;;  %v8868_v6 = vmul.f32 %v19232_v63, %v19232_v63  ;;  %v14746_v33 = vld [vmem:[%s24046_s4 + $0x70] ss:$8 sps:$4 sm:$0xff]   ;;  %v24559_v8 = vld [vmem:[#allocation30_spill] sm:$0xff]  ;;  %9696 = vmatprep.subr.bf16.mxu1 %v14748_v2 }
 0x3d5   :  { %v8799_v48 = vadd.f32 %v19214_v7, %v8798_v13  ;;  %v8931_v41 = vadd.f32 %v8930_v14, %v8868_v6  ;;  %v14010_v20 = vpop.f32.mrb[44].mxu0  ;;  %v24060_v13 = vmov 0   ;;  %v24561_v6 = vld [vmem:[#allocation31_spill] sm:$0xff] }
 0x3d6   :  { %v19252_v42 = vadd.f32 %v14010_v20, %v18702_v61  ;;  %v8613_v58 = vpop.f32.mrb[45].mxu0  ;;  %9714 = vmatprep.mubr.bf16.mxu1 %v24060_v13  ;;  %9697 = vmatpush1.bf16.msra.mxu1 %v14746_v33 }
 0x3d7   :  { %v8932_v18 = vadd.f32 %v8931_v41, %v8869_v49  ;;  %v19258_v16 = vadd.f32 %v8613_v58, %v24559_v8  ;;  %v8800_v50 = vadd.f32 %v19226_v36, %v8799_v48  ;;  %v14011_v14 = vpop.f32.mrb[46].mxu0  ;;  %v24563_v58 = vld [vmem:[#allocation32_spill] sm:$0xff]  ;;  %v24565_v36 = vld [vmem:[#allocation33_spill] sm:$0xff] }
 0x3d8   :  { %24558 = vst [vmem:[#allocation19_spill] sm:$0xff] %v19252_v42  ;;  %v19263_v7 = vadd.f32 %v14011_v14, %v24561_v6  ;;  %v8616_v61 = vpop.f32.mrb[47].mxu0  ;;  %v8873_v14 = vmul.f32 %v19252_v42, %v19252_v42 }
 0x3d9   :  { %24560 = vst [vmem:[#allocation20_spill] sm:$0xff] %v19258_v16  ;;  %v8801_v20 = vadd.f32 %v19258_v16, %v8800_v50  ;;  %v8871_v49 = vmul.f32 %v19258_v16, %v19258_v16  ;;  %v8933_v41 = vadd.f32 %v8932_v18, %v8870_v57  ;;  %v19269_v8 = vadd.f32 %v8616_v61, %v24563_v58 }
 0x3da   :  { %24562 = vst [vmem:[#allocation21_spill] sm:$0xff] %v19263_v7  ;;  %v8874_v18 = vmul.f32 %v19263_v7, %v19263_v7 }
 0x3db   :  { %24564 = vst [vmem:[#allocation22_spill] sm:$0xff] %v19269_v8  ;;  %v8934_v48 = vadd.f32 %v8933_v41, %v8871_v49  ;;  %v8802_v2 = vadd.f32 %v19269_v8, %v8801_v20  ;;  %v8872_v13 = vmul.f32 %v19269_v8, %v19269_v8  ;;  %v24566_v49 = vld [vmem:[#allocation34_spill] sm:$0xff]  ;;  %v24567_v8 = vld [vmem:[#allocation35_spill] sm:$0xff] }
 0x3dd   :  { %v8803_v33 = vadd.f32 %v19252_v42, %v8802_v2  ;;  %v8935_v6 = vadd.f32 %v8934_v48, %v8872_v13  ;;  %v14014_v50 = vpop.f32.mrb[48].mxu0 }
 0x3de   :  { %v19278_v63 = vadd.f32 %v14014_v50, %v24565_v36  ;;  %v8629_v57 = vpop.f32.mrb[49].mxu0  ;;  %v24568_v50 = vld [vmem:[#allocation36_spill] sm:$0xff] }
 0x3df   :  { %v8936_v61 = vadd.f32 %v8935_v6, %v8873_v14  ;;  %v19283_v20 = vadd.f32 %v8629_v57, %v24566_v49  ;;  %v8804_v41 = vadd.f32 %v19263_v7, %v8803_v33  ;;  %v14015_v58 = vpop.f32.mrb[50].mxu0 }
 0x3e0   :  { %v19287_v16 = vadd.f32 %v14015_v58, %v24567_v8  ;;  %v8632_v2 = vpop.f32.mrb[51].mxu0  ;;  %v8877_v8 = vmul.f32 %v19278_v63, %v19278_v63  ;;  %v24569_v58 = vld [vmem:[#allocation37_spill] sm:$0xff] }
 0x3e1   :  { %v8805_v13 = vadd.f32 %v19283_v20, %v8804_v41  ;;  %v8875_v36 = vmul.f32 %v19283_v20, %v19283_v20  ;;  %v8937_v48 = vadd.f32 %v8936_v61, %v8874_v18  ;;  %v19293_v42 = vadd.f32 %v8632_v2, %v24568_v50 }
 0x3e2   :  { %v8878_v61 = vmul.f32 %v19287_v16, %v19287_v16 }
 0x3e3   :  { %v8938_v14 = vadd.f32 %v8937_v48, %v8875_v36  ;;  %v8806_v6 = vadd.f32 %v19293_v42, %v8805_v13  ;;  %v8876_v33 = vmul.f32 %v19293_v42, %v19293_v42  ;;  %v24571_v36 = vld [vmem:[#allocation38_spill] sm:$0xff] }
 0x3e5   :  { %v8807_v57 = vadd.f32 %v19278_v63, %v8806_v6  ;;  %v8939_v49 = vadd.f32 %v8938_v14, %v8876_v33  ;;  %v14018_v41 = vpop.f32.mrb[52].mxu0 }
 0x3e6   :  { %v19302_v7 = vadd.f32 %v14018_v41, %v24569_v58  ;;  %v8645_v18 = vpop.f32.mrb[53].mxu0  ;;  %v24575_v58 = vld [vmem:[#allocation40_spill] sm:$0xff] }
 0x3e7   :  { %v8940_v2 = vadd.f32 %v8939_v49, %v8877_v8  ;;  %v19307_v13 = vadd.f32 %v8645_v18, %v24571_v36  ;;  %v8808_v48 = vadd.f32 %v19287_v16, %v8807_v57  ;;  %v14019_v50 = vpop.f32.mrb[54].mxu0 }
 0x3e8   :  { %24570 = vst [vmem:[#allocation23_spill] sm:$0xff] %v19302_v7  ;;  %v19311_v29 = vadd.f32 %v14019_v50, %v24573_v62  ;;  %v8648_v6 = vpop.f32.mrb[55].mxu0  ;;  %v8881_v62 = vmul.f32 %v19302_v7, %v19302_v7 }
 0x3e9   :  { %24572 = vst [vmem:[#allocation24_spill] sm:$0xff] %v19307_v13  ;;  %v8809_v14 = vadd.f32 %v19307_v13, %v8808_v48  ;;  %v8879_v33 = vmul.f32 %v19307_v13, %v19307_v13  ;;  %v8941_v41 = vadd.f32 %v8940_v2, %v8878_v61  ;;  %v19317_v11 = vadd.f32 %v8648_v6, %v24575_v58 }
 0x3ea   :  { %24574 = vst [vmem:[#allocation25_spill] sm:$0xff] %v19311_v29  ;;  %v8882_v2 = vmul.f32 %v19311_v29, %v19311_v29 }
 0x3eb   :  { %24576 = vst [vmem:[#allocation26_spill] sm:$0xff] %v19317_v11  ;;  %v8942_v8 = vadd.f32 %v8941_v41, %v8879_v33  ;;  %v8810_v49 = vadd.f32 %v19317_v11, %v8809_v14  ;;  %v8880_v57 = vmul.f32 %v19317_v11, %v19317_v11 }
 0x3ed   :  { %v8811_v18 = vadd.f32 %v19302_v7, %v8810_v49  ;;  %v8943_v36 = vadd.f32 %v8942_v8, %v8880_v57  ;;  %v14022_v48 = vpop.f32.mrb[56].mxu0 }
 0x3ee   :  { %v19326_v50 = vadd.f32 %v14022_v48, %v18800_v17  ;;  %v8661_v61 = vpop.f32.mrb[57].mxu0  ;;  %v24580_v48 = vld [vmem:[#allocation41_spill] sm:$0xff] }
 0x3ef   :  { %v8944_v6 = vadd.f32 %v8943_v36, %v8881_v62  ;;  %v19331_v14 = vadd.f32 %v8661_v61, %v18806_v19  ;;  %v8812_v33 = vadd.f32 %v19311_v29, %v8811_v18  ;;  %v14023_v41 = vpop.f32.mrb[58].mxu0  ;;  %v24608_v29 = vld [vmem:[#allocation21_spill] sm:$0xff] }
 0x3f0   :  { %24577 = vst [vmem:[#allocation27_spill] sm:$0xff] %v19326_v50  ;;  %v19335_v58 = vadd.f32 %v14023_v41, %v18811_v4  ;;  %v8664_v49 = vpop.f32.mrb[59].mxu0  ;;  %v8885_v4 = vmul.f32 %v19326_v50, %v19326_v50 }
 0x3f1   :  { %24578 = vst [vmem:[#allocation28_spill] sm:$0xff] %v19331_v14  ;;  %v8813_v8 = vadd.f32 %v19331_v14, %v8812_v33  ;;  %v8883_v17 = vmul.f32 %v19331_v14, %v19331_v14  ;;  %v8945_v57 = vadd.f32 %v8944_v6, %v8882_v2  ;;  %v19341_v37 = vadd.f32 %v8664_v49, %v24580_v48  ;;  %v24607_v14 = vld [vmem:[#allocation19_spill] sm:$0xff] }
 0x3f2   :  { %24579 = vst [vmem:[#allocation29_spill] sm:$0xff] %v19335_v58  ;;  %v8886_v6 = vmul.f32 %v19335_v58, %v19335_v58 }
 0x3f3   :  { %24581 = vst [vmem:[#allocation30_spill] sm:$0xff] %v19341_v37  ;;  %v8946_v62 = vadd.f32 %v8945_v57, %v8883_v17  ;;  %v8814_v19 = vadd.f32 %v19341_v37, %v8813_v8  ;;  %v8884_v18 = vmul.f32 %v19341_v37, %v19341_v37 }
 0x3f5   :  { %v8815_v36 = vadd.f32 %v19326_v50, %v8814_v19  ;;  %v8947_v61 = vadd.f32 %v8946_v62, %v8884_v18  ;;  %v14026_v33 = vpop.f32.mrb[60].mxu0 }
 0x3f6   :  { %v19350_v41 = vadd.f32 %v14026_v33, %v18828_v9  ;;  %v8677_v2 = vpop.f32.mrb[61].mxu0 }
 0x3f7   :  { %v8948_v49 = vadd.f32 %v8947_v61, %v8885_v4  ;;  %v19355_v8 = vadd.f32 %v8677_v2, %v18834_v0  ;;  %v8816_v17 = vadd.f32 %v19335_v58, %v8815_v36  ;;  %v14027_v57 = vpop.f32.mrb[62].mxu0 }
 0x3f8   :  { %24582 = vst [vmem:[#allocation31_spill] sm:$0xff] %v19350_v41  ;;  %v19359_v48 = vadd.f32 %v14027_v57, %v18837_v39  ;;  %v8680_v19 = vpop.f32.mrb[63].mxu0  ;;  %v8889_v39 = vmul.f32 %v19350_v41, %v19350_v41 }
 0x3f9   :  { %24583 = vst [vmem:[#allocation32_spill] sm:$0xff] %v19355_v8  ;;  %v8817_v62 = vadd.f32 %v19355_v8, %v8816_v17  ;;  %v8887_v9 = vmul.f32 %v19355_v8, %v19355_v8  ;;  %v8949_v18 = vadd.f32 %v8948_v49, %v8886_v6  ;;  %v19365_v33 = vadd.f32 %v8680_v19, %v18847_v43 }
 0x3fa   :  { %24584 = vst [vmem:[#allocation33_spill] sm:$0xff] %v19359_v48  ;;  %v8890_v17 = vmul.f32 %v19359_v48, %v19359_v48 }
 0x3fb   :  { %v8950_v4 = vadd.f32 %v8949_v18, %v8887_v9  ;;  %v8818_v0 = vadd.f32 %v19365_v33, %v8817_v62  ;;  %v8888_v36 = vmul.f32 %v19365_v33, %v19365_v33 }
 0x3fd   :  { %v8819_v61 = vadd.f32 %v19350_v41, %v8818_v0  ;;  %v8951_v2 = vadd.f32 %v8950_v4, %v8888_v36  ;;  %v9032_v36 = vlaneseq }
 0x3ff   :  { %v8820_v6 = vadd.f32 %v19359_v48, %v8819_v61  ;;  %v8952_v49 = vadd.f32 %v8951_v2, %v8889_v39  ;;  %v24596_v61 = vld [vmem:[#allocation9_spill] sm:$0xff] }
 0x401   :  { %v8821_v43 = vrot.slane %v8820_v6, 4  ;;  %v8953_v57 = vadd.f32 %v8952_v49, %v8890_v17  ;;  %v19382_v17 = vshrl.u32 %v9032_v36, 7  ;;  %v24593_v36 = vld [vmem:[#allocation8_spill] sm:$0xff] }
 0x403   :  { %v8822_v19 = vadd.f32 %v8821_v43, %v8820_v6  ;;  %v8954_v9 = vrot.slane %v8953_v57, 4  ;;  %24585 = vst [vmem:[#allocation34_spill] sm:$0xff] %v19382_v17 }
 0x405   :  { %v8823_v62 = vrot.slane %v8822_v19, 2  ;;  %v8955_v18 = vadd.f32 %v8954_v9, %v8953_v57  ;;  %v24591_v9 = vld [vmem:[#allocation5_spill] sm:$0xff] }
 0x407   :  { %v8824_v44 = vadd.f32 %v8823_v62, %v8822_v19  ;;  %v8956_v54 = vrot.slane %v8955_v18, 2  ;;  %v24592_v19 = vld [vmem:[#allocation6_spill] sm:$0xff] }
 0x409   :  { %v8825_v12 = vrot.slane %v8824_v44, 1  ;;  %v8957_v25 = vadd.f32 %v8956_v54, %v8955_v18  ;;  %v19385_v54 = vsub.s32 0, %v19382_v17  ;;  %v24588_v18 = vld [vmem:[#allocation4_spill] sm:$0xff] }
 0x40a   :  { %v24597_v17 = vld [vmem:[#allocation12_spill] sm:$0xff] }
 0x40b   :  { %v8826_v3 = vadd.f32 %v8825_v12, %v8824_v44  ;;  %v8958_v40 = vrot.slane %v8957_v25, 1  ;;  %24586 = vst [vmem:[#allocation35_spill] sm:$0xff] %v19385_v54 }
 0x40d   :  { %v8959_v0 = vadd.f32 %v8958_v40, %v8957_v25  ;;  %v19376_v4 = vmul.f32 0.001953125, %v8826_v3  ;;  %v24595_v40 = vld [vmem:[#allocation7_spill] sm:$0xff] }
 0x40f   :  { %v8961_v41 = vmul.f32 0.001953125, %v8959_v0  ;;  %v8962_v39 = vmul.f32 %v19376_v4, %v19376_v4  ;;  %v24589_v0 = vld [vmem:[#allocation2_spill] sm:$0xff]  ;;  %v8995_v44 = vsub.f32 %v24591_v9, %v19376_v4  ;;  %v8996_v25 = vsub.f32 %v24592_v19, %v19376_v4  ;;  %v24599_v19 = vld [vmem:[#allocation11_spill] sm:$0xff] }
 0x410   :  { %v8997_v3 = vsub.f32 %v24593_v36, %v19376_v4  ;;  %v8999_v43 = vsub.f32 %v24595_v40, %v19376_v4  ;;  %v9000_v62 = vsub.f32 %v24596_v61, %v19376_v4  ;;  %v9001_v48 = vsub.f32 %v24597_v17, %v19376_v4  ;;  %v24598_v9 = vld [vmem:[#allocation14_spill] sm:$0xff]  ;;  %v24600_v36 = vld [vmem:[#allocation13_spill] sm:$0xff]  ;;  %v24603_v17 = vld [vmem:[#allocation15_spill] sm:$0xff] }
 0x411   :  { %v8963_v2 = vsub.f32 %v8961_v41, %v8962_v39  ;;  %v8993_v39 = vsub.f32 %v19114_v56, %v19376_v4  ;;  %v24594_v56 = vld [vmem:[#allocation10_spill] sm:$0xff]  ;;  %v9002_v57 = vsub.f32 %v24598_v9, %v19376_v4  ;;  %v9003_v8 = vsub.f32 %v24599_v19, %v19376_v4  ;;  %v24604_v9 = vld [vmem:[#allocation17_spill] sm:$0xff] }
 0x412   :  { %v8998_v12 = vsub.f32 %v24594_v56, %v19376_v4  ;;  %v9004_v58 = vsub.f32 %v24600_v36, %v19376_v4  ;;  %v24602_v61 = vld [vmem:[#allocation18_spill] sm:$0xff]  ;;  %v9007_v50 = vsub.f32 %v24603_v17, %v19376_v4  ;;  %v9008_v37 = vsub.f32 %v24604_v9, %v19376_v4  ;;  %v24605_v36 = vld [vmem:[#allocation20_spill] sm:$0xff] }
 0x413   :  { %v8964_v6 = vmax.f32 %v8963_v2, 0.0  ;;  %v8994_v2 = vsub.f32 %v19124_v32, %v19376_v4  ;;  %v9006_v56 = vsub.f32 %v24602_v61, %v19376_v4  ;;  %v19514_v19 = vld [vmem:[%s24048_s3] ss:$0 sm:$0xff]  ;;  %v9011_v61 = vsub.f32 %v24607_v14, %v19376_v4 }
 0x414   :  { %v9012_v17 = vsub.f32 %v24608_v29, %v19376_v4  ;;  %v24609_v9 = vsub.f32 %v19365_v33, %v19376_v4  ;;  %v24610_v11 = vsub.f32 %v18947_v34, %v19376_v4  ;;  %v24612_v29 = vsub.f32 %v18944_v45, %v19376_v4 }
 0x415   :  { %v9029_v49 = vadd.f32 1e-05, %v8964_v6  ;;  %v8756_v6 = vld [vmem:[%s24047_s2] sm:$0x1]  ;;  %v24613_v33 = vsub.f32 %v18950_v47, %v19376_v4 }
 0x417   :  { %14749 = vrsqrt.f32 %v9029_v49  ;;  %v24587_v49 = vld [vmem:[#allocation3_spill] sm:$0xff] }
 0x421   :  { %v14750_v41 = vpop.eup %14749 }
 0x422   :  { %v9031_v32 = vmul.f32 %v14750_v41, %v8756_v6  ;;  %v24601_v41 = vld [vmem:[#allocation16_spill] sm:$0xff] }
 0x423   :  { %v9005_v6 = vsub.f32 %v24601_v41, %v19376_v4  ;;  %v9009_v41 = vsub.f32 %v24605_v36, %v19376_v4  ;;  %v24611_v36 = vsub.f32 %v18953_v26, %v19376_v4 }
 0x424   :  { %v19503_v40 = vrot.slane %v9031_v32, %v19385_v54  ;;  %v24606_v32 = vld [vmem:[#allocation22_spill] sm:$0xff] }
 0x425   :  { %v9010_v54 = vsub.f32 %v24606_v32, %v19376_v4 }
 0x426   :  { %v9097_v7 = vmul.f32 %v19503_v40, %v24609_v9  ;;  %v19532_v13 = vmul.f32 %v19503_v40, %v24610_v11  ;;  %v19538_v32 = vmul.f32 %v19503_v40, %v24611_v36  ;;  %v19544_v14 = vmul.f32 %v19503_v40, %v24612_v29 }
 0x427   :  { %v19550_v34 = vmul.f32 %v19503_v40, %v24613_v33  ;;  %v24614_v11 = vsub.f32 %v18970_v22, %v19376_v4  ;;  %v24615_v9 = vsub.f32 %v18980_v30, %v19376_v4  ;;  %v24616_v36 = vsub.f32 %v18965_v38, %v19376_v4 }
 0x428   :  { %v19571_v29 = vadd.f32 %v19514_v19, %v9097_v7  ;;  %v24619_v22 = vsub.f32 %v18974_v24, %v19376_v4  ;;  %v24621_v30 = vsub.f32 %v18994_v51, %v19376_v4  ;;  %v24623_v38 = vsub.f32 %v19004_v53, %v19376_v4 }
 0x429   :  { %v19556_v26 = vmul.f32 %v19503_v40, %v24614_v11  ;;  %v19562_v45 = vmul.f32 %v19503_v40, %v24615_v9  ;;  %v19568_v47 = vmul.f32 %v19503_v40, %v24616_v36  ;;  %v24625_v7 = vsub.f32 %v18989_v59, %v19376_v4 }
 0x42a   :  { %24618 = vst [vmem:[#allocation37_spill] sm:$0xff] %v19571_v29  ;;  %v19577_v33 = vmul.f32 %v19503_v40, %v24619_v22  ;;  %v19583_v11 = vmul.f32 %v19503_v40, %v24621_v30  ;;  %v19589_v9 = vmul.f32 %v19503_v40, %v24623_v38  ;;  %v24627_v36 = vsub.f32 %v18998_v28, %v19376_v4 }
 0x42b   :  { %24617 = vst [vmem:[#allocation36_spill] sm:$0xff] %v19568_v47  ;;  %v19595_v24 = vmul.f32 %v19503_v40, %v24625_v7  ;;  %v24629_v22 = vsub.f32 %v19018_v15, %v19376_v4  ;;  %v24631_v30 = vsub.f32 %v19028_v31, %v19376_v4  ;;  %v24633_v38 = vsub.f32 %v19013_v46, %v19376_v4  ;;  %v24673_v47 = vld [vmem:[#allocation33_spill] sm:$0xff] }
 0x42c   :  { %24620 = vst [vmem:[#allocation38_spill] sm:$0xff] %v19577_v33  ;;  %24622 = vst [vmem:[#allocation39_spill] sm:$0xff] %v19583_v11  ;;  %v19601_v51 = vmul.f32 %v19503_v40, %v24627_v36  ;;  %v24635_v7 = vsub.f32 %v19022_v35, %v19376_v4  ;;  %v24637_v36 = vsub.f32 %v19042_v1, %v19376_v4  ;;  %v24669_v11 = vld [vmem:[#allocation32_spill] sm:$0xff]  ;;  %v24671_v33 = vld [vmem:[#allocation31_spill] sm:$0xff] }
 0x42d   :  { %24624 = vst [vmem:[#allocation40_spill] sm:$0xff] %v19589_v9  ;;  %24626 = vst [vmem:[#allocation41_spill] sm:$0xff] %v19595_v24  ;;  %v19607_v53 = vmul.f32 %v19503_v40, %v24629_v22  ;;  %v19613_v59 = vmul.f32 %v19503_v40, %v24631_v30  ;;  %v19619_v28 = vmul.f32 %v19503_v40, %v24633_v38  ;;  %v24665_v24 = vld [vmem:[#allocation27_spill] sm:$0xff]  ;;  %v24667_v9 = vld [vmem:[#allocation29_spill] sm:$0xff] }
 0x42e   :  { %24628 = vst [vmem:[#allocation3_spill] sm:$0xff] %v19601_v51  ;;  %v19625_v15 = vmul.f32 %v19503_v40, %v24635_v7  ;;  %v9052_v31 = vmul.f32 %v19503_v40, %v24637_v36  ;;  %v24638_v22 = vsub.f32 %v19052_v52, %v19376_v4  ;;  %v24639_v46 = vsub.f32 %v19037_v21, %v19376_v4  ;;  %v24663_v51 = vld [vmem:[#allocation30_spill] sm:$0xff] }
 0x42f   :  { %24630 = vst [vmem:[#allocation4_spill] sm:$0xff] %v19607_v53  ;;  %24632 = vst [vmem:[#allocation2_spill] sm:$0xff] %v19613_v59  ;;  %v24640_v35 = vsub.f32 %v19046_v27, %v19376_v4  ;;  %v24641_v1 = vsub.f32 %v19066_v5, %v19376_v4  ;;  %v24642_v52 = vsub.f32 %v19076_v23, %v19376_v4  ;;  %v24659_v59 = vld [vmem:[#allocation25_spill] sm:$0xff]  ;;  %v24661_v53 = vld [vmem:[#allocation28_spill] sm:$0xff] }
 0x430   :  { %24634 = vst [vmem:[#allocation5_spill] sm:$0xff] %v19619_v28  ;;  %24636 = vst [vmem:[#allocation6_spill] sm:$0xff] %v19625_v15  ;;  %v9053_v30 = vmul.f32 %v19503_v40, %v24638_v22  ;;  %v9054_v38 = vmul.f32 %v19503_v40, %v24639_v46  ;;  %v24643_v21 = vsub.f32 %v19061_v10, %v19376_v4  ;;  %v24657_v28 = vld [vmem:[#allocation23_spill] sm:$0xff] }
 0x431   :  { %v9055_v7 = vmul.f32 %v19503_v40, %v24640_v35  ;;  %v9056_v36 = vmul.f32 %v19503_v40, %v24641_v1  ;;  %v9057_v22 = vmul.f32 %v19503_v40, %v24642_v52  ;;  %v24644_v27 = vsub.f32 %v19070_v55, %v19376_v4 }
 0x432   :  { %v9058_v46 = vmul.f32 %v19503_v40, %v24643_v21  ;;  %v24645_v5 = vsub.f32 %v24587_v49, %v19376_v4  ;;  %v24646_v23 = vsub.f32 %v24588_v18, %v19376_v4  ;;  %v24647_v10 = vsub.f32 %v24589_v0, %v19376_v4 }
 0x433   :  { %v9059_v35 = vmul.f32 %v19503_v40, %v24644_v27  ;;  %v24648_v55 = vsub.f32 %v19094_v60, %v19376_v4  ;;  %v9064_v29 = vmul.f32 %v19503_v40, %v8993_v39  ;;  %v9065_v49 = vmul.f32 %v19503_v40, %v8994_v2 }
 0x434   :  { %v9060_v1 = vmul.f32 %v19503_v40, %v24645_v5  ;;  %v9061_v52 = vmul.f32 %v19503_v40, %v24646_v23  ;;  %v9062_v21 = vmul.f32 %v19503_v40, %v24647_v10  ;;  %v9066_v5 = vmul.f32 %v19503_v40, %v8995_v44 }
 0x435   :  { %v9063_v27 = vmul.f32 %v19503_v40, %v24648_v55  ;;  %v9067_v18 = vmul.f32 %v19503_v40, %v8996_v25  ;;  %v9068_v23 = vmul.f32 %v19503_v40, %v8997_v3  ;;  %v9069_v15 = vmul.f32 %v19503_v40, %v8998_v12 }
 0x436   :  { %v9070_v0 = vmul.f32 %v19503_v40, %v8999_v43  ;;  %v9071_v10 = vmul.f32 %v19503_v40, %v9000_v62  ;;  %v9072_v60 = vmul.f32 %v19503_v40, %v9001_v48  ;;  %v9073_v55 = vmul.f32 %v19503_v40, %v9002_v57 }
 0x437   :  { %v9074_v39 = vmul.f32 %v19503_v40, %v9003_v8  ;;  %v9075_v2 = vmul.f32 %v19503_v40, %v9004_v58  ;;  %v9076_v44 = vmul.f32 %v19503_v40, %v9005_v6  ;;  %v9077_v25 = vmul.f32 %v19503_v40, %v9006_v56 }
 0x438   :  { %v9078_v3 = vmul.f32 %v19503_v40, %v9007_v50  ;;  %v9079_v12 = vmul.f32 %v19503_v40, %v9008_v37  ;;  %v9080_v43 = vmul.f32 %v19503_v40, %v9009_v41  ;;  %v9081_v62 = vmul.f32 %v19503_v40, %v9010_v54 }
 0x439   :  { %v9082_v48 = vmul.f32 %v19503_v40, %v9011_v61  ;;  %v9083_v57 = vmul.f32 %v19503_v40, %v9012_v17  ;;  %v24649_v8 = vsub.f32 %v19283_v20, %v19376_v4  ;;  %v24650_v6 = vsub.f32 %v19293_v42, %v19376_v4  ;;  %v24653_v61 = vld [vmem:[#allocation24_spill] sm:$0xff] }
 0x43a   :  { %v24651_v37 = vsub.f32 %v19278_v63, %v19376_v4  ;;  %v24652_v54 = vsub.f32 %v19287_v16, %v19376_v4  ;;  %v24654_v20 = vsub.f32 %v24653_v61, %v19376_v4  ;;  %v24658_v63 = vsub.f32 %v24657_v28, %v19376_v4 }
 0x43b   :  { %v9084_v58 = vmul.f32 %v19503_v40, %v24649_v8  ;;  %v9085_v50 = vmul.f32 %v19503_v40, %v24650_v6  ;;  %v24655_v8 = vld [vmem:[#allocation26_spill] sm:$0xff]  ;;  %v24660_v16 = vsub.f32 %v24659_v59, %v19376_v4  ;;  %v24662_v61 = vsub.f32 %v24661_v53, %v19376_v4 }
 0x43c   :  { %v9086_v56 = vmul.f32 %v19503_v40, %v24651_v37  ;;  %v9087_v41 = vmul.f32 %v19503_v40, %v24652_v54  ;;  %v9088_v17 = vmul.f32 %v19503_v40, %v24654_v20  ;;  %v24656_v42 = vsub.f32 %v24655_v8, %v19376_v4 }
 0x43d   :  { %v9090_v37 = vmul.f32 %v19503_v40, %v24658_v63  ;;  %v9091_v54 = vmul.f32 %v19503_v40, %v24660_v16  ;;  %v9092_v20 = vmul.f32 %v19503_v40, %v24662_v61  ;;  %v24664_v8 = vsub.f32 %v24663_v51, %v19376_v4 }
 0x43e   :  { %v9089_v6 = vmul.f32 %v19503_v40, %v24656_v42  ;;  %v24666_v28 = vsub.f32 %v24665_v24, %v19376_v4  ;;  %v24668_v59 = vsub.f32 %v24667_v9, %v19376_v4  ;;  %v24670_v53 = vsub.f32 %v24669_v11, %v19376_v4 }
 0x43f   :  { %v9093_v42 = vmul.f32 %v19503_v40, %v24664_v8  ;;  %v24672_v51 = vsub.f32 %v24671_v33, %v19376_v4  ;;  %v24674_v24 = vsub.f32 %v24673_v47, %v19376_v4  ;;  %v19757_v9 = vadd.f32 %v19514_v19, %v19532_v13 }
 0x440   :  { %v9094_v63 = vmul.f32 %v19503_v40, %v24666_v28  ;;  %v9095_v16 = vmul.f32 %v19503_v40, %v24668_v59  ;;  %v9096_v61 = vmul.f32 %v19503_v40, %v24670_v53  ;;  %v19761_v59 = vadd.f32 %v19514_v19, %v19538_v32 }
 0x441   :  { %v9098_v8 = vmul.f32 %v19503_v40, %v24672_v51  ;;  %v9099_v28 = vmul.f32 %v19503_v40, %v24674_v24  ;;  %v19765_v11 = vadd.f32 %v19514_v19, %v19544_v14  ;;  %v19769_v33 = vadd.f32 %v19514_v19, %v19550_v34  ;;  %v24693_v51 = vld [vmem:[#allocation38_spill] sm:$0xff] }
 0x442   :  { %v19773_v4 = vadd.f32 %v19514_v19, %v19556_v26  ;;  %v19777_v13 = vadd.f32 %v19514_v19, %v19562_v45  ;;  %v19780_v40 = vadd.f32 %v19514_v19, %v9052_v31  ;;  %v19783_v32 = vadd.f32 %v19514_v19, %v9053_v30 }
 0x443   :  { %v19786_v14 = vadd.f32 %v19514_v19, %v9054_v38  ;;  %v19789_v34 = vadd.f32 %v19514_v19, %v9055_v7  ;;  %v19792_v47 = vadd.f32 %v19514_v19, %v9056_v36  ;;  %v19795_v26 = vadd.f32 %v19514_v19, %v9057_v22 }
 0x444   :  { %v19798_v45 = vadd.f32 %v19514_v19, %v9058_v46  ;;  %v19801_v31 = vadd.f32 %v19514_v19, %v9059_v35  ;;  %v19804_v30 = vadd.f32 %v19514_v19, %v9060_v1  ;;  %v19807_v38 = vadd.f32 %v19514_v19, %v9061_v52 }
 0x445   :  { %v19810_v7 = vadd.f32 %v19514_v19, %v9062_v21  ;;  %v19813_v36 = vadd.f32 %v19514_v19, %v9063_v27  ;;  %v19816_v22 = vadd.f32 %v19514_v19, %v9064_v29  ;;  %v19819_v46 = vadd.f32 %v19514_v19, %v9065_v49 }
 0x446   :  { %v19822_v35 = vadd.f32 %v19514_v19, %v9066_v5  ;;  %v19825_v1 = vadd.f32 %v19514_v19, %v9067_v18  ;;  %v19828_v52 = vadd.f32 %v19514_v19, %v9068_v23  ;;  %v19831_v21 = vadd.f32 %v19514_v19, %v9069_v15 }
 0x447   :  { %v19834_v27 = vadd.f32 %v19514_v19, %v9070_v0  ;;  %v19837_v29 = vadd.f32 %v19514_v19, %v9071_v10  ;;  %v19840_v49 = vadd.f32 %v19514_v19, %v9072_v60  ;;  %v19843_v5 = vadd.f32 %v19514_v19, %v9073_v55 }
 0x448   :  { %v19846_v18 = vadd.f32 %v19514_v19, %v9074_v39  ;;  %v19849_v23 = vadd.f32 %v19514_v19, %v9075_v2  ;;  %v19852_v15 = vadd.f32 %v19514_v19, %v9076_v44  ;;  %v19855_v0 = vadd.f32 %v19514_v19, %v9077_v25 }
 0x449   :  { %v19858_v10 = vadd.f32 %v19514_v19, %v9078_v3  ;;  %v19861_v60 = vadd.f32 %v19514_v19, %v9079_v12  ;;  %v19864_v55 = vadd.f32 %v19514_v19, %v9080_v43  ;;  %v19867_v39 = vadd.f32 %v19514_v19, %v9081_v62 }
 0x44a   :  { %v19870_v2 = vadd.f32 %v19514_v19, %v9082_v48  ;;  %v19873_v44 = vadd.f32 %v19514_v19, %v9083_v57  ;;  %v19876_v25 = vadd.f32 %v19514_v19, %v9084_v58  ;;  %v19879_v3 = vadd.f32 %v19514_v19, %v9085_v50 }
 0x44b   :  { %v19882_v12 = vadd.f32 %v19514_v19, %v9086_v56  ;;  %v19885_v43 = vadd.f32 %v19514_v19, %v9087_v41  ;;  %v19888_v62 = vadd.f32 %v19514_v19, %v9088_v17  ;;  %v19891_v48 = vadd.f32 %v19514_v19, %v9089_v6 }
 0x44c   :  { %24675 = vst [vmem:[#allocation8_spill] sm:$0xff] %v19870_v2  ;;  %24676 = vst [vmem:[#allocation10_spill] sm:$0xff] %v19873_v44  ;;  %v19894_v57 = vadd.f32 %v19514_v19, %v9090_v37  ;;  %v19897_v58 = vadd.f32 %v19514_v19, %v9091_v54  ;;  %v19900_v50 = vadd.f32 %v19514_v19, %v9092_v20  ;;  %v24692_v20 = vld [vmem:[#allocation36_spill] sm:$0xff]  ;;  %vm9170_vm6 = vcmp.gt.f32.partialorder %v19757_v9, 0.0 }
 0x44d   :  { %24677 = vst [vmem:[#allocation7_spill] sm:$0xff] %v19876_v25  ;;  %24678 = vst [vmem:[#allocation9_spill] sm:$0xff] %v19879_v3  ;;  %v19903_v56 = vadd.f32 %v19514_v19, %v9093_v42  ;;  %v19906_v41 = vadd.f32 %v19514_v19, %v9094_v63  ;;  %v19909_v17 = vadd.f32 %v19514_v19, %v9095_v16  ;;  %v9234_v42 = vmin.f32 %v19757_v9, 0.0 }
 0x44e   :  { %24679 = vst [vmem:[#allocation12_spill] sm:$0xff] %v19882_v12  ;;  %24680 = vst [vmem:[#allocation14_spill] sm:$0xff] %v19885_v43  ;;  %v19912_v6 = vadd.f32 %v19514_v19, %v9096_v61  ;;  %v19915_v37 = vadd.f32 %v19514_v19, %v9098_v8  ;;  %v19918_v54 = vadd.f32 %v19514_v19, %v9099_v28  ;;  %v9235_v63 = vmin.f32 %v19761_v59, 0.0  ;;  %v24694_v61 = vld [vmem:[#allocation39_spill] sm:$0xff]  ;;  %v24700_v43 = vld [vmem:[#allocation5_spill] sm:$0xff] }
 0x44f   :  { %24681 = vst [vmem:[#allocation11_spill] sm:$0xff] %v19888_v62  ;;  %24682 = vst [vmem:[#allocation13_spill] sm:$0xff] %v19891_v48  ;;  %v19922_v53 = vadd.f32 %v19514_v19, %v24692_v20  ;;  %v19928_v16 = vadd.f32 %v19514_v19, %v24693_v51  ;;  %v19932_v24 = vadd.f32 %v19514_v19, %v24694_v61  ;;  %v9236_v8 = vmin.f32 %v19765_v11, 0.0  ;;  %v24698_v48 = vld [vmem:[#allocation4_spill] sm:$0xff] }
 0x450   :  { %24683 = vst [vmem:[#allocation16_spill] sm:$0xff] %v19894_v57  ;;  %24684 = vst [vmem:[#allocation18_spill] sm:$0xff] %v19897_v58  ;;  %v9237_v28 = vmin.f32 %v19769_v33, 0.0  ;;  %v9239_v61 = vmin.f32 %v19777_v13, 0.0  ;;  %v24697_v58 = vld [vmem:[#allocation3_spill] sm:$0xff]  ;;  %vm9171_vm7 = vcmp.gt.f32.partialorder %v19761_v59, 0.0 }
 0x451   :  { %24685 = vst [vmem:[#allocation15_spill] sm:$0xff] %v19900_v50  ;;  %24686 = vst [vmem:[#allocation17_spill] sm:$0xff] %v19903_v56  ;;  %v9302_v51 = vmul.f32 1.442695, %v9236_v8  ;;  %v9238_v50 = vmin.f32 %v19773_v4, 0.0  ;;  %v19948_v57 = vadd.f32 %v19514_v19, %v24697_v58  ;;  %v9241_v8 = vmin.f32 %v19928_v16, 0.0 }
 0x452   :  { %24687 = vst [vmem:[#allocation20_spill] sm:$0xff] %v19906_v41  ;;  %24688 = vst [vmem:[#allocation22_spill] sm:$0xff] %v19909_v17  ;;  %v9298_v17 = vmul.f32 1.442695, %v9234_v42  ;;  %v9300_v41 = vmul.f32 1.442695, %v9235_v63  ;;  %v19962_v58 = vadd.f32 %v19514_v19, %v24700_v43 }
 0x453   :  { %24689 = vst [vmem:[#allocation19_spill] sm:$0xff] %v19912_v6  ;;  %24690 = vst [vmem:[#allocation21_spill] sm:$0xff] %v19915_v37  ;;  %v24696_v37 = vld [vmem:[#allocation41_spill] sm:$0xff]  ;;  %v9304_v56 = vmul.f32 1.442695, %v9237_v28  ;;  %v24699_v28 = vld [vmem:[#allocation2_spill] sm:$0xff] }
 0x454   :  { %24691 = vst [vmem:[#allocation24_spill] sm:$0xff] %v19918_v54  ;;  %v24695_v54 = vld [vmem:[#allocation40_spill] sm:$0xff]  ;;  %v19942_v6 = vadd.f32 %v19514_v19, %v24696_v37  ;;  %14751 = vpow2.f32 %v9298_v17  ;;  %v9240_v37 = vmin.f32 %v19922_v53, 0.0  ;;  %v9306_v42 = vmul.f32 1.442695, %v9238_v50  ;;  %v24701_v50 = vld [vmem:[#allocation6_spill] sm:$0xff] }
 0x455   :  { %v19938_v20 = vadd.f32 %v19514_v19, %v24695_v54  ;;  %v19952_v54 = vadd.f32 %v19514_v19, %v24698_v48  ;;  %14753 = vpow2.f32 %v9300_v41  ;;  %v9308_v63 = vmul.f32 1.442695, %v9239_v61 }
 0x456   :  { %v19958_v62 = vadd.f32 %v19514_v19, %v24699_v28  ;;  %14755 = vpow2.f32 %v9302_v51  ;;  %v9310_v12 = vmul.f32 1.442695, %v9240_v37  ;;  %v9312_v48 = vmul.f32 1.442695, %v9241_v8 }
 0x457   :  { %14757 = vpow2.f32 %v9304_v56  ;;  %v9242_v17 = vmin.f32 %v19932_v24, 0.0  ;;  %v9243_v41 = vmin.f32 %v19938_v20, 0.0  ;;  %v19968_v61 = vadd.f32 %v19514_v19, %v24701_v50 }
 0x458   :  { %14759 = vpow2.f32 %v9306_v42  ;;  %v9244_v28 = vmin.f32 %v19942_v6, 0.0  ;;  %v9245_v51 = vmin.f32 %v19948_v57, 0.0  ;;  %vm9172_vm8 = vcmp.gt.f32.partialorder %v19765_v11, 0.0 }
 0x459   :  { %14761 = vpow2.f32 %v9308_v63  ;;  %v9314_v43 = vmul.f32 1.442695, %v9242_v17  ;;  %v9316_v3 = vmul.f32 1.442695, %v9243_v41  ;;  %v9246_v19 = vmin.f32 %v19952_v54, 0.0 }
 0x45a   :  { %14763 = vpow2.f32 %v9310_v12  ;;  %v9318_v56 = vmul.f32 1.442695, %v9244_v28  ;;  %v9320_v37 = vmul.f32 1.442695, %v9245_v51  ;;  %v9247_v8 = vmin.f32 %v19958_v62, 0.0 }
 0x45b   :  { %14765 = vpow2.f32 %v9312_v48  ;;  %vm9173_vm9 = vcmp.gt.f32.partialorder %v19769_v33, 0.0  ;;  %vm9174_vm10 = vcmp.gt.f32.partialorder %v19773_v4, 0.0  ;;  %v9248_v42 = vmin.f32 %v19962_v58, 0.0 }
 0x45c   :  { %14767 = vpow2.f32 %v9314_v43  ;;  %v9322_v63 = vmul.f32 1.442695, %v9246_v19  ;;  %v9324_v17 = vmul.f32 1.442695, %v9247_v8  ;;  %v9249_v41 = vmin.f32 %v19968_v61, 0.0 }
 0x45d   :  { %14769 = vpow2.f32 %v9316_v3  ;;  %vm9175_vm11 = vcmp.gt.f32.partialorder %v19777_v13, 0.0  ;;  %vm9176_vm12 = vcmp.gt.f32.partialorder %v19922_v53, 0.0  ;;  %v9326_v48 = vmul.f32 1.442695, %v9248_v42 }
 0x45e   :  { %v14752_v12 = vpop.eup %14751  ;;  %14771 = vpow2.f32 %v9318_v56  ;;  %vm9177_vm13 = vcmp.gt.f32.partialorder %v19928_v16, 0.0  ;;  %v9328_v43 = vmul.f32 1.442695, %v9249_v41  ;;  %v9250_v51 = vmin.f32 %v19780_v40, 0.0 }
 0x45f   :  { %v14754_v50 = vpop.eup %14753  ;;  %v12740_v28 = vadd.f32 -1.0, %v14752_v12  ;;  %14773 = vpow2.f32 %v9320_v37  ;;  %vm9178_vm14 = vcmp.gt.f32.partialorder %v19932_v24, 0.0  ;;  %v9251_v8 = vmin.f32 %v19783_v32, 0.0 }
 0x460   :  { %v14756_v3 = vpop.eup %14755  ;;  %v12741_v19 = vadd.f32 -1.0, %v14754_v50  ;;  %14775 = vpow2.f32 %v9322_v63  ;;  %vm9179_vm15 = vcmp.gt.f32.partialorder %v19938_v20, 0.0  ;;  %v9330_v37 = vmul.f32 1.442695, %v9250_v51 }
 0x461   :  { %v14758_v25 = vpop.eup %14757  ;;  %v9490_v56 = vsel %vm9170_vm6, %v19757_v9, %v12740_v28  ;;  %v12742_v42 = vadd.f32 -1.0, %v14756_v3  ;;  %14777 = vpow2.f32 %v9324_v17  ;;  %vm9180_vm0 = vcmp.gt.f32.partialorder %v19942_v6, 0.0 }
 0x462   :  { %v14760_v41 = vpop.eup %14759  ;;  %v9491_v12 = vsel %vm9171_vm7, %v19761_v59, %v12741_v19  ;;  %v12743_v50 = vadd.f32 -1.0, %v14758_v25  ;;  %14779 = vpow2.f32 %v9326_v48  ;;  %v9332_v63 = vmul.f32 1.442695, %v9251_v8 }
 0x463   :  { %v14762_v44 = vpop.eup %14761  ;;  %v9554_v2 = vpack.c.bf16 %v9491_v12, %v9490_v56  ;;  %v9492_v9 = vsel %vm9172_vm8, %v19765_v11, %v12742_v42  ;;  %v12744_v28 = vadd.f32 -1.0, %v14760_v41  ;;  %vm9181_vm1 = vcmp.gt.f32.partialorder %v19948_v57, 0.0 }
 0x464   :  { %14781 = vpow2.f32 %v9328_v43  ;;  %v14764_v17 = vpop.eup %14763  ;;  %v9493_v59 = vsel %vm9173_vm9, %v19769_v33, %v12743_v50  ;;  %v12745_v25 = vadd.f32 -1.0, %v14762_v44  ;;  %vm9182_vm2 = vcmp.gt.f32.partialorder %v19952_v54, 0.0 }
 0x465   :  { %14783 = vpow2.f32 %v9330_v37  ;;  %v14766_v48 = vpop.eup %14765  ;;  %9715 = vmatmul.mubr.bf16.vlgmr.msra.gmra.mrb[64].mxu1 %v9554_v2  ;;  %v9555_v51 = vpack.c.bf16 %v9493_v59, %v9492_v9  ;;  %v20006_v11 = vsel %vm9174_vm10, %v19773_v4, %v12744_v28  ;;  %v12746_v3 = vadd.f32 -1.0, %v14764_v17 }
 0x466   :  { %14785 = vpow2.f32 %v9332_v63  ;;  %v14768_v43 = vpop.eup %14767  ;;  %v24702_v19 = vmov 0   ;;  %v20012_v33 = vsel %vm9175_vm11, %v19777_v13, %v12745_v25  ;;  %v12747_v44 = vadd.f32 -1.0, %v14766_v48 }
 0x467   :  { %9724 = vmatprep.mubr.bf16.mxu1 %v24702_v19  ;;  %v9252_v8 = vmin.f32 %v19786_v14, 0.0  ;;  %v9253_v2 = vmin.f32 %v19789_v34, 0.0  ;;  %v14770_v56 = vpop.eup %14769  ;;  %v9556_v4 = vpack.c.bf16 %v20012_v33, %v20006_v11  ;;  %v20021_v42 = vsel %vm9176_vm12, %v19922_v53, %v12746_v3 }
 0x468   :  { %v12748_v37 = vadd.f32 -1.0, %v14768_v43  ;;  %vm9183_vm3 = vcmp.gt.f32.partialorder %v19958_v62, 0.0  ;;  %v14772_v41 = vpop.eup %14771  ;;  %v20027_v13 = vsel %vm9177_vm13, %v19928_v16, %v12747_v44  ;;  %v12749_v12 = vadd.f32 -1.0, %v14770_v56 }
 0x469   :  { %v9334_v50 = vmul.f32 1.442695, %v9252_v8  ;;  %v9336_v63 = vmul.f32 1.442695, %v9253_v2  ;;  %v14774_v9 = vpop.eup %14773  ;;  %v9557_v28 = vpack.c.bf16 %v20027_v13, %v20021_v42  ;;  %v12750_v17 = vadd.f32 -1.0, %v14772_v41 }
 0x46a   :  { %v20034_v53 = vsel %vm9178_vm14, %v19932_v24, %v12748_v37  ;;  %vm9184_vm4 = vcmp.gt.f32.partialorder %v19962_v58, 0.0  ;;  %v14776_v59 = vpop.eup %14775  ;;  %v20040_v16 = vsel %vm9179_vm15, %v19938_v20, %v12749_v12  ;;  %v12751_v25 = vadd.f32 -1.0, %v14774_v9 }
 0x46b   :  { %14787 = vpow2.f32 %v9334_v50  ;;  %v9254_v48 = vmin.f32 %v19792_v47, 0.0  ;;  %v14778_v3 = vpop.eup %14777  ;;  %v9558_v43 = vpack.c.bf16 %v20040_v16, %v20034_v53  ;;  %v20048_v24 = vsel %vm9180_vm0, %v19942_v6, %v12750_v17 }
 0x46c   :  { %v12752_v44 = vadd.f32 -1.0, %v14776_v59  ;;  %14789 = vpow2.f32 %v9336_v63  ;;  %v14780_v8 = vpop.eup %14779  ;;  %v20053_v20 = vsel %vm9181_vm1, %v19948_v57, %v12751_v25  ;;  %v12753_v2 = vadd.f32 -1.0, %v14778_v3 }
 0x46d   :  { %v9255_v56 = vmin.f32 %v19795_v26, 0.0  ;;  %v9338_v37 = vmul.f32 1.442695, %v9254_v48  ;;  %9725 = vmatmul.mubr.bf16.gmra.mrb[68].mxu1 %v9555_v51  ;;  %v9559_v12 = vpack.c.bf16 %v20053_v20, %v20048_v24  ;;  %vm9185_vm5 = vcmp.gt.f32.partialorder %v19968_v61, 0.0 }
 0x46e   :  { %v14782_v41 = vpop.eup %14781  ;;  %v20061_v6 = vsel %vm9182_vm2, %v19952_v54, %v12752_v44  ;;  %v12754_v50 = vadd.f32 -1.0, %v14780_v8  ;;  %9734 = vmatprep.mubr.bf16.mxu1 %v24702_v19  ;;  %v20068_v57 = vsel %vm9183_vm3, %v19958_v62, %v12753_v2  ;;  %vm9186_vm6 = vcmp.gt.f32.partialorder %v19780_v40, 0.0 }
 0x46f   :  { %v14784_v63 = vpop.eup %14783  ;;  %v12755_v51 = vadd.f32 -1.0, %v14782_v41  ;;  %14791 = vpow2.f32 %v9338_v37  ;;  %v9340_v9 = vmul.f32 1.442695, %v9255_v56  ;;  %v9560_v59 = vpack.c.bf16 %v20068_v57, %v20061_v6 }
 0x470   :  { %v14786_v17 = vpop.eup %14785  ;;  %v20075_v54 = vsel %vm9184_vm4, %v19962_v58, %v12754_v50  ;;  %v12756_v25 = vadd.f32 -1.0, %v14784_v63  ;;  %v9256_v3 = vmin.f32 %v19798_v45, 0.0  ;;  %vm9187_vm7 = vcmp.gt.f32.partialorder %v19783_v32, 0.0 }
 0x471   :  { %v20079_v48 = vsel %vm9185_vm5, %v19968_v61, %v12755_v51  ;;  %v12757_v62 = vadd.f32 -1.0, %v14786_v17  ;;  %14793 = vpow2.f32 %v9340_v9  ;;  %v9257_v58 = vmin.f32 %v19801_v31, 0.0 }
 0x472   :  { %v9561_v44 = vpack.c.bf16 %v20079_v48, %v20075_v54  ;;  %v20086_v8 = vsel %vm9186_vm6, %v19780_v40, %v12756_v25  ;;  %v9342_v56 = vmul.f32 1.442695, %v9256_v3  ;;  %v9258_v61 = vmin.f32 %v19804_v30, 0.0 }
 0x473   :  { %v20090_v2 = vsel %vm9187_vm7, %v19783_v32, %v12757_v62  ;;  %v9344_v41 = vmul.f32 1.442695, %v9257_v58  ;;  %v9259_v50 = vmin.f32 %v19807_v38, 0.0  ;;  %vm9188_vm8 = vcmp.gt.f32.partialorder %v19786_v14, 0.0 }
 0x474   :  { %v9562_v37 = vpack.c.bf16 %v20090_v2, %v20086_v8  ;;  %14795 = vpow2.f32 %v9342_v56  ;;  %v9346_v40 = vmul.f32 1.442695, %v9258_v61  ;;  %v9260_v51 = vmin.f32 %v19810_v7, 0.0 }
 0x475   :  { %v14788_v63 = vpop.eup %14787  ;;  %9735 = vmatmul.mubr.bf16.gmra.mrb[72].mxu1 %v9556_v4  ;;  %14797 = vpow2.f32 %v9344_v41  ;;  %v9348_v17 = vmul.f32 1.442695, %v9259_v50  ;;  %v9261_v25 = vmin.f32 %v19813_v36, 0.0  ;;  %vm9189_vm9 = vcmp.gt.f32.partialorder %v19789_v34, 0.0 }
 0x476   :  { %v14790_v9 = vpop.eup %14789  ;;  %v12758_v32 = vadd.f32 -1.0, %v14788_v63  ;;  %9744 = vmatprep.mubr.bf16.mxu1 %v24702_v19  ;;  %14799 = vpow2.f32 %v9346_v40  ;;  %v9350_v3 = vmul.f32 1.442695, %v9260_v51  ;;  %vm9190_vm10 = vcmp.gt.f32.partialorder %v19792_v47, 0.0 }
 0x477   :  { %v12759_v62 = vadd.f32 -1.0, %v14790_v9  ;;  %14801 = vpow2.f32 %v9348_v17  ;;  %v9352_v11 = vmul.f32 1.442695, %v9261_v25  ;;  %v9262_v56 = vmin.f32 %v19816_v22, 0.0 }
 0x478   :  { %v20105_v58 = vsel %vm9188_vm8, %v19786_v14, %v12758_v32  ;;  %14803 = vpow2.f32 %v9350_v3  ;;  %v9263_v61 = vmin.f32 %v19819_v46, 0.0  ;;  %vm9191_vm11 = vcmp.gt.f32.partialorder %v19795_v26, 0.0 }
 0x479   :  { %v14792_v33 = vpop.eup %14791  ;;  %v20109_v4 = vsel %vm9189_vm9, %v19789_v34, %v12759_v62  ;;  %14805 = vpow2.f32 %v9352_v11  ;;  %vm9192_vm12 = vcmp.gt.f32.partialorder %v19798_v45, 0.0  ;;  %v9354_v63 = vmul.f32 1.442695, %v9262_v56 }
 0x47a   :  { %v9563_v41 = vpack.c.bf16 %v20109_v4, %v20105_v58  ;;  %v12760_v14 = vadd.f32 -1.0, %v14792_v33  ;;  %v9356_v40 = vmul.f32 1.442695, %v9263_v61  ;;  %v9264_v34 = vmin.f32 %v19822_v35, 0.0 }
 0x47b   :  { %v14794_v50 = vpop.eup %14793  ;;  %vm9193_vm13 = vcmp.gt.f32.partialorder %v19801_v31, 0.0  ;;  %v9265_v32 = vmin.f32 %v19825_v1, 0.0  ;;  %vm9194_vm14 = vcmp.gt.f32.partialorder %v19804_v30, 0.0  ;;  %14807 = vpow2.f32 %v9354_v63 }
 0x47c   :  { %v12761_v51 = vadd.f32 -1.0, %v14794_v50  ;;  %v20121_v9 = vsel %vm9190_vm10, %v19792_v47, %v12760_v14  ;;  %v9358_v17 = vmul.f32 1.442695, %v9264_v34  ;;  %v9266_v25 = vmin.f32 %v19828_v52, 0.0 }
 0x47d   :  { %9745 = vmatmul.mubr.bf16.gmra.mrb[76].mxu1 %v9557_v28  ;;  %14809 = vpow2.f32 %v9356_v40  ;;  %v9360_v47 = vmul.f32 1.442695, %v9265_v32  ;;  %v9267_v3 = vmin.f32 %v19831_v21, 0.0  ;;  %vm9195_vm15 = vcmp.gt.f32.partialorder %v19807_v38, 0.0 }
 0x47e   :  { %v20133_v62 = vsel %vm9191_vm11, %v19795_v26, %v12761_v51  ;;  %v14796_v11 = vpop.eup %14795  ;;  %9754 = vmatprep.mubr.bf16.mxu1 %v24702_v19  ;;  %14811 = vpow2.f32 %v9358_v17  ;;  %v9362_v42 = vmul.f32 1.442695, %v9266_v25  ;;  %vm9196_vm0 = vcmp.gt.f32.partialorder %v19810_v7, 0.0 }
 0x47f   :  { %v9564_v33 = vpack.c.bf16 %v20133_v62, %v20121_v9  ;;  %v14798_v13 = vpop.eup %14797  ;;  %v12762_v28 = vadd.f32 -1.0, %v14796_v11  ;;  %14813 = vpow2.f32 %v9360_v47  ;;  %v9364_v26 = vmul.f32 1.442695, %v9267_v3 }
 0x480   :  { %v14800_v56 = vpop.eup %14799  ;;  %v12763_v61 = vadd.f32 -1.0, %v14798_v13  ;;  %14815 = vpow2.f32 %v9362_v42  ;;  %v9268_v14 = vmin.f32 %v19834_v27, 0.0  ;;  %v9269_v50 = vmin.f32 %v19837_v29, 0.0 }
 0x481   :  { %v14802_v63 = vpop.eup %14801  ;;  %v20146_v40 = vsel %vm9192_vm12, %v19798_v45, %v12762_v28  ;;  %v12764_v34 = vadd.f32 -1.0, %v14800_v56  ;;  %vm9197_vm1 = vcmp.gt.f32.partialorder %v19813_v36, 0.0  ;;  %14817 = vpow2.f32 %v9364_v26 }
 0x482   :  { %v14804_v51 = vpop.eup %14803  ;;  %v20152_v32 = vsel %vm9193_vm13, %v19801_v31, %v12763_v61  ;;  %v12765_v17 = vadd.f32 -1.0, %v14802_v63  ;;  %v9366_v25 = vmul.f32 1.442695, %v9268_v14  ;;  %v9368_v47 = vmul.f32 1.442695, %v9269_v50 }
 0x483   :  { %v14806_v3 = vpop.eup %14805  ;;  %v9565_v11 = vpack.c.bf16 %v20152_v32, %v20146_v40  ;;  %v20159_v45 = vsel %vm9194_vm14, %v19804_v30, %v12764_v34  ;;  %v12766_v42 = vadd.f32 -1.0, %v14804_v51  ;;  %vm9198_vm2 = vcmp.gt.f32.partialorder %v19816_v22, 0.0 }
 0x484   :  { %v20165_v31 = vsel %vm9195_vm15, %v19807_v38, %v12765_v17  ;;  %v12767_v13 = vadd.f32 -1.0, %v14806_v3  ;;  %14819 = vpow2.f32 %v9366_v25  ;;  %v9270_v28 = vmin.f32 %v19840_v49, 0.0 }
 0x485   :  { %9755 = vmatmul.mubr.bf16.gmra.mrb[80].mxu1 %v9558_v43  ;;  %v9566_v30 = vpack.c.bf16 %v20165_v31, %v20159_v45  ;;  %v20176_v26 = vsel %vm9196_vm0, %v19810_v7, %v12766_v42  ;;  %14821 = vpow2.f32 %v9368_v47  ;;  %v9271_v38 = vmin.f32 %v19843_v5, 0.0  ;;  %v14808_v56 = vpop.eup %14807 }
 0x486   :  { %9764 = vmatprep.mubr.bf16.mxu1 %v24702_v19  ;;  %v20183_v61 = vsel %vm9197_vm1, %v19813_v36, %v12767_v13  ;;  %vm9199_vm3 = vcmp.gt.f32.partialorder %v19819_v46, 0.0  ;;  %vm9200_vm4 = vcmp.gt.f32.partialorder %v19822_v35, 0.0  ;;  %v9370_v53 = vmul.f32 1.442695, %v9270_v28 }
 0x487   :  { %v14810_v16 = vpop.eup %14809  ;;  %v9567_v7 = vpack.c.bf16 %v20183_v61, %v20176_v26  ;;  %v12768_v43 = vadd.f32 -1.0, %v14808_v56  ;;  %v9372_v14 = vmul.f32 1.442695, %v9271_v38  ;;  %v9272_v50 = vmin.f32 %v19846_v18, 0.0 }
 0x488   :  { %v14812_v63 = vpop.eup %14811  ;;  %v12769_v34 = vadd.f32 -1.0, %v14810_v16  ;;  %vm9201_vm5 = vcmp.gt.f32.partialorder %v19825_v1, 0.0  ;;  %14823 = vpow2.f32 %v9370_v53  ;;  %v9273_v36 = vmin.f32 %v19849_v23, 0.0 }
 0x489   :  { %v14814_v51 = vpop.eup %14813  ;;  %v20195_v17 = vsel %vm9198_vm2, %v19816_v22, %v12768_v43  ;;  %v12770_v25 = vadd.f32 -1.0, %v14812_v63  ;;  %14825 = vpow2.f32 %v9372_v14  ;;  %v9374_v47 = vmul.f32 1.442695, %v9272_v50 }
 0x48a   :  { %v14816_v3 = vpop.eup %14815  ;;  %v20200_v42 = vsel %vm9199_vm3, %v19819_v46, %v12769_v34  ;;  %v12771_v13 = vadd.f32 -1.0, %v14814_v51  ;;  %vm9202_vm6 = vcmp.gt.f32.partialorder %v19828_v52, 0.0  ;;  %v9376_v28 = vmul.f32 1.442695, %v9273_v36 }
 0x48b   :  { %v14818_v38 = vpop.eup %14817  ;;  %v20208_v22 = vsel %vm9200_vm4, %v19822_v35, %v12770_v25  ;;  %v12772_v53 = vadd.f32 -1.0, %v14816_v3  ;;  %14827 = vpow2.f32 %v9374_v47  ;;  %v9274_v43 = vmin.f32 %v19852_v15, 0.0 }
 0x48c   :  { %v20213_v46 = vsel %vm9201_vm5, %v19825_v1, %v12771_v13  ;;  %v12773_v16 = vadd.f32 -1.0, %v14818_v38  ;;  %14829 = vpow2.f32 %v9376_v28  ;;  %vm9203_vm7 = vcmp.gt.f32.partialorder %v19831_v21, 0.0 }
 0x48d   :  { %9765 = vmatmul.mubr.bf16.gmra.mrb[84].mxu1 %v9559_v12  ;;  %v20223_v35 = vsel %vm9202_vm6, %v19828_v52, %v12772_v53  ;;  %v9275_v50 = vmin.f32 %v19855_v0, 0.0  ;;  %vm9204_vm8 = vcmp.gt.f32.partialorder %v19834_v27, 0.0  ;;  %v9378_v24 = vmul.f32 1.442695, %v9274_v43 }
 0x48e   :  { %v14820_v1 = vpop.eup %14819  ;;  %9774 = vmatprep.mubr.bf16.mxu1 %v24702_v19  ;;  %v20228_v63 = vsel %vm9203_vm7, %v19831_v21, %v12773_v16  ;;  %v9276_v20 = vmin.f32 %v19858_v10, 0.0  ;;  %v9277_v51 = vmin.f32 %v19861_v60, 0.0  ;;  %vm9205_vm9 = vcmp.gt.f32.partialorder %v19837_v29, 0.0 }
 0x48f   :  { %v14822_v12 = vpop.eup %14821  ;;  %v12774_v36 = vadd.f32 -1.0, %v14820_v1  ;;  %v9380_v52 = vmul.f32 1.442695, %v9275_v50  ;;  %14831 = vpow2.f32 %v9378_v24  ;;  %vm9206_vm10 = vcmp.gt.f32.partialorder %v19840_v49, 0.0 }
 0x490   :  { %v12775_v25 = vadd.f32 -1.0, %v14822_v12  ;;  %v9382_v47 = vmul.f32 1.442695, %v9276_v20  ;;  %v9384_v3 = vmul.f32 1.442695, %v9277_v51  ;;  %v9278_v38 = vmin.f32 %v19864_v55, 0.0 }
 0x491   :  { %v20237_v21 = vsel %vm9204_vm8, %v19834_v27, %v12774_v36  ;;  %14833 = vpow2.f32 %v9380_v52  ;;  %v9279_v53 = vmin.f32 %v19867_v39, 0.0  ;;  %vm9207_vm11 = vcmp.gt.f32.partialorder %v19843_v5, 0.0  ;;  %v24703_v12 = vld [vmem:[#allocation8_spill] sm:$0xff]  ;;  %v24704_v52 = vld [vmem:[#allocation10_spill] sm:$0xff] }
 0x492   :  { %v14824_v13 = vpop.eup %14823  ;;  %v20241_v28 = vsel %vm9205_vm9, %v19837_v29, %v12775_v25  ;;  %14835 = vpow2.f32 %v9382_v47  ;;  %vm9208_vm12 = vcmp.gt.f32.partialorder %v19846_v18, 0.0  ;;  %v9386_v1 = vmul.f32 1.442695, %v9278_v38  ;;  %v24705_v38 = vld [vmem:[#allocation7_spill] sm:$0xff] }
 0x493   :  { %v14826_v16 = vpop.eup %14825  ;;  %v12776_v27 = vadd.f32 -1.0, %v14824_v13  ;;  %14837 = vpow2.f32 %v9384_v3  ;;  %v9388_v24 = vmul.f32 1.442695, %v9279_v53  ;;  %vm9209_vm13 = vcmp.gt.f32.partialorder %v19849_v23, 0.0 }
 0x494   :  { %v12777_v50 = vadd.f32 -1.0, %v14826_v16  ;;  %v9280_v36 = vmin.f32 %v24703_v12, 0.0  ;;  %v9281_v51 = vmin.f32 %v24704_v52, 0.0  ;;  %vm9210_vm14 = vcmp.gt.f32.partialorder %v19852_v15, 0.0 }
 0x495   :  { %v14828_v29 = vpop.eup %14827  ;;  %9775 = vmatmul.mubr.bf16.gmra.mrb[88].mxu1 %v9560_v59  ;;  %v20255_v20 = vsel %vm9206_vm10, %v19840_v49, %v12776_v27  ;;  %14839 = vpow2.f32 %v9386_v1  ;;  %v9282_v53 = vmin.f32 %v24705_v38, 0.0  ;;  %vm9211_vm15 = vcmp.gt.f32.partialorder %v19855_v0, 0.0 }
 0x496   :  { %v14830_v25 = vpop.eup %14829  ;;  %9784 = vmatprep.mubr.bf16.mxu1 %v24702_v19  ;;  %v20262_v47 = vsel %vm9207_vm11, %v19843_v5, %v12777_v50  ;;  %v12778_v3 = vadd.f32 -1.0, %v14828_v29  ;;  %14841 = vpow2.f32 %v9388_v24  ;;  %v9390_v57 = vmul.f32 1.442695, %v9280_v36  ;;  %v24706_v5 = vld [vmem:[#allocation9_spill] sm:$0xff] }
 0x497   :  { %v12779_v6 = vadd.f32 -1.0, %v14830_v25  ;;  %v9392_v13 = vmul.f32 1.442695, %v9281_v51  ;;  %v9283_v16 = vmin.f32 %v24706_v5, 0.0  ;;  %vm9212_vm0 = vcmp.gt.f32.partialorder %v19858_v10, 0.0  ;;  %v24707_v51 = vld [vmem:[#allocation12_spill] sm:$0xff] }
 0x498   :  { %v20270_v59 = vsel %vm9208_vm12, %v19846_v18, %v12778_v3  ;;  %14843 = vpow2.f32 %v9390_v57  ;;  %v9394_v1 = vmul.f32 1.442695, %v9282_v53  ;;  %vm9213_vm1 = vcmp.gt.f32.partialorder %v19861_v60, 0.0  ;;  %v24709_v57 = vld [vmem:[#allocation11_spill] sm:$0xff]  ;;  %v24710_v18 = vld [vmem:[#allocation13_spill] sm:$0xff] }
 0x499   :  { %v20277_v27 = vsel %vm9209_vm13, %v19849_v23, %v12779_v6  ;;  %v14832_v50 = vpop.eup %14831  ;;  %14845 = vpow2.f32 %v9392_v13  ;;  %v9396_v24 = vmul.f32 1.442695, %v9283_v16  ;;  %v9284_v25 = vmin.f32 %v24707_v51, 0.0  ;;  %v24708_v23 = vld [vmem:[#allocation14_spill] sm:$0xff] }
 0x49a   :  { %v12780_v36 = vadd.f32 -1.0, %v14832_v50  ;;  %v9285_v3 = vmin.f32 %v24708_v23, 0.0  ;;  %vm9214_vm2 = vcmp.gt.f32.partialorder %v19864_v55, 0.0  ;;  %14847 = vpow2.f32 %v9394_v1 }
 0x49b   :  { %v14834_v29 = vpop.eup %14833  ;;  %v9286_v43 = vmin.f32 %v24709_v57, 0.0  ;;  %14849 = vpow2.f32 %v9396_v24  ;;  %v9398_v16 = vmul.f32 1.442695, %v9284_v25  ;;  %v9287_v54 = vmin.f32 %v24710_v18, 0.0 }
 0x49c   :  { %v14836_v6 = vpop.eup %14835  ;;  %v12781_v49 = vadd.f32 -1.0, %v14834_v29  ;;  %v20294_v13 = vsel %vm9210_vm14, %v19852_v15, %v12780_v36  ;;  %v9400_v29 = vmul.f32 1.442695, %v9285_v3  ;;  %vm9215_vm3 = vcmp.gt.f32.partialorder %v19867_v39, 0.0  ;;  %v24714_v36 = vld [vmem:[#allocation17_spill] sm:$0xff] }
 0x49d   :  { %v14838_v34 = vpop.eup %14837  ;;  %9785 = vmatmul.mubr.bf16.gmra.mrb[92].mxu1 %v9561_v44  ;;  %v12782_v53 = vadd.f32 -1.0, %v14836_v6  ;;  %14851 = vpow2.f32 %v9398_v16  ;;  %v9402_v44 = vmul.f32 1.442695, %v9286_v43  ;;  %vm9216_vm4 = vcmp.gt.f32.partialorder %v24703_v12, 0.0  ;;  %v24711_v43 = vld [vmem:[#allocation16_spill] sm:$0xff]  ;;  %v24712_v6 = vld [vmem:[#allocation18_spill] sm:$0xff] }
 0x49e   :  { %9794 = vmatprep.mubr.bf16.mxu1 %v24702_v19  ;;  %v20300_v50 = vsel %vm9211_vm15, %v19855_v0, %v12781_v49  ;;  %v12783_v1 = vadd.f32 -1.0, %v14838_v34  ;;  %14853 = vpow2.f32 %v9400_v29  ;;  %v9404_v34 = vmul.f32 1.442695, %v9287_v54 }
 0x49f   :  { %v20308_v15 = vsel %vm9212_vm0, %v19858_v10, %v12782_v53  ;;  %v14840_v24 = vpop.eup %14839  ;;  %14855 = vpow2.f32 %v9402_v44  ;;  %v9288_v3 = vmin.f32 %v24711_v43, 0.0  ;;  %v9289_v53 = vmin.f32 %v24712_v6, 0.0 }
 0x4a0   :  { %v20313_v0 = vsel %vm9213_vm1, %v19861_v60, %v12783_v1  ;;  %v14842_v49 = vpop.eup %14841  ;;  %v12784_v25 = vadd.f32 -1.0, %v14840_v24  ;;  %14857 = vpow2.f32 %v9404_v34  ;;  %vm9217_vm5 = vcmp.gt.f32.partialorder %v24704_v52, 0.0  ;;  %v24713_v1 = vld [vmem:[#allocation15_spill] sm:$0xff] }
 0x4a1   :  { %v12785_v10 = vadd.f32 -1.0, %v14842_v49  ;;  %vm9218_vm6 = vcmp.gt.f32.partialorder %v24705_v38, 0.0  ;;  %v9290_v29 = vmin.f32 %v24713_v1, 0.0  ;;  %v9406_v34 = vmul.f32 1.442695, %v9288_v3 }
 0x4a2   :  { %v14844_v60 = vpop.eup %14843  ;;  %v20324_v16 = vsel %vm9214_vm2, %v19864_v55, %v12784_v25  ;;  %v9408_v49 = vmul.f32 1.442695, %v9289_v53  ;;  %v9291_v48 = vmin.f32 %v24714_v36, 0.0  ;;  %vm9219_vm7 = vcmp.gt.f32.partialorder %v24706_v5, 0.0 }
 0x4a3   :  { %v14846_v54 = vpop.eup %14845  ;;  %v20332_v44 = vsel %vm9215_vm3, %v19867_v39, %v12785_v10  ;;  %v12786_v24 = vadd.f32 -1.0, %v14844_v60  ;;  %v9410_v14 = vmul.f32 1.442695, %v9290_v29  ;;  %vm9220_vm8 = vcmp.gt.f32.partialorder %v24707_v51, 0.0 }
 0x4a4   :  { %v12787_v25 = vadd.f32 -1.0, %v14846_v54  ;;  %v14848_v56 = vpop.eup %14847  ;;  %14859 = vpow2.f32 %v9406_v34  ;;  %v9412_v10 = vmul.f32 1.442695, %v9291_v48  ;;  %vm9221_vm9 = vcmp.gt.f32.partialorder %v24708_v23, 0.0 }
 0x4a5   :  { %9795 = vmatmul.mubr.bf16.gmra.mrb[96].mxu1 %v9562_v37  ;;  %v20344_v39 = vsel %vm9216_vm4, %v24703_v12, %v12786_v24  ;;  %v14850_v8 = vpop.eup %14849  ;;  %v12788_v37 = vadd.f32 -1.0, %v14848_v56  ;;  %14861 = vpow2.f32 %v9408_v49  ;;  %v24715_v12 = vld [vmem:[#allocation20_spill] sm:$0xff]  ;;  %vm9222_vm10 = vcmp.gt.f32.partialorder %v24709_v57, 0.0 }
 0x4a6   :  { %9804 = vmatprep.mubr.bf16.mxu1 %v24702_v19  ;;  %v20351_v2 = vsel %vm9217_vm5, %v24704_v52, %v12787_v25  ;;  %v12789_v53 = vadd.f32 -1.0, %v14850_v8  ;;  %14863 = vpow2.f32 %v9410_v14  ;;  %v9292_v60 = vmin.f32 %v24715_v12, 0.0  ;;  %v24716_v52 = vld [vmem:[#allocation22_spill] sm:$0xff] }
 0x4a7   :  { %v14852_v29 = vpop.eup %14851  ;;  %v20359_v54 = vsel %vm9218_vm6, %v24705_v38, %v12788_v37  ;;  %14865 = vpow2.f32 %v9412_v10  ;;  %v9293_v56 = vmin.f32 %v24716_v52, 0.0  ;;  %v24717_v37 = vld [vmem:[#allocation19_spill] sm:$0xff]  ;;  %vm9223_vm11 = vcmp.gt.f32.partialorder %v24710_v18, 0.0 }
 0x4a8   :  { %v14854_v24 = vpop.eup %14853  ;;  %v20366_v48 = vsel %vm9219_vm7, %v24706_v5, %v12789_v53  ;;  %v12790_v14 = vadd.f32 -1.0, %v14852_v29  ;;  %v9414_v34 = vmul.f32 1.442695, %v9292_v60  ;;  %v9294_v10 = vmin.f32 %v24717_v37, 0.0  ;;  %v24718_v53 = vld [vmem:[#allocation37_spill] sm:$0xff] }
 0x4a9   :  { %v14856_v49 = vpop.eup %14855  ;;  %v12791_v25 = vadd.f32 -1.0, %v14854_v24  ;;  %v9416_v8 = vmul.f32 1.442695, %v9293_v56  ;;  %v9295_v29 = vmin.f32 %v24718_v53, 0.0  ;;  %vm9224_vm12 = vcmp.gt.f32.partialorder %v24711_v43, 0.0 }
 0x4aa   :  { %v14858_v3 = vpop.eup %14857  ;;  %v20375_v55 = vsel %vm9220_vm8, %v24707_v51, %v12790_v14  ;;  %v12792_v5 = vadd.f32 -1.0, %v14856_v49  ;;  %14867 = vpow2.f32 %v9414_v34  ;;  %v9418_v24 = vmul.f32 1.442695, %v9294_v10  ;;  %v24720_v49 = vld [vmem:[#allocation24_spill] sm:$0xff] }
 0x4ab   :  { %v20384_v60 = vsel %vm9221_vm9, %v24708_v23, %v12791_v25  ;;  %v12793_v56 = vadd.f32 -1.0, %v14858_v3  ;;  %14869 = vpow2.f32 %v9416_v8  ;;  %v9420_v4 = vmul.f32 1.442695, %v9295_v29  ;;  %v24719_v23 = vld [vmem:[#allocation21_spill] sm:$0xff] }
 0x4ac   :  { %v20393_v58 = vsel %vm9222_vm10, %v24709_v57, %v12792_v5  ;;  %14871 = vpow2.f32 %v9418_v24  ;;  %v9296_v3 = vmin.f32 %v24719_v23, 0.0  ;;  %v9297_v25 = vmin.f32 %v24720_v49, 0.0 }
 0x4ad   :  { %9805 = vmatmul.mubr.bf16.gmra.mrb[100].mxu1 %v9563_v41  ;;  %v20396_v41 = vsel %vm9223_vm11, %v24710_v18, %v12793_v56  ;;  %14873 = vpow2.f32 %v9420_v4  ;;  %vm9225_vm13 = vcmp.gt.f32.partialorder %v24712_v6, 0.0  ;;  %vm9226_vm14 = vcmp.gt.f32.partialorder %v24713_v1, 0.0 }
 0x4ae   :  { %9814 = vmatprep.mubr.bf16.mxu1 %v24702_v19  ;;  %v14860_v14 = vpop.eup %14859  ;;  %v9580_v34 = vpack.c.bf16 %v20396_v41, %v20393_v58  ;;  %v9422_v51 = vmul.f32 1.442695, %v9296_v3  ;;  %v9424_v5 = vmul.f32 1.442695, %v9297_v25  ;;  %vm9227_vm15 = vcmp.gt.f32.partialorder %v24714_v36, 0.0 }
 0x4af   :  { %v14862_v8 = vpop.eup %14861  ;;  %v12794_v10 = vadd.f32 -1.0, %v14860_v14  ;;  %vm9228_vm0 = vcmp.gt.f32.partialorder %v24715_v12, 0.0  ;;  %vm9229_vm1 = vcmp.gt.f32.partialorder %v24716_v52, 0.0  ;;  %vm9230_vm2 = vcmp.gt.f32.partialorder %v24717_v37, 0.0 }
 0x4b0   :  { %v14864_v38 = vpop.eup %14863  ;;  %v12795_v57 = vadd.f32 -1.0, %v14862_v8  ;;  %14875 = vpow2.f32 %v9422_v51  ;;  %vm9231_vm3 = vcmp.gt.f32.partialorder %v24718_v53, 0.0  ;;  %vm9232_vm4 = vcmp.gt.f32.partialorder %v24719_v23, 0.0 }
 0x4b1   :  { %v14866_v18 = vpop.eup %14865  ;;  %v20405_v29 = vsel %vm9224_vm12, %v24711_v43, %v12794_v10  ;;  %v12796_v56 = vadd.f32 -1.0, %v14864_v38  ;;  %14877 = vpow2.f32 %v9424_v5  ;;  %vm9233_vm5 = vcmp.gt.f32.partialorder %v24720_v49, 0.0 }
 0x4b2   :  { %v20408_v24 = vsel %vm9225_vm13, %v24712_v6, %v12795_v57  ;;  %v12797_v4 = vadd.f32 -1.0, %v14866_v18  ;;  %v24723_v45 = vpack.c.bf16 %v20228_v63, %v20223_v35  ;;  %v24724_v31 = vpack.c.bf16 %v20241_v28, %v20237_v21 }
 0x4b3   :  { %v9581_v3 = vpack.c.bf16 %v20408_v24, %v20405_v29  ;;  %v20418_v43 = vsel %vm9226_vm14, %v24713_v1, %v12796_v56  ;;  %v24726_v26 = vpack.c.bf16 %v20277_v27, %v20270_v59  ;;  %v24727_v61 = vpack.c.bf16 %v20300_v50, %v20294_v13 }
 0x4b4   :  { %v14868_v38 = vpop.eup %14867  ;;  %v20422_v6 = vsel %vm9227_vm15, %v24714_v36, %v12797_v4 }
 0x4b5   :  { %9815 = vmatmul.mubr.bf16.gmra.mrb[104].mxu1 %v9564_v33  ;;  %v14870_v51 = vpop.eup %14869  ;;  %v9582_v14 = vpack.c.bf16 %v20422_v6, %v20418_v43  ;;  %v12798_v9 = vadd.f32 -1.0, %v14868_v38 }
 0x4b6   :  { %9824 = vmatprep.mubr.bf16.mxu1 %v24702_v19  ;;  %v12799_v62 = vadd.f32 -1.0, %v14870_v51  ;;  %v14872_v33 = vpop.eup %14871 }
 0x4b7   :  { %v20429_v1 = vsel %vm9228_vm0, %v24715_v12, %v12798_v9  ;;  %v14874_v25 = vpop.eup %14873  ;;  %v12800_v36 = vadd.f32 -1.0, %v14872_v33 }
 0x4b8   :  { %v20432_v8 = vsel %vm9229_vm1, %v24716_v52, %v12799_v62  ;;  %v12801_v57 = vadd.f32 -1.0, %v14874_v25 }
 0x4b9   :  { %v9583_v10 = vpack.c.bf16 %v20432_v8, %v20429_v1  ;;  %v20439_v5 = vsel %vm9230_vm2, %v24717_v37, %v12800_v36 }
 0x4ba   :  { %v14876_v18 = vpop.eup %14875  ;;  %v20445_v12 = vsel %vm9231_vm3, %v24718_v53, %v12801_v57  ;;  %v24722_v53 = vpack.c.bf16 %v20213_v46, %v20208_v22  ;;  %v24731_v22 = vpack.c.bf16 %v20366_v48, %v20359_v54  ;;  %v24732_v46 = vpack.c.bf16 %v20384_v60, %v20375_v55 }
 0x4bb   :  { %v14878_v52 = vpop.eup %14877  ;;  %v9584_v56 = vpack.c.bf16 %v20445_v12, %v20439_v5  ;;  %v12802_v4 = vadd.f32 -1.0, %v14876_v18 }
 0x4bc   :  { %v12803_v38 = vadd.f32 -1.0, %v14878_v52 }
 0x4bd   :  { %9825 = vmatmul.mubr.bf16.gmra.mrb[108].mxu1 %v9565_v11  ;;  %v20453_v37 = vsel %vm9232_vm4, %v24719_v23, %v12802_v4  ;;  %v24721_v11 = vpack.c.bf16 %v20200_v42, %v20195_v17  ;;  %v24729_v17 = vpack.c.bf16 %v20332_v44, %v20324_v16  ;;  %v24730_v42 = vpack.c.bf16 %v20351_v2, %v20344_v39 }
 0x4be   :  { %9834 = vmatprep.mubr.bf16.mxu1 %v24702_v19  ;;  %v20456_v40 = vsel %vm9233_vm5, %v24720_v49, %v12803_v38 }
 0x4bf   :  { %v9585_v32 = vpack.c.bf16 %v20456_v40, %v20453_v37 }
 0x4c5   :  { %9835 = vmatmul.mubr.bf16.gmra.mrb[112].mxu1 %v9566_v30  ;;  %v24725_v30 = vpack.c.bf16 %v20262_v47, %v20255_v20 }
 0x4c6   :  { %9844 = vmatprep.mubr.bf16.mxu1 %v24702_v19 }
 0x4cd   :  { %9845 = vmatmul.mubr.bf16.gmra.mrb[116].mxu1 %v9567_v7  ;;  %v24728_v7 = vpack.c.bf16 %v20313_v0, %v20308_v15 }
 0x4ce   :  { %9854 = vmatprep.mubr.bf16.mxu1 %v24702_v19 }
 0x4d5   :  { %9855 = vmatmul.mubr.bf16.gmra.mrb[120].mxu1 %v24721_v11 }
 0x4d6   :  { %9864 = vmatprep.mubr.bf16.mxu1 %v24702_v19 }
 0x4dd   :  { %9865 = vmatmul.mubr.bf16.gmra.mrb[124].mxu1 %v24722_v53 }
 0x4de   :  { %9874 = vmatprep.mubr.bf16.mxu1 %v24702_v19 }
 0x4e5   :  { %9875 = vmatmul.mubr.bf16.gmra.mrb[128].mxu1 %v24723_v45 }
 0x4e6   :  { %9884 = vmatprep.mubr.bf16.mxu1 %v24702_v19 }
 0x4ed   :  { %9885 = vmatmul.mubr.bf16.gmra.mrb[132].mxu1 %v24724_v31 }
 0x4ee   :  { %9894 = vmatprep.mubr.bf16.mxu1 %v24702_v19 }
 0x4f5   :  { %9895 = vmatmul.mubr.bf16.gmra.mrb[136].mxu1 %v24725_v30 }
 0x4f6   :  { %9904 = vmatprep.mubr.bf16.mxu1 %v24702_v19 }
 0x4fd   :  { %9905 = vmatmul.mubr.bf16.gmra.mrb[140].mxu1 %v24726_v26 }
 0x4fe   :  { %9914 = vmatprep.mubr.bf16.mxu1 %v24702_v19 }
 0x505   :  { %9915 = vmatmul.mubr.bf16.gmra.mrb[144].mxu1 %v24727_v61 }
 0x506   :  { %9924 = vmatprep.mubr.bf16.mxu1 %v24702_v19 }
 0x50d   :  { %9925 = vmatmul.mubr.bf16.gmra.mrb[148].mxu1 %v24728_v7 }
 0x50e   :  { %9934 = vmatprep.mubr.bf16.mxu1 %v24702_v19 }
 0x515   :  { %9935 = vmatmul.mubr.bf16.gmra.mrb[152].mxu1 %v24729_v17 }
 0x516   :  { %9944 = vmatprep.mubr.bf16.mxu1 %v24702_v19 }
 0x51d   :  { %9945 = vmatmul.mubr.bf16.gmra.mrb[156].mxu1 %v24730_v42 }
 0x51e   :  { %9954 = vmatprep.mubr.bf16.mxu1 %v24702_v19 }
 0x525   :  { %9955 = vmatmul.mubr.bf16.gmra.mrb[160].mxu1 %v24731_v22 }
 0x526   :  { %9964 = vmatprep.mubr.bf16.mxu1 %v24702_v19 }
 0x52d   :  { %9965 = vmatmul.mubr.bf16.gmra.mrb[164].mxu1 %v24732_v46 }
 0x52e   :  { %9974 = vmatprep.mubr.bf16.mxu1 %v24702_v19 }
 0x535   :  { %9975 = vmatmul.mubr.bf16.gmra.mrb[168].mxu1 %v9580_v34 }
 0x536   :  { %9984 = vmatprep.mubr.bf16.mxu1 %v24702_v19 }
 0x538   :  { %v20520_v35 = vpop.f32.mrb[64].mxu1 }
 0x539   :  { %v20522_v63 = vpop.f32.mrb[65].mxu1  ;;  %v10175_v28 = vmul.f32 %v20520_v35, %v20520_v35 }
 0x53a   :  { %24733 = vst [vmem:[#allocation26_spill] sm:$0xff] %v20522_v63  ;;  %v20524_v21 = vpop.f32.mrb[66].mxu1  ;;  %v10176_v27 = vmul.f32 %v20522_v63, %v20522_v63 }
 0x53b   :  { %v10037_v20 = vadd.f32 %v20524_v21, %v20520_v35  ;;  %v10177_v47 = vmul.f32 %v20524_v21, %v20524_v21  ;;  %v20532_v59 = vpop.f32.mrb[67].mxu1 }
 0x53c   :  { %24734 = vst [vmem:[#allocation23_spill] sm:$0xff] %v20532_v59  ;;  %v10106_v13 = vadd.f32 %v20532_v59, %v20522_v63  ;;  %v10178_v50 = vmul.f32 %v20532_v59, %v20532_v59 }
 0x53d   :  { %v10303_v15 = vadd.f32 %v10177_v47, %v10175_v28  ;;  %9985 = vmatmul.mubr.bf16.gmra.mrb[172].mxu1 %v9581_v3 }
 0x53e   :  { %v10372_v0 = vadd.f32 %v10178_v50, %v10176_v27  ;;  %9994 = vmatprep.mubr.bf16.mxu1 %v24702_v19 }
 0x540   :  { %v20544_v16 = vpop.f32.mrb[68].mxu1 }
 0x541   :  { %v10038_v44 = vadd.f32 %v10037_v20, %v20544_v16  ;;  %v10179_v55 = vmul.f32 %v20544_v16, %v20544_v16  ;;  %v20549_v39 = vpop.f32.mrb[69].mxu1 }
 0x542   :  { %24735 = vst [vmem:[#allocation25_spill] sm:$0xff] %v20549_v39  ;;  %v10107_v2 = vadd.f32 %v10106_v13, %v20549_v39  ;;  %v10180_v54 = vmul.f32 %v20549_v39, %v20549_v39  ;;  %v20554_v48 = vpop.f32.mrb[70].mxu1 }
 0x543   :  { %v10304_v60 = vadd.f32 %v10303_v15, %v10179_v55  ;;  %v10039_v58 = vadd.f32 %v10038_v44, %v20554_v48  ;;  %v10181_v41 = vmul.f32 %v20554_v48, %v20554_v48  ;;  %v20559_v23 = vpop.f32.mrb[71].mxu1 }
 0x544   :  { %24736 = vst [vmem:[#allocation28_spill] sm:$0xff] %v20559_v23  ;;  %v10373_v34 = vadd.f32 %v10372_v0, %v10180_v54  ;;  %v10108_v49 = vadd.f32 %v10107_v2, %v20559_v23  ;;  %v10182_v29 = vmul.f32 %v20559_v23, %v20559_v23 }
 0x545   :  { %v10305_v24 = vadd.f32 %v10304_v60, %v10181_v41  ;;  %9995 = vmatmul.mubr.bf16.gmra.mrb[176].mxu1 %v9582_v14 }
 0x546   :  { %v10374_v3 = vadd.f32 %v10373_v34, %v10182_v29  ;;  %10004 = vmatprep.mubr.bf16.mxu1 %v24702_v19 }
 0x548   :  { %v20568_v51 = vpop.f32.mrb[72].mxu1 }
 0x549   :  { %v10040_v9 = vadd.f32 %v10039_v58, %v20568_v51  ;;  %v10183_v62 = vmul.f32 %v20568_v51, %v20568_v51  ;;  %v20573_v33 = vpop.f32.mrb[73].mxu1 }
 0x54a   :  { %24737 = vst [vmem:[#allocation30_spill] sm:$0xff] %v20573_v33  ;;  %v10109_v25 = vadd.f32 %v10108_v49, %v20573_v33  ;;  %v10184_v36 = vmul.f32 %v20573_v33, %v20573_v33  ;;  %v20578_v57 = vpop.f32.mrb[74].mxu1 }
 0x54b   :  { %v10306_v43 = vadd.f32 %v10305_v24, %v10183_v62  ;;  %v10041_v6 = vadd.f32 %v10040_v9, %v20578_v57  ;;  %v10185_v14 = vmul.f32 %v20578_v57, %v20578_v57  ;;  %v20583_v18 = vpop.f32.mrb[75].mxu1 }
 0x54c   :  { %24738 = vst [vmem:[#allocation27_spill] sm:$0xff] %v20583_v18  ;;  %v10375_v52 = vadd.f32 %v10374_v3, %v10184_v36  ;;  %v10110_v4 = vadd.f32 %v10109_v25, %v20583_v18  ;;  %v10186_v38 = vmul.f32 %v20583_v18, %v20583_v18 }
 0x54d   :  { %v10307_v11 = vadd.f32 %v10306_v43, %v10185_v14  ;;  %10005 = vmatmul.mubr.bf16.gmra.mrb[180].mxu1 %v9583_v10 }
 0x54e   :  { %v10376_v53 = vadd.f32 %v10375_v52, %v10186_v38  ;;  %10014 = vmatprep.mubr.bf16.mxu1 %v24702_v19 }
 0x550   :  { %v20592_v45 = vpop.f32.mrb[76].mxu1 }
 0x551   :  { %v10042_v31 = vadd.f32 %v10041_v6, %v20592_v45  ;;  %v10187_v30 = vmul.f32 %v20592_v45, %v20592_v45  ;;  %v20597_v26 = vpop.f32.mrb[77].mxu1 }
 0x552   :  { %24739 = vst [vmem:[#allocation29_spill] sm:$0xff] %v20597_v26  ;;  %v10111_v61 = vadd.f32 %v10110_v4, %v20597_v26  ;;  %v10188_v7 = vmul.f32 %v20597_v26, %v20597_v26  ;;  %v20602_v17 = vpop.f32.mrb[78].mxu1 }
 0x553   :  { %v10308_v1 = vadd.f32 %v10307_v11, %v10187_v30  ;;  %v10043_v8 = vadd.f32 %v10042_v31, %v20602_v17  ;;  %v10189_v10 = vmul.f32 %v20602_v17, %v20602_v17  ;;  %v20607_v42 = vpop.f32.mrb[79].mxu1 }
 0x554   :  { %24740 = vst [vmem:[#allocation32_spill] sm:$0xff] %v20607_v42  ;;  %v10377_v22 = vadd.f32 %v10376_v53, %v10188_v7  ;;  %v10112_v46 = vadd.f32 %v10111_v61, %v20607_v42  ;;  %v10190_v28 = vmul.f32 %v20607_v42, %v20607_v42 }
 0x555   :  { %v10309_v20 = vadd.f32 %v10308_v1, %v10189_v10  ;;  %10015 = vmatmul.mubr.bf16.gmra.mrb[184].mxu1 %v9584_v56 }
 0x556   :  { %v10378_v47 = vadd.f32 %v10377_v22, %v10190_v28  ;;  %10024 = vmatprep.mubr.bf16.mxu1 %v24702_v19 }
 0x558   :  { %v20616_v27 = vpop.f32.mrb[80].mxu1 }
 0x559   :  { %v10044_v13 = vadd.f32 %v10043_v8, %v20616_v27  ;;  %v10191_v50 = vmul.f32 %v20616_v27, %v20616_v27  ;;  %v20621_v15 = vpop.f32.mrb[81].mxu1 }
 0x55a   :  { %24741 = vst [vmem:[#allocation31_spill] sm:$0xff] %v20621_v15  ;;  %v10113_v0 = vadd.f32 %v10112_v46, %v20621_v15  ;;  %v10192_v44 = vmul.f32 %v20621_v15, %v20621_v15  ;;  %v20626_v55 = vpop.f32.mrb[82].mxu1 }
 0x55b   :  { %v10310_v5 = vadd.f32 %v10309_v20, %v10191_v50  ;;  %v10045_v12 = vadd.f32 %v10044_v13, %v20626_v55  ;;  %v10193_v19 = vmul.f32 %v20626_v55, %v20626_v55  ;;  %v20631_v56 = vpop.f32.mrb[83].mxu1 }
 0x55c   :  { %24742 = vst [vmem:[#allocation33_spill] sm:$0xff] %v20631_v56  ;;  %v10379_v2 = vadd.f32 %v10378_v47, %v10192_v44  ;;  %v10114_v54 = vadd.f32 %v10113_v0, %v20631_v56  ;;  %v10194_v60 = vmul.f32 %v20631_v56, %v20631_v56 }
 0x55d   :  { %v10311_v58 = vadd.f32 %v10310_v5, %v10193_v19  ;;  %10025 = vmatmul.mubr.bf16.gmra.mrb[188].mxu1 %v9585_v32 }
 0x55e   :  { %v10380_v41 = vadd.f32 %v10379_v2, %v10194_v60 }
 0x560   :  { %v20639_v34 = vpop.f32.mrb[84].mxu1 }
 0x561   :  { %v10046_v49 = vadd.f32 %v10045_v12, %v20639_v34  ;;  %v10195_v29 = vmul.f32 %v20639_v34, %v20639_v34  ;;  %v20644_v24 = vpop.f32.mrb[85].mxu1 }
 0x562   :  { %24743 = vst [vmem:[#allocation36_spill] sm:$0xff] %v20644_v24  ;;  %v10115_v3 = vadd.f32 %v10114_v54, %v20644_v24  ;;  %v10196_v9 = vmul.f32 %v20644_v24, %v20644_v24  ;;  %v20649_v62 = vpop.f32.mrb[86].mxu1 }
 0x563   :  { %v10312_v25 = vadd.f32 %v10311_v58, %v10195_v29  ;;  %v10047_v37 = vadd.f32 %v10046_v49, %v20649_v62  ;;  %v10197_v40 = vmul.f32 %v20649_v62, %v20649_v62  ;;  %v20654_v32 = vpop.f32.mrb[87].mxu1 }
 0x564   :  { %24744 = vst [vmem:[#allocation38_spill] sm:$0xff] %v20654_v32  ;;  %v10381_v36 = vadd.f32 %v10380_v41, %v10196_v9  ;;  %v10116_v43 = vadd.f32 %v10115_v3, %v20654_v32  ;;  %v10198_v6 = vmul.f32 %v20654_v32, %v20654_v32 }
 0x565   :  { %v10313_v14 = vadd.f32 %v10312_v25, %v10197_v40 }
 0x566   :  { %v10382_v52 = vadd.f32 %v10381_v36, %v10198_v6 }
 0x568   :  { %v20659_v4 = vpop.f32.mrb[88].mxu1 }
 0x569   :  { %v10048_v38 = vadd.f32 %v10047_v37, %v20659_v4  ;;  %v10199_v11 = vmul.f32 %v20659_v4, %v20659_v4  ;;  %v20664_v53 = vpop.f32.mrb[89].mxu1 }
 0x56a   :  { %24745 = vst [vmem:[#allocation39_spill] sm:$0xff] %v20664_v53  ;;  %v10117_v31 = vadd.f32 %v10116_v43, %v20664_v53  ;;  %v10200_v30 = vmul.f32 %v20664_v53, %v20664_v53  ;;  %v20669_v61 = vpop.f32.mrb[90].mxu1 }
 0x56b   :  { %v10314_v7 = vadd.f32 %v10313_v14, %v10199_v11  ;;  %v10049_v1 = vadd.f32 %v10048_v38, %v20669_v61  ;;  %v10201_v8 = vmul.f32 %v20669_v61, %v20669_v61  ;;  %v20674_v10 = vpop.f32.mrb[91].mxu1 }
 0x56c   :  { %24746 = vst [vmem:[#allocation40_spill] sm:$0xff] %v20674_v10  ;;  %v10383_v22 = vadd.f32 %v10382_v52, %v10200_v30  ;;  %v10118_v46 = vadd.f32 %v10117_v31, %v20674_v10  ;;  %v10202_v28 = vmul.f32 %v20674_v10, %v20674_v10 }
 0x56d   :  { %v10315_v20 = vadd.f32 %v10314_v7, %v10201_v8 }
 0x56e   :  { %v10384_v47 = vadd.f32 %v10383_v22, %v10202_v28 }
 0x570   :  { %v20679_v13 = vpop.f32.mrb[92].mxu1 }
 0x571   :  { %v10050_v50 = vadd.f32 %v10049_v1, %v20679_v13  ;;  %v10203_v0 = vmul.f32 %v20679_v13, %v20679_v13  ;;  %v20684_v44 = vpop.f32.mrb[93].mxu1 }
 0x572   :  { %24747 = vst [vmem:[#allocation41_spill] sm:$0xff] %v20684_v44  ;;  %v10119_v5 = vadd.f32 %v10118_v46, %v20684_v44  ;;  %v10204_v12 = vmul.f32 %v20684_v44, %v20684_v44  ;;  %v20689_v19 = vpop.f32.mrb[94].mxu1 }
 0x573   :  { %v10316_v2 = vadd.f32 %v10315_v20, %v10203_v0  ;;  %v10051_v54 = vadd.f32 %v10050_v50, %v20689_v19  ;;  %v10205_v60 = vmul.f32 %v20689_v19, %v20689_v19  ;;  %v20694_v58 = vpop.f32.mrb[95].mxu1 }
 0x574   :  { %24748 = vst [vmem:[#allocation3_spill] sm:$0xff] %v20694_v58  ;;  %v10385_v41 = vadd.f32 %v10384_v47, %v10204_v12  ;;  %v10120_v49 = vadd.f32 %v10119_v5, %v20694_v58  ;;  %v10206_v29 = vmul.f32 %v20694_v58, %v20694_v58 }
 0x575   :  { %v10317_v3 = vadd.f32 %v10316_v2, %v10205_v60 }
 0x576   :  { %v10386_v9 = vadd.f32 %v10385_v41, %v10206_v29 }
 0x578   :  { %v20699_v25 = vpop.f32.mrb[96].mxu1 }
 0x579   :  { %v10052_v37 = vadd.f32 %v10051_v54, %v20699_v25  ;;  %v10207_v40 = vmul.f32 %v20699_v25, %v20699_v25  ;;  %v20704_v36 = vpop.f32.mrb[97].mxu1 }
 0x57a   :  { %24749 = vst [vmem:[#allocation4_spill] sm:$0xff] %v20704_v36  ;;  %v10121_v43 = vadd.f32 %v10120_v49, %v20704_v36  ;;  %v10208_v6 = vmul.f32 %v20704_v36, %v20704_v36  ;;  %v20709_v14 = vpop.f32.mrb[98].mxu1 }
 0x57b   :  { %v10318_v52 = vadd.f32 %v10317_v3, %v10207_v40  ;;  %v10053_v38 = vadd.f32 %v10052_v37, %v20709_v14  ;;  %v10209_v11 = vmul.f32 %v20709_v14, %v20709_v14  ;;  %v20714_v31 = vpop.f32.mrb[99].mxu1 }
 0x57c   :  { %24750 = vst [vmem:[#allocation2_spill] sm:$0xff] %v20714_v31  ;;  %v10387_v30 = vadd.f32 %v10386_v9, %v10208_v6  ;;  %v10122_v7 = vadd.f32 %v10121_v43, %v20714_v31  ;;  %v10210_v1 = vmul.f32 %v20714_v31, %v20714_v31 }
 0x57d   :  { %v10319_v8 = vadd.f32 %v10318_v52, %v10209_v11 }
 0x57e   :  { %v10388_v22 = vadd.f32 %v10387_v30, %v10210_v1 }
 0x580   :  { %v20719_v46 = vpop.f32.mrb[100].mxu1 }
 0x581   :  { %v10054_v28 = vadd.f32 %v10053_v38, %v20719_v46  ;;  %v10211_v20 = vmul.f32 %v20719_v46, %v20719_v46  ;;  %v20724_v47 = vpop.f32.mrb[101].mxu1 }
 0x582   :  { %24751 = vst [vmem:[#allocation5_spill] sm:$0xff] %v20724_v47  ;;  %v10123_v50 = vadd.f32 %v10122_v7, %v20724_v47  ;;  %v10212_v0 = vmul.f32 %v20724_v47, %v20724_v47  ;;  %v20729_v5 = vpop.f32.mrb[102].mxu1 }
 0x583   :  { %v10320_v12 = vadd.f32 %v10319_v8, %v10211_v20  ;;  %v10055_v2 = vadd.f32 %v10054_v28, %v20729_v5  ;;  %v10213_v54 = vmul.f32 %v20729_v5, %v20729_v5  ;;  %v20734_v60 = vpop.f32.mrb[103].mxu1 }
 0x584   :  { %24752 = vst [vmem:[#allocation6_spill] sm:$0xff] %v20734_v60  ;;  %v10389_v41 = vadd.f32 %v10388_v22, %v10212_v0  ;;  %v10124_v49 = vadd.f32 %v10123_v50, %v20734_v60  ;;  %v10214_v29 = vmul.f32 %v20734_v60, %v20734_v60 }
 0x585   :  { %v10321_v3 = vadd.f32 %v10320_v12, %v10213_v54 }
 0x586   :  { %v10390_v9 = vadd.f32 %v10389_v41, %v10214_v29 }
 0x588   :  { %v20739_v37 = vpop.f32.mrb[104].mxu1 }
 0x589   :  { %v10056_v40 = vadd.f32 %v10055_v2, %v20739_v37  ;;  %v10215_v43 = vmul.f32 %v20739_v37, %v20739_v37  ;;  %v20744_v6 = vpop.f32.mrb[105].mxu1 }
 0x58a   :  { %24753 = vst [vmem:[#allocation8_spill] sm:$0xff] %v20744_v6  ;;  %v10125_v52 = vadd.f32 %v10124_v49, %v20744_v6  ;;  %v10216_v38 = vmul.f32 %v20744_v6, %v20744_v6  ;;  %v20749_v11 = vpop.f32.mrb[106].mxu1 }
 0x58b   :  { %v10322_v30 = vadd.f32 %v10321_v3, %v10215_v43  ;;  %v10057_v7 = vadd.f32 %v10056_v40, %v20749_v11  ;;  %v10217_v1 = vmul.f32 %v20749_v11, %v20749_v11  ;;  %v20754_v8 = vpop.f32.mrb[107].mxu1 }
 0x58c   :  { %24754 = vst [vmem:[#allocation10_spill] sm:$0xff] %v20754_v8  ;;  %v10391_v22 = vadd.f32 %v10390_v9, %v10216_v38  ;;  %v10126_v28 = vadd.f32 %v10125_v52, %v20754_v8  ;;  %v10218_v20 = vmul.f32 %v20754_v8, %v20754_v8 }
 0x58d   :  { %v10323_v50 = vadd.f32 %v10322_v30, %v10217_v1 }
 0x58e   :  { %v10392_v0 = vadd.f32 %v10391_v22, %v10218_v20 }
 0x590   :  { %v20759_v12 = vpop.f32.mrb[108].mxu1 }
 0x591   :  { %v10058_v2 = vadd.f32 %v10057_v7, %v20759_v12  ;;  %v10219_v54 = vmul.f32 %v20759_v12, %v20759_v12  ;;  %v20764_v41 = vpop.f32.mrb[109].mxu1 }
 0x592   :  { %24755 = vst [vmem:[#allocation7_spill] sm:$0xff] %v20764_v41  ;;  %v10127_v49 = vadd.f32 %v10126_v28, %v20764_v41  ;;  %v10220_v29 = vmul.f32 %v20764_v41, %v20764_v41  ;;  %v20769_v3 = vpop.f32.mrb[110].mxu1 }
 0x593   :  { %v10324_v9 = vadd.f32 %v10323_v50, %v10219_v54  ;;  %v10059_v40 = vadd.f32 %v10058_v2, %v20769_v3  ;;  %v10221_v43 = vmul.f32 %v20769_v3, %v20769_v3  ;;  %v20774_v52 = vpop.f32.mrb[111].mxu1 }
 0x594   :  { %24756 = vst [vmem:[#allocation9_spill] sm:$0xff] %v20774_v52  ;;  %v10393_v38 = vadd.f32 %v10392_v0, %v10220_v29  ;;  %v10128_v30 = vadd.f32 %v10127_v49, %v20774_v52  ;;  %v10222_v7 = vmul.f32 %v20774_v52, %v20774_v52 }
 0x595   :  { %v10325_v1 = vadd.f32 %v10324_v9, %v10221_v43 }
 0x596   :  { %v10394_v22 = vadd.f32 %v10393_v38, %v10222_v7 }
 0x598   :  { %v20779_v28 = vpop.f32.mrb[112].mxu1 }
 0x599   :  { %v10060_v20 = vadd.f32 %v10059_v40, %v20779_v28  ;;  %v10223_v50 = vmul.f32 %v20779_v28, %v20779_v28  ;;  %v20784_v2 = vpop.f32.mrb[113].mxu1 }
 0x59a   :  { %24757 = vst [vmem:[#allocation12_spill] sm:$0xff] %v20784_v2  ;;  %v10129_v54 = vadd.f32 %v10128_v30, %v20784_v2  ;;  %v10224_v0 = vmul.f32 %v20784_v2, %v20784_v2  ;;  %v20789_v49 = vpop.f32.mrb[114].mxu1 }
 0x59b   :  { %v10326_v29 = vadd.f32 %v10325_v1, %v10223_v50  ;;  %v10061_v9 = vadd.f32 %v10060_v20, %v20789_v49  ;;  %v10225_v43 = vmul.f32 %v20789_v49, %v20789_v49  ;;  %v20794_v38 = vpop.f32.mrb[115].mxu1 }
 0x59c   :  { %24758 = vst [vmem:[#allocation14_spill] sm:$0xff] %v20794_v38  ;;  %v10395_v40 = vadd.f32 %v10394_v22, %v10224_v0  ;;  %v10130_v7 = vadd.f32 %v10129_v54, %v20794_v38  ;;  %v10226_v52 = vmul.f32 %v20794_v38, %v20794_v38 }
 0x59d   :  { %v10327_v30 = vadd.f32 %v10326_v29, %v10225_v43 }
 0x59e   :  { %v10396_v41 = vadd.f32 %v10395_v40, %v10226_v52 }
 0x5a0   :  { %v20799_v8 = vpop.f32.mrb[116].mxu1 }
 0x5a1   :  { %v10062_v2 = vadd.f32 %v10061_v9, %v20799_v8  ;;  %v10227_v1 = vmul.f32 %v20799_v8, %v20799_v8  ;;  %v20804_v20 = vpop.f32.mrb[117].mxu1 }
 0x5a2   :  { %24759 = vst [vmem:[#allocation11_spill] sm:$0xff] %v20804_v20  ;;  %v10131_v50 = vadd.f32 %v10130_v7, %v20804_v20  ;;  %v10228_v22 = vmul.f32 %v20804_v20, %v20804_v20  ;;  %v20809_v54 = vpop.f32.mrb[118].mxu1 }
 0x5a3   :  { %v10328_v0 = vadd.f32 %v10327_v30, %v10227_v1  ;;  %v10063_v29 = vadd.f32 %v10062_v2, %v20809_v54  ;;  %v10229_v52 = vmul.f32 %v20809_v54, %v20809_v54  ;;  %v20814_v43 = vpop.f32.mrb[119].mxu1 }
 0x5a4   :  { %24760 = vst [vmem:[#allocation13_spill] sm:$0xff] %v20814_v43  ;;  %v10397_v9 = vadd.f32 %v10396_v41, %v10228_v22  ;;  %v10132_v40 = vadd.f32 %v10131_v50, %v20814_v43  ;;  %v10230_v38 = vmul.f32 %v20814_v43, %v20814_v43 }
 0x5a5   :  { %v10329_v7 = vadd.f32 %v10328_v0, %v10229_v52 }
 0x5a6   :  { %v10398_v6 = vadd.f32 %v10397_v9, %v10230_v38 }
 0x5a8   :  { %v20819_v60 = vpop.f32.mrb[120].mxu1 }
 0x5a9   :  { %v10064_v20 = vadd.f32 %v10063_v29, %v20819_v60  ;;  %v10231_v2 = vmul.f32 %v20819_v60, %v20819_v60  ;;  %v20824_v30 = vpop.f32.mrb[121].mxu1 }
 0x5aa   :  { %24761 = vst [vmem:[#allocation16_spill] sm:$0xff] %v20824_v30  ;;  %v10133_v1 = vadd.f32 %v10132_v40, %v20824_v30  ;;  %v10232_v41 = vmul.f32 %v20824_v30, %v20824_v30  ;;  %v20829_v50 = vpop.f32.mrb[122].mxu1 }
 0x5ab   :  { %v10330_v22 = vadd.f32 %v10329_v7, %v10231_v2  ;;  %v10065_v0 = vadd.f32 %v10064_v20, %v20829_v50  ;;  %v10233_v38 = vmul.f32 %v20829_v50, %v20829_v50  ;;  %v20834_v52 = vpop.f32.mrb[123].mxu1 }
 0x5ac   :  { %24762 = vst [vmem:[#allocation18_spill] sm:$0xff] %v20834_v52  ;;  %v10399_v29 = vadd.f32 %v10398_v6, %v10232_v41  ;;  %v10134_v9 = vadd.f32 %v10133_v1, %v20834_v52  ;;  %v10234_v43 = vmul.f32 %v20834_v52, %v20834_v52 }
 0x5ad   :  { %v10331_v40 = vadd.f32 %v10330_v22, %v10233_v38 }
 0x5ae   :  { %v10400_v47 = vadd.f32 %v10399_v29, %v10234_v43 }
 0x5b0   :  { %v20839_v31 = vpop.f32.mrb[124].mxu1 }
 0x5b1   :  { %v10066_v30 = vadd.f32 %v10065_v0, %v20839_v31  ;;  %v10235_v20 = vmul.f32 %v20839_v31, %v20839_v31  ;;  %v20844_v7 = vpop.f32.mrb[125].mxu1 }
 0x5b2   :  { %24763 = vst [vmem:[#allocation15_spill] sm:$0xff] %v20844_v7  ;;  %v10135_v2 = vadd.f32 %v10134_v9, %v20844_v7  ;;  %v10236_v6 = vmul.f32 %v20844_v7, %v20844_v7  ;;  %v20849_v1 = vpop.f32.mrb[126].mxu1 }
 0x5b3   :  { %v10332_v41 = vadd.f32 %v10331_v40, %v10235_v20  ;;  %v10067_v22 = vadd.f32 %v10066_v30, %v20849_v1  ;;  %v10237_v43 = vmul.f32 %v20849_v1, %v20849_v1  ;;  %v20854_v38 = vpop.f32.mrb[127].mxu1 }
 0x5b4   :  { %24764 = vst [vmem:[#allocation17_spill] sm:$0xff] %v20854_v38  ;;  %v10401_v0 = vadd.f32 %v10400_v47, %v10236_v6  ;;  %v10136_v29 = vadd.f32 %v10135_v2, %v20854_v38  ;;  %v10238_v52 = vmul.f32 %v20854_v38, %v20854_v38 }
 0x5b5   :  { %v10333_v9 = vadd.f32 %v10332_v41, %v10237_v43 }
 0x5b6   :  { %v10402_v36 = vadd.f32 %v10401_v0, %v10238_v52 }
 0x5b8   :  { %v20859_v58 = vpop.f32.mrb[128].mxu1 }
 0x5b9   :  { %v10068_v7 = vadd.f32 %v10067_v22, %v20859_v58  ;;  %v10239_v30 = vmul.f32 %v20859_v58, %v20859_v58  ;;  %v20864_v40 = vpop.f32.mrb[129].mxu1 }
 0x5ba   :  { %24765 = vst [vmem:[#allocation20_spill] sm:$0xff] %v20864_v40  ;;  %v10137_v20 = vadd.f32 %v10136_v29, %v20864_v40  ;;  %v10240_v47 = vmul.f32 %v20864_v40, %v20864_v40  ;;  %v20869_v2 = vpop.f32.mrb[130].mxu1 }
 0x5bb   :  { %v10334_v6 = vadd.f32 %v10333_v9, %v10239_v30  ;;  %v10069_v41 = vadd.f32 %v10068_v7, %v20869_v2  ;;  %v10241_v52 = vmul.f32 %v20869_v2, %v20869_v2  ;;  %v20874_v43 = vpop.f32.mrb[131].mxu1 }
 0x5bc   :  { %24766 = vst [vmem:[#allocation22_spill] sm:$0xff] %v20874_v43  ;;  %v10403_v22 = vadd.f32 %v10402_v36, %v10240_v47  ;;  %v10138_v0 = vadd.f32 %v10137_v20, %v20874_v43  ;;  %v10242_v38 = vmul.f32 %v20874_v43, %v20874_v43 }
 0x5bd   :  { %v10335_v29 = vadd.f32 %v10334_v6, %v10241_v52 }
 0x5be   :  { %v10404_v44 = vadd.f32 %v10403_v22, %v10242_v38 }
 0x5c0   :  { %v20879_v10 = vpop.f32.mrb[132].mxu1 }
 0x5c1   :  { %v10070_v40 = vadd.f32 %v10069_v41, %v20879_v10  ;;  %v10243_v7 = vmul.f32 %v20879_v10, %v20879_v10  ;;  %v20884_v9 = vpop.f32.mrb[133].mxu1 }
 0x5c2   :  { %24767 = vst [vmem:[#allocation19_spill] sm:$0xff] %v20884_v9  ;;  %v10139_v30 = vadd.f32 %v10138_v0, %v20884_v9  ;;  %v10244_v36 = vmul.f32 %v20884_v9, %v20884_v9  ;;  %v20889_v20 = vpop.f32.mrb[134].mxu1 }
 0x5c3   :  { %v10336_v47 = vadd.f32 %v10335_v29, %v10243_v7  ;;  %v10071_v6 = vadd.f32 %v10070_v40, %v20889_v20  ;;  %v10245_v38 = vmul.f32 %v20889_v20, %v20889_v20  ;;  %v20894_v52 = vpop.f32.mrb[135].mxu1 }
 0x5c4   :  { %24768 = vst [vmem:[#allocation37_spill] sm:$0xff] %v20894_v52  ;;  %v10405_v41 = vadd.f32 %v10404_v44, %v10244_v36  ;;  %v10140_v22 = vadd.f32 %v10139_v30, %v20894_v52  ;;  %v10246_v43 = vmul.f32 %v20894_v52, %v20894_v52 }
 0x5c5   :  { %v10337_v0 = vadd.f32 %v10336_v47, %v10245_v38 }
 0x5c6   :  { %v10406_v53 = vadd.f32 %v10405_v41, %v10246_v43 }
 0x5c8   :  { %v20899_v32 = vpop.f32.mrb[136].mxu1 }
 0x5c9   :  { %v10072_v9 = vadd.f32 %v10071_v6, %v20899_v32  ;;  %v10247_v40 = vmul.f32 %v20899_v32, %v20899_v32  ;;  %v20904_v29 = vpop.f32.mrb[137].mxu1 }
 0x5ca   :  { %24769 = vst [vmem:[#allocation21_spill] sm:$0xff] %v20904_v29  ;;  %v10141_v7 = vadd.f32 %v10140_v22, %v20904_v29  ;;  %v10248_v44 = vmul.f32 %v20904_v29, %v20904_v29  ;;  %v20909_v30 = vpop.f32.mrb[138].mxu1 }
 0x5cb   :  { %v10338_v36 = vadd.f32 %v10337_v0, %v10247_v40  ;;  %v10073_v47 = vadd.f32 %v10072_v9, %v20909_v30  ;;  %v10249_v43 = vmul.f32 %v20909_v30, %v20909_v30  ;;  %v20914_v38 = vpop.f32.mrb[139].mxu1 }
 0x5cc   :  { %24770 = vst [vmem:[#allocation24_spill] sm:$0xff] %v20914_v38  ;;  %v10407_v6 = vadd.f32 %v10406_v53, %v10248_v44  ;;  %v10142_v41 = vadd.f32 %v10141_v7, %v20914_v38  ;;  %v10250_v52 = vmul.f32 %v20914_v38, %v20914_v38 }
 0x5cd   :  { %v10339_v22 = vadd.f32 %v10338_v36, %v10249_v43 }
 0x5ce   :  { %v10408_v24 = vadd.f32 %v10407_v6, %v10250_v52 }
 0x5d0   :  { %v20919_v56 = vpop.f32.mrb[140].mxu1 }
 0x5d1   :  { %v10074_v29 = vadd.f32 %v10073_v47, %v20919_v56  ;;  %v10251_v9 = vmul.f32 %v20919_v56, %v20919_v56  ;;  %v20924_v0 = vpop.f32.mrb[141].mxu1 }
 0x5d2   :  { %24771 = vst [vmem:[#allocation42_spill] sm:$0xff] %v20924_v0  ;;  %v10143_v40 = vadd.f32 %v10142_v41, %v20924_v0  ;;  %v10252_v53 = vmul.f32 %v20924_v0, %v20924_v0  ;;  %v20929_v7 = vpop.f32.mrb[142].mxu1 }
 0x5d3   :  { %v10340_v44 = vadd.f32 %v10339_v22, %v10251_v9  ;;  %v10075_v36 = vadd.f32 %v10074_v29, %v20929_v7  ;;  %v10253_v52 = vmul.f32 %v20929_v7, %v20929_v7  ;;  %v20934_v43 = vpop.f32.mrb[143].mxu1 }
 0x5d4   :  { %24772 = vst [vmem:[#allocation43_spill] sm:$0xff] %v20934_v43  ;;  %v10409_v47 = vadd.f32 %v10408_v24, %v10252_v53  ;;  %v10144_v6 = vadd.f32 %v10143_v40, %v20934_v43  ;;  %v10254_v38 = vmul.f32 %v20934_v43, %v20934_v43 }
 0x5d5   :  { %v10341_v41 = vadd.f32 %v10340_v44, %v10253_v52 }
 0x5d6   :  { %v10410_v15 = vadd.f32 %v10409_v47, %v10254_v38 }
 0x5d8   :  { %v20939_v42 = vpop.f32.mrb[144].mxu1 }
 0x5d9   :  { %v10076_v0 = vadd.f32 %v10075_v36, %v20939_v42  ;;  %v10255_v29 = vmul.f32 %v20939_v42, %v20939_v42  ;;  %v20944_v22 = vpop.f32.mrb[145].mxu1 }
 0x5da   :  { %24773 = vst [vmem:[#allocation44_spill] sm:$0xff] %v20944_v22  ;;  %v10145_v9 = vadd.f32 %v10144_v6, %v20944_v22  ;;  %v10256_v24 = vmul.f32 %v20944_v22, %v20944_v22  ;;  %v20949_v40 = vpop.f32.mrb[146].mxu1 }
 0x5db   :  { %v10342_v53 = vadd.f32 %v10341_v41, %v10255_v29  ;;  %v10077_v44 = vadd.f32 %v10076_v0, %v20949_v40  ;;  %v10257_v38 = vmul.f32 %v20949_v40, %v20949_v40  ;;  %v20954_v52 = vpop.f32.mrb[147].mxu1 }
 0x5dc   :  { %24774 = vst [vmem:[#allocation45_spill] sm:$0xff] %v20954_v52  ;;  %v10411_v36 = vadd.f32 %v10410_v15, %v10256_v24  ;;  %v10146_v47 = vadd.f32 %v10145_v9, %v20954_v52  ;;  %v10258_v43 = vmul.f32 %v20954_v52, %v20954_v52 }
 0x5dd   :  { %v10343_v6 = vadd.f32 %v10342_v53, %v10257_v38 }
 0x5de   :  { %v10412_v26 = vadd.f32 %v10411_v36, %v10258_v43 }
 0x5e0   :  { %v20959_v18 = vpop.f32.mrb[148].mxu1 }
 0x5e1   :  { %v10078_v22 = vadd.f32 %v10077_v44, %v20959_v18  ;;  %v10259_v0 = vmul.f32 %v20959_v18, %v20959_v18  ;;  %v20964_v41 = vpop.f32.mrb[149].mxu1 }
 0x5e2   :  { %24775 = vst [vmem:[#allocation46_spill] sm:$0xff] %v20964_v41  ;;  %v10147_v29 = vadd.f32 %v10146_v47, %v20964_v41  ;;  %v10260_v15 = vmul.f32 %v20964_v41, %v20964_v41  ;;  %v20969_v9 = vpop.f32.mrb[150].mxu1 }
 0x5e3   :  { %24776 = vst [vmem:[#allocation47_spill] sm:$0xff] %v20969_v9  ;;  %v10344_v24 = vadd.f32 %v10343_v6, %v10259_v0  ;;  %v10079_v53 = vadd.f32 %v10078_v22, %v20969_v9  ;;  %v10261_v43 = vmul.f32 %v20969_v9, %v20969_v9  ;;  %v20974_v38 = vpop.f32.mrb[151].mxu1 }
 0x5e4   :  { %24777 = vst [vmem:[#allocation48_spill] sm:$0xff] %v20974_v38  ;;  %v10413_v44 = vadd.f32 %v10412_v26, %v10260_v15  ;;  %v10148_v36 = vadd.f32 %v10147_v29, %v20974_v38  ;;  %v10262_v52 = vmul.f32 %v20974_v38, %v20974_v38 }
 0x5e5   :  { %v10345_v47 = vadd.f32 %v10344_v24, %v10261_v43 }
 0x5e6   :  { %v10414_v33 = vadd.f32 %v10413_v44, %v10262_v52 }
 0x5e8   :  { %v20979_v23 = vpop.f32.mrb[152].mxu1 }
 0x5e9   :  { %24778 = vst [vmem:[#allocation49_spill] sm:$0xff] %v20979_v23  ;;  %v10080_v41 = vadd.f32 %v10079_v53, %v20979_v23  ;;  %v10263_v22 = vmul.f32 %v20979_v23, %v20979_v23  ;;  %v20984_v6 = vpop.f32.mrb[153].mxu1 }
 0x5ea   :  { %24779 = vst [vmem:[#allocation50_spill] sm:$0xff] %v20984_v6  ;;  %v10149_v0 = vadd.f32 %v10148_v36, %v20984_v6  ;;  %v10264_v26 = vmul.f32 %v20984_v6, %v20984_v6  ;;  %v20989_v29 = vpop.f32.mrb[154].mxu1 }
 0x5eb   :  { %24780 = vst [vmem:[#allocation51_spill] sm:$0xff] %v20989_v29  ;;  %v10346_v15 = vadd.f32 %v10345_v47, %v10263_v22  ;;  %v10081_v24 = vadd.f32 %v10080_v41, %v20989_v29  ;;  %v10265_v52 = vmul.f32 %v20989_v29, %v20989_v29  ;;  %v20994_v43 = vpop.f32.mrb[155].mxu1 }
 0x5ec   :  { %24781 = vst [vmem:[#allocation52_spill] sm:$0xff] %v20994_v43  ;;  %v10415_v53 = vadd.f32 %v10414_v33, %v10264_v26  ;;  %v10150_v44 = vadd.f32 %v10149_v0, %v20994_v43  ;;  %v10266_v38 = vmul.f32 %v20994_v43, %v20994_v43 }
 0x5ed   :  { %v10347_v36 = vadd.f32 %v10346_v15, %v10265_v52 }
 0x5ee   :  { %v10416_v39 = vadd.f32 %v10415_v53, %v10266_v38 }
 0x5f0   :  { %v20999_v59 = vpop.f32.mrb[156].mxu1 }
 0x5f1   :  { %24782 = vst [vmem:[#allocation53_spill] sm:$0xff] %v20999_v59  ;;  %v10082_v6 = vadd.f32 %v10081_v24, %v20999_v59  ;;  %v10267_v41 = vmul.f32 %v20999_v59, %v20999_v59  ;;  %v21004_v47 = vpop.f32.mrb[157].mxu1 }
 0x5f2   :  { %24783 = vst [vmem:[#allocation54_spill] sm:$0xff] %v21004_v47  ;;  %v10151_v22 = vadd.f32 %v10150_v44, %v21004_v47  ;;  %v10268_v33 = vmul.f32 %v21004_v47, %v21004_v47  ;;  %v21009_v0 = vpop.f32.mrb[158].mxu1 }
 0x5f3   :  { %24784 = vst [vmem:[#allocation55_spill] sm:$0xff] %v21009_v0  ;;  %v10348_v26 = vadd.f32 %v10347_v36, %v10267_v41  ;;  %v10083_v15 = vadd.f32 %v10082_v6, %v21009_v0  ;;  %v10269_v38 = vmul.f32 %v21009_v0, %v21009_v0  ;;  %v21014_v52 = vpop.f32.mrb[159].mxu1 }
 0x5f4   :  { %24785 = vst [vmem:[#allocation56_spill] sm:$0xff] %v21014_v52  ;;  %v10417_v24 = vadd.f32 %v10416_v39, %v10268_v33  ;;  %v10152_v53 = vadd.f32 %v10151_v22, %v21014_v52  ;;  %v10270_v43 = vmul.f32 %v21014_v52, %v21014_v52 }
 0x5f5   :  { %v10349_v44 = vadd.f32 %v10348_v26, %v10269_v38 }
 0x5f6   :  { %v10418_v63 = vadd.f32 %v10417_v24, %v10270_v43 }
 0x5f8   :  { %v21019_v59 = vpop.f32.mrb[160].mxu1 }
 0x5f9   :  { %24786 = vst [vmem:[#allocation57_spill] sm:$0xff] %v21019_v59  ;;  %v10084_v47 = vadd.f32 %v10083_v15, %v21019_v59  ;;  %v10271_v6 = vmul.f32 %v21019_v59, %v21019_v59  ;;  %v21024_v36 = vpop.f32.mrb[161].mxu1 }
 0x5fa   :  { %24787 = vst [vmem:[#allocation58_spill] sm:$0xff] %v21024_v36  ;;  %v10153_v41 = vadd.f32 %v10152_v53, %v21024_v36  ;;  %v10272_v39 = vmul.f32 %v21024_v36, %v21024_v36  ;;  %v21029_v22 = vpop.f32.mrb[162].mxu1 }
 0x5fb   :  { %24788 = vst [vmem:[#allocation59_spill] sm:$0xff] %v21029_v22  ;;  %v10350_v33 = vadd.f32 %v10349_v44, %v10271_v6  ;;  %v10085_v26 = vadd.f32 %v10084_v47, %v21029_v22  ;;  %v10273_v43 = vmul.f32 %v21029_v22, %v21029_v22  ;;  %v21034_v38 = vpop.f32.mrb[163].mxu1 }
 0x5fc   :  { %24789 = vst [vmem:[#allocation60_spill] sm:$0xff] %v21034_v38  ;;  %v10419_v15 = vadd.f32 %v10418_v63, %v10272_v39  ;;  %v10154_v24 = vadd.f32 %v10153_v41, %v21034_v38  ;;  %v10274_v52 = vmul.f32 %v21034_v38, %v21034_v38 }
 0x5fd   :  { %v10351_v53 = vadd.f32 %v10350_v33, %v10273_v43 }
 0x5fe   :  { %v10420_v59 = vadd.f32 %v10419_v15, %v10274_v52 }
 0x600   :  { %v21039_v0 = vpop.f32.mrb[164].mxu1 }
 0x601   :  { %24790 = vst [vmem:[#allocation61_spill] sm:$0xff] %v21039_v0  ;;  %v10086_v36 = vadd.f32 %v10085_v26, %v21039_v0  ;;  %v10275_v47 = vmul.f32 %v21039_v0, %v21039_v0  ;;  %v21044_v44 = vpop.f32.mrb[165].mxu1 }
 0x602   :  { %24791 = vst [vmem:[#allocation62_spill] sm:$0xff] %v21044_v44  ;;  %v10155_v6 = vadd.f32 %v10154_v24, %v21044_v44  ;;  %v10276_v63 = vmul.f32 %v21044_v44, %v21044_v44  ;;  %v21049_v41 = vpop.f32.mrb[166].mxu1 }
 0x603   :  { %24792 = vst [vmem:[#allocation63_spill] sm:$0xff] %v21049_v41  ;;  %v10352_v39 = vadd.f32 %v10351_v53, %v10275_v47  ;;  %v10087_v33 = vadd.f32 %v10086_v36, %v21049_v41  ;;  %v10277_v52 = vmul.f32 %v21049_v41, %v21049_v41  ;;  %v21054_v43 = vpop.f32.mrb[167].mxu1 }
 0x604   :  { %24793 = vst [vmem:[#allocation64_spill] sm:$0xff] %v21054_v43  ;;  %v10421_v26 = vadd.f32 %v10420_v59, %v10276_v63  ;;  %v10156_v15 = vadd.f32 %v10155_v6, %v21054_v43  ;;  %v10278_v38 = vmul.f32 %v21054_v43, %v21054_v43 }
 0x605   :  { %v10353_v24 = vadd.f32 %v10352_v39, %v10277_v52 }
 0x606   :  { %v10422_v0 = vadd.f32 %v10421_v26, %v10278_v38 }
 0x608   :  { %v21059_v22 = vpop.f32.mrb[168].mxu1 }
 0x609   :  { %24794 = vst [vmem:[#allocation65_spill] sm:$0xff] %v21059_v22  ;;  %v10088_v44 = vadd.f32 %v10087_v33, %v21059_v22  ;;  %v10279_v36 = vmul.f32 %v21059_v22, %v21059_v22  ;;  %v21064_v53 = vpop.f32.mrb[169].mxu1 }
 0x60a   :  { %24795 = vst [vmem:[#allocation66_spill] sm:$0xff] %v21064_v53  ;;  %v10157_v47 = vadd.f32 %v10156_v15, %v21064_v53  ;;  %v10280_v59 = vmul.f32 %v21064_v53, %v21064_v53  ;;  %v21069_v6 = vpop.f32.mrb[170].mxu1 }
 0x60b   :  { %24796 = vst [vmem:[#allocation67_spill] sm:$0xff] %v21069_v6  ;;  %v10354_v63 = vadd.f32 %v10353_v24, %v10279_v36  ;;  %v10089_v39 = vadd.f32 %v10088_v44, %v21069_v6  ;;  %v10281_v38 = vmul.f32 %v21069_v6, %v21069_v6  ;;  %v21074_v52 = vpop.f32.mrb[171].mxu1 }
 0x60c   :  { %24797 = vst [vmem:[#allocation68_spill] sm:$0xff] %v21074_v52  ;;  %v10423_v33 = vadd.f32 %v10422_v0, %v10280_v59  ;;  %v10158_v26 = vadd.f32 %v10157_v47, %v21074_v52  ;;  %v10282_v43 = vmul.f32 %v21074_v52, %v21074_v52 }
 0x60d   :  { %v10355_v15 = vadd.f32 %v10354_v63, %v10281_v38 }
 0x60e   :  { %v10424_v22 = vadd.f32 %v10423_v33, %v10282_v43 }
 0x610   :  { %v21079_v41 = vpop.f32.mrb[172].mxu1 }
 0x611   :  { %24798 = vst [vmem:[#allocation69_spill] sm:$0xff] %v21079_v41  ;;  %v10090_v53 = vadd.f32 %v10089_v39, %v21079_v41  ;;  %v10283_v44 = vmul.f32 %v21079_v41, %v21079_v41  ;;  %v21084_v24 = vpop.f32.mrb[173].mxu1 }
 0x612   :  { %24799 = vst [vmem:[#allocation70_spill] sm:$0xff] %v21084_v24  ;;  %v10159_v36 = vadd.f32 %v10158_v26, %v21084_v24  ;;  %v10284_v0 = vmul.f32 %v21084_v24, %v21084_v24  ;;  %v21089_v47 = vpop.f32.mrb[174].mxu1 }
 0x613   :  { %24800 = vst [vmem:[#allocation71_spill] sm:$0xff] %v21089_v47  ;;  %v10356_v59 = vadd.f32 %v10355_v15, %v10283_v44  ;;  %v10091_v63 = vadd.f32 %v10090_v53, %v21089_v47  ;;  %v10285_v43 = vmul.f32 %v21089_v47, %v21089_v47  ;;  %v21094_v38 = vpop.f32.mrb[175].mxu1 }
 0x614   :  { %24801 = vst [vmem:[#allocation72_spill] sm:$0xff] %v21094_v38  ;;  %v10425_v39 = vadd.f32 %v10424_v22, %v10284_v0  ;;  %v10160_v33 = vadd.f32 %v10159_v36, %v21094_v38  ;;  %v10286_v52 = vmul.f32 %v21094_v38, %v21094_v38 }
 0x615   :  { %v10357_v26 = vadd.f32 %v10356_v59, %v10285_v43 }
 0x616   :  { %v10426_v41 = vadd.f32 %v10425_v39, %v10286_v52 }
 0x618   :  { %v21099_v6 = vpop.f32.mrb[176].mxu1 }
 0x619   :  { %24802 = vst [vmem:[#allocation73_spill] sm:$0xff] %v21099_v6  ;;  %v10092_v24 = vadd.f32 %v10091_v63, %v21099_v6  ;;  %v10287_v53 = vmul.f32 %v21099_v6, %v21099_v6  ;;  %v21104_v15 = vpop.f32.mrb[177].mxu1 }
 0x61a   :  { %24803 = vst [vmem:[#allocation74_spill] sm:$0xff] %v21104_v15  ;;  %v10161_v44 = vadd.f32 %v10160_v33, %v21104_v15  ;;  %v10288_v22 = vmul.f32 %v21104_v15, %v21104_v15  ;;  %v21109_v36 = vpop.f32.mrb[178].mxu1 }
 0x61b   :  { %24804 = vst [vmem:[#allocation75_spill] sm:$0xff] %v21109_v36  ;;  %v10358_v0 = vadd.f32 %v10357_v26, %v10287_v53  ;;  %v10093_v59 = vadd.f32 %v10092_v24, %v21109_v36  ;;  %v10289_v52 = vmul.f32 %v21109_v36, %v21109_v36  ;;  %v21114_v43 = vpop.f32.mrb[179].mxu1 }
 0x61c   :  { %24805 = vst [vmem:[#allocation76_spill] sm:$0xff] %v21114_v43  ;;  %v10427_v63 = vadd.f32 %v10426_v41, %v10288_v22  ;;  %v10162_v39 = vadd.f32 %v10161_v44, %v21114_v43  ;;  %v10290_v38 = vmul.f32 %v21114_v43, %v21114_v43 }
 0x61d   :  { %v10359_v33 = vadd.f32 %v10358_v0, %v10289_v52 }
 0x61e   :  { %v10428_v6 = vadd.f32 %v10427_v63, %v10290_v38 }
 0x620   :  { %v21119_v47 = vpop.f32.mrb[180].mxu1 }
 0x621   :  { %24806 = vst [vmem:[#allocation77_spill] sm:$0xff] %v21119_v47  ;;  %v10094_v15 = vadd.f32 %v10093_v59, %v21119_v47  ;;  %v10291_v24 = vmul.f32 %v21119_v47, %v21119_v47  ;;  %v21124_v26 = vpop.f32.mrb[181].mxu1 }
 0x622   :  { %24807 = vst [vmem:[#allocation78_spill] sm:$0xff] %v21124_v26  ;;  %v10163_v53 = vadd.f32 %v10162_v39, %v21124_v26  ;;  %v10292_v41 = vmul.f32 %v21124_v26, %v21124_v26  ;;  %v21129_v44 = vpop.f32.mrb[182].mxu1 }
 0x623   :  { %24808 = vst [vmem:[#allocation79_spill] sm:$0xff] %v21129_v44  ;;  %v10360_v22 = vadd.f32 %v10359_v33, %v10291_v24  ;;  %v10095_v0 = vadd.f32 %v10094_v15, %v21129_v44  ;;  %v10293_v38 = vmul.f32 %v21129_v44, %v21129_v44  ;;  %v21134_v52 = vpop.f32.mrb[183].mxu1 }
 0x624   :  { %24809 = vst [vmem:[#allocation80_spill] sm:$0xff] %v21134_v52  ;;  %v10429_v59 = vadd.f32 %v10428_v6, %v10292_v41  ;;  %v10164_v63 = vadd.f32 %v10163_v53, %v21134_v52  ;;  %v10294_v43 = vmul.f32 %v21134_v52, %v21134_v52 }
 0x625   :  { %v10361_v39 = vadd.f32 %v10360_v22, %v10293_v38 }
 0x626   :  { %v10430_v47 = vadd.f32 %v10429_v59, %v10294_v43 }
 0x628   :  { %v21139_v36 = vpop.f32.mrb[184].mxu1 }
 0x629   :  { %24810 = vst [vmem:[#allocation81_spill] sm:$0xff] %v21139_v36  ;;  %v10096_v26 = vadd.f32 %v10095_v0, %v21139_v36  ;;  %v10295_v15 = vmul.f32 %v21139_v36, %v21139_v36  ;;  %v21144_v33 = vpop.f32.mrb[185].mxu1 }
 0x62a   :  { %24811 = vst [vmem:[#allocation82_spill] sm:$0xff] %v21144_v33  ;;  %v10165_v24 = vadd.f32 %v10164_v63, %v21144_v33  ;;  %v10296_v6 = vmul.f32 %v21144_v33, %v21144_v33  ;;  %v21149_v53 = vpop.f32.mrb[186].mxu1 }
 0x62b   :  { %24812 = vst [vmem:[#allocation83_spill] sm:$0xff] %v21149_v53  ;;  %v10362_v41 = vadd.f32 %v10361_v39, %v10295_v15  ;;  %v10097_v22 = vadd.f32 %v10096_v26, %v21149_v53  ;;  %v10297_v43 = vmul.f32 %v21149_v53, %v21149_v53  ;;  %v21154_v38 = vpop.f32.mrb[187].mxu1 }
 0x62c   :  { %24813 = vst [vmem:[#allocation84_spill] sm:$0xff] %v21154_v38  ;;  %v10431_v0 = vadd.f32 %v10430_v47, %v10296_v6  ;;  %v10166_v59 = vadd.f32 %v10165_v24, %v21154_v38  ;;  %v10298_v52 = vmul.f32 %v21154_v38, %v21154_v38 }
 0x62d   :  { %v10363_v63 = vadd.f32 %v10362_v41, %v10297_v43 }
 0x62e   :  { %v10432_v36 = vadd.f32 %v10431_v0, %v10298_v52 }
 0x630   :  { %v21159_v44 = vpop.f32.mrb[188].mxu1 }
 0x631   :  { %24814 = vst [vmem:[#allocation85_spill] sm:$0xff] %v21159_v44  ;;  %v10098_v33 = vadd.f32 %v10097_v22, %v21159_v44  ;;  %v10299_v26 = vmul.f32 %v21159_v44, %v21159_v44  ;;  %v21164_v39 = vpop.f32.mrb[189].mxu1 }
 0x632   :  { %24815 = vst [vmem:[#allocation86_spill] sm:$0xff] %v21164_v39  ;;  %v10167_v15 = vadd.f32 %v10166_v59, %v21164_v39  ;;  %v10300_v47 = vmul.f32 %v21164_v39, %v21164_v39  ;;  %v21169_v24 = vpop.f32.mrb[190].mxu1 }
 0x633   :  { %24816 = vst [vmem:[#allocation87_spill] sm:$0xff] %v21169_v24  ;;  %v10364_v6 = vadd.f32 %v10363_v63, %v10299_v26  ;;  %v10099_v41 = vadd.f32 %v10098_v33, %v21169_v24  ;;  %v10301_v52 = vmul.f32 %v21169_v24, %v21169_v24  ;;  %v21174_v53 = vpop.f32.mrb[191].mxu1 }
 0x634   :  { %v10433_v43 = vadd.f32 %v10432_v36, %v10300_v47  ;;  %24817 = vst [vmem:[#allocation88_spill] sm:$0xff] %v21174_v53  ;;  %v21177_v59 = vadd.f32 %v10167_v15, %v21174_v53  ;;  %v10302_v39 = vmul.f32 %v21174_v53, %v21174_v53 }
 0x635   :  { %v10100_v22 = vrot.slane %v10099_v41, 4  ;;  %v10365_v0 = vadd.f32 %v10364_v6, %v10301_v52 }
 0x636   :  { %v21181_v26 = vadd.f32 %v10433_v43, %v10302_v39 }
 0x637   :  { %v10101_v38 = vadd.f32 %v10100_v22, %v10099_v41  ;;  %v10366_v44 = vrot.slane %v10365_v0, 4 }
 0x638   :  { %v10435_v22 = vrot.slane %v21181_v26, 4 }
 0x639   :  { %v10102_v29 = vrot.slane %v10101_v38, 2  ;;  %v10367_v63 = vadd.f32 %v10366_v44, %v10365_v0  ;;  %v24832_v44 = vld [vmem:[#allocation75_spill] sm:$0xff] }
 0x63a   :  { %v10436_v39 = vadd.f32 %v10435_v22, %v21181_v26 }
 0x63b   :  { %v10103_v33 = vadd.f32 %v10102_v29, %v10101_v38  ;;  %v10368_v23 = vrot.slane %v10367_v63, 2  ;;  %v10035_v38 = vld [vmem:[%s24049_s5] sm:$0x3] }
 0x63d   :  { %v10104_v24 = vrot.slane %v10103_v33, 1  ;;  %v10369_v36 = vadd.f32 %v10368_v23, %v10367_v63  ;;  %v10437_v23 = vrot.slane %v10436_v39, 2 }
 0x63f   :  { %v10105_v47 = vadd.f32 %v10104_v24, %v10103_v33  ;;  %v10370_v6 = vrot.slane %v10369_v36, 1  ;;  %v24818_v33 = vld [vmem:[#allocation47_spill] sm:$0xff]  ;;  %v21325_v63 = vadd.f32 %v10437_v23, %v10436_v39 }
 0x641   :  { %v10371_v41 = vadd.f32 %v10370_v6, %v10369_v36  ;;  %v21183_v52 = vmul.f32 0.001953125, %v10105_v47  ;;  %v24819_v36 = vld [vmem:[#allocation49_spill] sm:$0xff] }
 0x643   :  { %v10443_v15 = vmul.f32 0.001953125, %v10371_v41  ;;  %v10445_v9 = vmul.f32 %v21183_v52, %v21183_v52  ;;  %v24841_v22 = vsub.f32 %v20520_v35, %v21183_v52  ;;  %v24844_v39 = vsub.f32 %v20554_v48, %v21183_v52 }
 0x645   :  { %v10447_v43 = vsub.f32 %v10443_v15, %v10445_v9  ;;  %v24839_v9 = vrot.slane %v21177_v59, 4  ;;  %v24840_v15 = vld [vmem:[#allocation35_spill] sm:$0xff] }
 0x646   :  { %v10587_v6 = vrot.slane %v10035_v38, %v24840_v15  ;;  %v24842_v38 = vsub.f32 %v20524_v21, %v21183_v52 }
 0x647   :  { %v10449_v41 = vmax.f32 %v10447_v43, 0.0  ;;  %v10170_v0 = vadd.f32 %v24839_v9, %v21177_v59  ;;  %v24847_v9 = vsub.f32 %v20592_v45, %v21183_v52 }
 0x649   :  { %v10579_v47 = vadd.f32 1e-05, %v10449_v41  ;;  %v10171_v24 = vrot.slane %v10170_v0, 2 }
 0x64b   :  { %14879 = vrsqrt.f32 %v10579_v47  ;;  %v10172_v43 = vadd.f32 %v10171_v24, %v10170_v0  ;;  %v24845_v0 = vsub.f32 %v20568_v51, %v21183_v52 }
 0x64d   :  { %v10173_v41 = vrot.slane %v10172_v43, 1 }
 0x64f   :  { %v21330_v47 = vadd.f32 %v10173_v41, %v10172_v43  ;;  %v24848_v43 = vsub.f32 %v20602_v17, %v21183_v52  ;;  %v24849_v41 = vsub.f32 %v20616_v27, %v21183_v52 }
 0x655   :  { %v14880_v29 = vpop.eup %14879 }
 0x656   :  { %v10594_v53 = vmul.f32 %v14880_v29, %v10587_v6  ;;  %v24846_v6 = vsub.f32 %v20578_v57, %v21183_v52 }
 0x658   :  { %v21328_v59 = vrot.slane %v10594_v53, %v24840_v15  ;;  %v24843_v53 = vsub.f32 %v20544_v16, %v21183_v52 }
 0x65a   :  { %v21337_v24 = vmul.f32 %v21328_v59, %v24841_v22  ;;  %v21343_v23 = vmul.f32 %v21328_v59, %v24842_v38  ;;  %v21349_v29 = vmul.f32 %v21328_v59, %v24843_v53  ;;  %v21355_v35 = vmul.f32 %v21328_v59, %v24844_v39 }
 0x65b   :  { %v21361_v21 = vmul.f32 %v21328_v59, %v24845_v0  ;;  %v21367_v16 = vmul.f32 %v21328_v59, %v24846_v6  ;;  %v21373_v48 = vmul.f32 %v21328_v59, %v24847_v9  ;;  %v21379_v51 = vmul.f32 %v21328_v59, %v24848_v43 }
 0x65c   :  { %v21385_v57 = vmul.f32 %v21328_v59, %v24849_v41  ;;  %v24850_v22 = vsub.f32 %v20626_v55, %v21183_v52  ;;  %v24851_v38 = vsub.f32 %v20639_v34, %v21183_v52  ;;  %v24852_v53 = vsub.f32 %v20649_v62, %v21183_v52 }
 0x65d   :  { %v24853_v39 = vsub.f32 %v20659_v4, %v21183_v52  ;;  %v24854_v0 = vsub.f32 %v20669_v61, %v21183_v52  ;;  %v24855_v6 = vsub.f32 %v20679_v13, %v21183_v52  ;;  %v24856_v9 = vsub.f32 %v20689_v19, %v21183_v52 }
 0x65e   :  { %v21391_v45 = vmul.f32 %v21328_v59, %v24850_v22  ;;  %v21397_v17 = vmul.f32 %v21328_v59, %v24851_v38  ;;  %v21403_v27 = vmul.f32 %v21328_v59, %v24852_v53  ;;  %v24857_v43 = vsub.f32 %v20699_v25, %v21183_v52 }
 0x65f   :  { %v21409_v55 = vmul.f32 %v21328_v59, %v24853_v39  ;;  %v21415_v34 = vmul.f32 %v21328_v59, %v24854_v0  ;;  %v21421_v62 = vmul.f32 %v21328_v59, %v24855_v6  ;;  %v21427_v4 = vmul.f32 %v21328_v59, %v24856_v9 }
 0x660   :  { %v21433_v61 = vmul.f32 %v21328_v59, %v24857_v43  ;;  %v24858_v41 = vsub.f32 %v20709_v14, %v21183_v52  ;;  %v24859_v22 = vsub.f32 %v20719_v46, %v21183_v52  ;;  %v24860_v38 = vsub.f32 %v20729_v5, %v21183_v52 }
 0x661   :  { %v24861_v53 = vsub.f32 %v20739_v37, %v21183_v52  ;;  %v24862_v39 = vsub.f32 %v20749_v11, %v21183_v52  ;;  %v24863_v0 = vsub.f32 %v20759_v12, %v21183_v52  ;;  %v24864_v6 = vsub.f32 %v20769_v3, %v21183_v52 }
 0x662   :  { %v21439_v13 = vmul.f32 %v21328_v59, %v24858_v41  ;;  %v21445_v19 = vmul.f32 %v21328_v59, %v24859_v22  ;;  %v21451_v25 = vmul.f32 %v21328_v59, %v24860_v38  ;;  %v24865_v9 = vsub.f32 %v20779_v28, %v21183_v52 }
 0x663   :  { %v21457_v14 = vmul.f32 %v21328_v59, %v24861_v53  ;;  %v21463_v46 = vmul.f32 %v21328_v59, %v24862_v39  ;;  %v21469_v5 = vmul.f32 %v21328_v59, %v24863_v0  ;;  %v21475_v37 = vmul.f32 %v21328_v59, %v24864_v6 }
 0x664   :  { %v21481_v11 = vmul.f32 %v21328_v59, %v24865_v9  ;;  %v24866_v43 = vsub.f32 %v20789_v49, %v21183_v52  ;;  %v24867_v41 = vsub.f32 %v20799_v8, %v21183_v52  ;;  %v24868_v22 = vsub.f32 %v20809_v54, %v21183_v52 }
 0x665   :  { %v24869_v38 = vsub.f32 %v20819_v60, %v21183_v52  ;;  %v24870_v53 = vsub.f32 %v20829_v50, %v21183_v52  ;;  %v24871_v39 = vsub.f32 %v20839_v31, %v21183_v52  ;;  %v24872_v0 = vsub.f32 %v20849_v1, %v21183_v52 }
 0x666   :  { %v21487_v12 = vmul.f32 %v21328_v59, %v24866_v43  ;;  %v21493_v3 = vmul.f32 %v21328_v59, %v24867_v41  ;;  %v21499_v28 = vmul.f32 %v21328_v59, %v24868_v22  ;;  %v24873_v6 = vsub.f32 %v20859_v58, %v21183_v52 }
 0x667   :  { %v21505_v49 = vmul.f32 %v21328_v59, %v24869_v38  ;;  %v21511_v8 = vmul.f32 %v21328_v59, %v24870_v53  ;;  %v21517_v54 = vmul.f32 %v21328_v59, %v24871_v39  ;;  %v21523_v60 = vmul.f32 %v21328_v59, %v24872_v0 }
 0x668   :  { %v21529_v50 = vmul.f32 %v21328_v59, %v24873_v6  ;;  %v24874_v9 = vsub.f32 %v20869_v2, %v21183_v52  ;;  %v24875_v43 = vsub.f32 %v20879_v10, %v21183_v52  ;;  %v24876_v41 = vsub.f32 %v20889_v20, %v21183_v52 }
 0x669   :  { %v24877_v22 = vsub.f32 %v20899_v32, %v21183_v52  ;;  %v24878_v38 = vsub.f32 %v20909_v30, %v21183_v52  ;;  %v24879_v53 = vsub.f32 %v20919_v56, %v21183_v52  ;;  %v24880_v39 = vsub.f32 %v20929_v7, %v21183_v52 }
 0x66a   :  { %v21535_v31 = vmul.f32 %v21328_v59, %v24874_v9  ;;  %v21541_v1 = vmul.f32 %v21328_v59, %v24875_v43  ;;  %v21547_v58 = vmul.f32 %v21328_v59, %v24876_v41  ;;  %v24881_v0 = vsub.f32 %v20939_v42, %v21183_v52 }
 0x66b   :  { %v21553_v2 = vmul.f32 %v21328_v59, %v24877_v22  ;;  %v21559_v10 = vmul.f32 %v21328_v59, %v24878_v38  ;;  %v21565_v20 = vmul.f32 %v21328_v59, %v24879_v53  ;;  %v21571_v32 = vmul.f32 %v21328_v59, %v24880_v39  ;;  %v24886_v22 = vld [vmem:[#allocation51_spill] sm:$0xff]  ;;  %v24888_v53 = vld [vmem:[#allocation53_spill] sm:$0xff] }
 0x66c   :  { %v21577_v30 = vmul.f32 %v21328_v59, %v24881_v0  ;;  %v24882_v6 = vsub.f32 %v20949_v40, %v21183_v52  ;;  %v24883_v9 = vsub.f32 %v20959_v18, %v21183_v52  ;;  %v24884_v43 = vsub.f32 %v24818_v33, %v21183_v52  ;;  %v24891_v0 = vld [vmem:[#allocation55_spill] sm:$0xff] }
 0x66d   :  { %v24885_v41 = vsub.f32 %v24819_v36, %v21183_v52  ;;  %v24887_v38 = vsub.f32 %v24886_v22, %v21183_v52  ;;  %v24889_v39 = vsub.f32 %v24888_v53, %v21183_v52  ;;  %v24897_v22 = vld [vmem:[#allocation59_spill] sm:$0xff] }
 0x66e   :  { %v21583_v56 = vmul.f32 %v21328_v59, %v24882_v6  ;;  %v21589_v7 = vmul.f32 %v21328_v59, %v24883_v9  ;;  %v21595_v42 = vmul.f32 %v21328_v59, %v24884_v43  ;;  %v24892_v6 = vsub.f32 %v24891_v0, %v21183_v52  ;;  %v24894_v9 = vld [vmem:[#allocation57_spill] sm:$0xff] }
 0x66f   :  { %v21601_v40 = vmul.f32 %v21328_v59, %v24885_v41  ;;  %v21607_v18 = vmul.f32 %v21328_v59, %v24887_v38  ;;  %v21613_v33 = vmul.f32 %v21328_v59, %v24889_v39  ;;  %v24895_v43 = vsub.f32 %v24894_v9, %v21183_v52  ;;  %v24900_v39 = vld [vmem:[#allocation61_spill] sm:$0xff] }
 0x670   :  { %v21619_v36 = vmul.f32 %v21328_v59, %v24892_v6  ;;  %v24898_v38 = vsub.f32 %v24897_v22, %v21183_v52  ;;  %v24901_v26 = vsub.f32 %v24900_v39, %v21183_v52  ;;  %v24903_v6 = vld [vmem:[#allocation63_spill] sm:$0xff] }
 0x671   :  { %24890 = vst [vmem:[#allocation47_spill] sm:$0xff] %v21613_v33  ;;  %v21625_v41 = vmul.f32 %v21328_v59, %v24895_v43  ;;  %v24906_v43 = vld [vmem:[#allocation65_spill] sm:$0xff] }
 0x672   :  { %24893 = vst [vmem:[#allocation49_spill] sm:$0xff] %v21619_v36  ;;  %v21631_v53 = vmul.f32 %v21328_v59, %v24898_v38  ;;  %v21637_v0 = vmul.f32 %v21328_v59, %v24901_v26  ;;  %v24904_v36 = vsub.f32 %v24903_v6, %v21183_v52  ;;  %v24909_v38 = vld [vmem:[#allocation67_spill] sm:$0xff]  ;;  %v24912_v26 = vld [vmem:[#allocation69_spill] sm:$0xff] }
 0x673   :  { %24896 = vst [vmem:[#allocation75_spill] sm:$0xff] %v21625_v41  ;;  %v24907_v41 = vsub.f32 %v24906_v43, %v21183_v52 }
 0x674   :  { %24899 = vst [vmem:[#allocation51_spill] sm:$0xff] %v21631_v53  ;;  %24902 = vst [vmem:[#allocation53_spill] sm:$0xff] %v21637_v0  ;;  %v21643_v9 = vmul.f32 %v21328_v59, %v24904_v36  ;;  %v24910_v53 = vsub.f32 %v24909_v38, %v21183_v52  ;;  %v24913_v0 = vsub.f32 %v24912_v26, %v21183_v52  ;;  %v24915_v36 = vld [vmem:[#allocation71_spill] sm:$0xff] }
 0x675   :  { %v21649_v22 = vmul.f32 %v21328_v59, %v24907_v41  ;;  %v24918_v41 = vld [vmem:[#allocation73_spill] sm:$0xff] }
 0x676   :  { %24905 = vst [vmem:[#allocation55_spill] sm:$0xff] %v21643_v9  ;;  %v21655_v39 = vmul.f32 %v21328_v59, %v24910_v53  ;;  %v21661_v6 = vmul.f32 %v21328_v59, %v24913_v0  ;;  %v24916_v9 = vsub.f32 %v24915_v36, %v21183_v52  ;;  %v24921_v53 = vsub.f32 %v24832_v44, %v21183_v52  ;;  %v24923_v0 = vld [vmem:[#allocation77_spill] sm:$0xff] }
 0x677   :  { %24908 = vst [vmem:[#allocation57_spill] sm:$0xff] %v21649_v22  ;;  %v24919_v22 = vsub.f32 %v24918_v41, %v21183_v52 }
 0x678   :  { %24911 = vst [vmem:[#allocation59_spill] sm:$0xff] %v21655_v39  ;;  %24914 = vst [vmem:[#allocation61_spill] sm:$0xff] %v21661_v6  ;;  %v21667_v43 = vmul.f32 %v21328_v59, %v24916_v9  ;;  %v21679_v26 = vmul.f32 %v21328_v59, %v24921_v53  ;;  %v24924_v6 = vsub.f32 %v24923_v0, %v21183_v52  ;;  %v24926_v9 = vld [vmem:[#allocation79_spill] sm:$0xff] }
 0x679   :  { %v21673_v38 = vmul.f32 %v21328_v59, %v24919_v22  ;;  %v24929_v22 = vld [vmem:[#allocation81_spill] sm:$0xff]  ;;  %v24932_v53 = vld [vmem:[#allocation83_spill] sm:$0xff] }
 0x67a   :  { %24917 = vst [vmem:[#allocation63_spill] sm:$0xff] %v21667_v43  ;;  %24922 = vst [vmem:[#allocation67_spill] sm:$0xff] %v21679_v26  ;;  %v21685_v36 = vmul.f32 %v21328_v59, %v24924_v6  ;;  %v24927_v43 = vsub.f32 %v24926_v9, %v21183_v52  ;;  %v24933_v26 = vsub.f32 %v24932_v53, %v21183_v52  ;;  %v24935_v6 = vld [vmem:[#allocation85_spill] sm:$0xff]  ;;  %v21721_v53 = vmul.f32 0.001953125, %v21330_v47 }
 0x67b   :  { %24920 = vst [vmem:[#allocation65_spill] sm:$0xff] %v21673_v38  ;;  %v24930_v38 = vsub.f32 %v24929_v22, %v21183_v52 }
 0x67c   :  { %24925 = vst [vmem:[#allocation69_spill] sm:$0xff] %v21685_v36  ;;  %v21691_v41 = vmul.f32 %v21328_v59, %v24927_v43  ;;  %v21703_v0 = vmul.f32 %v21328_v59, %v24933_v26  ;;  %v24936_v36 = vsub.f32 %v24935_v6, %v21183_v52  ;;  %v24938_v43 = vld [vmem:[#allocation87_spill] sm:$0xff]  ;;  %24942 = vst [vmem:[#allocation83_spill] sm:$0xff] %v21721_v53 }
 0x67d   :  { %v21697_v44 = vmul.f32 %v21328_v59, %v24930_v38  ;;  %v24941_v38 = vrot.slane %v21325_v63, 1  ;;  %v10446_v6 = vmul.f32 %v21721_v53, %v21721_v53 }
 0x67e   :  { %24928 = vst [vmem:[#allocation71_spill] sm:$0xff] %v21691_v41  ;;  %24934 = vst [vmem:[#allocation77_spill] sm:$0xff] %v21703_v0  ;;  %v21709_v9 = vmul.f32 %v21328_v59, %v24936_v36  ;;  %v24939_v41 = vsub.f32 %v24938_v43, %v21183_v52  ;;  %v10036_v36 = vld [vmem:[%s24050_s6] sm:$0x3]  ;;  %v25024_v43 = vld [vmem:[#allocation51_spill] sm:$0xff] }
 0x67f   :  { %24931 = vst [vmem:[#allocation73_spill] sm:$0xff] %v21697_v44  ;;  %v10440_v44 = vadd.f32 %v24941_v38, %v21325_v63  ;;  %v21729_v52 = vrot.slane %v10036_v36, %v24840_v15  ;;  %v25020_v15 = vld [vmem:[#allocation49_spill] sm:$0xff]  ;;  %v25028_v36 = vld [vmem:[#allocation55_spill] sm:$0xff] }
 0x680   :  { %24937 = vst [vmem:[#allocation79_spill] sm:$0xff] %v21709_v9  ;;  %v21715_v22 = vmul.f32 %v21328_v59, %v24939_v41  ;;  %v25026_v41 = vld [vmem:[#allocation53_spill] sm:$0xff]  ;;  %v25032_v0 = vld [vmem:[#allocation59_spill] sm:$0xff] }
 0x681   :  { %v10444_v26 = vmul.f32 0.001953125, %v10440_v44  ;;  %v21825_v39 = vadd.f32 %v21729_v52, %v21337_v24  ;;  %v21833_v59 = vadd.f32 %v21729_v52, %v21349_v29  ;;  %v21837_v63 = vadd.f32 %v21729_v52, %v21355_v35  ;;  %v25018_v44 = vld [vmem:[#allocation47_spill] sm:$0xff] }
 0x682   :  { %24940 = vst [vmem:[#allocation81_spill] sm:$0xff] %v21715_v22  ;;  %v21841_v47 = vadd.f32 %v21729_v52, %v21361_v21  ;;  %v21845_v24 = vadd.f32 %v21729_v52, %v21367_v16  ;;  %v21853_v29 = vadd.f32 %v21729_v52, %v21379_v51  ;;  %v21857_v35 = vadd.f32 %v21729_v52, %v21385_v57  ;;  %v25034_v22 = vld [vmem:[#allocation61_spill] sm:$0xff]  ;;  %v25036_v38 = vld [vmem:[#allocation63_spill] sm:$0xff] }
 0x683   :  { %v10448_v9 = vsub.f32 %v10444_v26, %v10446_v6  ;;  %24989 = vst [vmem:[#allocation87_spill] sm:$0xff] %v21825_v39  ;;  %v21829_v6 = vadd.f32 %v21729_v52, %v21343_v23  ;;  %24991 = vst [vmem:[#allocation90_spill] sm:$0xff] %v21833_v59  ;;  %v21849_v23 = vadd.f32 %v21729_v52, %v21373_v48  ;;  %v25030_v26 = vld [vmem:[#allocation57_spill] sm:$0xff] }
 0x684   :  { %24992 = vst [vmem:[#allocation91_spill] sm:$0xff] %v21837_v63  ;;  %24993 = vst [vmem:[#allocation92_spill] sm:$0xff] %v21841_v47  ;;  %v21861_v21 = vadd.f32 %v21729_v52, %v21391_v45  ;;  %v21865_v16 = vadd.f32 %v21729_v52, %v21397_v17  ;;  %v21869_v48 = vadd.f32 %v21729_v52, %v21403_v27  ;;  %v25038_v53 = vld [vmem:[#allocation65_spill] sm:$0xff] }
 0x685   :  { %v21751_v33 = vmax.f32 %v10448_v9, 0.0  ;;  %24990 = vst [vmem:[#allocation89_spill] sm:$0xff] %v21829_v6  ;;  %24994 = vst [vmem:[#allocation93_spill] sm:$0xff] %v21845_v24  ;;  %v21873_v51 = vadd.f32 %v21729_v52, %v21409_v55  ;;  %v21877_v57 = vadd.f32 %v21729_v52, %v21415_v34  ;;  %v21881_v45 = vadd.f32 %v21729_v52, %v21421_v62  ;;  %v25022_v9 = vld [vmem:[#allocation75_spill] sm:$0xff] }
 0x686   :  { %24995 = vst [vmem:[#allocation94_spill] sm:$0xff] %v21849_v23  ;;  %24996 = vst [vmem:[#allocation95_spill] sm:$0xff] %v21853_v29  ;;  %v21885_v17 = vadd.f32 %v21729_v52, %v21427_v4  ;;  %v21889_v27 = vadd.f32 %v21729_v52, %v21433_v61  ;;  %v21893_v55 = vadd.f32 %v21729_v52, %v21439_v13 }
 0x687   :  { %24953 = vst [vmem:[#allocation85_spill] sm:$0xff] %v21751_v33  ;;  %24997 = vst [vmem:[#allocation96_spill] sm:$0xff] %v21857_v35  ;;  %v21897_v34 = vadd.f32 %v21729_v52, %v21445_v19  ;;  %v21901_v62 = vadd.f32 %v21729_v52, %v21451_v25  ;;  %v21905_v4 = vadd.f32 %v21729_v52, %v21457_v14  ;;  %v25040_v33 = vld [vmem:[#allocation67_spill] sm:$0xff]  ;;  %vm10899_vm4 = vcmp.gt.f32.partialorder %v21881_v45, 0.0 }
 0x688   :  { %24998 = vst [vmem:[#allocation97_spill] sm:$0xff] %v21861_v21  ;;  %24999 = vst [vmem:[#allocation98_spill] sm:$0xff] %v21865_v16  ;;  %v21909_v61 = vadd.f32 %v21729_v52, %v21463_v46  ;;  %v21913_v13 = vadd.f32 %v21729_v52, %v21469_v5  ;;  %v21917_v19 = vadd.f32 %v21729_v52, %v21475_v37  ;;  %vm10905_vm2 = vcmp.gt.f32.partialorder %v21893_v55, 0.0 }
 0x689   :  { %v21921_v25 = vadd.f32 %v21729_v52, %v21481_v11  ;;  %v21925_v14 = vadd.f32 %v21729_v52, %v21487_v12  ;;  %v21929_v46 = vadd.f32 %v21729_v52, %v21493_v3  ;;  %v21933_v5 = vadd.f32 %v21729_v52, %v21499_v28 }
 0x68a   :  { %v21937_v37 = vadd.f32 %v21729_v52, %v21505_v49  ;;  %v21941_v11 = vadd.f32 %v21729_v52, %v21511_v8  ;;  %v21945_v12 = vadd.f32 %v21729_v52, %v21517_v54  ;;  %v21949_v3 = vadd.f32 %v21729_v52, %v21523_v60 }
 0x68b   :  { %25000 = vst [vmem:[#allocation99_spill] sm:$0xff] %v21929_v46  ;;  %v21953_v28 = vadd.f32 %v21729_v52, %v21529_v50  ;;  %v21957_v49 = vadd.f32 %v21729_v52, %v21535_v31  ;;  %v21961_v8 = vadd.f32 %v21729_v52, %v21541_v1  ;;  %v21965_v54 = vadd.f32 %v21729_v52, %v21547_v58  ;;  %v25052_v46 = vld [vmem:[#allocation81_spill] sm:$0xff] }
 0x68c   :  { %25001 = vst [vmem:[#allocation100_spill] sm:$0xff] %v21941_v11  ;;  %25002 = vst [vmem:[#allocation101_spill] sm:$0xff] %v21945_v12  ;;  %v21969_v60 = vadd.f32 %v21729_v52, %v21553_v2  ;;  %v21973_v50 = vadd.f32 %v21729_v52, %v21559_v10  ;;  %v21977_v31 = vadd.f32 %v21729_v52, %v21565_v20  ;;  %vm10907_vm3 = vcmp.gt.f32.partialorder %v21897_v34, 0.0 }
 0x68d   :  { %25003 = vst [vmem:[#allocation102_spill] sm:$0xff] %v21949_v3  ;;  %25004 = vst [vmem:[#allocation103_spill] sm:$0xff] %v21953_v28  ;;  %v21981_v1 = vadd.f32 %v21729_v52, %v21571_v32  ;;  %v21985_v58 = vadd.f32 %v21729_v52, %v21577_v30  ;;  %v21989_v2 = vadd.f32 %v21729_v52, %v21583_v56  ;;  %vm10909_vm5 = vcmp.gt.f32.partialorder %v21901_v62, 0.0 }
 0x68e   :  { %25005 = vst [vmem:[#allocation104_spill] sm:$0xff] %v21957_v49  ;;  %25006 = vst [vmem:[#allocation105_spill] sm:$0xff] %v21961_v8  ;;  %v21993_v10 = vadd.f32 %v21729_v52, %v21589_v7  ;;  %v21997_v20 = vadd.f32 %v21729_v52, %v21595_v42  ;;  %v22001_v32 = vadd.f32 %v21729_v52, %v21601_v40  ;;  %vm10911_vm1 = vcmp.gt.f32.partialorder %v21905_v4, 0.0 }
 0x68f   :  { %25007 = vst [vmem:[#allocation106_spill] sm:$0xff] %v21965_v54  ;;  %25008 = vst [vmem:[#allocation107_spill] sm:$0xff] %v21969_v60  ;;  %v22005_v30 = vadd.f32 %v21729_v52, %v21607_v18  ;;  %v22009_v56 = vadd.f32 %v21729_v52, %v25018_v44  ;;  %v22013_v7 = vadd.f32 %v21729_v52, %v25020_v15  ;;  %v25070_v60 = vmin.f32 %v21893_v55, 0.0 }
 0x690   :  { %25009 = vst [vmem:[#allocation108_spill] sm:$0xff] %v21973_v50  ;;  %25010 = vst [vmem:[#allocation109_spill] sm:$0xff] %v21977_v31  ;;  %v22017_v42 = vadd.f32 %v21729_v52, %v25022_v9  ;;  %v22021_v40 = vadd.f32 %v21729_v52, %v25024_v43  ;;  %v22025_v18 = vadd.f32 %v21729_v52, %v25026_v41  ;;  %v25099_v31 = vld [vmem:[#allocation96_spill] sm:$0xff] }
 0x691   :  { %25011 = vst [vmem:[#allocation110_spill] sm:$0xff] %v21981_v1  ;;  %25012 = vst [vmem:[#allocation111_spill] sm:$0xff] %v21985_v58  ;;  %v22029_v44 = vadd.f32 %v21729_v52, %v25028_v36  ;;  %v22033_v15 = vadd.f32 %v21729_v52, %v25030_v26  ;;  %v22037_v9 = vadd.f32 %v21729_v52, %v25032_v0  ;;  %v25098_v1 = vld [vmem:[#allocation95_spill] sm:$0xff]  ;;  %vm10887_vm14 = vcmp.gt.f32.partialorder %v25099_v31, 0.0 }
 0x692   :  { %25013 = vst [vmem:[#allocation112_spill] sm:$0xff] %v21989_v2  ;;  %25014 = vst [vmem:[#allocation113_spill] sm:$0xff] %v21993_v10  ;;  %v22041_v43 = vadd.f32 %v21729_v52, %v25034_v22  ;;  %v22045_v41 = vadd.f32 %v21729_v52, %v25036_v38  ;;  %v22049_v36 = vadd.f32 %v21729_v52, %v25038_v53  ;;  %vm10885_vm13 = vcmp.gt.f32.partialorder %v25098_v1, 0.0 }
 0x693   :  { %25015 = vst [vmem:[#allocation114_spill] sm:$0xff] %v21997_v20  ;;  %25016 = vst [vmem:[#allocation115_spill] sm:$0xff] %v22001_v32  ;;  %v22053_v26 = vadd.f32 %v21729_v52, %v25040_v33  ;;  %v25091_v32 = vld [vmem:[#allocation93_spill] sm:$0xff]  ;;  %v25092_v20 = vld [vmem:[#allocation94_spill] sm:$0xff] }
 0x694   :  { %25017 = vst [vmem:[#allocation116_spill] sm:$0xff] %v22005_v30  ;;  %25019 = vst [vmem:[#allocation47_spill] sm:$0xff] %v22009_v56  ;;  %vm10881_vm11 = vcmp.gt.f32.partialorder %v25091_v32, 0.0  ;;  %vm10883_vm12 = vcmp.gt.f32.partialorder %v25092_v20, 0.0 }
 0x695   :  { %25021 = vst [vmem:[#allocation49_spill] sm:$0xff] %v22013_v7  ;;  %25023 = vst [vmem:[#allocation75_spill] sm:$0xff] %v22017_v42 }
 0x696   :  { %25025 = vst [vmem:[#allocation51_spill] sm:$0xff] %v22021_v40  ;;  %25027 = vst [vmem:[#allocation53_spill] sm:$0xff] %v22025_v18  ;;  %v25085_v18 = vld [vmem:[#allocation91_spill] sm:$0xff]  ;;  %v25086_v40 = vld [vmem:[#allocation92_spill] sm:$0xff] }
 0x697   :  { %25029 = vst [vmem:[#allocation55_spill] sm:$0xff] %v22029_v44  ;;  %25031 = vst [vmem:[#allocation57_spill] sm:$0xff] %v22033_v15  ;;  %v25042_v15 = vld [vmem:[#allocation69_spill] sm:$0xff]  ;;  %vm10877_vm9 = vcmp.gt.f32.partialorder %v25085_v18, 0.0  ;;  %vm10879_vm10 = vcmp.gt.f32.partialorder %v25086_v40, 0.0 }
 0x698   :  { %25033 = vst [vmem:[#allocation59_spill] sm:$0xff] %v22037_v9  ;;  %25035 = vst [vmem:[#allocation61_spill] sm:$0xff] %v22041_v43  ;;  %v22057_v0 = vadd.f32 %v21729_v52, %v25042_v15  ;;  %v25044_v9 = vld [vmem:[#allocation71_spill] sm:$0xff]  ;;  %v25046_v43 = vld [vmem:[#allocation73_spill] sm:$0xff]  ;;  %v11001_v15 = vmin.f32 %v21829_v6, 0.0 }
 0x699   :  { %25037 = vst [vmem:[#allocation63_spill] sm:$0xff] %v22045_v41  ;;  %25039 = vst [vmem:[#allocation65_spill] sm:$0xff] %v22049_v36  ;;  %v22061_v22 = vadd.f32 %v21729_v52, %v25044_v9  ;;  %v22065_v38 = vadd.f32 %v21729_v52, %v25046_v43  ;;  %v25048_v41 = vld [vmem:[#allocation77_spill] sm:$0xff]  ;;  %v25050_v36 = vld [vmem:[#allocation79_spill] sm:$0xff]  ;;  %v11005_v9 = vmin.f32 %v21837_v63, 0.0  ;;  %v11009_v43 = vmin.f32 %v21845_v24, 0.0 }
 0x69a   :  { %25041 = vst [vmem:[#allocation67_spill] sm:$0xff] %v22053_v26  ;;  %25043 = vst [vmem:[#allocation69_spill] sm:$0xff] %v22057_v0  ;;  %v22069_v53 = vadd.f32 %v21729_v52, %v25048_v41  ;;  %v22073_v33 = vadd.f32 %v21729_v52, %v25050_v36  ;;  %v10999_v26 = vmin.f32 %v21825_v39, 0.0  ;;  %v11003_v0 = vmin.f32 %v21833_v59, 0.0 }
 0x69b   :  { %25045 = vst [vmem:[#allocation71_spill] sm:$0xff] %v22061_v22  ;;  %25047 = vst [vmem:[#allocation73_spill] sm:$0xff] %v22065_v38  ;;  %v11007_v22 = vmin.f32 %v21841_v47, 0.0  ;;  %v11011_v38 = vmin.f32 %v21849_v23, 0.0  ;;  %v11013_v41 = vmin.f32 %v21853_v29, 0.0  ;;  %v11017_v36 = vmin.f32 %v21861_v21, 0.0 }
 0x69c   :  { %25049 = vst [vmem:[#allocation77_spill] sm:$0xff] %v22069_v53  ;;  %25051 = vst [vmem:[#allocation79_spill] sm:$0xff] %v22073_v33  ;;  %v11015_v53 = vmin.f32 %v21857_v35, 0.0  ;;  %v11019_v39 = vmin.f32 %v21865_v16, 0.0  ;;  %v22114_v29 = vadd.f32 %v21729_v52, %v25052_v46  ;;  %v11127_v35 = vmul.f32 1.442695, %v10999_v26 }
 0x69d   :  { %v11131_v21 = vmul.f32 1.442695, %v11001_v15  ;;  %v11135_v11 = vmul.f32 1.442695, %v11003_v0  ;;  %v11139_v63 = vmul.f32 1.442695, %v11005_v9 }
 0x69e   :  { %25053 = vst [vmem:[#allocation81_spill] sm:$0xff] %v22114_v29  ;;  %14881 = vpow2.f32 %v11127_v35  ;;  %v11143_v23 = vmul.f32 1.442695, %v11007_v22  ;;  %v11147_v46 = vmul.f32 1.442695, %v11009_v43  ;;  %v25067_v43 = vmin.f32 %v21881_v45, 0.0 }
 0x69f   :  { %14883 = vpow2.f32 %v11131_v21  ;;  %v11151_v15 = vmul.f32 1.442695, %v11011_v38  ;;  %v11155_v24 = vmul.f32 1.442695, %v11013_v41  ;;  %v11159_v52 = vmul.f32 1.442695, %v11015_v53 }
 0x6a0   :  { %14885 = vpow2.f32 %v11135_v11  ;;  %v11163_v0 = vmul.f32 1.442695, %v11017_v36  ;;  %v11167_v47 = vmul.f32 1.442695, %v11019_v39  ;;  %v25061_v36 = vmin.f32 %v21873_v51, 0.0  ;;  %v25075_v38 = vld [vmem:[#allocation87_spill] sm:$0xff] }
 0x6a1   :  { %14887 = vpow2.f32 %v11139_v63  ;;  %v25064_v41 = vmin.f32 %v21877_v57, 0.0  ;;  %vm10871_vm6 = vcmp.gt.f32.partialorder %v25075_v38, 0.0  ;;  %v25079_v63 = vld [vmem:[#allocation89_spill] sm:$0xff] }
 0x6a2   :  { %14889 = vpow2.f32 %v11143_v23  ;;  %v25058_v23 = vmin.f32 %v21869_v48, 0.0  ;;  %vm10873_vm7 = vcmp.gt.f32.partialorder %v25079_v63, 0.0 }
 0x6a3   :  { %14891 = vpow2.f32 %v11147_v46  ;;  %v11175_v46 = vmul.f32 1.442695, %v25061_v36  ;;  %v11179_v35 = vmul.f32 1.442695, %v25064_v41  ;;  %v25069_v41 = vmin.f32 %v21889_v27, 0.0 }
 0x6a4   :  { %14893 = vpow2.f32 %v11151_v15  ;;  %v11171_v53 = vmul.f32 1.442695, %v25058_v23  ;;  %v25071_v23 = vmin.f32 %v21897_v34, 0.0  ;;  %v25072_v36 = vmin.f32 %v21901_v62, 0.0 }
 0x6a5   :  { %14895 = vpow2.f32 %v11155_v24  ;;  %v11191_v16 = vmul.f32 1.442695, %v25069_v41 }
 0x6a6   :  { %14897 = vpow2.f32 %v11159_v52  ;;  %v11183_v52 = vmul.f32 1.442695, %v25067_v43  ;;  %v11199_v43 = vmul.f32 1.442695, %v25071_v23  ;;  %v11203_v9 = vmul.f32 1.442695, %v25072_v36 }
 0x6a7   :  { %14899 = vpow2.f32 %v11163_v0  ;;  %v25068_v0 = vmin.f32 %v21885_v17, 0.0  ;;  %v25077_v23 = vmin.f32 %v21917_v19, 0.0 }
 0x6a8   :  { %v14882_v24 = vpop.eup %14881  ;;  %14901 = vpow2.f32 %v11167_v47  ;;  %v11195_v47 = vmul.f32 1.442695, %v25070_v60  ;;  %v25076_v60 = vmin.f32 %v21913_v13, 0.0 }
 0x6a9   :  { %v14884_v21 = vpop.eup %14883  ;;  %14903 = vpow2.f32 %v11171_v53  ;;  %v11187_v39 = vmul.f32 1.442695, %v25068_v0  ;;  %v25073_v53 = vmin.f32 %v21905_v4, 0.0  ;;  %v25074_v0 = vmin.f32 %v21909_v61, 0.0 }
 0x6aa   :  { %v14886_v15 = vpop.eup %14885  ;;  %14905 = vpow2.f32 %v11175_v46  ;;  %v11215_v41 = vmul.f32 1.442695, %v25076_v60  ;;  %v11219_v59 = vmul.f32 1.442695, %v25077_v23  ;;  %v25084_v23 = vmin.f32 %v21933_v5, 0.0 }
 0x6ab   :  { %v14888_v6 = vpop.eup %14887  ;;  %14907 = vpow2.f32 %v11179_v35  ;;  %v11207_v29 = vmul.f32 1.442695, %v25073_v53  ;;  %v11211_v46 = vmul.f32 1.442695, %v25074_v0  ;;  %v25078_v35 = vmin.f32 %v21921_v25, 0.0  ;;  %v25080_v53 = vld [vmem:[#allocation90_spill] sm:$0xff] }
 0x6ac   :  { %v14890_v33 = vpop.eup %14889  ;;  %14909 = vpow2.f32 %v11183_v52  ;;  %vm10875_vm8 = vcmp.gt.f32.partialorder %v25080_v53, 0.0  ;;  %v25081_v0 = vmin.f32 %v21925_v14, 0.0  ;;  %v25082_v52 = vld [vmem:[#allocation99_spill] sm:$0xff]  ;;  %v22186_v44 = vmul.f32 1.442695, %v25084_v23 }
 0x6ad   :  { %v22172_v22 = vmul.f32 1.442695, %v25078_v35  ;;  %v14892_v36 = vpop.eup %14891  ;;  %14911 = vpow2.f32 %v11187_v39  ;;  %v25083_v11 = vmin.f32 %v25082_v52, 0.0  ;;  %v25087_v39 = vmin.f32 %v21937_v37, 0.0 }
 0x6ae   :  { %v22178_v26 = vmul.f32 1.442695, %v25081_v0  ;;  %v14894_v35 = vpop.eup %14893  ;;  %14913 = vpow2.f32 %v11191_v16  ;;  %v25088_v0 = vld [vmem:[#allocation100_spill] sm:$0xff]  ;;  %v25093_v16 = vmin.f32 %v21949_v3, 0.0 }
 0x6af   :  { %v22182_v60 = vmul.f32 1.442695, %v25083_v11  ;;  %v22192_v42 = vmul.f32 1.442695, %v25087_v39  ;;  %v25089_v7 = vmin.f32 %v25088_v0, 0.0  ;;  %v25090_v11 = vmin.f32 %v21945_v12, 0.0  ;;  %v14896_v23 = vpop.eup %14895 }
 0x6b0   :  { %14915 = vpow2.f32 %v11195_v47  ;;  %v22206_v10 = vmul.f32 1.442695, %v25093_v16  ;;  %v25094_v39 = vmin.f32 %v21953_v28, 0.0  ;;  %v25100_v47 = vmin.f32 %v21961_v8, 0.0 }
 0x6b1   :  { %v22196_v56 = vmul.f32 1.442695, %v25089_v7  ;;  %v22200_v30 = vmul.f32 1.442695, %v25090_v11  ;;  %v25096_v7 = vmin.f32 %v21957_v49, 0.0  ;;  %v14898_v11 = vpop.eup %14897  ;;  %14917 = vpow2.f32 %v11199_v43  ;;  %v25105_v49 = vld [vmem:[#allocation97_spill] sm:$0xff] }
 0x6b2   :  { %v22210_v2 = vmul.f32 1.442695, %v25094_v39  ;;  %v22220_v12 = vmul.f32 1.442695, %v25100_v47  ;;  %v25102_v16 = vmin.f32 %v21965_v54, 0.0  ;;  %v25103_v39 = vld [vmem:[#allocation107_spill] sm:$0xff]  ;;  %14919 = vpow2.f32 %v11203_v9 }
 0x6b3   :  { %v22214_v58 = vmul.f32 1.442695, %v25096_v7  ;;  %v25104_v28 = vmin.f32 %v25103_v39, 0.0  ;;  %v14900_v7 = vpop.eup %14899  ;;  %vm10889_vm15 = vcmp.gt.f32.partialorder %v25105_v49, 0.0  ;;  %v25107_v43 = vmin.f32 %v21973_v50, 0.0 }
 0x6b4   :  { %25095 = vst [vmem:[#allocation87_spill] sm:$0xff] %v22210_v2  ;;  %25101 = vst [vmem:[#allocation90_spill] sm:$0xff] %v22220_v12  ;;  %v22224_v3 = vmul.f32 1.442695, %v25102_v16  ;;  %v12820_v47 = vadd.f32 -1.0, %v14882_v24  ;;  %v12822_v8 = vadd.f32 -1.0, %v14884_v21  ;;  %v14902_v12 = vpop.eup %14901  ;;  %14921 = vpow2.f32 %v11207_v29 }
 0x6b5   :  { %25097 = vst [vmem:[#allocation89_spill] sm:$0xff] %v22214_v58  ;;  %v22228_v0 = vmul.f32 1.442695, %v25104_v28  ;;  %v25106_v58 = vld [vmem:[#allocation98_spill] sm:$0xff]  ;;  %v22234_v2 = vmul.f32 1.442695, %v25107_v43  ;;  %v14904_v54 = vpop.eup %14903  ;;  %14923 = vpow2.f32 %v11211_v46 }
 0x6b6   :  { %vm10891_vm0 = vcmp.gt.f32.partialorder %v25106_v58, 0.0  ;;  %v12824_v28 = vadd.f32 -1.0, %v14886_v15  ;;  %v12826_v16 = vadd.f32 -1.0, %v14888_v6  ;;  %v12828_v39 = vadd.f32 -1.0, %v14890_v33  ;;  %v14906_v24 = vpop.eup %14905 }
 0x6b7   :  { %v12830_v9 = vadd.f32 -1.0, %v14892_v36  ;;  %v12832_v43 = vadd.f32 -1.0, %v14894_v35  ;;  %v12834_v50 = vadd.f32 -1.0, %v14896_v23  ;;  %14925 = vpow2.f32 %v11215_v41  ;;  %v14908_v6 = vpop.eup %14907 }
 0x6b8   :  { %v12836_v21 = vadd.f32 -1.0, %v14898_v11  ;;  %v12838_v29 = vadd.f32 -1.0, %v14900_v7  ;;  %v12840_v15 = vadd.f32 -1.0, %v14902_v12  ;;  %14927 = vpow2.f32 %v11219_v59  ;;  %v14910_v35 = vpop.eup %14909 }
 0x6b9   :  { %v12842_v33 = vadd.f32 -1.0, %v14904_v54  ;;  %v12844_v46 = vadd.f32 -1.0, %v14906_v24  ;;  %v11511_v36 = vsel %vm10871_vm6, %v25075_v38, %v12820_v47  ;;  %14929 = vpow2.f32 %v22172_v22  ;;  %v14912_v54 = vpop.eup %14911 }
 0x6ba   :  { %v12846_v12 = vadd.f32 -1.0, %v14908_v6  ;;  %v11513_v41 = vsel %vm10873_vm7, %v25079_v63, %v12822_v8  ;;  %v11515_v59 = vsel %vm10875_vm8, %v25080_v53, %v12824_v28  ;;  %11639 = vst [vmem:[%s24051_s7] sm:$0xff] %v11511_v36  ;;  %vm10913_vm6 = vcmp.gt.f32.partialorder %v21909_v61, 0.0  ;;  %v14914_v63 = vpop.eup %14913  ;;  %v25120_v36 = vld [vmem:[#allocation102_spill] sm:$0xff] }
 0x6bb   :  { %14931 = vpow2.f32 %v22178_v26  ;;  %v12848_v38 = vadd.f32 -1.0, %v14910_v35  ;;  %v11517_v22 = vsel %vm10877_vm9, %v25085_v18, %v12826_v16  ;;  %v11519_v8 = vsel %vm10879_vm10, %v25086_v40, %v12828_v39  ;;  %11641 = vst [vmem:[%s24051_s7 + $0x10] sm:$0xff] %v11513_v41  ;;  %11643 = vst [vmem:[%s24051_s7 + $0x20] sm:$0xff] %v11515_v59  ;;  %v14916_v53 = vpop.eup %14915  ;;  %v25114_v16 = vld [vmem:[#allocation100_spill] sm:$0xff]  ;;  %v25121_v35 = vld [vmem:[#allocation110_spill] sm:$0xff] }
 0x6bc   :  { %vm10915_vm7 = vcmp.gt.f32.partialorder %v21913_v13, 0.0  ;;  %14933 = vpow2.f32 %v22182_v60  ;;  %v12850_v26 = vadd.f32 -1.0, %v14912_v54  ;;  %v11521_v18 = vsel %vm10881_vm11, %v25091_v32, %v12830_v9  ;;  %11645 = vst [vmem:[%s24051_s7 + $0x30] sm:$0xff] %v11517_v22  ;;  %11647 = vst [vmem:[%s24051_s7 + $0x40] sm:$0xff] %v11519_v8  ;;  %v14918_v23 = vpop.eup %14917  ;;  %v25115_v9 = vld [vmem:[#allocation89_spill] sm:$0xff]  ;;  %v25124_v22 = vld [vmem:[#allocation111_spill] sm:$0xff] }
 0x6bd   :  { %v11523_v40 = vsel %vm10883_vm12, %v25092_v20, %v12832_v43  ;;  %vm10917_vm8 = vcmp.gt.f32.partialorder %v21917_v19, 0.0  ;;  %14935 = vpow2.f32 %v22186_v44  ;;  %v12852_v60 = vadd.f32 -1.0, %v14914_v63  ;;  %11649 = vst [vmem:[%s24051_s7 + $0x50] sm:$0xff] %v11521_v18  ;;  %v25126_v18 = vld [vmem:[#allocation104_spill] sm:$0xff] }
 0x6be   :  { %v11525_v32 = vsel %vm10885_vm13, %v25098_v1, %v12834_v50  ;;  %v11527_v20 = vsel %vm10887_vm14, %v25099_v31, %v12836_v21  ;;  %11651 = vst [vmem:[%s24051_s7 + $0x60] sm:$0xff] %v11523_v40  ;;  %vm10919_vm9 = vcmp.gt.f32.partialorder %v21921_v25, 0.0  ;;  %14937 = vpow2.f32 %v22192_v42  ;;  %v14920_v1 = vpop.eup %14919  ;;  %v25116_v21 = vld [vmem:[#allocation101_spill] sm:$0xff]  ;;  %v25127_v40 = vld [vmem:[#allocation112_spill] sm:$0xff] }
 0x6bf   :  { %v12854_v44 = vadd.f32 -1.0, %v14916_v53  ;;  %v11529_v50 = vsel %vm10889_vm15, %v25105_v49, %v12838_v29  ;;  %v11531_v31 = vsel %vm10891_vm0, %v25106_v58, %v12840_v15  ;;  %11653 = vst [vmem:[%s24051_s7 + $0x70] sm:$0xff] %v11525_v32  ;;  %11655 = vst [vmem:[%s24051_s7 + $0x80] sm:$0xff] %v11527_v20  ;;  %vm10921_vm10 = vcmp.gt.f32.partialorder %v21925_v14, 0.0  ;;  %v14922_v11 = vpop.eup %14921  ;;  %v25117_v29 = vld [vmem:[#allocation90_spill] sm:$0xff]  ;;  %v25118_v15 = vld [vmem:[#allocation109_spill] sm:$0xff] }
 0x6c0   :  { %14939 = vpow2.f32 %v22196_v56  ;;  %v12856_v42 = vadd.f32 -1.0, %v14918_v23  ;;  %vm25108_vm11 = vcmp.gt.f32.partialorder %v21869_v48, 0.0  ;;  %vm25109_vm12 = vcmp.gt.f32.partialorder %v21873_v51, 0.0  ;;  %11657 = vst [vmem:[%s24051_s7 + $0x90] sm:$0xff] %v11529_v50  ;;  %11659 = vst [vmem:[%s24051_s7 + $0xa0] sm:$0xff] %v11531_v31  ;;  %v14924_v39 = vpop.eup %14923  ;;  %v25129_v20 = vld [vmem:[#allocation105_spill] sm:$0xff] }
 0x6c1   :  { %v11533_v49 = vsel %vm25108_vm11, %v21869_v48, %v12842_v33  ;;  %v11535_v58 = vsel %vm25109_vm12, %v21873_v51, %v12844_v46  ;;  %vm10923_vm13 = vcmp.gt.f32.partialorder %v25082_v52, 0.0  ;;  %14941 = vpow2.f32 %v22200_v30  ;;  %v14926_v7 = vpop.eup %14925  ;;  %v25130_v23 = vld [vmem:[#allocation113_spill] sm:$0xff] }
 0x6c2   :  { %v12858_v56 = vadd.f32 -1.0, %v14920_v1  ;;  %vm25110_vm14 = vcmp.gt.f32.partialorder %v21877_v57, 0.0  ;;  %v11539_v51 = vsel %vm10899_vm4, %v21881_v45, %v12848_v38  ;;  %11661 = vst [vmem:[%s24051_s7 + $0xb0] sm:$0xff] %v11533_v49  ;;  %11663 = vst [vmem:[%s24051_s7 + $0xc0] sm:$0xff] %v11535_v58  ;;  %vm10925_vm15 = vcmp.gt.f32.partialorder %v21933_v5, 0.0  ;;  %v14928_v28 = vpop.eup %14927  ;;  %v25123_v38 = vld [vmem:[#allocation103_spill] sm:$0xff] }
 0x6c3   :  { %v11537_v48 = vsel %vm25110_vm14, %v21877_v57, %v12846_v12  ;;  %14943 = vpow2.f32 %v22206_v10  ;;  %v12860_v30 = vadd.f32 -1.0, %v14922_v11  ;;  %vm25111_vm0 = vcmp.gt.f32.partialorder %v21885_v17, 0.0  ;;  %11667 = vst [vmem:[%s24051_s7 + $0xe0] sm:$0xff] %v11539_v51  ;;  %v25113_v10 = vld [vmem:[#allocation87_spill] sm:$0xff]  ;;  %v14930_v24 = vpop.eup %14929  ;;  %v25132_v1 = vld [vmem:[#allocation106_spill] sm:$0xff] }
 0x6c4   :  { %v11541_v57 = vsel %vm25111_vm0, %v21885_v17, %v12850_v26  ;;  %vm25112_vm4 = vcmp.gt.f32.partialorder %v21889_v27, 0.0  ;;  %11665 = vst [vmem:[%s24051_s7 + $0xd0] sm:$0xff] %v11537_v48  ;;  %vm10927_vm11 = vcmp.gt.f32.partialorder %v21937_v37, 0.0  ;;  %14945 = vpow2.f32 %v25113_v10  ;;  %v25135_v48 = vld [vmem:[#allocation107_spill] sm:$0xff]  ;;  %v25139_v10 = vld [vmem:[#allocation116_spill] sm:$0xff] }
 0x6c5   :  { %v11543_v45 = vsel %vm25112_vm4, %v21889_v27, %v12852_v60  ;;  %v12862_v47 = vadd.f32 -1.0, %v14924_v39  ;;  %v11545_v17 = vsel %vm10905_vm2, %v21893_v55, %v12854_v44  ;;  %v11547_v27 = vsel %vm10907_vm3, %v21897_v34, %v12856_v42  ;;  %11669 = vst [vmem:[%s24051_s7 + $0xf0] sm:$0xff] %v11541_v57  ;;  %v14932_v46 = vpop.eup %14931  ;;  %v25133_v42 = vld [vmem:[#allocation114_spill] sm:$0xff]  ;;  %v25136_v51 = vld [vmem:[#allocation115_spill] sm:$0xff] }
 0x6c6   :  { %11671 = vst [vmem:[%s24051_s7 + $0x100] sm:$0xff] %v11543_v45  ;;  %vm10929_vm12 = vcmp.gt.f32.partialorder %v25114_v16, 0.0  ;;  %14947 = vpow2.f32 %v25115_v9  ;;  %v12864_v43 = vadd.f32 -1.0, %v14926_v7  ;;  %v11549_v55 = vsel %vm10909_vm5, %v21901_v62, %v12858_v56  ;;  %11673 = vst [vmem:[%s24051_s7 + $0x110] sm:$0xff] %v11545_v17  ;;  %v14934_v54 = vpop.eup %14933  ;;  %v25138_v7 = vld [vmem:[#allocation108_spill] sm:$0xff]  ;;  %v25141_v9 = vld [vmem:[#allocation47_spill] sm:$0xff] }
 0x6c7   :  { %v11551_v34 = vsel %vm10911_vm1, %v21905_v4, %v12860_v30  ;;  %11675 = vst [vmem:[%s24051_s7 + $0x120] sm:$0xff] %v11547_v27  ;;  %vm10931_vm2 = vcmp.gt.f32.partialorder %v25116_v21, 0.0  ;;  %14949 = vpow2.f32 %v25117_v29  ;;  %v25119_v6 = vmin.f32 %v25118_v15, 0.0  ;;  %11677 = vst [vmem:[%s24051_s7 + $0x130] sm:$0xff] %v11549_v55  ;;  %v25143_v29 = vld [vmem:[#allocation49_spill] sm:$0xff] }
 0x6c8   :  { %v12866_v33 = vadd.f32 -1.0, %v14928_v28  ;;  %v11553_v4 = vsel %vm10913_vm6, %v21909_v61, %v12862_v47  ;;  %11679 = vst [vmem:[%s24051_s7 + $0x140] sm:$0xff] %v11551_v34  ;;  %vm10933_vm1 = vcmp.gt.f32.partialorder %v25120_v36, 0.0  ;;  %14951 = vpow2.f32 %v22224_v3 }
 0x6c9   :  { %v11279_v62 = vmul.f32 1.442695, %v25119_v6  ;;  %v25122_v12 = vmin.f32 %v25121_v35, 0.0  ;;  %v12868_v59 = vadd.f32 -1.0, %v14930_v24  ;;  %v11555_v61 = vsel %vm10915_vm7, %v21913_v13, %v12864_v43  ;;  %11681 = vst [vmem:[%s24051_s7 + $0x150] sm:$0xff] %v11553_v4  ;;  %v14936_v13 = vpop.eup %14935 }
 0x6ca   :  { %vm10935_vm3 = vcmp.gt.f32.partialorder %v25123_v38, 0.0  ;;  %14953 = vpow2.f32 %v22228_v0  ;;  %v25125_v8 = vmin.f32 %v25124_v22, 0.0  ;;  %v12870_v63 = vadd.f32 -1.0, %v14932_v46  ;;  %11683 = vst [vmem:[%s24051_s7 + $0x160] sm:$0xff] %v11555_v61  ;;  %v25145_v46 = vld [vmem:[#allocation75_spill] sm:$0xff] }
 0x6cb   :  { %v11283_v41 = vmul.f32 1.442695, %v25122_v12  ;;  %v11557_v26 = vsel %vm10917_vm8, %v21917_v19, %v12866_v33  ;;  %vm10937_vm5 = vcmp.gt.f32.partialorder %v25126_v18, 0.0  ;;  %14955 = vpow2.f32 %v22234_v2  ;;  %v14938_v19 = vpop.eup %14937 }
 0x6cc   :  { %v11287_v3 = vmul.f32 1.442695, %v25125_v8  ;;  %v25128_v53 = vmin.f32 %v25127_v40, 0.0  ;;  %v12872_v60 = vadd.f32 -1.0, %v14934_v54  ;;  %v11559_v32 = vsel %vm10919_vm9, %v21921_v25, %v12868_v59  ;;  %11685 = vst [vmem:[%s24051_s7 + $0x170] sm:$0xff] %v11557_v26  ;;  %v14940_v25 = vpop.eup %14939  ;;  %v25147_v54 = vld [vmem:[#allocation51_spill] sm:$0xff] }
 0x6cd   :  { %vm10939_vm6 = vcmp.gt.f32.partialorder %v25129_v20, 0.0  ;;  %14957 = vpow2.f32 %v11279_v62  ;;  %v25131_v44 = vmin.f32 %v25130_v23, 0.0  ;;  %v12874_v2 = vadd.f32 -1.0, %v14936_v13  ;;  %11687 = vst [vmem:[%s24051_s7 + $0x180] sm:$0xff] %v11559_v32  ;;  %v25149_v13 = vld [vmem:[#allocation53_spill] sm:$0xff] }
 0x6ce   :  { %v11291_v0 = vmul.f32 1.442695, %v25128_v53  ;;  %v11561_v31 = vsel %vm10921_vm10, %v21925_v14, %v12870_v63  ;;  %vm10941_vm7 = vcmp.gt.f32.partialorder %v25132_v1, 0.0  ;;  %14959 = vpow2.f32 %v11283_v41  ;;  %v14942_v14 = vpop.eup %14941 }
 0x6cf   :  { %v11295_v50 = vmul.f32 1.442695, %v25131_v44  ;;  %v25134_v49 = vmin.f32 %v25133_v42, 0.0  ;;  %v12876_v11 = vadd.f32 -1.0, %v14938_v19  ;;  %v11563_v56 = vsel %vm10923_vm13, %v25082_v52, %v12872_v60  ;;  %11689 = vst [vmem:[%s24051_s7 + $0x190] sm:$0xff] %v11561_v31  ;;  %v14944_v52 = vpop.eup %14943  ;;  %v25151_v19 = vld [vmem:[#allocation55_spill] sm:$0xff] }
 0x6d0   :  { %vm10943_vm8 = vcmp.gt.f32.partialorder %v25135_v48, 0.0  ;;  %14961 = vpow2.f32 %v11287_v3  ;;  %v25137_v39 = vmin.f32 %v25136_v51, 0.0  ;;  %v12878_v57 = vadd.f32 -1.0, %v14940_v25  ;;  %11691 = vst [vmem:[%s24051_s7 + $0x1a0] sm:$0xff] %v11563_v56  ;;  %v25153_v25 = vld [vmem:[#allocation57_spill] sm:$0xff] }
 0x6d1   :  { %v11299_v58 = vmul.f32 1.442695, %v25134_v49  ;;  %v11565_v45 = vsel %vm10925_vm15, %v21933_v5, %v12874_v2  ;;  %vm10945_vm9 = vcmp.gt.f32.partialorder %v25138_v7, 0.0  ;;  %14963 = vpow2.f32 %v11291_v0  ;;  %v14946_v5 = vpop.eup %14945 }
 0x6d2   :  { %v11303_v30 = vmul.f32 1.442695, %v25137_v39  ;;  %v25140_v47 = vmin.f32 %v25139_v10, 0.0  ;;  %v12880_v27 = vadd.f32 -1.0, %v14942_v14  ;;  %v11567_v28 = vsel %vm10927_vm11, %v21937_v37, %v12876_v11  ;;  %11693 = vst [vmem:[%s24051_s7 + $0x1b0] sm:$0xff] %v11565_v45  ;;  %v14948_v37 = vpop.eup %14947  ;;  %v25155_v14 = vld [vmem:[#allocation59_spill] sm:$0xff] }
 0x6d3   :  { %vm10947_vm10 = vcmp.gt.f32.partialorder %v25118_v15, 0.0  ;;  %14965 = vpow2.f32 %v11295_v50  ;;  %v25142_v43 = vmin.f32 %v25141_v9, 0.0  ;;  %v12882_v34 = vadd.f32 -1.0, %v14944_v52  ;;  %11695 = vst [vmem:[%s24051_s7 + $0x1c0] sm:$0xff] %v11567_v28  ;;  %v25157_v52 = vld [vmem:[#allocation61_spill] sm:$0xff] }
 0x6d4   :  { %v11307_v17 = vmul.f32 1.442695, %v25140_v47  ;;  %v11569_v24 = vsel %vm10929_vm12, %v25114_v16, %v12878_v57  ;;  %vm10949_vm13 = vcmp.gt.f32.partialorder %v25121_v35, 0.0  ;;  %14967 = vpow2.f32 %v11299_v58  ;;  %v14950_v16 = vpop.eup %14949 }
 0x6d5   :  { %v11311_v55 = vmul.f32 1.442695, %v25142_v43  ;;  %v25144_v6 = vmin.f32 %v25143_v29, 0.0  ;;  %v12884_v33 = vadd.f32 -1.0, %v14946_v5  ;;  %v11571_v4 = vsel %vm10931_vm2, %v25116_v21, %v12880_v27  ;;  %11697 = vst [vmem:[%s24051_s7 + $0x1d0] sm:$0xff] %v11569_v24  ;;  %v14952_v21 = vpop.eup %14951  ;;  %v25159_v5 = vld [vmem:[#allocation63_spill] sm:$0xff] }
 0x6d6   :  { %vm10951_vm14 = vcmp.gt.f32.partialorder %v25124_v22, 0.0  ;;  %14969 = vpow2.f32 %v11303_v30  ;;  %v25146_v12 = vmin.f32 %v25145_v46, 0.0  ;;  %v12886_v59 = vadd.f32 -1.0, %v14948_v37  ;;  %11699 = vst [vmem:[%s24051_s7 + $0x1e0] sm:$0xff] %v11571_v4  ;;  %v25161_v37 = vld [vmem:[#allocation65_spill] sm:$0xff] }
 0x6d7   :  { %v11315_v62 = vmul.f32 1.442695, %v25144_v6  ;;  %v11573_v61 = vsel %vm10933_vm1, %v25120_v36, %v12882_v34  ;;  %vm10953_vm15 = vcmp.gt.f32.partialorder %v25127_v40, 0.0  ;;  %14971 = vpow2.f32 %v11307_v17  ;;  %v14954_v36 = vpop.eup %14953 }
 0x6d8   :  { %v11319_v41 = vmul.f32 1.442695, %v25146_v12  ;;  %v25148_v8 = vmin.f32 %v25147_v54, 0.0  ;;  %v12888_v63 = vadd.f32 -1.0, %v14950_v16  ;;  %v11575_v26 = vsel %vm10935_vm3, %v25123_v38, %v12884_v33  ;;  %11701 = vst [vmem:[%s24051_s7 + $0x1f0] sm:$0xff] %v11573_v61  ;;  %v14956_v38 = vpop.eup %14955  ;;  %v25163_v16 = vld [vmem:[#allocation67_spill] sm:$0xff] }
 0x6d9   :  { %vm10955_vm0 = vcmp.gt.f32.partialorder %v25130_v23, 0.0  ;;  %14973 = vpow2.f32 %v11311_v55  ;;  %v25150_v53 = vmin.f32 %v25149_v13, 0.0  ;;  %v12890_v60 = vadd.f32 -1.0, %v14952_v21  ;;  %11703 = vst [vmem:[%s24051_s7 + $0x200] sm:$0xff] %v11575_v26 }
 0x6da   :  { %v11323_v3 = vmul.f32 1.442695, %v25148_v8  ;;  %v11577_v32 = vsel %vm10937_vm5, %v25126_v18, %v12886_v59  ;;  %vm10957_vm4 = vcmp.gt.f32.partialorder %v25133_v42, 0.0  ;;  %14975 = vpow2.f32 %v11315_v62  ;;  %v14958_v18 = vpop.eup %14957 }
 0x6db   :  { %v11327_v0 = vmul.f32 1.442695, %v25150_v53  ;;  %v25152_v44 = vmin.f32 %v25151_v19, 0.0  ;;  %v12892_v2 = vadd.f32 -1.0, %v14954_v36  ;;  %v11579_v31 = vsel %vm10939_vm6, %v25129_v20, %v12888_v63  ;;  %11705 = vst [vmem:[%s24051_s7 + $0x210] sm:$0xff] %v11577_v32  ;;  %v14960_v20 = vpop.eup %14959 }
 0x6dc   :  { %vm10959_vm11 = vcmp.gt.f32.partialorder %v25136_v51, 0.0  ;;  %14977 = vpow2.f32 %v11319_v41  ;;  %v25154_v49 = vmin.f32 %v25153_v25, 0.0  ;;  %v12894_v11 = vadd.f32 -1.0, %v14956_v38  ;;  %11707 = vst [vmem:[%s24051_s7 + $0x220] sm:$0xff] %v11579_v31 }
 0x6dd   :  { %v11331_v50 = vmul.f32 1.442695, %v25152_v44  ;;  %v11581_v56 = vsel %vm10941_vm7, %v25132_v1, %v12890_v60  ;;  %vm10961_vm12 = vcmp.gt.f32.partialorder %v25139_v10, 0.0  ;;  %14979 = vpow2.f32 %v11323_v3  ;;  %v14962_v1 = vpop.eup %14961 }
 0x6de   :  { %v11335_v58 = vmul.f32 1.442695, %v25154_v49  ;;  %v25156_v39 = vmin.f32 %v25155_v14, 0.0  ;;  %v12896_v57 = vadd.f32 -1.0, %v14958_v18  ;;  %v11583_v45 = vsel %vm10943_vm8, %v25135_v48, %v12892_v2  ;;  %11709 = vst [vmem:[%s24051_s7 + $0x230] sm:$0xff] %v11581_v56  ;;  %v14964_v48 = vpop.eup %14963 }
 0x6df   :  { %vm10963_vm2 = vcmp.gt.f32.partialorder %v25141_v9, 0.0  ;;  %14981 = vpow2.f32 %v11327_v0  ;;  %v25158_v47 = vmin.f32 %v25157_v52, 0.0  ;;  %v12898_v27 = vadd.f32 -1.0, %v14960_v20  ;;  %11711 = vst [vmem:[%s24051_s7 + $0x240] sm:$0xff] %v11583_v45 }
 0x6e0   :  { %v11339_v30 = vmul.f32 1.442695, %v25156_v39  ;;  %v11585_v28 = vsel %vm10945_vm9, %v25138_v7, %v12894_v11  ;;  %vm10965_vm1 = vcmp.gt.f32.partialorder %v25143_v29, 0.0  ;;  %14983 = vpow2.f32 %v11331_v50  ;;  %v14966_v7 = vpop.eup %14965 }
 0x6e1   :  { %v11343_v17 = vmul.f32 1.442695, %v25158_v47  ;;  %v25160_v43 = vmin.f32 %v25159_v5, 0.0  ;;  %v12900_v34 = vadd.f32 -1.0, %v14962_v1  ;;  %v11587_v24 = vsel %vm10947_vm10, %v25118_v15, %v12896_v57  ;;  %11713 = vst [vmem:[%s24051_s7 + $0x250] sm:$0xff] %v11585_v28  ;;  %v14968_v15 = vpop.eup %14967 }
 0x6e2   :  { %vm10967_vm3 = vcmp.gt.f32.partialorder %v25145_v46, 0.0  ;;  %14985 = vpow2.f32 %v11335_v58  ;;  %v25162_v6 = vmin.f32 %v25161_v37, 0.0  ;;  %v12902_v33 = vadd.f32 -1.0, %v14964_v48  ;;  %11715 = vst [vmem:[%s24051_s7 + $0x260] sm:$0xff] %v11587_v24  ;;  %v14970_v21 = vpop.eup %14969 }
 0x6e3   :  { %v11347_v55 = vmul.f32 1.442695, %v25160_v43  ;;  %v11589_v4 = vsel %vm10949_vm13, %v25121_v35, %v12898_v27  ;;  %14987 = vpow2.f32 %v11339_v30  ;;  %v25164_v12 = vmin.f32 %v25163_v16, 0.0  ;;  %v25165_v35 = vld [vmem:[#allocation69_spill] sm:$0xff]  ;;  %v14972_v36 = vpop.eup %14971 }
 0x6e4   :  { %v11351_v62 = vmul.f32 1.442695, %v25162_v6  ;;  %v12904_v59 = vadd.f32 -1.0, %v14966_v7  ;;  %v11591_v61 = vsel %vm10951_vm14, %v25124_v22, %v12900_v34  ;;  %11717 = vst [vmem:[%s24051_s7 + $0x270] sm:$0xff] %v11589_v4  ;;  %14989 = vpow2.f32 %v11343_v17  ;;  %v25167_v22 = vld [vmem:[#allocation71_spill] sm:$0xff]  ;;  %v14974_v38 = vpop.eup %14973 }
 0x6e5   :  { %v11355_v41 = vmul.f32 1.442695, %v25164_v12  ;;  %v25166_v8 = vmin.f32 %v25165_v35, 0.0  ;;  %v12906_v63 = vadd.f32 -1.0, %v14968_v15  ;;  %v11593_v26 = vsel %vm10953_vm15, %v25127_v40, %v12902_v33  ;;  %11719 = vst [vmem:[%s24051_s7 + $0x280] sm:$0xff] %v11591_v61  ;;  %v25169_v40 = vld [vmem:[#allocation73_spill] sm:$0xff]  ;;  %v14976_v18 = vpop.eup %14975 }
 0x6e6   :  { %14991 = vpow2.f32 %v11347_v55  ;;  %v25168_v53 = vmin.f32 %v25167_v22, 0.0  ;;  %v12908_v60 = vadd.f32 -1.0, %v14970_v21  ;;  %v11595_v32 = vsel %vm10955_vm0, %v25130_v23, %v12904_v59  ;;  %11721 = vst [vmem:[%s24051_s7 + $0x290] sm:$0xff] %v11593_v26  ;;  %v25171_v23 = vld [vmem:[#allocation77_spill] sm:$0xff]  ;;  %v14978_v20 = vpop.eup %14977  ;;  %v25178_v61 = vld [vmem:[#allocation83_spill] sm:$0xff]  ;;  %v25179_v21 = vld [vmem:[#allocation52_spill] sm:$0xff] }
 0x6e7   :  { %v11359_v3 = vmul.f32 1.442695, %v25166_v8  ;;  %14993 = vpow2.f32 %v11351_v62  ;;  %v25170_v44 = vmin.f32 %v25169_v40, 0.0  ;;  %v12910_v2 = vadd.f32 -1.0, %v14972_v36  ;;  %11723 = vst [vmem:[%s24051_s7 + $0x2a0] sm:$0xff] %v11595_v32  ;;  %v14980_v1 = vpop.eup %14979  ;;  %v25177_v55 = vld [vmem:[#allocation85_spill] sm:$0xff] }
 0x6e8   :  { %v11363_v0 = vmul.f32 1.442695, %v25168_v53  ;;  %v11597_v31 = vsel %vm10957_vm4, %v25133_v42, %v12906_v63  ;;  %14995 = vpow2.f32 %v11355_v41  ;;  %v25172_v49 = vmin.f32 %v25171_v23, 0.0  ;;  %v25173_v42 = vld [vmem:[#allocation79_spill] sm:$0xff]  ;;  %v25180_v53 = vld [vmem:[#allocation34_spill] sm:$0xff] }
 0x6e9   :  { %v11367_v50 = vmul.f32 1.442695, %v25170_v44  ;;  %v12912_v11 = vadd.f32 -1.0, %v14974_v38  ;;  %v11599_v56 = vsel %vm10959_vm11, %v25136_v51, %v12908_v60  ;;  %11725 = vst [vmem:[%s24051_s7 + $0x2b0] sm:$0xff] %v11597_v31  ;;  %14997 = vpow2.f32 %v11359_v3  ;;  %v25175_v51 = vld [vmem:[#allocation81_spill] sm:$0xff]  ;;  %v14982_v48 = vpop.eup %14981 }
 0x6ea   :  { %v11371_v58 = vmul.f32 1.442695, %v25172_v49  ;;  %v25174_v39 = vmin.f32 %v25173_v42, 0.0  ;;  %v12914_v57 = vadd.f32 -1.0, %v14976_v18  ;;  %v11601_v45 = vsel %vm10961_vm12, %v25139_v10, %v12910_v2  ;;  %11727 = vst [vmem:[%s24051_s7 + $0x2c0] sm:$0xff] %v11599_v56  ;;  %v14984_v24 = vpop.eup %14983 }
 0x6eb   :  { %14999 = vpow2.f32 %v11363_v0  ;;  %v25176_v47 = vmin.f32 %v25175_v51, 0.0  ;;  %v12916_v27 = vadd.f32 -1.0, %v14978_v20  ;;  %v11603_v28 = vsel %vm10963_vm2, %v25141_v9, %v12912_v11  ;;  %11729 = vst [vmem:[%s24051_s7 + $0x2d0] sm:$0xff] %v11601_v45 }
 0x6ec   :  { %v11375_v30 = vmul.f32 1.442695, %v25174_v39  ;;  %15001 = vpow2.f32 %v11367_v50  ;;  %v12918_v10 = vadd.f32 -1.0, %v14980_v1  ;;  %v11605_v43 = vsel %vm10965_vm1, %v25143_v29, %v12914_v57  ;;  %11731 = vst [vmem:[%s24051_s7 + $0x2e0] sm:$0xff] %v11603_v28  ;;  %v14986_v29 = vpop.eup %14985  ;;  %v25182_v39 = vld [vmem:[#allocation56_spill] sm:$0xff] }
 0x6ed   :  { %v11379_v17 = vmul.f32 1.442695, %v25176_v47  ;;  %v10580_v34 = vadd.f32 1e-05, %v25177_v55  ;;  %vm10969_vm5 = vcmp.gt.f32.partialorder %v25147_v54, 0.0  ;;  %15003 = vpow2.f32 %v11371_v58  ;;  %11733 = vst [vmem:[%s24051_s7 + $0x2f0] sm:$0xff] %v11605_v43  ;;  %v14988_v33 = vpop.eup %14987 }
 0x6ee   :  { %v12920_v9 = vadd.f32 -1.0, %v14982_v48  ;;  %v11607_v7 = vsel %vm10967_vm3, %v25145_v46, %v12916_v27  ;;  %vm10971_vm6 = vcmp.gt.f32.partialorder %v25149_v13, 0.0  ;;  %15005 = vpow2.f32 %v11375_v30  ;;  %v14990_v15 = vpop.eup %14989  ;;  %v25186_v55 = vld [vmem:[#allocation64_spill] sm:$0xff] }
 0x6ef   :  { %v12922_v6 = vadd.f32 -1.0, %v14984_v24  ;;  %v11609_v62 = vsel %vm10969_vm5, %v25147_v54, %v12918_v10  ;;  %11735 = vst [vmem:[%s24051_s7 + $0x300] sm:$0xff] %v11607_v7  ;;  %vm10973_vm7 = vcmp.gt.f32.partialorder %v25151_v19, 0.0  ;;  %15007 = vpow2.f32 %v11379_v17  ;;  %v25184_v17 = vld [vmem:[#allocation60_spill] sm:$0xff] }
 0x6f0   :  { %v12924_v46 = vadd.f32 -1.0, %v14986_v29  ;;  %v11611_v4 = vsel %vm10971_vm6, %v25149_v13, %v12920_v9  ;;  %11737 = vst [vmem:[%s24051_s7 + $0x310] sm:$0xff] %v11609_v62  ;;  %vm10975_vm8 = vcmp.gt.f32.partialorder %v25153_v25, 0.0  ;;  %v12926_v12 = vadd.f32 -1.0, %v14988_v33  ;;  %v14992_v41 = vpop.eup %14991  ;;  %v25188_v7 = vld [vmem:[#allocation68_spill] sm:$0xff] }
 0x6f1   :  { %v11613_v54 = vsel %vm10973_vm7, %v25151_v19, %v12922_v6  ;;  %11739 = vst [vmem:[%s24051_s7 + $0x320] sm:$0xff] %v11611_v4  ;;  %15009 = vrsqrt.f32 %v10580_v34  ;;  %vm10977_vm9 = vcmp.gt.f32.partialorder %v25155_v14, 0.0  ;;  %v12928_v59 = vadd.f32 -1.0, %v14990_v15  ;;  %v14994_v3 = vpop.eup %14993  ;;  %v25191_v15 = vld [vmem:[#allocation74_spill] sm:$0xff] }
 0x6f2   :  { %v11615_v13 = vsel %vm10975_vm8, %v25153_v25, %v12924_v46  ;;  %11741 = vst [vmem:[%s24051_s7 + $0x330] sm:$0xff] %v11613_v54  ;;  %vm10979_vm10 = vcmp.gt.f32.partialorder %v25157_v52, 0.0  ;;  %vm10981_vm13 = vcmp.gt.f32.partialorder %v25159_v5, 0.0  ;;  %v12930_v19 = vadd.f32 -1.0, %v14992_v41  ;;  %v14996_v25 = vpop.eup %14995  ;;  %v25190_v46 = vld [vmem:[#allocation72_spill] sm:$0xff]  ;;  %v25193_v41 = vld [vmem:[#allocation78_spill] sm:$0xff] }
 0x6f3   :  { %v11617_v63 = vsel %vm10977_vm9, %v25155_v14, %v12926_v12  ;;  %11743 = vst [vmem:[%s24051_s7 + $0x340] sm:$0xff] %v11615_v13  ;;  %vm10983_vm14 = vcmp.gt.f32.partialorder %v25161_v37, 0.0  ;;  %v12932_v26 = vadd.f32 -1.0, %v14994_v3  ;;  %v11619_v36 = vsel %vm10979_vm10, %v25157_v52, %v12928_v59  ;;  %v14998_v60 = vpop.eup %14997  ;;  %v25192_v54 = vld [vmem:[#allocation76_spill] sm:$0xff] }
 0x6f4   :  { %11745 = vst [vmem:[%s24051_s7 + $0x350] sm:$0xff] %v11617_v63  ;;  %v24369_v0 = vsub.s32 1, %v25180_v53  ;;  %vm10985_vm15 = vcmp.gt.f32.partialorder %v25163_v16, 0.0  ;;  %vm10987_vm0 = vcmp.gt.f32.partialorder %v25165_v35, 0.0  ;;  %v12934_v14 = vadd.f32 -1.0, %v14996_v25  ;;  %11747 = vst [vmem:[%s24051_s7 + $0x360] sm:$0xff] %v11619_v36 }
 0x6f5   :  { %v11621_v32 = vsel %vm10981_vm13, %v25159_v5, %v12930_v19  ;;  %v15000_v38 = vpop.eup %14999  ;;  %vm10989_vm4 = vcmp.gt.f32.partialorder %v25167_v22, 0.0  ;;  %vm10991_vm11 = vcmp.gt.f32.partialorder %v25169_v40, 0.0  ;;  %v12936_v52 = vadd.f32 -1.0, %v14998_v60  ;;  %v25194_v13 = vld [vmem:[#allocation80_spill] sm:$0xff]  ;;  %v25195_v19 = vld [vmem:[#allocation35_spill] sm:$0xff]  ;;  %v25196_v25 = vld [vmem:[#allocation82_spill] sm:$0xff] }
 0x6f6   :  { %v11623_v44 = vsel %vm10983_vm14, %v25161_v37, %v12932_v26  ;;  %11749 = vst [vmem:[%s24051_s7 + $0x370] sm:$0xff] %v11621_v32  ;;  %v15002_v50 = vpop.eup %15001  ;;  %vm10993_vm12 = vcmp.gt.f32.partialorder %v25171_v23, 0.0  ;;  %vm10995_vm2 = vcmp.gt.f32.partialorder %v25173_v42, 0.0  ;;  %v12938_v5 = vadd.f32 -1.0, %v15000_v38  ;;  %v25197_v36 = vld [vmem:[#allocation84_spill] sm:$0xff] }
 0x6f7   :  { %v11625_v2 = vsel %vm10985_vm15, %v25163_v16, %v12934_v14  ;;  %11751 = vst [vmem:[%s24051_s7 + $0x380] sm:$0xff] %v11623_v44  ;;  %v15004_v31 = vpop.eup %15003  ;;  %vm10997_vm1 = vcmp.gt.f32.partialorder %v25175_v51, 0.0  ;;  %v12940_v37 = vadd.f32 -1.0, %v15002_v50  ;;  %v11627_v18 = vsel %vm10987_vm0, %v25165_v35, %v12936_v52  ;;  %v15377_v16 = vld [vmem:[%s24049_s5] sm:$0x3]  ;;  %v25199_v38 = vld [vmem:[#allocation88_spill] sm:$0xff] }
 0x6f8   :  { %11753 = vst [vmem:[%s24051_s7 + $0x390] sm:$0xff] %v11625_v2  ;;  %v10591_v49 = vrot.slane %v15377_v16, %v24369_v0  ;;  %v15006_v58 = vpop.eup %15005  ;;  %v12942_v11 = vadd.f32 -1.0, %v15004_v31  ;;  %v11629_v56 = vsel %vm10989_vm4, %v25167_v22, %v12938_v5  ;;  %11755 = vst [vmem:[%s24051_s7 + $0x3a0] sm:$0xff] %v11627_v18  ;;  %v25181_v35 = vld [vmem:[#allocation54_spill] sm:$0xff]  ;;  %v25202_v2 = vld [vmem:[#allocation23_spill] sm:$0xff] }
 0x6f9   :  { %v15008_v57 = vpop.eup %15007  ;;  %v12944_v45 = vadd.f32 -1.0, %v15006_v58  ;;  %v11631_v1 = vsel %vm10991_vm11, %v25169_v40, %v12940_v37  ;;  %11757 = vst [vmem:[%s24051_s7 + $0x3b0] sm:$0xff] %v11629_v56  ;;  %v25183_v22 = vld [vmem:[#allocation58_spill] sm:$0xff]  ;;  %v25203_v31 = vsub.f32 %v25202_v2, %v25178_v61  ;;  %v25204_v18 = vld [vmem:[#allocation25_spill] sm:$0xff]  ;;  %v25206_v58 = vld [vmem:[#allocation28_spill] sm:$0xff] }
 0x6fa   :  { %v12946_v48 = vadd.f32 -1.0, %v15008_v57  ;;  %v11633_v10 = vsel %vm10993_vm12, %v25171_v23, %v12942_v11  ;;  %11759 = vst [vmem:[%s24051_s7 + $0x3c0] sm:$0xff] %v11631_v1  ;;  %v25185_v40 = vld [vmem:[#allocation62_spill] sm:$0xff]  ;;  %v25205_v16 = vsub.f32 %v25204_v18, %v25178_v61  ;;  %v25207_v11 = vsub.f32 %v25206_v58, %v25178_v61  ;;  %v25216_v2 = vld [vmem:[#allocation31_spill] sm:$0xff] }
 0x6fb   :  { %v15010_v28 = vpop.eup %15009  ;;  %v11635_v24 = vsel %vm10995_vm2, %v25173_v42, %v12944_v45  ;;  %11761 = vst [vmem:[%s24051_s7 + $0x3d0] sm:$0xff] %v11633_v10  ;;  %v25187_v23 = vld [vmem:[#allocation66_spill] sm:$0xff] }
 0x6fc   :  { %v10595_v6 = vmul.f32 %v15010_v28, %v10591_v49  ;;  %v11637_v62 = vsel %vm10997_vm1, %v25175_v51, %v12946_v48  ;;  %11763 = vst [vmem:[%s24051_s7 + $0x3e0] sm:$0xff] %v11635_v24  ;;  %v25189_v42 = vld [vmem:[#allocation70_spill] sm:$0xff]  ;;  %v25210_v28 = vld [vmem:[#allocation27_spill] sm:$0xff]  ;;  %v25212_v24 = vld [vmem:[#allocation29_spill] sm:$0xff] }
 0x6fd   :  { %11765 = vst [vmem:[%s24051_s7 + $0x3f0] sm:$0xff] %v11637_v62  ;;  %v25198_v14 = vld [vmem:[#allocation86_spill] sm:$0xff]  ;;  %v25211_v48 = vsub.f32 %v25210_v28, %v25178_v61 }
 0x6fe   :  { %v22759_v63 = vrot.slane %v10595_v6, %v25195_v19  ;;  %v25200_v44 = vld [vmem:[#allocation26_spill] sm:$0xff]  ;;  %v25213_v6 = vsub.f32 %v25212_v24, %v25178_v61  ;;  %v25214_v19 = vld [vmem:[#allocation32_spill] sm:$0xff] }
 0x6ff   :  { %v25201_v50 = vsub.f32 %v25200_v44, %v25178_v61  ;;  %v25208_v57 = vld [vmem:[#allocation30_spill] sm:$0xff]  ;;  %v25215_v44 = vsub.f32 %v25214_v19, %v25178_v61  ;;  %v25224_v19 = vld [vmem:[#allocation39_spill] sm:$0xff] }
 0x700   :  { %v22779_v37 = vmul.f32 %v22759_v63, %v25203_v31  ;;  %v22785_v49 = vmul.f32 %v22759_v63, %v25205_v16  ;;  %v22791_v56 = vmul.f32 %v22759_v63, %v25207_v11  ;;  %v25209_v45 = vsub.f32 %v25208_v57, %v25178_v61  ;;  %v25218_v16 = vld [vmem:[#allocation33_spill] sm:$0xff]  ;;  %v25220_v57 = vld [vmem:[#allocation36_spill] sm:$0xff] }
 0x701   :  { %v22773_v5 = vmul.f32 %v22759_v63, %v25201_v50  ;;  %v22803_v10 = vmul.f32 %v22759_v63, %v25211_v48  ;;  %v22809_v62 = vmul.f32 %v22759_v63, %v25213_v6  ;;  %v22815_v50 = vmul.f32 %v22759_v63, %v25215_v44  ;;  %v25222_v48 = vld [vmem:[#allocation38_spill] sm:$0xff] }
 0x702   :  { %v22797_v1 = vmul.f32 %v22759_v63, %v25209_v45  ;;  %v25217_v31 = vsub.f32 %v25216_v2, %v25178_v61  ;;  %v25219_v58 = vsub.f32 %v25218_v16, %v25178_v61  ;;  %v25221_v45 = vsub.f32 %v25220_v57, %v25178_v61  ;;  %v25228_v57 = vld [vmem:[#allocation41_spill] sm:$0xff] }
 0x703   :  { %v25223_v24 = vsub.f32 %v25222_v48, %v25178_v61  ;;  %v25225_v44 = vsub.f32 %v25224_v19, %v25178_v61 }
 0x704   :  { %v22821_v18 = vmul.f32 %v22759_v63, %v25217_v31  ;;  %v22827_v11 = vmul.f32 %v22759_v63, %v25219_v58  ;;  %v22833_v28 = vmul.f32 %v22759_v63, %v25221_v45  ;;  %v25226_v31 = vld [vmem:[#allocation40_spill] sm:$0xff]  ;;  %v25229_v45 = vsub.f32 %v25228_v57, %v25178_v61 }
 0x705   :  { %v22839_v6 = vmul.f32 %v22759_v63, %v25223_v24  ;;  %v22845_v2 = vmul.f32 %v22759_v63, %v25225_v44  ;;  %v25227_v16 = vsub.f32 %v25226_v31, %v25178_v61  ;;  %v25230_v24 = vld [vmem:[#allocation3_spill] sm:$0xff]  ;;  %v25232_v44 = vld [vmem:[#allocation4_spill] sm:$0xff] }
 0x706   :  { %v22857_v48 = vmul.f32 %v22759_v63, %v25229_v45  ;;  %v25231_v0 = vsub.f32 %v25230_v24, %v25178_v61  ;;  %v25233_v52 = vsub.f32 %v25232_v44, %v25178_v61  ;;  %v25236_v45 = vld [vmem:[#allocation5_spill] sm:$0xff] }
 0x707   :  { %v22851_v58 = vmul.f32 %v22759_v63, %v25227_v16  ;;  %v25234_v16 = vld [vmem:[#allocation2_spill] sm:$0xff]  ;;  %v25237_v60 = vsub.f32 %v25236_v45, %v25178_v61 }
 0x708   :  { %v22863_v19 = vmul.f32 %v22759_v63, %v25231_v0  ;;  %v22869_v31 = vmul.f32 %v22759_v63, %v25233_v52  ;;  %v25235_v32 = vsub.f32 %v25234_v16, %v25178_v61  ;;  %v25238_v0 = vld [vmem:[#allocation6_spill] sm:$0xff]  ;;  %v25240_v52 = vld [vmem:[#allocation8_spill] sm:$0xff] }
 0x709   :  { %v22881_v24 = vmul.f32 %v22759_v63, %v25237_v60  ;;  %v25239_v26 = vsub.f32 %v25238_v0, %v25178_v61  ;;  %v25241_v3 = vsub.f32 %v25240_v52, %v25178_v61  ;;  %v25244_v60 = vld [vmem:[#allocation7_spill] sm:$0xff] }
 0x70a   :  { %v22875_v57 = vmul.f32 %v22759_v63, %v25235_v32  ;;  %v25242_v32 = vld [vmem:[#allocation10_spill] sm:$0xff]  ;;  %v25245_v51 = vsub.f32 %v25244_v60, %v25178_v61 }
 0x70b   :  { %v22887_v44 = vmul.f32 %v22759_v63, %v25239_v26  ;;  %v22893_v16 = vmul.f32 %v22759_v63, %v25241_v3  ;;  %v25243_v59 = vsub.f32 %v25242_v32, %v25178_v61  ;;  %v25246_v26 = vld [vmem:[#allocation9_spill] sm:$0xff]  ;;  %v25248_v3 = vld [vmem:[#allocation12_spill] sm:$0xff] }
 0x70c   :  { %v22905_v0 = vmul.f32 %v22759_v63, %v25245_v51  ;;  %v25247_v12 = vsub.f32 %v25246_v26, %v25178_v61  ;;  %v25249_v4 = vsub.f32 %v25248_v3, %v25178_v61  ;;  %v25252_v51 = vld [vmem:[#allocation11_spill] sm:$0xff] }
 0x70d   :  { %v22899_v45 = vmul.f32 %v22759_v63, %v25243_v59  ;;  %v25250_v59 = vld [vmem:[#allocation14_spill] sm:$0xff]  ;;  %v25253_v29 = vsub.f32 %v25252_v51, %v25178_v61 }
 0x70e   :  { %v22911_v52 = vmul.f32 %v22759_v63, %v25247_v12  ;;  %v22917_v32 = vmul.f32 %v22759_v63, %v25249_v4  ;;  %v25251_v33 = vsub.f32 %v25250_v59, %v25178_v61  ;;  %v25254_v12 = vld [vmem:[#allocation13_spill] sm:$0xff]  ;;  %v25256_v4 = vld [vmem:[#allocation16_spill] sm:$0xff] }
 0x70f   :  { %v22929_v26 = vmul.f32 %v22759_v63, %v25253_v29  ;;  %v25255_v9 = vsub.f32 %v25254_v12, %v25178_v61  ;;  %v25257_v34 = vsub.f32 %v25256_v4, %v25178_v61  ;;  %v25260_v29 = vld [vmem:[#allocation15_spill] sm:$0xff] }
 0x710   :  { %v22923_v60 = vmul.f32 %v22759_v63, %v25251_v33  ;;  %v25258_v33 = vld [vmem:[#allocation18_spill] sm:$0xff]  ;;  %v25261_v27 = vsub.f32 %v25260_v29, %v25178_v61 }
 0x711   :  { %v22935_v3 = vmul.f32 %v22759_v63, %v25255_v9  ;;  %v22941_v59 = vmul.f32 %v22759_v63, %v25257_v34  ;;  %v25259_v43 = vsub.f32 %v25258_v33, %v25178_v61  ;;  %v25262_v9 = vld [vmem:[#allocation17_spill] sm:$0xff]  ;;  %v25265_v34 = vld [vmem:[#allocation20_spill] sm:$0xff] }
 0x712   :  { %v22953_v12 = vmul.f32 %v22759_v63, %v25261_v27  ;;  %v25263_v47 = vsub.f32 %v25262_v9, %v25178_v61  ;;  %v25266_v30 = vsub.f32 %v25265_v34, %v25178_v61  ;;  %v25271_v27 = vld [vmem:[#allocation19_spill] sm:$0xff] }
 0x713   :  { %v22947_v51 = vmul.f32 %v22759_v63, %v25259_v43  ;;  %v25268_v43 = vld [vmem:[#allocation22_spill] sm:$0xff]  ;;  %v25272_v8 = vsub.f32 %v25271_v27, %v25178_v61 }
 0x714   :  { %v22959_v4 = vmul.f32 %v22759_v63, %v25263_v47  ;;  %v22965_v33 = vmul.f32 %v22759_v63, %v25266_v30  ;;  %v25269_v20 = vsub.f32 %v25268_v43, %v25178_v61  ;;  %v25274_v47 = vld [vmem:[#allocation37_spill] sm:$0xff] }
 0x715   :  { %v22977_v9 = vmul.f32 %v22759_v63, %v25272_v8  ;;  %v25277_v30 = vld [vmem:[#allocation21_spill] sm:$0xff]  ;;  %v25283_v8 = vld [vmem:[#allocation42_spill] sm:$0xff] }
 0x716   :  { %25264 = vst [vmem:[#allocation99_spill] sm:$0xff] %v22959_v4  ;;  %25267 = vst [vmem:[#allocation91_spill] sm:$0xff] %v22965_v33  ;;  %v22971_v29 = vmul.f32 %v22759_v63, %v25269_v20  ;;  %v25275_v4 = vsub.f32 %v25274_v47, %v25178_v61  ;;  %v25278_v33 = vsub.f32 %v25277_v30, %v25178_v61  ;;  %v25280_v20 = vld [vmem:[#allocation24_spill] sm:$0xff] }
 0x717   :  { %25273 = vst [vmem:[#allocation93_spill] sm:$0xff] %v22977_v9  ;;  %v25284_v9 = vsub.f32 %v25283_v8, %v25178_v61 }
 0x718   :  { %25270 = vst [vmem:[#allocation92_spill] sm:$0xff] %v22971_v29  ;;  %v22983_v34 = vmul.f32 %v22759_v63, %v25275_v4  ;;  %v22989_v43 = vmul.f32 %v22759_v63, %v25278_v33  ;;  %v25281_v29 = vsub.f32 %v25280_v20, %v25178_v61  ;;  %v25286_v4 = vld [vmem:[#allocation43_spill] sm:$0xff]  ;;  %v25289_v33 = vld [vmem:[#allocation44_spill] sm:$0xff] }
 0x719   :  { %v23001_v47 = vmul.f32 %v22759_v63, %v25284_v9  ;;  %v25294_v9 = vld [vmem:[#allocation46_spill] sm:$0xff] }
 0x71a   :  { %25276 = vst [vmem:[#allocation94_spill] sm:$0xff] %v22983_v34  ;;  %25279 = vst [vmem:[#allocation95_spill] sm:$0xff] %v22989_v43  ;;  %v22995_v27 = vmul.f32 %v22759_v63, %v25281_v29  ;;  %v25287_v34 = vsub.f32 %v25286_v4, %v25178_v61  ;;  %v25290_v43 = vsub.f32 %v25289_v33, %v25178_v61  ;;  %v25292_v29 = vld [vmem:[#allocation45_spill] sm:$0xff] }
 0x71b   :  { %25285 = vst [vmem:[#allocation97_spill] sm:$0xff] %v23001_v47  ;;  %v25295_v47 = vsub.f32 %v25294_v9, %v25178_v61 }
 0x71c   :  { %25282 = vst [vmem:[#allocation96_spill] sm:$0xff] %v22995_v27  ;;  %v23007_v30 = vmul.f32 %v22759_v63, %v25287_v34  ;;  %v23013_v20 = vmul.f32 %v22759_v63, %v25290_v43  ;;  %v25293_v27 = vsub.f32 %v25292_v29, %v25178_v61  ;;  %v25296_v34 = vld [vmem:[#allocation48_spill] sm:$0xff]  ;;  %v25298_v43 = vld [vmem:[#allocation50_spill] sm:$0xff] }
 0x71d   :  { %v23025_v4 = vmul.f32 %v22759_v63, %v25295_v47  ;;  %v25301_v47 = vsub.f32 %v25181_v35, %v25178_v61 }
 0x71e   :  { %25288 = vst [vmem:[#allocation98_spill] sm:$0xff] %v23007_v30  ;;  %25291 = vst [vmem:[#allocation87_spill] sm:$0xff] %v23013_v20  ;;  %v23019_v8 = vmul.f32 %v22759_v63, %v25293_v27  ;;  %v25297_v30 = vsub.f32 %v25296_v34, %v25178_v61  ;;  %v25299_v20 = vsub.f32 %v25298_v43, %v25178_v61 }
 0x71f   :  { %v25300_v27 = vsub.f32 %v25179_v21, %v25178_v61  ;;  %v23049_v34 = vmul.f32 %v22759_v63, %v25301_v47  ;;  %v25305_v47 = vsub.f32 %v25185_v40, %v25178_v61 }
 0x720   :  { %v23031_v33 = vmul.f32 %v22759_v63, %v25297_v30  ;;  %v23037_v29 = vmul.f32 %v22759_v63, %v25299_v20  ;;  %v25302_v30 = vsub.f32 %v25182_v39, %v25178_v61  ;;  %v25303_v20 = vsub.f32 %v25183_v22, %v25178_v61 }
 0x721   :  { %v23043_v9 = vmul.f32 %v22759_v63, %v25300_v27  ;;  %v25304_v27 = vsub.f32 %v25184_v17, %v25178_v61  ;;  %v23073_v39 = vmul.f32 %v22759_v63, %v25305_v47  ;;  %v25309_v47 = vsub.f32 %v25189_v42, %v25178_v61 }
 0x722   :  { %v23055_v43 = vmul.f32 %v22759_v63, %v25302_v30  ;;  %v23061_v21 = vmul.f32 %v22759_v63, %v25303_v20  ;;  %v25306_v30 = vsub.f32 %v25186_v55, %v25178_v61  ;;  %v25307_v20 = vsub.f32 %v25187_v23, %v25178_v61 }
 0x723   :  { %v23067_v35 = vmul.f32 %v22759_v63, %v25304_v27  ;;  %v25308_v27 = vsub.f32 %v25188_v7, %v25178_v61  ;;  %v23097_v55 = vmul.f32 %v22759_v63, %v25309_v47  ;;  %v25313_v47 = vsub.f32 %v25193_v41, %v25178_v61 }
 0x724   :  { %v23079_v22 = vmul.f32 %v22759_v63, %v25306_v30  ;;  %v23085_v17 = vmul.f32 %v22759_v63, %v25307_v20  ;;  %v25310_v30 = vsub.f32 %v25190_v46, %v25178_v61  ;;  %v25311_v20 = vsub.f32 %v25191_v15, %v25178_v61 }
 0x725   :  { %v23091_v40 = vmul.f32 %v22759_v63, %v25308_v27  ;;  %v25312_v27 = vsub.f32 %v25192_v54, %v25178_v61  ;;  %v23121_v46 = vmul.f32 %v22759_v63, %v25313_v47  ;;  %v25317_v47 = vsub.f32 %v25198_v14, %v25178_v61 }
 0x726   :  { %v23103_v23 = vmul.f32 %v22759_v63, %v25310_v30  ;;  %v23109_v7 = vmul.f32 %v22759_v63, %v25311_v20  ;;  %v25314_v30 = vsub.f32 %v25194_v13, %v25178_v61  ;;  %v25315_v20 = vsub.f32 %v25196_v25, %v25178_v61 }
 0x727   :  { %v23115_v42 = vmul.f32 %v22759_v63, %v25312_v27  ;;  %v25316_v27 = vsub.f32 %v25197_v36, %v25178_v61  ;;  %v23145_v13 = vmul.f32 %v22759_v63, %v25317_v47  ;;  %v25320_v36 = vsub.s32 1, %v25180_v53 }
 0x728   :  { %v23127_v15 = vmul.f32 %v22759_v63, %v25314_v30  ;;  %v23133_v54 = vmul.f32 %v22759_v63, %v25315_v20  ;;  %v25318_v30 = vsub.f32 %v25199_v38, %v25178_v61  ;;  %v15378_v20 = vld [vmem:[%s24050_s6] sm:$0x3] }
 0x729   :  { %v23139_v41 = vmul.f32 %v22759_v63, %v25316_v27  ;;  %v23158_v27 = vrot.slane %v15378_v20, %v25320_v36  ;;  %v25344_v20 = vld [vmem:[#allocation92_spill] sm:$0xff]  ;;  %v25346_v36 = vld [vmem:[#allocation93_spill] sm:$0xff] }
 0x72a   :  { %v23151_v25 = vmul.f32 %v22759_v63, %v25318_v30  ;;  %v25342_v30 = vld [vmem:[#allocation91_spill] sm:$0xff] }
 0x72b   :  { %v23162_v14 = vadd.f32 %v23158_v27, %v22773_v5  ;;  %v23166_v47 = vadd.f32 %v23158_v27, %v22779_v37  ;;  %v23170_v61 = vadd.f32 %v23158_v27, %v22785_v49  ;;  %v23174_v63 = vadd.f32 %v23158_v27, %v22791_v56 }
 0x72c   :  { %25319 = vst [vmem:[#allocation100_spill] sm:$0xff] %v23151_v25  ;;  %v23178_v53 = vadd.f32 %v23158_v27, %v22797_v1  ;;  %v23182_v38 = vadd.f32 %v23158_v27, %v22803_v10  ;;  %v23186_v5 = vadd.f32 %v23158_v27, %v22809_v62  ;;  %v23190_v37 = vadd.f32 %v23158_v27, %v22815_v50  ;;  %v25348_v25 = vld [vmem:[#allocation94_spill] sm:$0xff] }
 0x72d   :  { %25321 = vst [vmem:[#allocation89_spill] sm:$0xff] %v23162_v14  ;;  %25322 = vst [vmem:[#allocation101_spill] sm:$0xff] %v23166_v47  ;;  %v23194_v49 = vadd.f32 %v23158_v27, %v22821_v18  ;;  %v23198_v56 = vadd.f32 %v23158_v27, %v22827_v11  ;;  %v23202_v1 = vadd.f32 %v23158_v27, %v22833_v28 }
 0x72e   :  { %25323 = vst [vmem:[#allocation90_spill] sm:$0xff] %v23170_v61  ;;  %25324 = vst [vmem:[#allocation109_spill] sm:$0xff] %v23174_v63  ;;  %v23206_v10 = vadd.f32 %v23158_v27, %v22839_v6  ;;  %v23210_v62 = vadd.f32 %v23158_v27, %v22845_v2  ;;  %v23214_v50 = vadd.f32 %v23158_v27, %v22851_v58 }
 0x72f   :  { %25325 = vst [vmem:[#allocation102_spill] sm:$0xff] %v23178_v53  ;;  %25326 = vst [vmem:[#allocation110_spill] sm:$0xff] %v23182_v38  ;;  %v23218_v18 = vadd.f32 %v23158_v27, %v22857_v48  ;;  %v23222_v11 = vadd.f32 %v23158_v27, %v22863_v19  ;;  %v23226_v28 = vadd.f32 %v23158_v27, %v22869_v31 }
 0x730   :  { %25327 = vst [vmem:[#allocation103_spill] sm:$0xff] %v23186_v5  ;;  %25328 = vst [vmem:[#allocation111_spill] sm:$0xff] %v23190_v37  ;;  %v23230_v6 = vadd.f32 %v23158_v27, %v22875_v57  ;;  %v23234_v2 = vadd.f32 %v23158_v27, %v22881_v24  ;;  %v23238_v58 = vadd.f32 %v23158_v27, %v22887_v44 }
 0x731   :  { %25329 = vst [vmem:[#allocation104_spill] sm:$0xff] %v23194_v49  ;;  %25330 = vst [vmem:[#allocation112_spill] sm:$0xff] %v23198_v56  ;;  %v23242_v48 = vadd.f32 %v23158_v27, %v22893_v16  ;;  %v23246_v19 = vadd.f32 %v23158_v27, %v22899_v45  ;;  %v23250_v31 = vadd.f32 %v23158_v27, %v22905_v0  ;;  %vm10900_vm2 = vcmp.gt.f32.partialorder %v23218_v18, 0.0 }
 0x732   :  { %25331 = vst [vmem:[#allocation105_spill] sm:$0xff] %v23202_v1  ;;  %25332 = vst [vmem:[#allocation113_spill] sm:$0xff] %v23238_v58  ;;  %v23254_v57 = vadd.f32 %v23158_v27, %v22911_v52  ;;  %v23258_v24 = vadd.f32 %v23158_v27, %v22917_v32  ;;  %v23262_v44 = vadd.f32 %v23158_v27, %v22923_v60  ;;  %v25340_v60 = vld [vmem:[#allocation99_spill] sm:$0xff]  ;;  %vm10906_vm11 = vcmp.gt.f32.partialorder %v23230_v6, 0.0 }
 0x733   :  { %25333 = vst [vmem:[#allocation106_spill] sm:$0xff] %v23242_v48  ;;  %25334 = vst [vmem:[#allocation114_spill] sm:$0xff] %v23246_v19  ;;  %v23266_v16 = vadd.f32 %v23158_v27, %v22929_v26  ;;  %v23270_v45 = vadd.f32 %v23158_v27, %v22935_v3  ;;  %v23274_v0 = vadd.f32 %v23158_v27, %v22941_v59  ;;  %vm10908_vm12 = vcmp.gt.f32.partialorder %v23234_v2, 0.0 }
 0x734   :  { %25335 = vst [vmem:[#allocation107_spill] sm:$0xff] %v23250_v31  ;;  %25336 = vst [vmem:[#allocation115_spill] sm:$0xff] %v23254_v57  ;;  %v23278_v52 = vadd.f32 %v23158_v27, %v22947_v51  ;;  %v23282_v32 = vadd.f32 %v23158_v27, %v22953_v12  ;;  %v23286_v26 = vadd.f32 %v23158_v27, %v25340_v60 }
 0x735   :  { %25337 = vst [vmem:[#allocation108_spill] sm:$0xff] %v23266_v16  ;;  %v23290_v3 = vadd.f32 %v23158_v27, %v25342_v30  ;;  %v23294_v59 = vadd.f32 %v23158_v27, %v25344_v20  ;;  %v23298_v51 = vadd.f32 %v23158_v27, %v25346_v36  ;;  %v23302_v12 = vadd.f32 %v23158_v27, %v25348_v25  ;;  %v25387_v16 = vld [vmem:[#allocation100_spill] sm:$0xff] }
 0x736   :  { %25338 = vst [vmem:[#allocation116_spill] sm:$0xff] %v23278_v52  ;;  %25339 = vst [vmem:[#allocation47_spill] sm:$0xff] %v23282_v32  ;;  %v25350_v32 = vld [vmem:[#allocation95_spill] sm:$0xff] }
 0x737   :  { %25341 = vst [vmem:[#allocation49_spill] sm:$0xff] %v23286_v26  ;;  %25343 = vst [vmem:[#allocation75_spill] sm:$0xff] %v23290_v3  ;;  %v23306_v60 = vadd.f32 %v23158_v27, %v25350_v32  ;;  %v25352_v26 = vld [vmem:[#allocation96_spill] sm:$0xff]  ;;  %v25354_v3 = vld [vmem:[#allocation97_spill] sm:$0xff]  ;;  %v23326_v32 = vadd.f32 %v23158_v27, %v23019_v8  ;;  %v23346_v8 = vadd.f32 %v23158_v27, %v23049_v34 }
 0x738   :  { %25345 = vst [vmem:[#allocation51_spill] sm:$0xff] %v23294_v59  ;;  %25347 = vst [vmem:[#allocation53_spill] sm:$0xff] %v23298_v51  ;;  %v23310_v30 = vadd.f32 %v23158_v27, %v25352_v26  ;;  %v23314_v20 = vadd.f32 %v23158_v27, %v25354_v3  ;;  %v25356_v59 = vld [vmem:[#allocation98_spill] sm:$0xff]  ;;  %v25358_v51 = vld [vmem:[#allocation87_spill] sm:$0xff]  ;;  %v23330_v26 = vadd.f32 %v23158_v27, %v23025_v4 }
 0x739   :  { %25349 = vst [vmem:[#allocation55_spill] sm:$0xff] %v23302_v12  ;;  %25351 = vst [vmem:[#allocation57_spill] sm:$0xff] %v23306_v60  ;;  %v23318_v36 = vadd.f32 %v23158_v27, %v25356_v59  ;;  %v23322_v25 = vadd.f32 %v23158_v27, %v25358_v51  ;;  %v23334_v3 = vadd.f32 %v23158_v27, %v23031_v33 }
 0x73a   :  { %25353 = vst [vmem:[#allocation59_spill] sm:$0xff] %v23310_v30  ;;  %25355 = vst [vmem:[#allocation61_spill] sm:$0xff] %v23314_v20  ;;  %v23338_v59 = vadd.f32 %v23158_v27, %v23037_v29  ;;  %v23342_v51 = vadd.f32 %v23158_v27, %v23043_v9  ;;  %v23350_v4 = vadd.f32 %v23158_v27, %v23055_v43  ;;  %v25434_v20 = vld [vmem:[#allocation104_spill] sm:$0xff] }
 0x73b   :  { %25357 = vst [vmem:[#allocation63_spill] sm:$0xff] %v23318_v36  ;;  %25359 = vst [vmem:[#allocation65_spill] sm:$0xff] %v23322_v25  ;;  %v23354_v33 = vadd.f32 %v23158_v27, %v23061_v21  ;;  %v23358_v29 = vadd.f32 %v23158_v27, %v23067_v35  ;;  %v23362_v9 = vadd.f32 %v23158_v27, %v23073_v39  ;;  %v25433_v36 = vld [vmem:[#allocation111_spill] sm:$0xff]  ;;  %vm10888_vm14 = vcmp.gt.f32.partialorder %v25434_v20, 0.0 }
 0x73c   :  { %25360 = vst [vmem:[#allocation67_spill] sm:$0xff] %v23326_v32  ;;  %25361 = vst [vmem:[#allocation69_spill] sm:$0xff] %v23330_v26  ;;  %v23366_v34 = vadd.f32 %v23158_v27, %v23079_v22  ;;  %v23370_v43 = vadd.f32 %v23158_v27, %v23085_v17  ;;  %v23374_v21 = vadd.f32 %v23158_v27, %v23091_v40  ;;  %vm10886_vm13 = vcmp.gt.f32.partialorder %v25433_v36, 0.0 }
 0x73d   :  { %25362 = vst [vmem:[#allocation71_spill] sm:$0xff] %v23334_v3  ;;  %25363 = vst [vmem:[#allocation73_spill] sm:$0xff] %v23338_v59  ;;  %v23378_v35 = vadd.f32 %v23158_v27, %v23097_v55  ;;  %v23382_v39 = vadd.f32 %v23158_v27, %v23103_v23  ;;  %v23386_v22 = vadd.f32 %v23158_v27, %v23109_v7  ;;  %v25382_v58 = vld [vmem:[#allocation47_spill] sm:$0xff]  ;;  %v25426_v59 = vld [vmem:[#allocation110_spill] sm:$0xff] }
 0x73e   :  { %25364 = vst [vmem:[#allocation77_spill] sm:$0xff] %v23342_v51  ;;  %25365 = vst [vmem:[#allocation79_spill] sm:$0xff] %v23346_v8  ;;  %v23390_v17 = vadd.f32 %v23158_v27, %v23115_v42  ;;  %v23394_v40 = vadd.f32 %v23158_v27, %v23121_v46  ;;  %v23398_v55 = vadd.f32 %v23158_v27, %v23127_v15  ;;  %v11002_v46 = vmin.f32 %v23166_v47, 0.0  ;;  %v25383_v48 = vld [vmem:[#allocation49_spill] sm:$0xff]  ;;  %v25384_v19 = vld [vmem:[#allocation75_spill] sm:$0xff] }
 0x73f   :  { %25366 = vst [vmem:[#allocation81_spill] sm:$0xff] %v23350_v4  ;;  %25367 = vst [vmem:[#allocation85_spill] sm:$0xff] %v23354_v33  ;;  %v23402_v23 = vadd.f32 %v23158_v27, %v23133_v54  ;;  %v23406_v7 = vadd.f32 %v23158_v27, %v23139_v41  ;;  %v23410_v42 = vadd.f32 %v23158_v27, %v23145_v13  ;;  %v11006_v15 = vmin.f32 %v23174_v63, 0.0  ;;  %v25385_v31 = vld [vmem:[#allocation51_spill] sm:$0xff]  ;;  %v25386_v57 = vld [vmem:[#allocation53_spill] sm:$0xff] }
 0x740   :  { %25368 = vst [vmem:[#allocation83_spill] sm:$0xff] %v23358_v29  ;;  %25369 = vst [vmem:[#allocation52_spill] sm:$0xff] %v23362_v9  ;;  %v11010_v54 = vmin.f32 %v23182_v38, 0.0  ;;  %v11014_v41 = vmin.f32 %v23190_v37, 0.0  ;;  %v11018_v13 = vmin.f32 %v23198_v56, 0.0  ;;  %v23451_v37 = vadd.f32 %v23158_v27, %v25387_v16  ;;  %v25420_v9 = vld [vmem:[#allocation109_spill] sm:$0xff] }
 0x741   :  { %25370 = vst [vmem:[#allocation34_spill] sm:$0xff] %v23366_v34  ;;  %25371 = vst [vmem:[#allocation54_spill] sm:$0xff] %v23370_v43  ;;  %v11133_v56 = vmul.f32 1.442695, %v11002_v46  ;;  %v11141_v63 = vmul.f32 1.442695, %v11006_v15 }
 0x742   :  { %25372 = vst [vmem:[#allocation56_spill] sm:$0xff] %v23374_v21  ;;  %25373 = vst [vmem:[#allocation58_spill] sm:$0xff] %v23378_v35  ;;  %v11149_v16 = vmul.f32 1.442695, %v11010_v54  ;;  %v11157_v38 = vmul.f32 1.442695, %v11014_v41 }
 0x743   :  { %25374 = vst [vmem:[#allocation60_spill] sm:$0xff] %v23382_v39  ;;  %25375 = vst [vmem:[#allocation62_spill] sm:$0xff] %v23386_v22  ;;  %v25397_v54 = vmin.f32 %v23218_v18, 0.0  ;;  %v25414_v35 = vld [vmem:[#allocation101_spill] sm:$0xff]  ;;  %vm10878_vm7 = vcmp.gt.f32.partialorder %v25420_v9, 0.0  ;;  %v25421_v29 = vld [vmem:[#allocation102_spill] sm:$0xff] }
 0x744   :  { %25376 = vst [vmem:[#allocation64_spill] sm:$0xff] %v23390_v17  ;;  %25377 = vst [vmem:[#allocation66_spill] sm:$0xff] %v23394_v40  ;;  %v11000_v17 = vmin.f32 %v23162_v14, 0.0  ;;  %v11004_v40 = vmin.f32 %v23170_v61, 0.0  ;;  %v11020_v14 = vmin.f32 %v23202_v1, 0.0  ;;  %v25401_v61 = vmin.f32 %v23234_v2, 0.0 }
 0x745   :  { %25378 = vst [vmem:[#allocation68_spill] sm:$0xff] %v23398_v55  ;;  %25379 = vst [vmem:[#allocation70_spill] sm:$0xff] %v23402_v23  ;;  %v11008_v55 = vmin.f32 %v23178_v53, 0.0  ;;  %v11012_v23 = vmin.f32 %v23186_v5, 0.0  ;;  %vm10874_vm5 = vcmp.gt.f32.partialorder %v25414_v35, 0.0  ;;  %vm10880_vm8 = vcmp.gt.f32.partialorder %v25421_v29, 0.0 }
 0x746   :  { %25380 = vst [vmem:[#allocation72_spill] sm:$0xff] %v23406_v7  ;;  %25381 = vst [vmem:[#allocation74_spill] sm:$0xff] %v23410_v42  ;;  %v11016_v7 = vmin.f32 %v23194_v49, 0.0  ;;  %v11129_v49 = vmul.f32 1.442695, %v11000_v17  ;;  %v25400_v17 = vmin.f32 %v23230_v6, 0.0 }
 0x747   :  { %25388 = vst [vmem:[#allocation76_spill] sm:$0xff] %v23451_v37  ;;  %v11137_v52 = vmul.f32 1.442695, %v11004_v40  ;;  %v11145_v5 = vmul.f32 1.442695, %v11008_v55  ;;  %v25411_v55 = vld [vmem:[#allocation115_spill] sm:$0xff] }
 0x748   :  { %15011 = vpow2.f32 %v11129_v49  ;;  %v11153_v46 = vmul.f32 1.442695, %v11012_v23  ;;  %v11161_v27 = vmul.f32 1.442695, %v11016_v7  ;;  %v11165_v40 = vmul.f32 1.442695, %v11018_v13 }
 0x749   :  { %15013 = vpow2.f32 %v11133_v56  ;;  %v11169_v53 = vmul.f32 1.442695, %v11020_v14  ;;  %v25391_v13 = vmin.f32 %v23210_v62, 0.0  ;;  %vm10882_vm9 = vcmp.gt.f32.partialorder %v25426_v59, 0.0  ;;  %v25427_v3 = vld [vmem:[#allocation103_spill] sm:$0xff] }
 0x74a   :  { %15015 = vpow2.f32 %v11137_v52  ;;  %vm10884_vm10 = vcmp.gt.f32.partialorder %v25427_v3, 0.0 }
 0x74b   :  { %15017 = vpow2.f32 %v11141_v63  ;;  %v25394_v63 = vmin.f32 %v23214_v50, 0.0 }
 0x74c   :  { %15019 = vpow2.f32 %v11145_v5  ;;  %v25389_v5 = vmin.f32 %v23206_v10, 0.0 }
 0x74d   :  { %15021 = vpow2.f32 %v11149_v16  ;;  %v11177_v16 = vmul.f32 1.442695, %v25391_v13  ;;  %v11181_v41 = vmul.f32 1.442695, %v25394_v63  ;;  %v25399_v63 = vmin.f32 %v23226_v28, 0.0  ;;  %v25402_v13 = vld [vmem:[#allocation113_spill] sm:$0xff] }
 0x74e   :  { %15023 = vpow2.f32 %v11153_v46  ;;  %v11173_v7 = vmul.f32 1.442695, %v25389_v5  ;;  %v25403_v1 = vmin.f32 %v25402_v13, 0.0  ;;  %v25408_v46 = vld [vmem:[#allocation89_spill] sm:$0xff]  ;;  %vm10910_vm1 = vcmp.gt.f32.partialorder %v25402_v13, 0.0 }
 0x74f   :  { %15025 = vpow2.f32 %v11157_v38  ;;  %v11193_v15 = vmul.f32 1.442695, %v25399_v63  ;;  %vm10872_vm3 = vcmp.gt.f32.partialorder %v25408_v46, 0.0  ;;  %v25409_v63 = vld [vmem:[#allocation107_spill] sm:$0xff] }
 0x750   :  { %15027 = vpow2.f32 %v11161_v27  ;;  %v11185_v27 = vmul.f32 1.442695, %v25397_v54  ;;  %v11201_v54 = vmul.f32 1.442695, %v25401_v61  ;;  %v11205_v23 = vmul.f32 1.442695, %v25403_v1 }
 0x751   :  { %15029 = vpow2.f32 %v11165_v40  ;;  %v25398_v40 = vmin.f32 %v23222_v11, 0.0  ;;  %v25412_v61 = vmin.f32 %v25411_v55, 0.0 }
 0x752   :  { %v15012_v38 = vpop.eup %15011  ;;  %15031 = vpow2.f32 %v11169_v53  ;;  %v11197_v53 = vmul.f32 1.442695, %v25400_v17  ;;  %v25410_v17 = vmin.f32 %v25409_v63, 0.0 }
 0x753   :  { %v15014_v56 = vpop.eup %15013  ;;  %15033 = vpow2.f32 %v11173_v7  ;;  %v11189_v14 = vmul.f32 1.442695, %v25398_v40  ;;  %v25404_v7 = vld [vmem:[#allocation106_spill] sm:$0xff]  ;;  %v11221_v22 = vmul.f32 1.442695, %v25412_v61  ;;  %v25419_v61 = vmin.f32 %v23270_v45, 0.0 }
 0x754   :  { %v15016_v60 = vpop.eup %15015  ;;  %15035 = vpow2.f32 %v11177_v16  ;;  %v25405_v37 = vmin.f32 %v25404_v7, 0.0  ;;  %v25406_v40 = vld [vmem:[#allocation114_spill] sm:$0xff]  ;;  %v11217_v52 = vmul.f32 1.442695, %v25410_v17  ;;  %vm10912_vm4 = vcmp.gt.f32.partialorder %v25404_v7, 0.0 }
 0x755   :  { %v15018_v47 = vpop.eup %15017  ;;  %15037 = vpow2.f32 %v11181_v41  ;;  %v25407_v5 = vmin.f32 %v25406_v40, 0.0  ;;  %v25413_v41 = vmin.f32 %v23258_v24, 0.0  ;;  %v23523_v34 = vmul.f32 1.442695, %v25419_v61 }
 0x756   :  { %v11209_v42 = vmul.f32 1.442695, %v25405_v37  ;;  %v15020_v49 = vpop.eup %15019  ;;  %15039 = vpow2.f32 %v11185_v27  ;;  %v25415_v37 = vld [vmem:[#allocation90_spill] sm:$0xff]  ;;  %v25417_v27 = vld [vmem:[#allocation108_spill] sm:$0xff] }
 0x757   :  { %v11213_v16 = vmul.f32 1.442695, %v25407_v5  ;;  %v23509_v39 = vmul.f32 1.442695, %v25413_v41  ;;  %v15022_v1 = vpop.eup %15021  ;;  %vm10876_vm6 = vcmp.gt.f32.partialorder %v25415_v37, 0.0  ;;  %15041 = vpow2.f32 %v11189_v14 }
 0x758   :  { %v25416_v5 = vmin.f32 %v23262_v44, 0.0  ;;  %v25418_v43 = vmin.f32 %v25417_v27, 0.0  ;;  %v15024_v41 = vpop.eup %15023  ;;  %15043 = vpow2.f32 %v11193_v15  ;;  %v25422_v14 = vmin.f32 %v23274_v0, 0.0 }
 0x759   :  { %v15026_v61 = vpop.eup %15025  ;;  %15045 = vpow2.f32 %v11197_v53  ;;  %v25428_v15 = vmin.f32 %v25383_v48, 0.0  ;;  %v25435_v53 = vmin.f32 %v25386_v57, 0.0  ;;  %v12823_v57 = vadd.f32 -1.0, %v15014_v56 }
 0x75a   :  { %v23515_v21 = vmul.f32 1.442695, %v25416_v5  ;;  %v23519_v17 = vmul.f32 1.442695, %v25418_v43  ;;  %v23529_v33 = vmul.f32 1.442695, %v25422_v14  ;;  %15047 = vpow2.f32 %v11201_v54 }
 0x75b   :  { %v25423_v5 = vld [vmem:[#allocation116_spill] sm:$0xff]  ;;  %v25425_v43 = vmin.f32 %v25382_v58, 0.0  ;;  %v23543_v26 = vmul.f32 1.442695, %v25428_v15  ;;  %v25429_v14 = vmin.f32 %v25384_v19, 0.0  ;;  %v25437_v15 = vmin.f32 %v23302_v12, 0.0 }
 0x75c   :  { %v25424_v4 = vmin.f32 %v25423_v5, 0.0  ;;  %v23557_v58 = vmul.f32 1.442695, %v25435_v53  ;;  %15049 = vpow2.f32 %v11205_v23  ;;  %v25442_v54 = vmin.f32 %v23310_v30, 0.0 }
 0x75d   :  { %v23537_v51 = vmul.f32 1.442695, %v25425_v43  ;;  %v23547_v32 = vmul.f32 1.442695, %v25429_v14  ;;  %v15028_v43 = vpop.eup %15027  ;;  %v23561_v48 = vmul.f32 1.442695, %v25437_v15  ;;  %15051 = vpow2.f32 %v11209_v42 }
 0x75e   :  { %v23533_v8 = vmul.f32 1.442695, %v25424_v4  ;;  %v25431_v4 = vmin.f32 %v25385_v31, 0.0  ;;  %25436 = vst [vmem:[#allocation35_spill] sm:$0xff] %v23557_v58  ;;  %v25438_v14 = vld [vmem:[#allocation57_spill] sm:$0xff]  ;;  %v25440_v31 = vld [vmem:[#allocation112_spill] sm:$0xff]  ;;  %15053 = vpow2.f32 %v11213_v16 }
 0x75f   :  { %25430 = vst [vmem:[#allocation78_spill] sm:$0xff] %v23547_v32  ;;  %v25439_v19 = vmin.f32 %v25438_v14, 0.0  ;;  %vm10890_vm15 = vcmp.gt.f32.partialorder %v25440_v31, 0.0  ;;  %v23571_v32 = vmul.f32 1.442695, %v25442_v54  ;;  %v12821_v53 = vadd.f32 -1.0, %v15012_v38 }
 0x760   :  { %v23551_v25 = vmul.f32 1.442695, %v25431_v4  ;;  %v15030_v4 = vpop.eup %15029  ;;  %v12827_v15 = vadd.f32 -1.0, %v15018_v47  ;;  %v12829_v14 = vadd.f32 -1.0, %v15020_v49  ;;  %v12831_v23 = vadd.f32 -1.0, %v15022_v1 }
 0x761   :  { %v23565_v5 = vmul.f32 1.442695, %v25439_v19  ;;  %v15032_v58 = vpop.eup %15031  ;;  %v12825_v19 = vadd.f32 -1.0, %v15016_v60  ;;  %v12833_v54 = vadd.f32 -1.0, %v15024_v41  ;;  %v12835_v30 = vadd.f32 -1.0, %v15026_v61 }
 0x762   :  { %25432 = vst [vmem:[#allocation80_spill] sm:$0xff] %v23551_v25  ;;  %v25441_v25 = vld [vmem:[#allocation105_spill] sm:$0xff]  ;;  %v15034_v12 = vpop.eup %15033  ;;  %15055 = vpow2.f32 %v11217_v52  ;;  %v12837_v56 = vadd.f32 -1.0, %v15028_v43  ;;  %v12839_v42 = vadd.f32 -1.0, %v15030_v4  ;;  %v12841_v60 = vadd.f32 -1.0, %v15032_v58 }
 0x763   :  { %vm10892_vm0 = vcmp.gt.f32.partialorder %v25441_v25, 0.0  ;;  %v15036_v38 = vpop.eup %15035  ;;  %15057 = vpow2.f32 %v11221_v22  ;;  %v12843_v49 = vadd.f32 -1.0, %v15034_v12  ;;  %v11512_v1 = vsel %vm10872_vm3, %v25408_v46, %v12821_v53 }
 0x764   :  { %v15038_v47 = vpop.eup %15037  ;;  %v12845_v16 = vadd.f32 -1.0, %v15036_v38  ;;  %15059 = vpow2.f32 %v23509_v39  ;;  %v11514_v52 = vsel %vm10874_vm5, %v25414_v35, %v12823_v57  ;;  %v11516_v12 = vsel %vm10876_vm6, %v25415_v37, %v12825_v19  ;;  %11640 = vst [vmem:[%s24051_s7 + $0x8] sm:$0xff] %v11512_v1  ;;  %v25455_v1 = vld [vmem:[#allocation49_spill] sm:$0xff] }
 0x765   :  { %v15040_v41 = vpop.eup %15039  ;;  %v12847_v58 = vadd.f32 -1.0, %v15038_v47  ;;  %vm10914_vm3 = vcmp.gt.f32.partialorder %v25406_v40, 0.0  ;;  %15061 = vpow2.f32 %v23515_v21  ;;  %v11518_v39 = vsel %vm10878_vm7, %v25420_v9, %v12827_v15  ;;  %11642 = vst [vmem:[%s24051_s7 + $0x18] sm:$0xff] %v11514_v52  ;;  %11644 = vst [vmem:[%s24051_s7 + $0x28] sm:$0xff] %v11516_v12  ;;  %v25449_v15 = vld [vmem:[#allocation116_spill] sm:$0xff] }
 0x766   :  { %v15042_v22 = vpop.eup %15041  ;;  %v12849_v46 = vadd.f32 -1.0, %v15040_v41  ;;  %v11520_v57 = vsel %vm10880_vm8, %v25421_v29, %v12829_v14  ;;  %vm10916_vm5 = vcmp.gt.f32.partialorder %v25409_v63, 0.0  ;;  %15063 = vpow2.f32 %v23519_v17  ;;  %11646 = vst [vmem:[%s24051_s7 + $0x38] sm:$0xff] %v11518_v39  ;;  %v25456_v41 = vld [vmem:[#allocation63_spill] sm:$0xff]  ;;  %v25459_v39 = vld [vmem:[#allocation65_spill] sm:$0xff] }
 0x767   :  { %v15044_v35 = vpop.eup %15043  ;;  %v12851_v21 = vadd.f32 -1.0, %v15042_v22  ;;  %v11522_v9 = vsel %vm10882_vm9, %v25426_v59, %v12831_v23  ;;  %v11524_v29 = vsel %vm10884_vm10, %v25427_v3, %v12833_v54  ;;  %11648 = vst [vmem:[%s24051_s7 + $0x48] sm:$0xff] %v11520_v57  ;;  %vm10918_vm6 = vcmp.gt.f32.partialorder %v25411_v55, 0.0 }
 0x768   :  { %v15046_v37 = vpop.eup %15045  ;;  %15065 = vpow2.f32 %v23523_v34  ;;  %v12853_v17 = vadd.f32 -1.0, %v15044_v35  ;;  %v11526_v59 = vsel %vm10886_vm13, %v25433_v36, %v12835_v30  ;;  %v11528_v3 = vsel %vm10888_vm14, %v25434_v20, %v12837_v56  ;;  %11650 = vst [vmem:[%s24051_s7 + $0x58] sm:$0xff] %v11522_v9  ;;  %11652 = vst [vmem:[%s24051_s7 + $0x68] sm:$0xff] %v11524_v29  ;;  %v25451_v56 = vld [vmem:[#allocation47_spill] sm:$0xff] }
 0x769   :  { %v15048_v61 = vpop.eup %15047  ;;  %vm10920_vm7 = vcmp.gt.f32.partialorder %v23258_v24, 0.0  ;;  %15067 = vpow2.f32 %v23529_v33  ;;  %v12855_v34 = vadd.f32 -1.0, %v15046_v37  ;;  %v11530_v30 = vsel %vm10890_vm15, %v25440_v31, %v12839_v42  ;;  %11654 = vst [vmem:[%s24051_s7 + $0x78] sm:$0xff] %v11526_v59  ;;  %11656 = vst [vmem:[%s24051_s7 + $0x88] sm:$0xff] %v11528_v3  ;;  %v25450_v23 = vld [vmem:[#allocation80_spill] sm:$0xff]  ;;  %v25452_v42 = vld [vmem:[#allocation35_spill] sm:$0xff] }
 0x76a   :  { %v11532_v20 = vsel %vm10892_vm0, %v25441_v25, %v12841_v60  ;;  %v15050_v36 = vpop.eup %15049  ;;  %vm10922_vm8 = vcmp.gt.f32.partialorder %v23262_v44, 0.0  ;;  %15069 = vpow2.f32 %v23533_v8  ;;  %v12857_v33 = vadd.f32 -1.0, %v15048_v61  ;;  %11658 = vst [vmem:[%s24051_s7 + $0x98] sm:$0xff] %v11530_v30  ;;  %v25453_v60 = vld [vmem:[#allocation61_spill] sm:$0xff]  ;;  %v25461_v9 = vld [vmem:[#allocation51_spill] sm:$0xff] }
 0x76b   :  { %vm25443_vm9 = vcmp.gt.f32.partialorder %v23206_v10, 0.0  ;;  %vm25444_vm10 = vcmp.gt.f32.partialorder %v23210_v62, 0.0  ;;  %11660 = vst [vmem:[%s24051_s7 + $0xa8] sm:$0xff] %v11532_v20  ;;  %v15052_v43 = vpop.eup %15051  ;;  %vm10924_vm13 = vcmp.gt.f32.partialorder %v25417_v27, 0.0  ;;  %15071 = vpow2.f32 %v23537_v51  ;;  %v25462_v29 = vld [vmem:[#allocation67_spill] sm:$0xff]  ;;  %v25464_v3 = vld [vmem:[#allocation53_spill] sm:$0xff] }
 0x76c   :  { %v11534_v31 = vsel %vm25443_vm9, %v23206_v10, %v12843_v49  ;;  %v11536_v25 = vsel %vm25444_vm10, %v23210_v62, %v12845_v16  ;;  %v12859_v8 = vadd.f32 -1.0, %v15050_v36  ;;  %vm25445_vm14 = vcmp.gt.f32.partialorder %v23214_v50, 0.0  ;;  %v15054_v14 = vpop.eup %15053  ;;  %v25465_v61 = vld [vmem:[#allocation69_spill] sm:$0xff]  ;;  %v25467_v36 = vld [vmem:[#allocation55_spill] sm:$0xff] }
 0x76d   :  { %v11538_v10 = vsel %vm25445_vm14, %v23214_v50, %v12847_v58  ;;  %v11540_v62 = vsel %vm10900_vm2, %v23218_v18, %v12849_v46  ;;  %11662 = vst [vmem:[%s24051_s7 + $0xb8] sm:$0xff] %v11534_v31  ;;  %11664 = vst [vmem:[%s24051_s7 + $0xc8] sm:$0xff] %v11536_v25  ;;  %vm10926_vm15 = vcmp.gt.f32.partialorder %v23270_v45, 0.0  ;;  %15073 = vpow2.f32 %v23543_v26  ;;  %v15056_v4 = vpop.eup %15055  ;;  %v25448_v26 = vld [vmem:[#allocation78_spill] sm:$0xff]  ;;  %v25458_v46 = vld [vmem:[#allocation75_spill] sm:$0xff] }
 0x76e   :  { %v12861_v51 = vadd.f32 -1.0, %v15052_v43  ;;  %vm25446_vm0 = vcmp.gt.f32.partialorder %v23222_v11, 0.0  ;;  %vm25447_vm2 = vcmp.gt.f32.partialorder %v23226_v28, 0.0  ;;  %11666 = vst [vmem:[%s24051_s7 + $0xd8] sm:$0xff] %v11538_v10  ;;  %11668 = vst [vmem:[%s24051_s7 + $0xe8] sm:$0xff] %v11540_v62  ;;  %vm10928_vm9 = vcmp.gt.f32.partialorder %v23274_v0, 0.0  ;;  %v15058_v19 = vpop.eup %15057 }
 0x76f   :  { %v11542_v50 = vsel %vm25446_vm0, %v23222_v11, %v12851_v21  ;;  %v11544_v18 = vsel %vm25447_vm2, %v23226_v28, %v12853_v17  ;;  %15075 = vpow2.f32 %v25448_v26  ;;  %v12863_v53 = vadd.f32 -1.0, %v15054_v14  ;;  %v15060_v38 = vpop.eup %15059  ;;  %v25470_v10 = vld [vmem:[#allocation57_spill] sm:$0xff] }
 0x770   :  { %v11546_v11 = vsel %vm10906_vm11, %v23230_v6, %v12855_v34  ;;  %v11548_v28 = vsel %vm10908_vm12, %v23234_v2, %v12857_v33  ;;  %11670 = vst [vmem:[%s24051_s7 + $0xf8] sm:$0xff] %v11542_v50  ;;  %11672 = vst [vmem:[%s24051_s7 + $0x108] sm:$0xff] %v11544_v18  ;;  %vm10930_vm10 = vcmp.gt.f32.partialorder %v25449_v15, 0.0  ;;  %15077 = vpow2.f32 %v25450_v23  ;;  %v15062_v16 = vpop.eup %15061  ;;  %v25468_v33 = vld [vmem:[#allocation71_spill] sm:$0xff]  ;;  %v25471_v62 = vld [vmem:[#allocation73_spill] sm:$0xff] }
 0x771   :  { %v12865_v54 = vadd.f32 -1.0, %v15056_v4  ;;  %v11550_v6 = vsel %vm10910_vm1, %v25402_v13, %v12859_v8  ;;  %v11552_v2 = vsel %vm10912_vm4, %v25404_v7, %v12861_v51  ;;  %11674 = vst [vmem:[%s24051_s7 + $0x118] sm:$0xff] %v11546_v11  ;;  %11676 = vst [vmem:[%s24051_s7 + $0x128] sm:$0xff] %v11548_v28  ;;  %vm10932_vm11 = vcmp.gt.f32.partialorder %v25451_v56, 0.0  ;;  %v15064_v22 = vpop.eup %15063  ;;  %v25473_v4 = vld [vmem:[#allocation59_spill] sm:$0xff]  ;;  %v25474_v26 = vld [vmem:[#allocation77_spill] sm:$0xff] }
 0x772   :  { %15079 = vpow2.f32 %v25452_v42  ;;  %v25454_v47 = vmin.f32 %v25453_v60, 0.0  ;;  %v12867_v49 = vadd.f32 -1.0, %v15058_v19  ;;  %v11554_v7 = vsel %vm10914_vm3, %v25406_v40, %v12863_v53  ;;  %11678 = vst [vmem:[%s24051_s7 + $0x138] sm:$0xff] %v11550_v6  ;;  %11680 = vst [vmem:[%s24051_s7 + $0x148] sm:$0xff] %v11552_v2  ;;  %v25476_v23 = vld [vmem:[#allocation79_spill] sm:$0xff]  ;;  %v25478_v42 = vld [vmem:[#allocation81_spill] sm:$0xff] }
 0x773   :  { %vm10934_vm4 = vcmp.gt.f32.partialorder %v25455_v1, 0.0  ;;  %15081 = vpow2.f32 %v23561_v48  ;;  %v25457_v58 = vmin.f32 %v25456_v41, 0.0  ;;  %v12869_v12 = vadd.f32 -1.0, %v15060_v38  ;;  %11682 = vst [vmem:[%s24051_s7 + $0x158] sm:$0xff] %v11554_v7 }
 0x774   :  { %v11281_v13 = vmul.f32 1.442695, %v25454_v47  ;;  %v11556_v40 = vsel %vm10916_vm5, %v25409_v63, %v12865_v54  ;;  %vm10936_vm12 = vcmp.gt.f32.partialorder %v25458_v46, 0.0  ;;  %15083 = vpow2.f32 %v23565_v5  ;;  %v15066_v63 = vpop.eup %15065 }
 0x775   :  { %v11285_v52 = vmul.f32 1.442695, %v25457_v58  ;;  %v25460_v57 = vmin.f32 %v25459_v39, 0.0  ;;  %v12871_v35 = vadd.f32 -1.0, %v15062_v16  ;;  %v11558_v21 = vsel %vm10918_vm6, %v25411_v55, %v12867_v49  ;;  %11684 = vst [vmem:[%s24051_s7 + $0x168] sm:$0xff] %v11556_v40  ;;  %v15068_v55 = vpop.eup %15067  ;;  %v25480_v16 = vld [vmem:[#allocation85_spill] sm:$0xff] }
 0x776   :  { %vm10938_vm1 = vcmp.gt.f32.partialorder %v25461_v9, 0.0  ;;  %15085 = vpow2.f32 %v23571_v32  ;;  %v25463_v37 = vmin.f32 %v25462_v29, 0.0  ;;  %v12873_v17 = vadd.f32 -1.0, %v15064_v22  ;;  %11686 = vst [vmem:[%s24051_s7 + $0x178] sm:$0xff] %v11558_v21  ;;  %v25482_v22 = vld [vmem:[#allocation83_spill] sm:$0xff] }
 0x777   :  { %v11289_v48 = vmul.f32 1.442695, %v25460_v57  ;;  %v11560_v59 = vsel %vm10920_vm7, %v23258_v24, %v12869_v12  ;;  %vm10940_vm3 = vcmp.gt.f32.partialorder %v25464_v3, 0.0  ;;  %15087 = vpow2.f32 %v11281_v13  ;;  %v15070_v24 = vpop.eup %15069 }
 0x778   :  { %v11293_v5 = vmul.f32 1.442695, %v25463_v37  ;;  %v25466_v34 = vmin.f32 %v25465_v61, 0.0  ;;  %v12875_v32 = vadd.f32 -1.0, %v15066_v63  ;;  %v11562_v20 = vsel %vm10922_vm8, %v23262_v44, %v12871_v35  ;;  %11688 = vst [vmem:[%s24051_s7 + $0x188] sm:$0xff] %v11560_v59  ;;  %v15072_v44 = vpop.eup %15071  ;;  %v25484_v63 = vld [vmem:[#allocation52_spill] sm:$0xff] }
 0x779   :  { %vm10942_vm5 = vcmp.gt.f32.partialorder %v25467_v36, 0.0  ;;  %15089 = vpow2.f32 %v11285_v52  ;;  %v25469_v31 = vmin.f32 %v25468_v33, 0.0  ;;  %v12877_v43 = vadd.f32 -1.0, %v15068_v55  ;;  %11690 = vst [vmem:[%s24051_s7 + $0x198] sm:$0xff] %v11562_v20  ;;  %v25486_v55 = vld [vmem:[#allocation34_spill] sm:$0xff] }
 0x77a   :  { %v11297_v30 = vmul.f32 1.442695, %v25466_v34  ;;  %v11564_v8 = vsel %vm10924_vm13, %v25417_v27, %v12873_v17  ;;  %vm10944_vm6 = vcmp.gt.f32.partialorder %v25470_v10, 0.0  ;;  %15091 = vpow2.f32 %v11289_v48  ;;  %v15074_v27 = vpop.eup %15073 }
 0x77b   :  { %v11301_v25 = vmul.f32 1.442695, %v25469_v31  ;;  %v25472_v14 = vmin.f32 %v25471_v62, 0.0  ;;  %v12879_v50 = vadd.f32 -1.0, %v15070_v24  ;;  %v11566_v18 = vsel %vm10926_vm15, %v23270_v45, %v12875_v32  ;;  %11692 = vst [vmem:[%s24051_s7 + $0x1a8] sm:$0xff] %v11564_v8  ;;  %v15076_v45 = vpop.eup %15075  ;;  %v25488_v24 = vld [vmem:[#allocation54_spill] sm:$0xff] }
 0x77c   :  { %vm10946_vm7 = vcmp.gt.f32.partialorder %v25473_v4, 0.0  ;;  %15093 = vpow2.f32 %v11293_v5  ;;  %v25475_v53 = vmin.f32 %v25474_v26, 0.0  ;;  %v12881_v28 = vadd.f32 -1.0, %v15072_v44  ;;  %11694 = vst [vmem:[%s24051_s7 + $0x1b8] sm:$0xff] %v11566_v18  ;;  %v25490_v44 = vld [vmem:[#allocation56_spill] sm:$0xff] }
 0x77d   :  { %v11305_v51 = vmul.f32 1.442695, %v25472_v14  ;;  %v11568_v19 = vsel %vm10928_vm9, %v23274_v0, %v12877_v43  ;;  %vm10948_vm8 = vcmp.gt.f32.partialorder %v25453_v60, 0.0  ;;  %15095 = vpow2.f32 %v11297_v30  ;;  %v15078_v0 = vpop.eup %15077 }
 0x77e   :  { %v11309_v11 = vmul.f32 1.442695, %v25475_v53  ;;  %v25477_v54 = vmin.f32 %v25476_v23, 0.0  ;;  %v12883_v2 = vadd.f32 -1.0, %v15074_v27  ;;  %v11570_v38 = vsel %vm10930_vm10, %v25449_v15, %v12879_v50  ;;  %11696 = vst [vmem:[%s24051_s7 + $0x1c8] sm:$0xff] %v11568_v19  ;;  %v15080_v15 = vpop.eup %15079  ;;  %v25492_v27 = vld [vmem:[#allocation58_spill] sm:$0xff] }
 0x77f   :  { %vm10950_vm13 = vcmp.gt.f32.partialorder %v25456_v41, 0.0  ;;  %15097 = vpow2.f32 %v11301_v25  ;;  %v25479_v47 = vmin.f32 %v25478_v42, 0.0  ;;  %v12885_v49 = vadd.f32 -1.0, %v15076_v45  ;;  %11698 = vst [vmem:[%s24051_s7 + $0x1d8] sm:$0xff] %v11570_v38  ;;  %v25494_v45 = vld [vmem:[#allocation60_spill] sm:$0xff] }
 0x780   :  { %v11313_v6 = vmul.f32 1.442695, %v25477_v54  ;;  %v11572_v7 = vsel %vm10932_vm11, %v25451_v56, %v12881_v28  ;;  %vm10952_vm14 = vcmp.gt.f32.partialorder %v25459_v39, 0.0  ;;  %15099 = vpow2.f32 %v11305_v51  ;;  %v15082_v56 = vpop.eup %15081 }
 0x781   :  { %v11317_v13 = vmul.f32 1.442695, %v25479_v47  ;;  %v25481_v58 = vmin.f32 %v25480_v16, 0.0  ;;  %v12887_v12 = vadd.f32 -1.0, %v15078_v0  ;;  %v11574_v40 = vsel %vm10934_vm4, %v25455_v1, %v12883_v2  ;;  %11700 = vst [vmem:[%s24051_s7 + $0x1e8] sm:$0xff] %v11572_v7  ;;  %v15084_v1 = vpop.eup %15083  ;;  %v25496_v0 = vld [vmem:[#allocation62_spill] sm:$0xff] }
 0x782   :  { %vm10954_vm15 = vcmp.gt.f32.partialorder %v25462_v29, 0.0  ;;  %15101 = vpow2.f32 %v11309_v11  ;;  %v25483_v57 = vmin.f32 %v25482_v22, 0.0  ;;  %v12889_v35 = vadd.f32 -1.0, %v15080_v15  ;;  %11702 = vst [vmem:[%s24051_s7 + $0x1f8] sm:$0xff] %v11574_v40 }
 0x783   :  { %v11321_v52 = vmul.f32 1.442695, %v25481_v58  ;;  %v11576_v21 = vsel %vm10936_vm12, %v25458_v46, %v12885_v49  ;;  %vm10956_vm0 = vcmp.gt.f32.partialorder %v25465_v61, 0.0  ;;  %15103 = vpow2.f32 %v11313_v6  ;;  %v15086_v46 = vpop.eup %15085 }
 0x784   :  { %v11325_v48 = vmul.f32 1.442695, %v25483_v57  ;;  %v25485_v37 = vmin.f32 %v25484_v63, 0.0  ;;  %v12891_v17 = vadd.f32 -1.0, %v15082_v56  ;;  %v11578_v59 = vsel %vm10938_vm1, %v25461_v9, %v12887_v12  ;;  %11704 = vst [vmem:[%s24051_s7 + $0x208] sm:$0xff] %v11576_v21  ;;  %v15088_v9 = vpop.eup %15087 }
 0x785   :  { %vm10958_vm2 = vcmp.gt.f32.partialorder %v25468_v33, 0.0  ;;  %15105 = vpow2.f32 %v11317_v13  ;;  %v25487_v34 = vmin.f32 %v25486_v55, 0.0  ;;  %v12893_v32 = vadd.f32 -1.0, %v15084_v1  ;;  %11706 = vst [vmem:[%s24051_s7 + $0x218] sm:$0xff] %v11578_v59 }
 0x786   :  { %v11329_v5 = vmul.f32 1.442695, %v25485_v37  ;;  %v11580_v20 = vsel %vm10940_vm3, %v25464_v3, %v12889_v35  ;;  %vm10960_vm9 = vcmp.gt.f32.partialorder %v25471_v62, 0.0  ;;  %15107 = vpow2.f32 %v11321_v52  ;;  %v15090_v3 = vpop.eup %15089 }
 0x787   :  { %v11333_v30 = vmul.f32 1.442695, %v25487_v34  ;;  %v25489_v31 = vmin.f32 %v25488_v24, 0.0  ;;  %v12895_v43 = vadd.f32 -1.0, %v15086_v46  ;;  %v11582_v8 = vsel %vm10942_vm5, %v25467_v36, %v12891_v17  ;;  %11708 = vst [vmem:[%s24051_s7 + $0x228] sm:$0xff] %v11580_v20  ;;  %v15092_v36 = vpop.eup %15091 }
 0x788   :  { %vm10962_vm10 = vcmp.gt.f32.partialorder %v25474_v26, 0.0  ;;  %15109 = vpow2.f32 %v11325_v48  ;;  %v25491_v14 = vmin.f32 %v25490_v44, 0.0  ;;  %v12897_v50 = vadd.f32 -1.0, %v15088_v9  ;;  %11710 = vst [vmem:[%s24051_s7 + $0x238] sm:$0xff] %v11582_v8 }
 0x789   :  { %v11337_v25 = vmul.f32 1.442695, %v25489_v31  ;;  %v11584_v18 = vsel %vm10944_vm6, %v25470_v10, %v12893_v32  ;;  %vm10964_vm11 = vcmp.gt.f32.partialorder %v25476_v23, 0.0  ;;  %15111 = vpow2.f32 %v11329_v5  ;;  %v15094_v10 = vpop.eup %15093 }
 0x78a   :  { %v11341_v51 = vmul.f32 1.442695, %v25491_v14  ;;  %v25493_v53 = vmin.f32 %v25492_v27, 0.0  ;;  %v12899_v28 = vadd.f32 -1.0, %v15090_v3  ;;  %v11586_v19 = vsel %vm10946_vm7, %v25473_v4, %v12895_v43  ;;  %11712 = vst [vmem:[%s24051_s7 + $0x248] sm:$0xff] %v11584_v18  ;;  %v15096_v4 = vpop.eup %15095 }
 0x78b   :  { %vm10966_vm4 = vcmp.gt.f32.partialorder %v25478_v42, 0.0  ;;  %15113 = vpow2.f32 %v11333_v30  ;;  %v25495_v54 = vmin.f32 %v25494_v45, 0.0  ;;  %v12901_v2 = vadd.f32 -1.0, %v15092_v36  ;;  %11714 = vst [vmem:[%s24051_s7 + $0x258] sm:$0xff] %v11586_v19  ;;  %v15098_v15 = vpop.eup %15097 }
 0x78c   :  { %v11345_v11 = vmul.f32 1.442695, %v25493_v53  ;;  %v11588_v38 = vsel %vm10948_vm8, %v25453_v60, %v12897_v50  ;;  %15115 = vpow2.f32 %v11337_v25  ;;  %v25497_v47 = vmin.f32 %v25496_v0, 0.0  ;;  %v25498_v60 = vld [vmem:[#allocation64_spill] sm:$0xff]  ;;  %v15100_v56 = vpop.eup %15099 }
 0x78d   :  { %v11349_v6 = vmul.f32 1.442695, %v25495_v54  ;;  %v12903_v49 = vadd.f32 -1.0, %v15094_v10  ;;  %v11590_v7 = vsel %vm10950_vm13, %v25456_v41, %v12899_v28  ;;  %11716 = vst [vmem:[%s24051_s7 + $0x268] sm:$0xff] %v11588_v38  ;;  %15117 = vpow2.f32 %v11341_v51  ;;  %v25500_v41 = vld [vmem:[#allocation66_spill] sm:$0xff]  ;;  %v15102_v1 = vpop.eup %15101 }
 0x78e   :  { %v11353_v13 = vmul.f32 1.442695, %v25497_v47  ;;  %v25499_v58 = vmin.f32 %v25498_v60, 0.0  ;;  %v12905_v12 = vadd.f32 -1.0, %v15096_v4  ;;  %v11592_v40 = vsel %vm10952_vm14, %v25459_v39, %v12901_v2  ;;  %11718 = vst [vmem:[%s24051_s7 + $0x278] sm:$0xff] %v11590_v7  ;;  %v25502_v39 = vld [vmem:[#allocation68_spill] sm:$0xff]  ;;  %v15104_v46 = vpop.eup %15103 }
 0x78f   :  { %15119 = vpow2.f32 %v11345_v11  ;;  %v25501_v57 = vmin.f32 %v25500_v41, 0.0  ;;  %v12907_v35 = vadd.f32 -1.0, %v15098_v15  ;;  %v11594_v21 = vsel %vm10954_vm15, %v25462_v29, %v12903_v49  ;;  %11720 = vst [vmem:[%s24051_s7 + $0x288] sm:$0xff] %v11592_v40  ;;  %v25504_v29 = vld [vmem:[#allocation70_spill] sm:$0xff]  ;;  %v15106_v9 = vpop.eup %15105 }
 0x790   :  { %v11357_v52 = vmul.f32 1.442695, %v25499_v58  ;;  %15121 = vpow2.f32 %v11349_v6  ;;  %v25503_v37 = vmin.f32 %v25502_v39, 0.0  ;;  %v12909_v17 = vadd.f32 -1.0, %v15100_v56  ;;  %11722 = vst [vmem:[%s24051_s7 + $0x298] sm:$0xff] %v11594_v21  ;;  %v15108_v3 = vpop.eup %15107 }
 0x791   :  { %v11361_v48 = vmul.f32 1.442695, %v25501_v57  ;;  %v11596_v59 = vsel %vm10956_vm0, %v25465_v61, %v12905_v12  ;;  %15123 = vpow2.f32 %v11353_v13  ;;  %v25505_v34 = vmin.f32 %v25504_v29, 0.0  ;;  %v25506_v61 = vld [vmem:[#allocation72_spill] sm:$0xff] }
 0x792   :  { %v11365_v5 = vmul.f32 1.442695, %v25503_v37  ;;  %v12911_v32 = vadd.f32 -1.0, %v15102_v1  ;;  %v11598_v20 = vsel %vm10958_vm2, %v25468_v33, %v12907_v35  ;;  %11724 = vst [vmem:[%s24051_s7 + $0x2a8] sm:$0xff] %v11596_v59  ;;  %15125 = vpow2.f32 %v11357_v52  ;;  %v25508_v33 = vld [vmem:[#allocation74_spill] sm:$0xff]  ;;  %v15110_v36 = vpop.eup %15109 }
 0x793   :  { %v11369_v30 = vmul.f32 1.442695, %v25505_v34  ;;  %v25507_v31 = vmin.f32 %v25506_v61, 0.0  ;;  %v12913_v43 = vadd.f32 -1.0, %v15104_v46  ;;  %v11600_v8 = vsel %vm10960_vm9, %v25471_v62, %v12909_v17  ;;  %11726 = vst [vmem:[%s24051_s7 + $0x2b8] sm:$0xff] %v11598_v20  ;;  %v25510_v62 = vld [vmem:[#allocation76_spill] sm:$0xff]  ;;  %v15112_v10 = vpop.eup %15111 }
 0x794   :  { %15127 = vpow2.f32 %v11361_v48  ;;  %v25509_v14 = vmin.f32 %v25508_v33, 0.0  ;;  %v12915_v50 = vadd.f32 -1.0, %v15106_v9  ;;  %v11602_v18 = vsel %vm10962_vm10, %v25474_v26, %v12911_v32  ;;  %11728 = vst [vmem:[%s24051_s7 + $0x2c8] sm:$0xff] %v11600_v8 }
 0x795   :  { %v11373_v25 = vmul.f32 1.442695, %v25507_v31  ;;  %15129 = vpow2.f32 %v11365_v5  ;;  %v25511_v53 = vmin.f32 %v25510_v62, 0.0  ;;  %v12917_v28 = vadd.f32 -1.0, %v15108_v3  ;;  %11730 = vst [vmem:[%s24051_s7 + $0x2d8] sm:$0xff] %v11602_v18  ;;  %v15114_v6 = vpop.eup %15113 }
 0x796   :  { %v11377_v51 = vmul.f32 1.442695, %v25509_v14  ;;  %v11604_v19 = vsel %vm10964_vm11, %v25476_v23, %v12913_v43  ;;  %vm10968_vm12 = vcmp.gt.f32.partialorder %v25480_v16, 0.0  ;;  %15131 = vpow2.f32 %v11369_v30  ;;  %v15116_v38 = vpop.eup %15115 }
 0x797   :  { %v11381_v11 = vmul.f32 1.442695, %v25511_v53  ;;  %v12919_v26 = vadd.f32 -1.0, %v15110_v36  ;;  %v11606_v54 = vsel %vm10966_vm4, %v25478_v42, %v12915_v50  ;;  %11732 = vst [vmem:[%s24051_s7 + $0x2e8] sm:$0xff] %v11604_v19  ;;  %vm10970_vm1 = vcmp.gt.f32.partialorder %v25482_v22, 0.0  ;;  %v15118_v47 = vpop.eup %15117 }
 0x798   :  { %15133 = vpow2.f32 %v11373_v25  ;;  %v12921_v23 = vadd.f32 -1.0, %v15112_v10  ;;  %v11608_v2 = vsel %vm10968_vm12, %v25480_v16, %v12917_v28  ;;  %11734 = vst [vmem:[%s24051_s7 + $0x2f8] sm:$0xff] %v11606_v54  ;;  %vm10972_vm3 = vcmp.gt.f32.partialorder %v25484_v63, 0.0 }
 0x799   :  { %15135 = vpow2.f32 %v11377_v51  ;;  %v12923_v42 = vadd.f32 -1.0, %v15114_v6  ;;  %v11610_v4 = vsel %vm10970_vm1, %v25482_v22, %v12919_v26  ;;  %11736 = vst [vmem:[%s24051_s7 + $0x308] sm:$0xff] %v11608_v2  ;;  %vm10974_vm5 = vcmp.gt.f32.partialorder %v25486_v55, 0.0  ;;  %v15120_v49 = vpop.eup %15119 }
 0x79a   :  { %15137 = vpow2.f32 %v11381_v11  ;;  %v12925_v16 = vadd.f32 -1.0, %v15116_v38  ;;  %v11612_v13 = vsel %vm10972_vm3, %v25484_v63, %v12921_v23  ;;  %11738 = vst [vmem:[%s24051_s7 + $0x318] sm:$0xff] %v11610_v4  ;;  %vm10976_vm6 = vcmp.gt.f32.partialorder %v25488_v24, 0.0  ;;  %v15122_v15 = vpop.eup %15121 }
 0x79b   :  { %v12927_v7 = vadd.f32 -1.0, %v15118_v47  ;;  %v11614_v22 = vsel %vm10974_vm5, %v25486_v55, %v12923_v42  ;;  %11740 = vst [vmem:[%s24051_s7 + $0x328] sm:$0xff] %v11612_v13  ;;  %vm10978_vm7 = vcmp.gt.f32.partialorder %v25490_v44, 0.0  ;;  %v12929_v58 = vadd.f32 -1.0, %v15120_v49  ;;  %v15124_v52 = vpop.eup %15123 }
 0x79c   :  { %v11616_v63 = vsel %vm10976_vm6, %v25488_v24, %v12925_v16  ;;  %11742 = vst [vmem:[%s24051_s7 + $0x338] sm:$0xff] %v11614_v22  ;;  %vm10980_vm8 = vcmp.gt.f32.partialorder %v25492_v27, 0.0  ;;  %v12931_v12 = vadd.f32 -1.0, %v15122_v15  ;;  %v15126_v40 = vpop.eup %15125  ;;  %vm10982_vm13 = vcmp.gt.f32.partialorder %v25494_v45, 0.0 }
 0x79d   :  { %v11618_v55 = vsel %vm10978_vm7, %v25490_v44, %v12927_v7  ;;  %11744 = vst [vmem:[%s24051_s7 + $0x348] sm:$0xff] %v11616_v63  ;;  %v12933_v56 = vadd.f32 -1.0, %v15124_v52  ;;  %v11620_v24 = vsel %vm10980_vm8, %v25492_v27, %v12929_v58  ;;  %vm10984_vm14 = vcmp.gt.f32.partialorder %v25496_v0, 0.0 }
 0x79e   :  { %11746 = vst [vmem:[%s24051_s7 + $0x358] sm:$0xff] %v11618_v55  ;;  %v15128_v57 = vpop.eup %15127  ;;  %v12935_v48 = vadd.f32 -1.0, %v15126_v40  ;;  %v11622_v44 = vsel %vm10982_vm13, %v25494_v45, %v12931_v12  ;;  %11748 = vst [vmem:[%s24051_s7 + $0x368] sm:$0xff] %v11620_v24  ;;  %vm10986_vm15 = vcmp.gt.f32.partialorder %v25498_v60, 0.0  ;;  %vm10988_vm0 = vcmp.gt.f32.partialorder %v25500_v41, 0.0 }
 0x79f   :  { %v15130_v35 = vpop.eup %15129  ;;  %v12937_v21 = vadd.f32 -1.0, %v15128_v57  ;;  %v11624_v27 = vsel %vm10984_vm14, %v25496_v0, %v12933_v56  ;;  %11750 = vst [vmem:[%s24051_s7 + $0x378] sm:$0xff] %v11622_v44  ;;  %vm10990_vm2 = vcmp.gt.f32.partialorder %v25502_v39, 0.0  ;;  %vm10992_vm9 = vcmp.gt.f32.partialorder %v25504_v29, 0.0 }
 0x7a0   :  { %v15132_v1 = vpop.eup %15131  ;;  %v12939_v37 = vadd.f32 -1.0, %v15130_v35  ;;  %v11626_v45 = vsel %vm10986_vm15, %v25498_v60, %v12935_v48  ;;  %11752 = vst [vmem:[%s24051_s7 + $0x388] sm:$0xff] %v11624_v27  ;;  %vm10994_vm10 = vcmp.gt.f32.partialorder %v25506_v61, 0.0  ;;  %vm10996_vm11 = vcmp.gt.f32.partialorder %v25508_v33, 0.0 }
 0x7a1   :  { %v12941_v17 = vadd.f32 -1.0, %v15132_v1  ;;  %v11628_v0 = vsel %vm10988_vm0, %v25500_v41, %v12937_v21  ;;  %11754 = vst [vmem:[%s24051_s7 + $0x398] sm:$0xff] %v11626_v45  ;;  %vm10998_vm4 = vcmp.gt.f32.partialorder %v25510_v62, 0.0 }
 0x7a2   :  { %v15134_v5 = vpop.eup %15133  ;;  %v11630_v60 = vsel %vm10990_vm2, %v25502_v39, %v12939_v37  ;;  %11756 = vst [vmem:[%s24051_s7 + $0x3a8] sm:$0xff] %v11628_v0 }
 0x7a3   :  { %v15136_v59 = vpop.eup %15135  ;;  %v12943_v46 = vadd.f32 -1.0, %v15134_v5  ;;  %v11632_v41 = vsel %vm10992_vm9, %v25504_v29, %v12941_v17  ;;  %11758 = vst [vmem:[%s24051_s7 + $0x3b8] sm:$0xff] %v11630_v60 }
 0x7a4   :  { %v15138_v34 = vpop.eup %15137  ;;  %v12945_v30 = vadd.f32 -1.0, %v15136_v59  ;;  %11760 = vst [vmem:[%s24051_s7 + $0x3c8] sm:$0xff] %v11632_v41 }
 0x7a5   :  { %v12947_v32 = vadd.f32 -1.0, %v15138_v34  ;;  %v11634_v20 = vsel %vm10994_vm10, %v25506_v61, %v12943_v46 }
 0x7a6   :  { %v11636_v39 = vsel %vm10996_vm11, %v25508_v33, %v12945_v30  ;;  %11762 = vst [vmem:[%s24051_s7 + $0x3d8] sm:$0xff] %v11634_v20 }
 0x7a7   :  { %v11638_v29 = vsel %vm10998_vm4, %v25510_v62, %v12947_v32  ;;  %11764 = vst [vmem:[%s24051_s7 + $0x3e8] sm:$0xff] %v11636_v39 }
 0x7a8   :  { %11766 = vst [vmem:[%s24051_s7 + $0x3f8] sm:$0xff] %v11638_v29 }

</bundles_post_ra>
